<compile_context>
chip_gen: v5e
topology: v5e:2x2
jax: 0.10.0
libtpu: 0.0.40
codegen_flags: <defaults>
</compile_context>

<pallas_src>
import functools

import jax
import jax.numpy as jnp
from jax.experimental import pallas as pl
from jax.experimental.pallas import tpu as pltpu

TILE_M = 1024   # max rows of the im2col matrix per grid step
LANE = 128      # TPU lane width (block_m alignment for multi-block grids)


def _round_up(x, m):
    return ((x + m - 1) // m) * m


def _choose_block_m(M):
    """Block size along M.

    * M < 256: one full-dim block (grid=1) -- laterals, extras, head levels.
    * M >= 256: at least two 128-aligned blocks so ("parallel",) shards the
      grid across both TensorCores on v7x; capped at TILE_M.  On single-TC
      v5e/v6e the extra grid step costs ~0.35 us, accepted per review.
    """
    if M < 256:
        return M
    half = _round_up((M + 1) // 2, LANE)
    return min(TILE_M, half)


# ----------------------------- Pallas kernel ------------------------------ #
def _matmul_bias_kernel(x_ref, w_ref, b_ref, o_ref, *, relu):
    # x_ref: (bm, K) f32   w_ref: (K, N) bf16   b_ref: (1, N) f32
    # o_ref: (bm, N) f32
    x = x_ref[...].astype(jnp.bfloat16)                        # MXU feed cast
    acc = jnp.dot(x, w_ref[...], preferred_element_type=jnp.float32)
    acc = acc + b_ref[...]                                     # f32 epilogue
    if relu:
        acc = jnp.maximum(acc, 0.0)
    o_ref[...] = acc.astype(o_ref.dtype)


def matmul_bias(x, w, b, relu=False):
    """(M, K) f32 @ (K, N) bf16 + b, tiled over M with a Pallas TPU kernel.

    Weights/bias arrive pre-packed ((K, N) bf16 / (1, N) f32): no pads, casts
    or reshapes inside the traced forward.  K and N use the full-dim BlockSpec
    exception; the ragged last M block is masked by Pallas.
    """
    M, K = x.shape
    Kw, N = w.shape
    assert K == Kw and b.shape == (1, N)
    block_m = _choose_block_m(M)
    return pl.pallas_call(
        functools.partial(_matmul_bias_kernel, relu=relu),
        out_shape=jax.ShapeDtypeStruct((M, N), jnp.float32),
        grid=(pl.cdiv(M, block_m),),
        in_specs=[
            pl.BlockSpec((block_m, K), lambda i: (i, 0)),
            pl.BlockSpec((K, N), lambda i: (0, 0)),
            pl.BlockSpec((1, N), lambda i: (0, 0)),
        ],
        out_specs=pl.BlockSpec((block_m, N), lambda i: (i, 0)),
        compiler_params=pltpu.CompilerParams(
            dimension_semantics=("parallel",),
            vmem_limit_bytes=32 * 1024 * 1024),
    )(x, w, b)


# ------------------------------ conv wrappers ------------------------------ #
def _im2col(x, KH, KW, stride, padding):
    """NHWC -> (B*Ho*Wo, KH*KW*C) patch matrix (plain-JAX glue)."""
    B, H, W, C = x.shape
    if padding:
        x = jnp.pad(x, ((0, 0), (padding, padding), (padding, padding), (0, 0)))
    Ho = (H + 2 * padding - KH) // stride + 1
    Wo = (W + 2 * padding - KW) // stride + 1
    if KH == 1 and KW == 1:
        if stride != 1:
            x = x[:, ::stride, ::stride, :]
        return x.reshape(B * Ho * Wo, C), (B, Ho, Wo)
    patches = [
        x[:, kh:kh + (Ho - 1) * stride + 1:stride,
          kw:kw + (Wo - 1) * stride + 1:stride, :]
        for kh in range(KH) for kw in range(KW)
    ]
    xm = jnp.concatenate(patches, axis=-1).reshape(B * Ho * Wo, KH * KW * C)
    return xm, (B, Ho, Wo)


def conv2d_p(x, p, k, stride=1, padding=1, relu=False):
    """NHWC conv2d via im2col (glue) + Pallas matmul (hot path).
    `p` holds pre-packed {"w": (k*k*Cin, Cout) bf16, "b": (1, Cout) f32}."""
    xm, (B, Ho, Wo) = _im2col(x, k, k, stride, padding)
    out = matmul_bias(xm, p["w"], p["b"], relu=relu)
    return out.reshape(B, Ho, Wo, p["w"].shape[1])


def conv2d_multilevel(feats, p, k=3, relu=False):
    """One shared-weight kxk/s1 conv applied to several NHWC feature maps with
    a single Pallas GEMM (per-level im2col rows concatenated along M)."""
    pad = (k - 1) // 2
    xms, shapes = [], []
    for f in feats:
        xm, shp = _im2col(f, k, k, 1, pad)
        xms.append(xm)
        shapes.append(shp)
    X = jnp.concatenate(xms, axis=0)
    out = matmul_bias(X, p["w"], p["b"], relu=relu)
    Cout = p["w"].shape[1]
    res, off = [], 0
    for (B, Ho, Wo) in shapes:
        n = B * Ho * Wo
        res.append(out[off:off + n].reshape(B, Ho, Wo, Cout))
        off += n
    return res


def upsample2x_nearest(x):
    # F.interpolate(scale_factor=2, mode='nearest') on NHWC
    return jnp.repeat(jnp.repeat(x, 2, axis=1), 2, axis=2)


# ------------------------------ parameters -------------------------------- #
def _conv_params(key, kh, kw, cin, cout):
    w = 0.01 * jax.random.normal(key, (kh, kw, cin, cout), jnp.float32)
    b = jnp.zeros((cout,), jnp.float32)
    return {"w": w, "b": b}


def make_params(key, num_classes, fpn_channels=32):
    keys = iter(jax.random.split(key, 64))
    p = {}
    # synthetic backbone: 5 stride-2 convs -> C3 (s=8), C4 (s=16), C5 (s=32)
    p["backbone"] = [
        _conv_params(next(keys), 3, 3, 3, 8),
        _conv_params(next(keys), 3, 3, 8, 16),
        _conv_params(next(keys), 3, 3, 16, 16),   # C3: 16 ch
        _conv_params(next(keys), 3, 3, 16, 32),   # C4: 32 ch
        _conv_params(next(keys), 3, 3, 32, 32),   # C5: 32 ch
    ]
    in_channels_list = [16, 32, 32]
    C = fpn_channels
    # FPN
    p["lateral"] = [_conv_params(next(keys), 1, 1, c, C) for c in in_channels_list]
    p["output"] = [_conv_params(next(keys), 3, 3, C, C) for _ in in_channels_list]
    p["extra"] = [
        [_conv_params(next(keys), 3, 3, in_channels_list[-1], C),
         _conv_params(next(keys), 3, 3, C, C)],
        [_conv_params(next(keys), 3, 3, C, C),
         _conv_params(next(keys), 3, 3, C, C)],
    ]
    # heads: 2x (Conv3x3 + ReLU) + final Conv3x3, shared across FPN levels
    def head(out_ch):
        return [_conv_params(next(keys), 3, 3, C, C),
                _conv_params(next(keys), 3, 3, C, C),
                _conv_params(next(keys), 3, 3, C, out_ch)]
    p["cls_head"] = head(num_classes)
    p["bbox_head"] = head(4)
    p["ctr_head"] = head(1)
    return p


# --------------------- one-time weight packing (host) ---------------------- #
def _pack_conv(w4d, b):
    KH, KW, Cin, Cout = w4d.shape
    return {"w": w4d.reshape(KH * KW * Cin, Cout).astype(jnp.bfloat16),
            "b": b.reshape(1, Cout).astype(jnp.float32)}


def _concat_heads_layer0(cls_p, bbox_p, ctr_p):
    # All three towers read the same FPN feature -> concat along Cout (N=3C).
    w = jnp.concatenate([cls_p["w"], bbox_p["w"], ctr_p["w"]], axis=3)
    b = jnp.concatenate([cls_p["b"], bbox_p["b"], ctr_p["b"]], axis=0)
    return w, b


def _blockdiag_heads(cls_p, bbox_p, ctr_p):
    # Block-diagonal fusion along (Cin, Cout): each head only reads its own
    # channel slice of the fused activation.  Structural zeros are free MXU
    # work at these sizes and keep numerics exact.
    ws = [cls_p["w"], bbox_p["w"], ctr_p["w"]]
    bs = [cls_p["b"], bbox_p["b"], ctr_p["b"]]
    KH, KW, C, _ = ws[0].shape
    n = len(ws)
    cols = []
    for i, w in enumerate(ws):
        out_i = w.shape[-1]
        blocks = [w if j == i else jnp.zeros((KH, KW, C, out_i), w.dtype)
                  for j in range(n)]
        cols.append(jnp.concatenate(blocks, axis=2))   # (KH, KW, n*C, out_i)
    return jnp.concatenate(cols, axis=3), jnp.concatenate(bs, axis=0)


def prepare_params(params):
    """Pack every weight once, outside the jitted forward: bf16 cast,
    2-D GEMM layout, bias -> (1, N) f32, fused head matrices."""
    packed = {
        "backbone": [_pack_conv(p["w"], p["b"]) for p in params["backbone"]],
        "lateral": [_pack_conv(p["w"], p["b"]) for p in params["lateral"]],
        "output": [_pack_conv(p["w"], p["b"]) for p in params["output"]],
        "extra": [[_pack_conv(p["w"], p["b"]) for p in pair]
                  for pair in params["extra"]],
    }
    w0, b0 = _concat_heads_layer0(params["cls_head"][0],
                                  params["bbox_head"][0], params["ctr_head"][0])
    w1, b1 = _blockdiag_heads(params["cls_head"][1],
                              params["bbox_head"][1], params["ctr_head"][1])
    w2, b2 = _blockdiag_heads(params["cls_head"][2],
                              params["bbox_head"][2], params["ctr_head"][2])
    packed["head0"] = _pack_conv(w0, b0)
    packed["head1"] = _pack_conv(w1, b1)
    packed["head2"] = _pack_conv(w2, b2)
    return packed


# ------------------------- fused head forward ------------------------------ #
def heads_forward(packed, fpn_feats):
    # Whole head section (3 heads x 3 layers x 5 levels) = 3 pallas_calls.
    nc = packed["head2"]["w"].shape[1] - 5          # Cout = nc + 4 + 1
    h = conv2d_multilevel(fpn_feats, packed["head0"], k=3, relu=True)
    h = conv2d_multilevel(h, packed["head1"], k=3, relu=True)
    o = conv2d_multilevel(h, packed["head2"], k=3, relu=False)
    cls = [t[..., :nc] for t in o]
    bbox = [t[..., nc:nc + 4] for t in o]
    ctr = [t[..., nc + 4:nc + 5] for t in o]
    return cls, bbox, ctr


# ------------------------------ FCOS forward ------------------------------ #
def fcos_forward(packed, images_nchw):
    # f32 activations throughout; bf16 only at the MXU feed inside the kernel.
    x = jnp.transpose(images_nchw, (0, 2, 3, 1)).astype(jnp.float32)  # NHWC

    # --- backbone ---
    bb = packed["backbone"]
    x = conv2d_p(x, bb[0], k=3, stride=2, padding=1, relu=True)
    x = conv2d_p(x, bb[1], k=3, stride=2, padding=1, relu=True)
    c3 = conv2d_p(x, bb[2], k=3, stride=2, padding=1, relu=True)
    c4 = conv2d_p(c3, bb[3], k=3, stride=2, padding=1, relu=True)
    c5 = conv2d_p(c4, bb[4], k=3, stride=2, padding=1, relu=True)
    feats_in = [c3, c4, c5]

    # --- FPN ---
    laterals = [conv2d_p(feats_in[i], lp, k=1, padding=0)
                for i, lp in enumerate(packed["lateral"])]
    for i in range(len(laterals) - 1, 0, -1):
        laterals[i - 1] = laterals[i - 1] + upsample2x_nearest(laterals[i])
    fpn_feats = [conv2d_p(laterals[i], op, k=3, padding=1)
                 for i, op in enumerate(packed["output"])]
    for extra in packed["extra"]:
        f = conv2d_p(fpn_feats[-1], extra[0], k=3, stride=2, padding=1)
        f = conv2d_p(f, extra[1], k=3, stride=1, padding=1)
        fpn_feats.append(f)

    # --- heads (fused across heads + batched across levels) ---
    cls_logits, bbox_preds, centerness_preds = heads_forward(packed, fpn_feats)

    to_nchw = lambda t: jnp.transpose(t, (0, 3, 1, 2))
    raw_outputs = {
        "cls_logits": [to_nchw(t) for t in cls_logits],
        "bbox_preds": [to_nchw(t) for t in bbox_preds],
        "centerness_preds": [to_nchw(t) for t in centerness_preds],
    }
    # training-mode forward: (raw predictions, empty post-processed list)
    return raw_outputs, []


# ---------------------------------- main ----------------------------------- #
if __name__ == "__main__":
    key = jax.random.PRNGKey(0)
    pkey, xkey = jax.random.split(key)

    num_classes = 5
    raw_params = make_params(pkey, num_classes=num_classes, fpn_channels=32)
    packed = prepare_params(raw_params)            # one-time, outside jit

    # small deterministic input: batch=2, RGB, 64x64 (so FPN levels stay valid)
    images = jax.random.normal(xkey, (2, 3, 64, 64), jnp.float32)

    raw_outputs, detections = jax.jit(fcos_forward)(packed, images)
    jax.block_until_ready(raw_outputs)

    # sanity: 5 FPN levels, correct channel counts & NCHW layout
    assert len(raw_outputs["cls_logits"]) == 5
    assert raw_outputs["cls_logits"][0].shape == (2, num_classes, 8, 8)
    assert raw_outputs["bbox_preds"][0].shape == (2, 4, 8, 8)
    assert raw_outputs["centerness_preds"][0].shape == (2, 1, 8, 8)
    assert raw_outputs["cls_logits"][-1].shape == (2, num_classes, 1, 1)
    assert detections == []

    print("KERNEL_OK")
</pallas_src>

<mosaic_0001>
module attributes {stable_mosaic.version = 11 : i64} {
  func.func @_matmul_bias_kernel(%arg0: i32, %arg1: memref<1024x27xf32, #tpu.memory_space<vmem>>, %arg2: memref<27x8xbf16, #tpu.memory_space<vmem>>, %arg3: memref<1x8xf32, #tpu.memory_space<vmem>>, %arg4: memref<1024x8xf32, #tpu.memory_space<vmem>>) attributes {dimension_semantics = [#tpu.dimension_semantics<parallel>], iteration_bounds = array<i64: 2>, scalar_prefetch = 0 : i64, scratch_operands = 0 : i64, tpu.core_type = #tpu.core_type<tc>, window_params = [{transform_indices = @transform_0, window_bounds = array<i64: 1024, 27>}, {pipeline_mode = #tpu.pipeline_mode<synchronous>, transform_indices = @transform_1, window_bounds = array<i64: 27, 8>}, {pipeline_mode = #tpu.pipeline_mode<synchronous>, transform_indices = @transform_2, window_bounds = array<i64: 1, 8>}, {transform_indices = @transform_3, window_bounds = array<i64: 1024, 8>}]} {
    %c0 = arith.constant 0 : index
    %c0_0 = arith.constant 0 : index
    %0 = vector.load %arg1[%c0, %c0_0] : memref<1024x27xf32, #tpu.memory_space<vmem>>, vector<1024x27xf32>
    %1 = arith.truncf %0 : vector<1024x27xf32> to vector<1024x27xbf16>
    %c0_1 = arith.constant 0 : index
    %c0_2 = arith.constant 0 : index
    %2 = vector.load %arg2[%c0_1, %c0_2] : memref<27x8xbf16, #tpu.memory_space<vmem>>, vector<27x8xbf16>
    %cst = arith.constant dense<0.000000e+00> : vector<1024x8xf32>
    %3 = tpu.matmul %1, %2, %cst {dimension_numbers = #tpu.dot_dimension_numbers<[1], [0], [0], [1], [0, 0, 1, 1], [], []>} : vector<1024x27xbf16>, vector<27x8xbf16>, vector<1024x8xf32> -> vector<1024x8xf32>
    %c0_3 = arith.constant 0 : index
    %c0_4 = arith.constant 0 : index
    %4 = vector.load %arg3[%c0_3, %c0_4] : memref<1x8xf32, #tpu.memory_space<vmem>>, vector<1x8xf32>
    %5 = vector.broadcast %4 : vector<1x8xf32> to vector<1024x8xf32>
    %6 = arith.addf %3, %5 : vector<1024x8xf32>
    %cst_5 = arith.constant 0.000000e+00 : f32
    %7 = vector.broadcast %cst_5 : f32 to vector<1024x8xf32>
    %8 = arith.maximumf %6, %7 : vector<1024x8xf32>
    %c0_6 = arith.constant 0 : index
    %c0_7 = arith.constant 0 : index
    %9 = vector.load %arg4[%c0_6, %c0_7] : memref<1024x8xf32, #tpu.memory_space<vmem>>, vector<1024x8xf32>
    tpu.vector_store %arg4[%c0_6, %c0_7], %8 {strides = array<i32>} : memref<1024x8xf32, #tpu.memory_space<vmem>>, vector<1024x8xf32>,
    return
  }
  func.func @transform_0(%arg0: i32) -> (i32, i32) {
    %c0_i32 = arith.constant 0 : i32
    %c0_i32_0 = arith.constant 0 : i32
    return %arg0, %c0_i32 : i32, i32
  }
  func.func @transform_1(%arg0: i32) -> (i32, i32) {
    %c0_i32 = arith.constant 0 : i32
    %c0_i32_0 = arith.constant 0 : i32
    %c0_i32_1 = arith.constant 0 : i32
    return %c0_i32, %c0_i32_0 : i32, i32
  }
  func.func @transform_2(%arg0: i32) -> (i32, i32) {
    %c0_i32 = arith.constant 0 : i32
    %c0_i32_0 = arith.constant 0 : i32
    %c0_i32_1 = arith.constant 0 : i32
    return %c0_i32, %c0_i32_0 : i32, i32
  }
  func.func @transform_3(%arg0: i32) -> (i32, i32) {
    %c0_i32 = arith.constant 0 : i32
    %c0_i32_0 = arith.constant 0 : i32
    return %arg0, %c0_i32 : i32, i32
  }
}

module attributes {stable_mosaic.version = 11 : i64} {
  func.func @_matmul_bias_kernel(%arg0: i32, %arg1: memref<256x72xf32, #tpu.memory_space<vmem>>, %arg2: memref<72x16xbf16, #tpu.memory_space<vmem>>, %arg3: memref<1x16xf32, #tpu.memory_space<vmem>>, %arg4: memref<256x16xf32, #tpu.memory_space<vmem>>) attributes {dimension_semantics = [#tpu.dimension_semantics<parallel>], iteration_bounds = array<i64: 2>, scalar_prefetch = 0 : i64, scratch_operands = 0 : i64, tpu.core_type = #tpu.core_type<tc>, window_params = [{transform_indices = @transform_0, window_bounds = array<i64: 256, 72>}, {pipeline_mode = #tpu.pipeline_mode<synchronous>, transform_indices = @transform_1, window_bounds = array<i64: 72, 16>}, {pipeline_mode = #tpu.pipeline_mode<synchronous>, transform_indices = @transform_2, window_bounds = array<i64: 1, 16>}, {transform_indices = @transform_3, window_bounds = array<i64: 256, 16>}]} {
    %c0 = arith.constant 0 : index
    %c0_0 = arith.constant 0 : index
    %0 = vector.load %arg1[%c0, %c0_0] : memref<256x72xf32, #tpu.memory_space<vmem>>, vector<256x72xf32>
    %1 = arith.truncf %0 : vector<256x72xf32> to vector<256x72xbf16>
    %c0_1 = arith.constant 0 : index
    %c0_2 = arith.constant 0 : index
    %2 = vector.load %arg2[%c0_1, %c0_2] : memref<72x16xbf16, #tpu.memory_space<vmem>>, vector<72x16xbf16>
    %cst = arith.constant dense<0.000000e+00> : vector<256x16xf32>
    %3 = tpu.matmul %1, %2, %cst {dimension_numbers = #tpu.dot_dimension_numbers<[1], [0], [0], [1], [0, 0, 1, 1], [], []>} : vector<256x72xbf16>, vector<72x16xbf16>, vector<256x16xf32> -> vector<256x16xf32>
    %c0_3 = arith.constant 0 : index
    %c0_4 = arith.constant 0 : index
    %4 = vector.load %arg3[%c0_3, %c0_4] : memref<1x16xf32, #tpu.memory_space<vmem>>, vector<1x16xf32>
    %5 = vector.broadcast %4 : vector<1x16xf32> to vector<256x16xf32>
    %6 = arith.addf %3, %5 : vector<256x16xf32>
    %cst_5 = arith.constant 0.000000e+00 : f32
    %7 = vector.broadcast %cst_5 : f32 to vector<256x16xf32>
    %8 = arith.maximumf %6, %7 : vector<256x16xf32>
    %c0_6 = arith.constant 0 : index
    %c0_7 = arith.constant 0 : index
    %9 = vector.load %arg4[%c0_6, %c0_7] : memref<256x16xf32, #tpu.memory_space<vmem>>, vector<256x16xf32>
    tpu.vector_store %arg4[%c0_6, %c0_7], %8 {strides = array<i32>} : memref<256x16xf32, #tpu.memory_space<vmem>>, vector<256x16xf32>,
    return
  }
  func.func @transform_0(%arg0: i32) -> (i32, i32) {
    %c0_i32 = arith.constant 0 : i32
    %c0_i32_0 = arith.constant 0 : i32
    return %arg0, %c0_i32 : i32, i32
  }
  func.func @transform_1(%arg0: i32) -> (i32, i32) {
    %c0_i32 = arith.constant 0 : i32
    %c0_i32_0 = arith.constant 0 : i32
    %c0_i32_1 = arith.constant 0 : i32
    return %c0_i32, %c0_i32_0 : i32, i32
  }
  func.func @transform_2(%arg0: i32) -> (i32, i32) {
    %c0_i32 = arith.constant 0 : i32
    %c0_i32_0 = arith.constant 0 : i32
    %c0_i32_1 = arith.constant 0 : i32
    return %c0_i32, %c0_i32_0 : i32, i32
  }
  func.func @transform_3(%arg0: i32) -> (i32, i32) {
    %c0_i32 = arith.constant 0 : i32
    %c0_i32_0 = arith.constant 0 : i32
    return %arg0, %c0_i32 : i32, i32
  }
}

module attributes {stable_mosaic.version = 11 : i64} {
  func.func @_matmul_bias_kernel(%arg0: i32, %arg1: memref<128x144xf32, #tpu.memory_space<vmem>>, %arg2: memref<144x16xbf16, #tpu.memory_space<vmem>>, %arg3: memref<1x16xf32, #tpu.memory_space<vmem>>, %arg4: memref<128x16xf32, #tpu.memory_space<vmem>>) attributes {dimension_semantics = [#tpu.dimension_semantics<parallel>], iteration_bounds = array<i64: 1>, scalar_prefetch = 0 : i64, scratch_operands = 0 : i64, tpu.core_type = #tpu.core_type<tc>, window_params = [{transform_indices = @transform_0, window_bounds = array<i64: 128, 144>}, {pipeline_mode = #tpu.pipeline_mode<synchronous>, transform_indices = @transform_1, window_bounds = array<i64: 144, 16>}, {pipeline_mode = #tpu.pipeline_mode<synchronous>, transform_indices = @transform_2, window_bounds = array<i64: 1, 16>}, {transform_indices = @transform_3, window_bounds = array<i64: 128, 16>}]} {
    %c0 = arith.constant 0 : index
    %c0_0 = arith.constant 0 : index
    %0 = vector.load %arg1[%c0, %c0_0] : memref<128x144xf32, #tpu.memory_space<vmem>>, vector<128x144xf32>
    %1 = arith.truncf %0 : vector<128x144xf32> to vector<128x144xbf16>
    %c0_1 = arith.constant 0 : index
    %c0_2 = arith.constant 0 : index
    %2 = vector.load %arg2[%c0_1, %c0_2] : memref<144x16xbf16, #tpu.memory_space<vmem>>, vector<144x16xbf16>
    %cst = arith.constant dense<0.000000e+00> : vector<128x16xf32>
    %3 = tpu.matmul %1, %2, %cst {dimension_numbers = #tpu.dot_dimension_numbers<[1], [0], [0], [1], [0, 0, 1, 1], [], []>} : vector<128x144xbf16>, vector<144x16xbf16>, vector<128x16xf32> -> vector<128x16xf32>
    %c0_3 = arith.constant 0 : index
    %c0_4 = arith.constant 0 : index
    %4 = vector.load %arg3[%c0_3, %c0_4] : memref<1x16xf32, #tpu.memory_space<vmem>>, vector<1x16xf32>
    %5 = vector.broadcast %4 : vector<1x16xf32> to vector<128x16xf32>
    %6 = arith.addf %3, %5 : vector<128x16xf32>
    %cst_5 = arith.constant 0.000000e+00 : f32
    %7 = vector.broadcast %cst_5 : f32 to vector<128x16xf32>
    %8 = arith.maximumf %6, %7 : vector<128x16xf32>
    %c0_6 = arith.constant 0 : index
    %c0_7 = arith.constant 0 : index
    %9 = vector.load %arg4[%c0_6, %c0_7] : memref<128x16xf32, #tpu.memory_space<vmem>>, vector<128x16xf32>
    tpu.vector_store %arg4[%c0_6, %c0_7], %8 {strides = array<i32>} : memref<128x16xf32, #tpu.memory_space<vmem>>, vector<128x16xf32>,
    return
  }
  func.func @transform_0(%arg0: i32) -> (i32, i32) {
    %c0_i32 = arith.constant 0 : i32
    %c0_i32_0 = arith.constant 0 : i32
    return %arg0, %c0_i32 : i32, i32
  }
  func.func @transform_1(%arg0: i32) -> (i32, i32) {
    %c0_i32 = arith.constant 0 : i32
    %c0_i32_0 = arith.constant 0 : i32
    %c0_i32_1 = arith.constant 0 : i32
    return %c0_i32, %c0_i32_0 : i32, i32
  }
  func.func @transform_2(%arg0: i32) -> (i32, i32) {
    %c0_i32 = arith.constant 0 : i32
    %c0_i32_0 = arith.constant 0 : i32
    %c0_i32_1 = arith.constant 0 : i32
    return %c0_i32, %c0_i32_0 : i32, i32
  }
  func.func @transform_3(%arg0: i32) -> (i32, i32) {
    %c0_i32 = arith.constant 0 : i32
    %c0_i32_0 = arith.constant 0 : i32
    return %arg0, %c0_i32 : i32, i32
  }
}

module attributes {stable_mosaic.version = 11 : i64} {
  func.func @_matmul_bias_kernel(%arg0: i32, %arg1: memref<32x144xf32, #tpu.memory_space<vmem>>, %arg2: memref<144x32xbf16, #tpu.memory_space<vmem>>, %arg3: memref<1x32xf32, #tpu.memory_space<vmem>>, %arg4: memref<32x32xf32, #tpu.memory_space<vmem>>) attributes {dimension_semantics = [#tpu.dimension_semantics<parallel>], iteration_bounds = array<i64: 1>, scalar_prefetch = 0 : i64, scratch_operands = 0 : i64, tpu.core_type = #tpu.core_type<tc>, window_params = [{transform_indices = @transform_0, window_bounds = array<i64: 32, 144>}, {pipeline_mode = #tpu.pipeline_mode<synchronous>, transform_indices = @transform_1, window_bounds = array<i64: 144, 32>}, {pipeline_mode = #tpu.pipeline_mode<synchronous>, transform_indices = @transform_2, window_bounds = array<i64: 1, 32>}, {transform_indices = @transform_3, window_bounds = array<i64: 32, 32>}]} {
    %c0 = arith.constant 0 : index
    %c0_0 = arith.constant 0 : index
    %0 = vector.load %arg1[%c0, %c0_0] : memref<32x144xf32, #tpu.memory_space<vmem>>, vector<32x144xf32>
    %1 = arith.truncf %0 : vector<32x144xf32> to vector<32x144xbf16>
    %c0_1 = arith.constant 0 : index
    %c0_2 = arith.constant 0 : index
    %2 = vector.load %arg2[%c0_1, %c0_2] : memref<144x32xbf16, #tpu.memory_space<vmem>>, vector<144x32xbf16>
    %cst = arith.constant dense<0.000000e+00> : vector<32x32xf32>
    %3 = tpu.matmul %1, %2, %cst {dimension_numbers = #tpu.dot_dimension_numbers<[1], [0], [0], [1], [0, 0, 1, 1], [], []>} : vector<32x144xbf16>, vector<144x32xbf16>, vector<32x32xf32> -> vector<32x32xf32>
    %c0_3 = arith.constant 0 : index
    %c0_4 = arith.constant 0 : index
    %4 = vector.load %arg3[%c0_3, %c0_4] : memref<1x32xf32, #tpu.memory_space<vmem>>, vector<1x32xf32>
    %5 = vector.broadcast %4 : vector<1x32xf32> to vector<32x32xf32>
    %6 = arith.addf %3, %5 : vector<32x32xf32>
    %cst_5 = arith.constant 0.000000e+00 : f32
    %7 = vector.broadcast %cst_5 : f32 to vector<32x32xf32>
    %8 = arith.maximumf %6, %7 : vector<32x32xf32>
    %c0_6 = arith.constant 0 : index
    %c0_7 = arith.constant 0 : index
    %9 = vector.load %arg4[%c0_6, %c0_7] : memref<32x32xf32, #tpu.memory_space<vmem>>, vector<32x32xf32>
    tpu.vector_store %arg4[%c0_6, %c0_7], %8 {strides = array<i32>} : memref<32x32xf32, #tpu.memory_space<vmem>>, vector<32x32xf32>,
    return
  }
  func.func @transform_0(%arg0: i32) -> (i32, i32) {
    %c0_i32 = arith.constant 0 : i32
    %c0_i32_0 = arith.constant 0 : i32
    return %arg0, %c0_i32 : i32, i32
  }
  func.func @transform_1(%arg0: i32) -> (i32, i32) {
    %c0_i32 = arith.constant 0 : i32
    %c0_i32_0 = arith.constant 0 : i32
    %c0_i32_1 = arith.constant 0 : i32
    return %c0_i32, %c0_i32_0 : i32, i32
  }
  func.func @transform_2(%arg0: i32) -> (i32, i32) {
    %c0_i32 = arith.constant 0 : i32
    %c0_i32_0 = arith.constant 0 : i32
    %c0_i32_1 = arith.constant 0 : i32
    return %c0_i32, %c0_i32_0 : i32, i32
  }
  func.func @transform_3(%arg0: i32) -> (i32, i32) {
    %c0_i32 = arith.constant 0 : i32
    %c0_i32_0 = arith.constant 0 : i32
    return %arg0, %c0_i32 : i32, i32
  }
}

module attributes {stable_mosaic.version = 11 : i64} {
  func.func @_matmul_bias_kernel(%arg0: i32, %arg1: memref<8x288xf32, #tpu.memory_space<vmem>>, %arg2: memref<288x32xbf16, #tpu.memory_space<vmem>>, %arg3: memref<1x32xf32, #tpu.memory_space<vmem>>, %arg4: memref<8x32xf32, #tpu.memory_space<vmem>>) attributes {dimension_semantics = [#tpu.dimension_semantics<parallel>], iteration_bounds = array<i64: 1>, scalar_prefetch = 0 : i64, scratch_operands = 0 : i64, tpu.core_type = #tpu.core_type<tc>, window_params = [{transform_indices = @transform_0, window_bounds = array<i64: 8, 288>}, {pipeline_mode = #tpu.pipeline_mode<synchronous>, transform_indices = @transform_1, window_bounds = array<i64: 288, 32>}, {pipeline_mode = #tpu.pipeline_mode<synchronous>, transform_indices = @transform_2, window_bounds = array<i64: 1, 32>}, {transform_indices = @transform_3, window_bounds = array<i64: 8, 32>}]} {
    %c0 = arith.constant 0 : index
    %c0_0 = arith.constant 0 : index
    %0 = vector.load %arg1[%c0, %c0_0] : memref<8x288xf32, #tpu.memory_space<vmem>>, vector<8x288xf32>
    %1 = arith.truncf %0 : vector<8x288xf32> to vector<8x288xbf16>
    %c0_1 = arith.constant 0 : index
    %c0_2 = arith.constant 0 : index
    %2 = vector.load %arg2[%c0_1, %c0_2] : memref<288x32xbf16, #tpu.memory_space<vmem>>, vector<288x32xbf16>
    %cst = arith.constant dense<0.000000e+00> : vector<8x32xf32>
    %3 = tpu.matmul %1, %2, %cst {dimension_numbers = #tpu.dot_dimension_numbers<[1], [0], [0], [1], [0, 0, 1, 1], [], []>} : vector<8x288xbf16>, vector<288x32xbf16>, vector<8x32xf32> -> vector<8x32xf32>
    %c0_3 = arith.constant 0 : index
    %c0_4 = arith.constant 0 : index
    %4 = vector.load %arg3[%c0_3, %c0_4] : memref<1x32xf32, #tpu.memory_space<vmem>>, vector<1x32xf32>
    %5 = vector.broadcast %4 : vector<1x32xf32> to vector<8x32xf32>
    %6 = arith.addf %3, %5 : vector<8x32xf32>
    %cst_5 = arith.constant 0.000000e+00 : f32
    %7 = vector.broadcast %cst_5 : f32 to vector<8x32xf32>
    %8 = arith.maximumf %6, %7 : vector<8x32xf32>
    %c0_6 = arith.constant 0 : index
    %c0_7 = arith.constant 0 : index
    %9 = vector.load %arg4[%c0_6, %c0_7] : memref<8x32xf32, #tpu.memory_space<vmem>>, vector<8x32xf32>
    tpu.vector_store %arg4[%c0_6, %c0_7], %8 {strides = array<i32>} : memref<8x32xf32, #tpu.memory_space<vmem>>, vector<8x32xf32>,
    return
  }
  func.func @transform_0(%arg0: i32) -> (i32, i32) {
    %c0_i32 = arith.constant 0 : i32
    %c0_i32_0 = arith.constant 0 : i32
    return %arg0, %c0_i32 : i32, i32
  }
  func.func @transform_1(%arg0: i32) -> (i32, i32) {
    %c0_i32 = arith.constant 0 : i32
    %c0_i32_0 = arith.constant 0 : i32
    %c0_i32_1 = arith.constant 0 : i32
    return %c0_i32, %c0_i32_0 : i32, i32
  }
  func.func @transform_2(%arg0: i32) -> (i32, i32) {
    %c0_i32 = arith.constant 0 : i32
    %c0_i32_0 = arith.constant 0 : i32
    %c0_i32_1 = arith.constant 0 : i32
    return %c0_i32, %c0_i32_0 : i32, i32
  }
  func.func @transform_3(%arg0: i32) -> (i32, i32) {
    %c0_i32 = arith.constant 0 : i32
    %c0_i32_0 = arith.constant 0 : i32
    return %arg0, %c0_i32 : i32, i32
  }
}

module attributes {stable_mosaic.version = 11 : i64} {
  func.func @_matmul_bias_kernel(%arg0: i32, %arg1: memref<8x32xf32, #tpu.memory_space<vmem>>, %arg2: memref<32x32xbf16, #tpu.memory_space<vmem>>, %arg3: memref<1x32xf32, #tpu.memory_space<vmem>>, %arg4: memref<8x32xf32, #tpu.memory_space<vmem>>) attributes {dimension_semantics = [#tpu.dimension_semantics<parallel>], iteration_bounds = array<i64: 1>, scalar_prefetch = 0 : i64, scratch_operands = 0 : i64, tpu.core_type = #tpu.core_type<tc>, window_params = [{transform_indices = @transform_0, window_bounds = array<i64: 8, 32>}, {pipeline_mode = #tpu.pipeline_mode<synchronous>, transform_indices = @transform_1, window_bounds = array<i64: 32, 32>}, {pipeline_mode = #tpu.pipeline_mode<synchronous>, transform_indices = @transform_2, window_bounds = array<i64: 1, 32>}, {transform_indices = @transform_3, window_bounds = array<i64: 8, 32>}]} {
    %c0 = arith.constant 0 : index
    %c0_0 = arith.constant 0 : index
    %0 = vector.load %arg1[%c0, %c0_0] : memref<8x32xf32, #tpu.memory_space<vmem>>, vector<8x32xf32>
    %1 = arith.truncf %0 : vector<8x32xf32> to vector<8x32xbf16>
    %c0_1 = arith.constant 0 : index
    %c0_2 = arith.constant 0 : index
    %2 = vector.load %arg2[%c0_1, %c0_2] : memref<32x32xbf16, #tpu.memory_space<vmem>>, vector<32x32xbf16>
    %cst = arith.constant dense<0.000000e+00> : vector<8x32xf32>
    %3 = tpu.matmul %1, %2, %cst {dimension_numbers = #tpu.dot_dimension_numbers<[1], [0], [0], [1], [0, 0, 1, 1], [], []>} : vector<8x32xbf16>, vector<32x32xbf16>, vector<8x32xf32> -> vector<8x32xf32>
    %c0_3 = arith.constant 0 : index
    %c0_4 = arith.constant 0 : index
    %4 = vector.load %arg3[%c0_3, %c0_4] : memref<1x32xf32, #tpu.memory_space<vmem>>, vector<1x32xf32>
    %5 = vector.broadcast %4 : vector<1x32xf32> to vector<8x32xf32>
    %6 = arith.addf %3, %5 : vector<8x32xf32>
    %c0_5 = arith.constant 0 : index
    %c0_6 = arith.constant 0 : index
    %7 = vector.load %arg4[%c0_5, %c0_6] : memref<8x32xf32, #tpu.memory_space<vmem>>, vector<8x32xf32>
    tpu.vector_store %arg4[%c0_5, %c0_6], %6 {strides = array<i32>} : memref<8x32xf32, #tpu.memory_space<vmem>>, vector<8x32xf32>,
    return
  }
  func.func @transform_0(%arg0: i32) -> (i32, i32) {
    %c0_i32 = arith.constant 0 : i32
    %c0_i32_0 = arith.constant 0 : i32
    return %arg0, %c0_i32 : i32, i32
  }
  func.func @transform_1(%arg0: i32) -> (i32, i32) {
    %c0_i32 = arith.constant 0 : i32
    %c0_i32_0 = arith.constant 0 : i32
    %c0_i32_1 = arith.constant 0 : i32
    return %c0_i32, %c0_i32_0 : i32, i32
  }
  func.func @transform_2(%arg0: i32) -> (i32, i32) {
    %c0_i32 = arith.constant 0 : i32
    %c0_i32_0 = arith.constant 0 : i32
    %c0_i32_1 = arith.constant 0 : i32
    return %c0_i32, %c0_i32_0 : i32, i32
  }
  func.func @transform_3(%arg0: i32) -> (i32, i32) {
    %c0_i32 = arith.constant 0 : i32
    %c0_i32_0 = arith.constant 0 : i32
    return %arg0, %c0_i32 : i32, i32
  }
}

module attributes {stable_mosaic.version = 11 : i64} {
  func.func @_matmul_bias_kernel(%arg0: i32, %arg1: memref<8x288xf32, #tpu.memory_space<vmem>>, %arg2: memref<288x32xbf16, #tpu.memory_space<vmem>>, %arg3: memref<1x32xf32, #tpu.memory_space<vmem>>, %arg4: memref<8x32xf32, #tpu.memory_space<vmem>>) attributes {dimension_semantics = [#tpu.dimension_semantics<parallel>], iteration_bounds = array<i64: 1>, scalar_prefetch = 0 : i64, scratch_operands = 0 : i64, tpu.core_type = #tpu.core_type<tc>, window_params = [{transform_indices = @transform_0, window_bounds = array<i64: 8, 288>}, {pipeline_mode = #tpu.pipeline_mode<synchronous>, transform_indices = @transform_1, window_bounds = array<i64: 288, 32>}, {pipeline_mode = #tpu.pipeline_mode<synchronous>, transform_indices = @transform_2, window_bounds = array<i64: 1, 32>}, {transform_indices = @transform_3, window_bounds = array<i64: 8, 32>}]} {
    %c0 = arith.constant 0 : index
    %c0_0 = arith.constant 0 : index
    %0 = vector.load %arg1[%c0, %c0_0] : memref<8x288xf32, #tpu.memory_space<vmem>>, vector<8x288xf32>
    %1 = arith.truncf %0 : vector<8x288xf32> to vector<8x288xbf16>
    %c0_1 = arith.constant 0 : index
    %c0_2 = arith.constant 0 : index
    %2 = vector.load %arg2[%c0_1, %c0_2] : memref<288x32xbf16, #tpu.memory_space<vmem>>, vector<288x32xbf16>
    %cst = arith.constant dense<0.000000e+00> : vector<8x32xf32>
    %3 = tpu.matmul %1, %2, %cst {dimension_numbers = #tpu.dot_dimension_numbers<[1], [0], [0], [1], [0, 0, 1, 1], [], []>} : vector<8x288xbf16>, vector<288x32xbf16>, vector<8x32xf32> -> vector<8x32xf32>
    %c0_3 = arith.constant 0 : index
    %c0_4 = arith.constant 0 : index
    %4 = vector.load %arg3[%c0_3, %c0_4] : memref<1x32xf32, #tpu.memory_space<vmem>>, vector<1x32xf32>
    %5 = vector.broadcast %4 : vector<1x32xf32> to vector<8x32xf32>
    %6 = arith.addf %3, %5 : vector<8x32xf32>
    %c0_5 = arith.constant 0 : index
    %c0_6 = arith.constant 0 : index
    %7 = vector.load %arg4[%c0_5, %c0_6] : memref<8x32xf32, #tpu.memory_space<vmem>>, vector<8x32xf32>
    tpu.vector_store %arg4[%c0_5, %c0_6], %6 {strides = array<i32>} : memref<8x32xf32, #tpu.memory_space<vmem>>, vector<8x32xf32>,
    return
  }
  func.func @transform_0(%arg0: i32) -> (i32, i32) {
    %c0_i32 = arith.constant 0 : i32
    %c0_i32_0 = arith.constant 0 : i32
    return %arg0, %c0_i32 : i32, i32
  }
  func.func @transform_1(%arg0: i32) -> (i32, i32) {
    %c0_i32 = arith.constant 0 : i32
    %c0_i32_0 = arith.constant 0 : i32
    %c0_i32_1 = arith.constant 0 : i32
    return %c0_i32, %c0_i32_0 : i32, i32
  }
  func.func @transform_2(%arg0: i32) -> (i32, i32) {
    %c0_i32 = arith.constant 0 : i32
    %c0_i32_0 = arith.constant 0 : i32
    %c0_i32_1 = arith.constant 0 : i32
    return %c0_i32, %c0_i32_0 : i32, i32
  }
  func.func @transform_3(%arg0: i32) -> (i32, i32) {
    %c0_i32 = arith.constant 0 : i32
    %c0_i32_0 = arith.constant 0 : i32
    return %arg0, %c0_i32 : i32, i32
  }
}

module attributes {stable_mosaic.version = 11 : i64} {
  func.func @_matmul_bias_kernel(%arg0: i32, %arg1: memref<2x288xf32, #tpu.memory_space<vmem>>, %arg2: memref<288x32xbf16, #tpu.memory_space<vmem>>, %arg3: memref<1x32xf32, #tpu.memory_space<vmem>>, %arg4: memref<2x32xf32, #tpu.memory_space<vmem>>) attributes {dimension_semantics = [#tpu.dimension_semantics<parallel>], iteration_bounds = array<i64: 1>, scalar_prefetch = 0 : i64, scratch_operands = 0 : i64, tpu.core_type = #tpu.core_type<tc>, window_params = [{transform_indices = @transform_0, window_bounds = array<i64: 2, 288>}, {pipeline_mode = #tpu.pipeline_mode<synchronous>, transform_indices = @transform_1, window_bounds = array<i64: 288, 32>}, {pipeline_mode = #tpu.pipeline_mode<synchronous>, transform_indices = @transform_2, window_bounds = array<i64: 1, 32>}, {transform_indices = @transform_3, window_bounds = array<i64: 2, 32>}]} {
    %c0 = arith.constant 0 : index
    %c0_0 = arith.constant 0 : index
    %0 = vector.load %arg1[%c0, %c0_0] : memref<2x288xf32, #tpu.memory_space<vmem>>, vector<2x288xf32>
    %1 = arith.truncf %0 : vector<2x288xf32> to vector<2x288xbf16>
    %c0_1 = arith.constant 0 : index
    %c0_2 = arith.constant 0 : index
    %2 = vector.load %arg2[%c0_1, %c0_2] : memref<288x32xbf16, #tpu.memory_space<vmem>>, vector<288x32xbf16>
    %cst = arith.constant dense<0.000000e+00> : vector<2x32xf32>
    %3 = tpu.matmul %1, %2, %cst {dimension_numbers = #tpu.dot_dimension_numbers<[1], [0], [0], [1], [0, 0, 1, 1], [], []>} : vector<2x288xbf16>, vector<288x32xbf16>, vector<2x32xf32> -> vector<2x32xf32>
    %c0_3 = arith.constant 0 : index
    %c0_4 = arith.constant 0 : index
    %4 = vector.load %arg3[%c0_3, %c0_4] : memref<1x32xf32, #tpu.memory_space<vmem>>, vector<1x32xf32>
    %5 = vector.broadcast %4 : vector<1x32xf32> to vector<2x32xf32>
    %6 = arith.addf %3, %5 : vector<2x32xf32>
    %c0_5 = arith.constant 0 : index
    %c0_6 = arith.constant 0 : index
    %7 = vector.load %arg4[%c0_5, %c0_6] : memref<2x32xf32, #tpu.memory_space<vmem>>, vector<2x32xf32>
    tpu.vector_store %arg4[%c0_5, %c0_6], %6 {strides = array<i32>} : memref<2x32xf32, #tpu.memory_space<vmem>>, vector<2x32xf32>,
    return
  }
  func.func @transform_0(%arg0: i32) -> (i32, i32) {
    %c0_i32 = arith.constant 0 : i32
    %c0_i32_0 = arith.constant 0 : i32
    return %arg0, %c0_i32 : i32, i32
  }
  func.func @transform_1(%arg0: i32) -> (i32, i32) {
    %c0_i32 = arith.constant 0 : i32
    %c0_i32_0 = arith.constant 0 : i32
    %c0_i32_1 = arith.constant 0 : i32
    return %c0_i32, %c0_i32_0 : i32, i32
  }
  func.func @transform_2(%arg0: i32) -> (i32, i32) {
    %c0_i32 = arith.constant 0 : i32
    %c0_i32_0 = arith.constant 0 : i32
    %c0_i32_1 = arith.constant 0 : i32
    return %c0_i32, %c0_i32_0 : i32, i32
  }
  func.func @transform_3(%arg0: i32) -> (i32, i32) {
    %c0_i32 = arith.constant 0 : i32
    %c0_i32_0 = arith.constant 0 : i32
    return %arg0, %c0_i32 : i32, i32
  }
}

module attributes {stable_mosaic.version = 11 : i64} {
  func.func @_matmul_bias_kernel(%arg0: i32, %arg1: memref<32x32xf32, #tpu.memory_space<vmem>>, %arg2: memref<32x32xbf16, #tpu.memory_space<vmem>>, %arg3: memref<1x32xf32, #tpu.memory_space<vmem>>, %arg4: memref<32x32xf32, #tpu.memory_space<vmem>>) attributes {dimension_semantics = [#tpu.dimension_semantics<parallel>], iteration_bounds = array<i64: 1>, scalar_prefetch = 0 : i64, scratch_operands = 0 : i64, tpu.core_type = #tpu.core_type<tc>, window_params = [{transform_indices = @transform_0, window_bounds = array<i64: 32, 32>}, {pipeline_mode = #tpu.pipeline_mode<synchronous>, transform_indices = @transform_1, window_bounds = array<i64: 32, 32>}, {pipeline_mode = #tpu.pipeline_mode<synchronous>, transform_indices = @transform_2, window_bounds = array<i64: 1, 32>}, {transform_indices = @transform_3, window_bounds = array<i64: 32, 32>}]} {
    %c0 = arith.constant 0 : index
    %c0_0 = arith.constant 0 : index
    %0 = vector.load %arg1[%c0, %c0_0] : memref<32x32xf32, #tpu.memory_space<vmem>>, vector<32x32xf32>
    %1 = arith.truncf %0 : vector<32x32xf32> to vector<32x32xbf16>
    %c0_1 = arith.constant 0 : index
    %c0_2 = arith.constant 0 : index
    %2 = vector.load %arg2[%c0_1, %c0_2] : memref<32x32xbf16, #tpu.memory_space<vmem>>, vector<32x32xbf16>
    %cst = arith.constant dense<0.000000e+00> : vector<32x32xf32>
    %3 = tpu.matmul %1, %2, %cst {dimension_numbers = #tpu.dot_dimension_numbers<[1], [0], [0], [1], [0, 0, 1, 1], [], []>} : vector<32x32xbf16>, vector<32x32xbf16>, vector<32x32xf32> -> vector<32x32xf32>
    %c0_3 = arith.constant 0 : index
    %c0_4 = arith.constant 0 : index
    %4 = vector.load %arg3[%c0_3, %c0_4] : memref<1x32xf32, #tpu.memory_space<vmem>>, vector<1x32xf32>
    %5 = vector.broadcast %4 : vector<1x32xf32> to vector<32x32xf32>
    %6 = arith.addf %3, %5 : vector<32x32xf32>
    %c0_5 = arith.constant 0 : index
    %c0_6 = arith.constant 0 : index
    %7 = vector.load %arg4[%c0_5, %c0_6] : memref<32x32xf32, #tpu.memory_space<vmem>>, vector<32x32xf32>
    tpu.vector_store %arg4[%c0_5, %c0_6], %6 {strides = array<i32>} : memref<32x32xf32, #tpu.memory_space<vmem>>, vector<32x32xf32>,
    return
  }
  func.func @transform_0(%arg0: i32) -> (i32, i32) {
    %c0_i32 = arith.constant 0 : i32
    %c0_i32_0 = arith.constant 0 : i32
    return %arg0, %c0_i32 : i32, i32
  }
  func.func @transform_1(%arg0: i32) -> (i32, i32) {
    %c0_i32 = arith.constant 0 : i32
    %c0_i32_0 = arith.constant 0 : i32
    %c0_i32_1 = arith.constant 0 : i32
    return %c0_i32, %c0_i32_0 : i32, i32
  }
  func.func @transform_2(%arg0: i32) -> (i32, i32) {
    %c0_i32 = arith.constant 0 : i32
    %c0_i32_0 = arith.constant 0 : i32
    %c0_i32_1 = arith.constant 0 : i32
    return %c0_i32, %c0_i32_0 : i32, i32
  }
  func.func @transform_3(%arg0: i32) -> (i32, i32) {
    %c0_i32 = arith.constant 0 : i32
    %c0_i32_0 = arith.constant 0 : i32
    return %arg0, %c0_i32 : i32, i32
  }
}

module attributes {stable_mosaic.version = 11 : i64} {
  func.func @_matmul_bias_kernel(%arg0: i32, %arg1: memref<32x288xf32, #tpu.memory_space<vmem>>, %arg2: memref<288x32xbf16, #tpu.memory_space<vmem>>, %arg3: memref<1x32xf32, #tpu.memory_space<vmem>>, %arg4: memref<32x32xf32, #tpu.memory_space<vmem>>) attributes {dimension_semantics = [#tpu.dimension_semantics<parallel>], iteration_bounds = array<i64: 1>, scalar_prefetch = 0 : i64, scratch_operands = 0 : i64, tpu.core_type = #tpu.core_type<tc>, window_params = [{transform_indices = @transform_0, window_bounds = array<i64: 32, 288>}, {pipeline_mode = #tpu.pipeline_mode<synchronous>, transform_indices = @transform_1, window_bounds = array<i64: 288, 32>}, {pipeline_mode = #tpu.pipeline_mode<synchronous>, transform_indices = @transform_2, window_bounds = array<i64: 1, 32>}, {transform_indices = @transform_3, window_bounds = array<i64: 32, 32>}]} {
    %c0 = arith.constant 0 : index
    %c0_0 = arith.constant 0 : index
    %0 = vector.load %arg1[%c0, %c0_0] : memref<32x288xf32, #tpu.memory_space<vmem>>, vector<32x288xf32>
    %1 = arith.truncf %0 : vector<32x288xf32> to vector<32x288xbf16>
    %c0_1 = arith.constant 0 : index
    %c0_2 = arith.constant 0 : index
    %2 = vector.load %arg2[%c0_1, %c0_2] : memref<288x32xbf16, #tpu.memory_space<vmem>>, vector<288x32xbf16>
    %cst = arith.constant dense<0.000000e+00> : vector<32x32xf32>
    %3 = tpu.matmul %1, %2, %cst {dimension_numbers = #tpu.dot_dimension_numbers<[1], [0], [0], [1], [0, 0, 1, 1], [], []>} : vector<32x288xbf16>, vector<288x32xbf16>, vector<32x32xf32> -> vector<32x32xf32>
    %c0_3 = arith.constant 0 : index
    %c0_4 = arith.constant 0 : index
    %4 = vector.load %arg3[%c0_3, %c0_4] : memref<1x32xf32, #tpu.memory_space<vmem>>, vector<1x32xf32>
    %5 = vector.broadcast %4 : vector<1x32xf32> to vector<32x32xf32>
    %6 = arith.addf %3, %5 : vector<32x32xf32>
    %c0_5 = arith.constant 0 : index
    %c0_6 = arith.constant 0 : index
    %7 = vector.load %arg4[%c0_5, %c0_6] : memref<32x32xf32, #tpu.memory_space<vmem>>, vector<32x32xf32>
    tpu.vector_store %arg4[%c0_5, %c0_6], %6 {strides = array<i32>} : memref<32x32xf32, #tpu.memory_space<vmem>>, vector<32x32xf32>,
    return
  }
  func.func @transform_0(%arg0: i32) -> (i32, i32) {
    %c0_i32 = arith.constant 0 : i32
    %c0_i32_0 = arith.constant 0 : i32
    return %arg0, %c0_i32 : i32, i32
  }
  func.func @transform_1(%arg0: i32) -> (i32, i32) {
    %c0_i32 = arith.constant 0 : i32
    %c0_i32_0 = arith.constant 0 : i32
    %c0_i32_1 = arith.constant 0 : i32
    return %c0_i32, %c0_i32_0 : i32, i32
  }
  func.func @transform_2(%arg0: i32) -> (i32, i32) {
    %c0_i32 = arith.constant 0 : i32
    %c0_i32_0 = arith.constant 0 : i32
    %c0_i32_1 = arith.constant 0 : i32
    return %c0_i32, %c0_i32_0 : i32, i32
  }
  func.func @transform_3(%arg0: i32) -> (i32, i32) {
    %c0_i32 = arith.constant 0 : i32
    %c0_i32_0 = arith.constant 0 : i32
    return %arg0, %c0_i32 : i32, i32
  }
}

module attributes {stable_mosaic.version = 11 : i64} {
  func.func @_matmul_bias_kernel(%arg0: i32, %arg1: memref<128x16xf32, #tpu.memory_space<vmem>>, %arg2: memref<16x32xbf16, #tpu.memory_space<vmem>>, %arg3: memref<1x32xf32, #tpu.memory_space<vmem>>, %arg4: memref<128x32xf32, #tpu.memory_space<vmem>>) attributes {dimension_semantics = [#tpu.dimension_semantics<parallel>], iteration_bounds = array<i64: 1>, scalar_prefetch = 0 : i64, scratch_operands = 0 : i64, tpu.core_type = #tpu.core_type<tc>, window_params = [{transform_indices = @transform_0, window_bounds = array<i64: 128, 16>}, {pipeline_mode = #tpu.pipeline_mode<synchronous>, transform_indices = @transform_1, window_bounds = array<i64: 16, 32>}, {pipeline_mode = #tpu.pipeline_mode<synchronous>, transform_indices = @transform_2, window_bounds = array<i64: 1, 32>}, {transform_indices = @transform_3, window_bounds = array<i64: 128, 32>}]} {
    %c0 = arith.constant 0 : index
    %c0_0 = arith.constant 0 : index
    %0 = vector.load %arg1[%c0, %c0_0] : memref<128x16xf32, #tpu.memory_space<vmem>>, vector<128x16xf32>
    %1 = arith.truncf %0 : vector<128x16xf32> to vector<128x16xbf16>
    %c0_1 = arith.constant 0 : index
    %c0_2 = arith.constant 0 : index
    %2 = vector.load %arg2[%c0_1, %c0_2] : memref<16x32xbf16, #tpu.memory_space<vmem>>, vector<16x32xbf16>
    %cst = arith.constant dense<0.000000e+00> : vector<128x32xf32>
    %3 = tpu.matmul %1, %2, %cst {dimension_numbers = #tpu.dot_dimension_numbers<[1], [0], [0], [1], [0, 0, 1, 1], [], []>} : vector<128x16xbf16>, vector<16x32xbf16>, vector<128x32xf32> -> vector<128x32xf32>
    %c0_3 = arith.constant 0 : index
    %c0_4 = arith.constant 0 : index
    %4 = vector.load %arg3[%c0_3, %c0_4] : memref<1x32xf32, #tpu.memory_space<vmem>>, vector<1x32xf32>
    %5 = vector.broadcast %4 : vector<1x32xf32> to vector<128x32xf32>
    %6 = arith.addf %3, %5 : vector<128x32xf32>
    %c0_5 = arith.constant 0 : index
    %c0_6 = arith.constant 0 : index
    %7 = vector.load %arg4[%c0_5, %c0_6] : memref<128x32xf32, #tpu.memory_space<vmem>>, vector<128x32xf32>
    tpu.vector_store %arg4[%c0_5, %c0_6], %6 {strides = array<i32>} : memref<128x32xf32, #tpu.memory_space<vmem>>, vector<128x32xf32>,
    return
  }
  func.func @transform_0(%arg0: i32) -> (i32, i32) {
    %c0_i32 = arith.constant 0 : i32
    %c0_i32_0 = arith.constant 0 : i32
    return %arg0, %c0_i32 : i32, i32
  }
  func.func @transform_1(%arg0: i32) -> (i32, i32) {
    %c0_i32 = arith.constant 0 : i32
    %c0_i32_0 = arith.constant 0 : i32
    %c0_i32_1 = arith.constant 0 : i32
    return %c0_i32, %c0_i32_0 : i32, i32
  }
  func.func @transform_2(%arg0: i32) -> (i32, i32) {
    %c0_i32 = arith.constant 0 : i32
    %c0_i32_0 = arith.constant 0 : i32
    %c0_i32_1 = arith.constant 0 : i32
    return %c0_i32, %c0_i32_0 : i32, i32
  }
  func.func @transform_3(%arg0: i32) -> (i32, i32) {
    %c0_i32 = arith.constant 0 : i32
    %c0_i32_0 = arith.constant 0 : i32
    return %arg0, %c0_i32 : i32, i32
  }
}

module attributes {stable_mosaic.version = 11 : i64} {
  func.func @_matmul_bias_kernel(%arg0: i32, %arg1: memref<128x288xf32, #tpu.memory_space<vmem>>, %arg2: memref<288x32xbf16, #tpu.memory_space<vmem>>, %arg3: memref<1x32xf32, #tpu.memory_space<vmem>>, %arg4: memref<128x32xf32, #tpu.memory_space<vmem>>) attributes {dimension_semantics = [#tpu.dimension_semantics<parallel>], iteration_bounds = array<i64: 1>, scalar_prefetch = 0 : i64, scratch_operands = 0 : i64, tpu.core_type = #tpu.core_type<tc>, window_params = [{transform_indices = @transform_0, window_bounds = array<i64: 128, 288>}, {pipeline_mode = #tpu.pipeline_mode<synchronous>, transform_indices = @transform_1, window_bounds = array<i64: 288, 32>}, {pipeline_mode = #tpu.pipeline_mode<synchronous>, transform_indices = @transform_2, window_bounds = array<i64: 1, 32>}, {transform_indices = @transform_3, window_bounds = array<i64: 128, 32>}]} {
    %c0 = arith.constant 0 : index
    %c0_0 = arith.constant 0 : index
    %0 = vector.load %arg1[%c0, %c0_0] : memref<128x288xf32, #tpu.memory_space<vmem>>, vector<128x288xf32>
    %1 = arith.truncf %0 : vector<128x288xf32> to vector<128x288xbf16>
    %c0_1 = arith.constant 0 : index
    %c0_2 = arith.constant 0 : index
    %2 = vector.load %arg2[%c0_1, %c0_2] : memref<288x32xbf16, #tpu.memory_space<vmem>>, vector<288x32xbf16>
    %cst = arith.constant dense<0.000000e+00> : vector<128x32xf32>
    %3 = tpu.matmul %1, %2, %cst {dimension_numbers = #tpu.dot_dimension_numbers<[1], [0], [0], [1], [0, 0, 1, 1], [], []>} : vector<128x288xbf16>, vector<288x32xbf16>, vector<128x32xf32> -> vector<128x32xf32>
    %c0_3 = arith.constant 0 : index
    %c0_4 = arith.constant 0 : index
    %4 = vector.load %arg3[%c0_3, %c0_4] : memref<1x32xf32, #tpu.memory_space<vmem>>, vector<1x32xf32>
    %5 = vector.broadcast %4 : vector<1x32xf32> to vector<128x32xf32>
    %6 = arith.addf %3, %5 : vector<128x32xf32>
    %c0_5 = arith.constant 0 : index
    %c0_6 = arith.constant 0 : index
    %7 = vector.load %arg4[%c0_5, %c0_6] : memref<128x32xf32, #tpu.memory_space<vmem>>, vector<128x32xf32>
    tpu.vector_store %arg4[%c0_5, %c0_6], %6 {strides = array<i32>} : memref<128x32xf32, #tpu.memory_space<vmem>>, vector<128x32xf32>,
    return
  }
  func.func @transform_0(%arg0: i32) -> (i32, i32) {
    %c0_i32 = arith.constant 0 : i32
    %c0_i32_0 = arith.constant 0 : i32
    return %arg0, %c0_i32 : i32, i32
  }
  func.func @transform_1(%arg0: i32) -> (i32, i32) {
    %c0_i32 = arith.constant 0 : i32
    %c0_i32_0 = arith.constant 0 : i32
    %c0_i32_1 = arith.constant 0 : i32
    return %c0_i32, %c0_i32_0 : i32, i32
  }
  func.func @transform_2(%arg0: i32) -> (i32, i32) {
    %c0_i32 = arith.constant 0 : i32
    %c0_i32_0 = arith.constant 0 : i32
    %c0_i32_1 = arith.constant 0 : i32
    return %c0_i32, %c0_i32_0 : i32, i32
  }
  func.func @transform_3(%arg0: i32) -> (i32, i32) {
    %c0_i32 = arith.constant 0 : i32
    %c0_i32_0 = arith.constant 0 : i32
    return %arg0, %c0_i32 : i32, i32
  }
}

module attributes {stable_mosaic.version = 11 : i64} {
  func.func @_matmul_bias_kernel(%arg0: i32, %arg1: memref<172x288xf32, #tpu.memory_space<vmem>>, %arg2: memref<288x96xbf16, #tpu.memory_space<vmem>>, %arg3: memref<1x96xf32, #tpu.memory_space<vmem>>, %arg4: memref<172x96xf32, #tpu.memory_space<vmem>>) attributes {dimension_semantics = [#tpu.dimension_semantics<parallel>], iteration_bounds = array<i64: 1>, scalar_prefetch = 0 : i64, scratch_operands = 0 : i64, tpu.core_type = #tpu.core_type<tc>, window_params = [{transform_indices = @transform_0, window_bounds = array<i64: 172, 288>}, {pipeline_mode = #tpu.pipeline_mode<synchronous>, transform_indices = @transform_1, window_bounds = array<i64: 288, 96>}, {pipeline_mode = #tpu.pipeline_mode<synchronous>, transform_indices = @transform_2, window_bounds = array<i64: 1, 96>}, {transform_indices = @transform_3, window_bounds = array<i64: 172, 96>}]} {
    %c0 = arith.constant 0 : index
    %c0_0 = arith.constant 0 : index
    %0 = vector.load %arg1[%c0, %c0_0] : memref<172x288xf32, #tpu.memory_space<vmem>>, vector<172x288xf32>
    %1 = arith.truncf %0 : vector<172x288xf32> to vector<172x288xbf16>
    %c0_1 = arith.constant 0 : index
    %c0_2 = arith.constant 0 : index
    %2 = vector.load %arg2[%c0_1, %c0_2] : memref<288x96xbf16, #tpu.memory_space<vmem>>, vector<288x96xbf16>
    %cst = arith.constant dense<0.000000e+00> : vector<172x96xf32>
    %3 = tpu.matmul %1, %2, %cst {dimension_numbers = #tpu.dot_dimension_numbers<[1], [0], [0], [1], [0, 0, 1, 1], [], []>} : vector<172x288xbf16>, vector<288x96xbf16>, vector<172x96xf32> -> vector<172x96xf32>
    %c0_3 = arith.constant 0 : index
    %c0_4 = arith.constant 0 : index
    %4 = vector.load %arg3[%c0_3, %c0_4] : memref<1x96xf32, #tpu.memory_space<vmem>>, vector<1x96xf32>
    %5 = vector.broadcast %4 : vector<1x96xf32> to vector<172x96xf32>
    %6 = arith.addf %3, %5 : vector<172x96xf32>
    %cst_5 = arith.constant 0.000000e+00 : f32
    %7 = vector.broadcast %cst_5 : f32 to vector<172x96xf32>
    %8 = arith.maximumf %6, %7 : vector<172x96xf32>
    %c0_6 = arith.constant 0 : index
    %c0_7 = arith.constant 0 : index
    %9 = vector.load %arg4[%c0_6, %c0_7] : memref<172x96xf32, #tpu.memory_space<vmem>>, vector<172x96xf32>
    tpu.vector_store %arg4[%c0_6, %c0_7], %8 {strides = array<i32>} : memref<172x96xf32, #tpu.memory_space<vmem>>, vector<172x96xf32>,
    return
  }
  func.func @transform_0(%arg0: i32) -> (i32, i32) {
    %c0_i32 = arith.constant 0 : i32
    %c0_i32_0 = arith.constant 0 : i32
    return %arg0, %c0_i32 : i32, i32
  }
  func.func @transform_1(%arg0: i32) -> (i32, i32) {
    %c0_i32 = arith.constant 0 : i32
    %c0_i32_0 = arith.constant 0 : i32
    %c0_i32_1 = arith.constant 0 : i32
    return %c0_i32, %c0_i32_0 : i32, i32
  }
  func.func @transform_2(%arg0: i32) -> (i32, i32) {
    %c0_i32 = arith.constant 0 : i32
    %c0_i32_0 = arith.constant 0 : i32
    %c0_i32_1 = arith.constant 0 : i32
    return %c0_i32, %c0_i32_0 : i32, i32
  }
  func.func @transform_3(%arg0: i32) -> (i32, i32) {
    %c0_i32 = arith.constant 0 : i32
    %c0_i32_0 = arith.constant 0 : i32
    return %arg0, %c0_i32 : i32, i32
  }
}

module attributes {stable_mosaic.version = 11 : i64} {
  func.func @_matmul_bias_kernel(%arg0: i32, %arg1: memref<172x864xf32, #tpu.memory_space<vmem>>, %arg2: memref<864x96xbf16, #tpu.memory_space<vmem>>, %arg3: memref<1x96xf32, #tpu.memory_space<vmem>>, %arg4: memref<172x96xf32, #tpu.memory_space<vmem>>) attributes {dimension_semantics = [#tpu.dimension_semantics<parallel>], iteration_bounds = array<i64: 1>, scalar_prefetch = 0 : i64, scratch_operands = 0 : i64, tpu.core_type = #tpu.core_type<tc>, window_params = [{transform_indices = @transform_0, window_bounds = array<i64: 172, 864>}, {pipeline_mode = #tpu.pipeline_mode<synchronous>, transform_indices = @transform_1, window_bounds = array<i64: 864, 96>}, {pipeline_mode = #tpu.pipeline_mode<synchronous>, transform_indices = @transform_2, window_bounds = array<i64: 1, 96>}, {transform_indices = @transform_3, window_bounds = array<i64: 172, 96>}]} {
    %c0 = arith.constant 0 : index
    %c0_0 = arith.constant 0 : index
    %0 = vector.load %arg1[%c0, %c0_0] : memref<172x864xf32, #tpu.memory_space<vmem>>, vector<172x864xf32>
    %1 = arith.truncf %0 : vector<172x864xf32> to vector<172x864xbf16>
    %c0_1 = arith.constant 0 : index
    %c0_2 = arith.constant 0 : index
    %2 = vector.load %arg2[%c0_1, %c0_2] : memref<864x96xbf16, #tpu.memory_space<vmem>>, vector<864x96xbf16>
    %cst = arith.constant dense<0.000000e+00> : vector<172x96xf32>
    %3 = tpu.matmul %1, %2, %cst {dimension_numbers = #tpu.dot_dimension_numbers<[1], [0], [0], [1], [0, 0, 1, 1], [], []>} : vector<172x864xbf16>, vector<864x96xbf16>, vector<172x96xf32> -> vector<172x96xf32>
    %c0_3 = arith.constant 0 : index
    %c0_4 = arith.constant 0 : index
    %4 = vector.load %arg3[%c0_3, %c0_4] : memref<1x96xf32, #tpu.memory_space<vmem>>, vector<1x96xf32>
    %5 = vector.broadcast %4 : vector<1x96xf32> to vector<172x96xf32>
    %6 = arith.addf %3, %5 : vector<172x96xf32>
    %cst_5 = arith.constant 0.000000e+00 : f32
    %7 = vector.broadcast %cst_5 : f32 to vector<172x96xf32>
    %8 = arith.maximumf %6, %7 : vector<172x96xf32>
    %c0_6 = arith.constant 0 : index
    %c0_7 = arith.constant 0 : index
    %9 = vector.load %arg4[%c0_6, %c0_7] : memref<172x96xf32, #tpu.memory_space<vmem>>, vector<172x96xf32>
    tpu.vector_store %arg4[%c0_6, %c0_7], %8 {strides = array<i32>} : memref<172x96xf32, #tpu.memory_space<vmem>>, vector<172x96xf32>,
    return
  }
  func.func @transform_0(%arg0: i32) -> (i32, i32) {
    %c0_i32 = arith.constant 0 : i32
    %c0_i32_0 = arith.constant 0 : i32
    return %arg0, %c0_i32 : i32, i32
  }
  func.func @transform_1(%arg0: i32) -> (i32, i32) {
    %c0_i32 = arith.constant 0 : i32
    %c0_i32_0 = arith.constant 0 : i32
    %c0_i32_1 = arith.constant 0 : i32
    return %c0_i32, %c0_i32_0 : i32, i32
  }
  func.func @transform_2(%arg0: i32) -> (i32, i32) {
    %c0_i32 = arith.constant 0 : i32
    %c0_i32_0 = arith.constant 0 : i32
    %c0_i32_1 = arith.constant 0 : i32
    return %c0_i32, %c0_i32_0 : i32, i32
  }
  func.func @transform_3(%arg0: i32) -> (i32, i32) {
    %c0_i32 = arith.constant 0 : i32
    %c0_i32_0 = arith.constant 0 : i32
    return %arg0, %c0_i32 : i32, i32
  }
}

module attributes {stable_mosaic.version = 11 : i64} {
  func.func @_matmul_bias_kernel(%arg0: i32, %arg1: memref<172x864xf32, #tpu.memory_space<vmem>>, %arg2: memref<864x10xbf16, #tpu.memory_space<vmem>>, %arg3: memref<1x10xf32, #tpu.memory_space<vmem>>, %arg4: memref<172x10xf32, #tpu.memory_space<vmem>>) attributes {dimension_semantics = [#tpu.dimension_semantics<parallel>], iteration_bounds = array<i64: 1>, scalar_prefetch = 0 : i64, scratch_operands = 0 : i64, tpu.core_type = #tpu.core_type<tc>, window_params = [{transform_indices = @transform_0, window_bounds = array<i64: 172, 864>}, {pipeline_mode = #tpu.pipeline_mode<synchronous>, transform_indices = @transform_1, window_bounds = array<i64: 864, 10>}, {pipeline_mode = #tpu.pipeline_mode<synchronous>, transform_indices = @transform_2, window_bounds = array<i64: 1, 10>}, {transform_indices = @transform_3, window_bounds = array<i64: 172, 10>}]} {
    %c0 = arith.constant 0 : index
    %c0_0 = arith.constant 0 : index
    %0 = vector.load %arg1[%c0, %c0_0] : memref<172x864xf32, #tpu.memory_space<vmem>>, vector<172x864xf32>
    %1 = arith.truncf %0 : vector<172x864xf32> to vector<172x864xbf16>
    %c0_1 = arith.constant 0 : index
    %c0_2 = arith.constant 0 : index
    %2 = vector.load %arg2[%c0_1, %c0_2] : memref<864x10xbf16, #tpu.memory_space<vmem>>, vector<864x10xbf16>
    %cst = arith.constant dense<0.000000e+00> : vector<172x10xf32>
    %3 = tpu.matmul %1, %2, %cst {dimension_numbers = #tpu.dot_dimension_numbers<[1], [0], [0], [1], [0, 0, 1, 1], [], []>} : vector<172x864xbf16>, vector<864x10xbf16>, vector<172x10xf32> -> vector<172x10xf32>
    %c0_3 = arith.constant 0 : index
    %c0_4 = arith.constant 0 : index
    %4 = vector.load %arg3[%c0_3, %c0_4] : memref<1x10xf32, #tpu.memory_space<vmem>>, vector<1x10xf32>
    %5 = vector.broadcast %4 : vector<1x10xf32> to vector<172x10xf32>
    %6 = arith.addf %3, %5 : vector<172x10xf32>
    %c0_5 = arith.constant 0 : index
    %c0_6 = arith.constant 0 : index
    %7 = vector.load %arg4[%c0_5, %c0_6] : memref<172x10xf32, #tpu.memory_space<vmem>>, vector<172x10xf32>
    tpu.vector_store %arg4[%c0_5, %c0_6], %6 {strides = array<i32>} : memref<172x10xf32, #tpu.memory_space<vmem>>, vector<172x10xf32>,
    return
  }
  func.func @transform_0(%arg0: i32) -> (i32, i32) {
    %c0_i32 = arith.constant 0 : i32
    %c0_i32_0 = arith.constant 0 : i32
    return %arg0, %c0_i32 : i32, i32
  }
  func.func @transform_1(%arg0: i32) -> (i32, i32) {
    %c0_i32 = arith.constant 0 : i32
    %c0_i32_0 = arith.constant 0 : i32
    %c0_i32_1 = arith.constant 0 : i32
    return %c0_i32, %c0_i32_0 : i32, i32
  }
  func.func @transform_2(%arg0: i32) -> (i32, i32) {
    %c0_i32 = arith.constant 0 : i32
    %c0_i32_0 = arith.constant 0 : i32
    %c0_i32_1 = arith.constant 0 : i32
    return %c0_i32, %c0_i32_0 : i32, i32
  }
  func.func @transform_3(%arg0: i32) -> (i32, i32) {
    %c0_i32 = arith.constant 0 : i32
    %c0_i32_0 = arith.constant 0 : i32
    return %arg0, %c0_i32 : i32, i32
  }
}

</mosaic_0001>

<bundles_post_ra>
// kernel: fcos_forward.18
= control target key start
LH: loop header
LB: loop body
LE: loop exit
PB: predicated region body
PF: predicated region fallthrough
CT: control target
= control target key end

     0   :  { %s1359_s12 = smov 0   ;;  %s1982_s0 = inlined_call_operand.vmem [shape: f32[2048,27], index: 0, kind: input, shape index: {}]   ;;  %s1983_s1 = inlined_call_operand.vmem [shape: bf16[27,8], index: 1, kind: input, shape index: {}]   ;;  %s1984_s2 = inlined_call_operand.vmem [shape: f32[1,8], index: 2, kind: input, shape index: {}]   ;;  %s1985_s3 = inlined_call_operand.vmem [shape: f32[2048,8], index: 3, kind: output, shape index: {}]  }
   0x1 LB: > { %s1228_s13 = sadd.s32 4294967295, %s1336_s12   ;;  %p1232_p0 = scmp.ge.s32.totalorder %s1336_s12, 1  ;;  %s1336_s12 = sphi %s1359_s12, %s13_s12  }
   0x2   : > { %p138_p1 = scmp.lt.s32.totalorder %s1336_s12, 3 }
   0x4   : > { %p139_p2 = pnand %p1232_p0, %p138_p1 }
   0x5   : > { %s1233_s18 = sshll.u32 (!%p139_p2), %s1228_s13, 7 }
   0x6   : > { %142 = sbr.rel (%p139_p2) target bundleno = 411 (0x19b), region = 32  ;;  %p163_p3 = scmp.lt.s32.totalorder (!%p139_p2), %s1233_s18, 255 }
   0xb   : > { %v1243_v0 = vld [vmem:[%s1983_s1 + $0x8] sm:$0xf]  ;;  %v1312_v1 = vld [vmem:[%s1983_s1 + $0x8] sm:$0x30]  ;;  %vm579_vm0 = vcmask 1044480   ;;  %vm580_vm1 = vcmask 1045504  }
   0xc   : > { %v1244_v2 = vor.u32 %v1312_v1, %v1243_v0  ;;  %v1338_v3 = vmov 65535   ;;  %s1987_s18 = smov (!%p163_p3, %s1233_s18), 255  ;;  %v1311_v7 = vld [vmem:[%s1983_s1] sm:$0xff]  ;;  %vm386_vm2 = vcmask 220160   ;;  %vm1043_vm3 = vcmask 64512  }
   0xd   : > { %v581_v4 = vsel %vm579_vm0, 4294967295, %v1338_v3  ;;  %s1234_s21 = sshll.u32 %s1987_s18, 3 }
   0xe   : > { %v582_v5 = vsel %vm580_vm1, %v581_v4, 0  ;;  %s1384_s24 = scalar_lea.vmem %s1982_s0, %s1234_s21  ;;  %s1502_s29 = scalar_lea.vmem %s1985_s3, %s1234_s21 }
   0xf   : > { %v584_v6 = vand.u32 %v1244_v2, %v582_v5  ;;  %v175_v8 = vld [vmem:[%s1384_s24] sm:$0xff]  ;;  %v176_v9 = vld [vmem:[%s1384_s24 + $0x8] sm:$0xff]  ;;  %v177_v20 = vld [vmem:[%s1384_s24 + $0x10] sm:$0xff] }
  0x10   : > { %v207_v10 = vld [vmem:[%s1384_s24 + $0x100] sm:$0xff]  ;;  %v303_v11 = vpack.c.bf16 %v176_v9, %v175_v8  ;;  %v208_v12 = vld [vmem:[%s1384_s24 + $0x108] sm:$0xff]  ;;  %v178_v21 = vld [vmem:[%s1384_s24 + $0x18] sm:$0xff] }
  0x11   : > { %592 = vmatpush.bf16.msra.mxu0 %v584_v6  ;;  %1313 = vmatpush.bf16.msra.mxu1 %v584_v6  ;;  %v239_v13 = vld [vmem:[%s1384_s24 + $0x200] sm:$0xff]  ;;  %v240_v14 = vld [vmem:[%s1384_s24 + $0x208] sm:$0xff]  ;;  %v319_v15 = vpack.c.bf16 %v208_v12, %v207_v10  ;;  %v209_v22 = vld [vmem:[%s1384_s24 + $0x110] sm:$0xff]  ;;  %v304_v28 = vpack.c.bf16 %v178_v21, %v177_v20 }
  0x12   : > { %1314 = vmatpush.bf16.msra.mxu2 %v584_v6  ;;  %1315 = vmatpush.bf16.msra.mxu3 %v584_v6  ;;  %v335_v16 = vpack.c.bf16 %v240_v14, %v239_v13  ;;  %v271_v17 = vld [vmem:[%s1384_s24 + $0x300] sm:$0xff]  ;;  %v272_v18 = vld [vmem:[%s1384_s24 + $0x308] sm:$0xff]  ;;  %v210_v23 = vld [vmem:[%s1384_s24 + $0x118] sm:$0xff] }
  0x13   : > { %v351_v19 = vpack.c.bf16 %v272_v18, %v271_v17  ;;  %v241_v24 = vld [vmem:[%s1384_s24 + $0x210] sm:$0xff]  ;;  %v242_v25 = vld [vmem:[%s1384_s24 + $0x218] sm:$0xff]  ;;  %v320_v29 = vpack.c.bf16 %v210_v23, %v209_v22  ;;  %v179_v32 = vld [vmem:[%s1384_s24 + $0x20] sm:$0xff] }
  0x14   : > { %v273_v26 = vld [vmem:[%s1384_s24 + $0x310] sm:$0xff]  ;;  %v274_v27 = vld [vmem:[%s1384_s24 + $0x318] sm:$0xff]  ;;  %v336_v30 = vpack.c.bf16 %v242_v25, %v241_v24  ;;  %v180_v33 = vld [vmem:[%s1384_s24 + $0x28] sm:$0xff] }
  0x15   : > { %593 = vmatpush.bf16.msra.mxu0 %v1311_v7  ;;  %1316 = vmatpush.bf16.msra.mxu1 %v1311_v7  ;;  %v352_v31 = vpack.c.bf16 %v274_v27, %v273_v26  ;;  %v211_v34 = vld [vmem:[%s1384_s24 + $0x120] sm:$0xff]  ;;  %v212_v35 = vld [vmem:[%s1384_s24 + $0x128] sm:$0xff]  ;;  %v305_v40 = vpack.c.bf16 %v180_v33, %v179_v32  ;;  %v181_v44 = vld [vmem:[%s1384_s24 + $0x30] sm:$0xff] }
  0x16   : > { %1317 = vmatpush.bf16.msra.mxu2 %v1311_v7  ;;  %1318 = vmatpush.bf16.msra.mxu3 %v1311_v7  ;;  %v243_v36 = vld [vmem:[%s1384_s24 + $0x220] sm:$0xff]  ;;  %v244_v37 = vld [vmem:[%s1384_s24 + $0x228] sm:$0xff]  ;;  %v321_v41 = vpack.c.bf16 %v212_v35, %v211_v34  ;;  %v182_v45 = vld [vmem:[%s1384_s24 + $0x38] sm:$0xff] }
  0x17   : > { %v275_v38 = vld [vmem:[%s1384_s24 + $0x320] sm:$0xff]  ;;  %v276_v39 = vld [vmem:[%s1384_s24 + $0x328] sm:$0xff]  ;;  %v337_v42 = vpack.c.bf16 %v244_v37, %v243_v36  ;;  %v213_v46 = vld [vmem:[%s1384_s24 + $0x130] sm:$0xff]  ;;  %v306_v52 = vpack.c.bf16 %v182_v45, %v181_v44 }
  0x18   : > { %1245 = vmatmul.msk.bf16.vlgmr.msra.gmra.mxu0 %vm386_vm2, %v303_v11  ;;  %1261 = vmatmul.msk.bf16.vlgmr.msra.gmra.mxu1 %vm386_vm2, %v319_v15  ;;  %v353_v43 = vpack.c.bf16 %v276_v39, %v275_v38  ;;  %v214_v47 = vld [vmem:[%s1384_s24 + $0x138] sm:$0xff]  ;;  %v245_v48 = vld [vmem:[%s1384_s24 + $0x230] sm:$0xff]  ;;  %v183_v56 = vld [vmem:[%s1384_s24 + $0x40] sm:$0xff] }
  0x19   : > { %1277 = vmatmul.msk.bf16.vlgmr.msra.gmra.mxu2 %vm386_vm2, %v335_v16  ;;  %1293 = vmatmul.msk.bf16.vlgmr.msra.gmra.mxu3 %vm386_vm2, %v351_v19  ;;  %v246_v49 = vld [vmem:[%s1384_s24 + $0x238] sm:$0xff]  ;;  %v277_v50 = vld [vmem:[%s1384_s24 + $0x330] sm:$0xff]  ;;  %v322_v53 = vpack.c.bf16 %v214_v47, %v213_v46  ;;  %v184_v57 = vld [vmem:[%s1384_s24 + $0x48] sm:$0xff] }
  0x1a   : > { %v278_v51 = vld [vmem:[%s1384_s24 + $0x338] sm:$0xff]  ;;  %v338_v54 = vpack.c.bf16 %v246_v49, %v245_v48  ;;  %v215_v58 = vld [vmem:[%s1384_s24 + $0x140] sm:$0xff]  ;;  %v216_v59 = vld [vmem:[%s1384_s24 + $0x148] sm:$0xff]  ;;  %v307_v0 = vpack.c.bf16 %v184_v57, %v183_v56 }
  0x1b   : > { %v354_v55 = vpack.c.bf16 %v278_v51, %v277_v50  ;;  %v247_v60 = vld [vmem:[%s1384_s24 + $0x240] sm:$0xff]  ;;  %v248_v61 = vld [vmem:[%s1384_s24 + $0x248] sm:$0xff]  ;;  %v323_v1 = vpack.c.bf16 %v216_v59, %v215_v58  ;;  %v185_v4 = vld [vmem:[%s1384_s24 + $0x50] sm:$0xff] }
  0x1c   : > { %v279_v62 = vld [vmem:[%s1384_s24 + $0x340] sm:$0xff]  ;;  %v280_v63 = vld [vmem:[%s1384_s24 + $0x348] sm:$0xff]  ;;  %v339_v2 = vpack.c.bf16 %v248_v61, %v247_v60  ;;  %v186_v5 = vld [vmem:[%s1384_s24 + $0x58] sm:$0xff] }
  0x1d   : > { %v355_v3 = vpack.c.bf16 %v280_v63, %v279_v62  ;;  %v217_v6 = vld [vmem:[%s1384_s24 + $0x150] sm:$0xff]  ;;  %v218_v7 = vld [vmem:[%s1384_s24 + $0x158] sm:$0xff]  ;;  %v308_v12 = vpack.c.bf16 %v186_v5, %v185_v4  ;;  %v187_v16 = vld [vmem:[%s1384_s24 + $0x60] sm:$0xff] }
  0x1e   : > { %v249_v8 = vld [vmem:[%s1384_s24 + $0x250] sm:$0xff]  ;;  %v250_v9 = vld [vmem:[%s1384_s24 + $0x258] sm:$0xff]  ;;  %v324_v13 = vpack.c.bf16 %v218_v7, %v217_v6  ;;  %v188_v17 = vld [vmem:[%s1384_s24 + $0x68] sm:$0xff] }
  0x1f   : > { %v281_v10 = vld [vmem:[%s1384_s24 + $0x350] sm:$0xff]  ;;  %v282_v11 = vld [vmem:[%s1384_s24 + $0x358] sm:$0xff]  ;;  %v340_v14 = vpack.c.bf16 %v250_v9, %v249_v8  ;;  %v219_v18 = vld [vmem:[%s1384_s24 + $0x160] sm:$0xff]  ;;  %v309_v24 = vpack.c.bf16 %v188_v17, %v187_v16 }
  0x20   : > { %v356_v15 = vpack.c.bf16 %v282_v11, %v281_v10  ;;  %v220_v19 = vld [vmem:[%s1384_s24 + $0x168] sm:$0xff]  ;;  %v251_v20 = vld [vmem:[%s1384_s24 + $0x260] sm:$0xff]  ;;  %v253_v32 = vld [vmem:[%s1384_s24 + $0x270] sm:$0xff] }
  0x21   : > { %v252_v21 = vld [vmem:[%s1384_s24 + $0x268] sm:$0xff]  ;;  %v283_v22 = vld [vmem:[%s1384_s24 + $0x360] sm:$0xff]  ;;  %v325_v25 = vpack.c.bf16 %v220_v19, %v219_v18  ;;  %v254_v33 = vld [vmem:[%s1384_s24 + $0x278] sm:$0xff] }
  0x22   : > { %v284_v23 = vld [vmem:[%s1384_s24 + $0x368] sm:$0xff]  ;;  %v341_v26 = vpack.c.bf16 %v252_v21, %v251_v20  ;;  %v285_v34 = vld [vmem:[%s1384_s24 + $0x370] sm:$0xff]  ;;  %v286_v35 = vld [vmem:[%s1384_s24 + $0x378] sm:$0xff]  ;;  %v342_v38 = vpack.c.bf16 %v254_v33, %v253_v32 }
  0x23   : > { %v357_v27 = vpack.c.bf16 %v284_v23, %v283_v22  ;;  %v358_v39 = vpack.c.bf16 %v286_v35, %v285_v34  ;;  %v224_v44 = vld [vmem:[%s1384_s24 + $0x188] sm:$0xff]  ;;  %v255_v45 = vld [vmem:[%s1384_s24 + $0x280] sm:$0xff]  ;;  %v193_v7 = vld [vmem:[%s1384_s24 + $0x90] sm:$0xff] }
  0x24   : > { %v256_v46 = vld [vmem:[%s1384_s24 + $0x288] sm:$0xff]  ;;  %v287_v47 = vld [vmem:[%s1384_s24 + $0x380] sm:$0xff]  ;;  %v194_v8 = vld [vmem:[%s1384_s24 + $0x98] sm:$0xff] }
  0x25   : > { %v288_v48 = vld [vmem:[%s1384_s24 + $0x388] sm:$0xff]  ;;  %v225_v9 = vld [vmem:[%s1384_s24 + $0x190] sm:$0xff]  ;;  %v226_v10 = vld [vmem:[%s1384_s24 + $0x198] sm:$0xff]  ;;  %v312_v17 = vpack.c.bf16 %v194_v8, %v193_v7 }
  0x26   : > { %v257_v11 = vld [vmem:[%s1384_s24 + $0x290] sm:$0xff]  ;;  %v328_v18 = vpack.c.bf16 %v226_v10, %v225_v9 }
  0x28   : > { %1246 = vmatmul.msk.bf16.gmra.mxu0 %vm386_vm2, %v304_v28  ;;  %1262 = vmatmul.msk.bf16.gmra.mxu1 %vm386_vm2, %v320_v29  ;;  %v189_v28 = vld [vmem:[%s1384_s24 + $0x70] sm:$0xff]  ;;  %v190_v29 = vld [vmem:[%s1384_s24 + $0x78] sm:$0xff] }
  0x29   : > { %1278 = vmatmul.msk.bf16.gmra.mxu2 %vm386_vm2, %v336_v30  ;;  %1294 = vmatmul.msk.bf16.gmra.mxu3 %vm386_vm2, %v352_v31  ;;  %v221_v30 = vld [vmem:[%s1384_s24 + $0x170] sm:$0xff]  ;;  %v222_v31 = vld [vmem:[%s1384_s24 + $0x178] sm:$0xff]  ;;  %v310_v36 = vpack.c.bf16 %v190_v29, %v189_v28 }
  0x2a   : > { %v326_v37 = vpack.c.bf16 %v222_v31, %v221_v30 }
  0x38   : > { %1247 = vmatmul.msk.bf16.gmra.mxu0 %vm386_vm2, %v305_v40  ;;  %1263 = vmatmul.msk.bf16.gmra.mxu1 %vm386_vm2, %v321_v41  ;;  %v1485_v40 = vld [vmem:[%s1984_s2] ss:$0 sm:$0xff] }
  0x39   : > { %1279 = vmatmul.msk.bf16.gmra.mxu2 %vm386_vm2, %v337_v42  ;;  %1295 = vmatmul.msk.bf16.gmra.mxu3 %vm386_vm2, %v353_v43  ;;  %v191_v41 = vld [vmem:[%s1384_s24 + $0x80] sm:$0xff]  ;;  %v192_v42 = vld [vmem:[%s1384_s24 + $0x88] sm:$0xff] }
  0x3a   : > { %v223_v43 = vld [vmem:[%s1384_s24 + $0x180] sm:$0xff]  ;;  %v311_v49 = vpack.c.bf16 %v192_v42, %v191_v41 }
  0x3b   : > { %v327_v50 = vpack.c.bf16 %v224_v44, %v223_v43  ;;  %v195_v44 = vld [vmem:[%s1384_s24 + $0xa0] sm:$0xff] }
  0x48   : > { %1248 = vmatmul.msk.bf16.gmra.mxu0 %vm386_vm2, %v306_v52  ;;  %1264 = vmatmul.msk.bf16.gmra.mxu1 %vm386_vm2, %v322_v53  ;;  %v343_v53 = vpack.c.bf16 %v256_v46, %v255_v45  ;;  %v196_v45 = vld [vmem:[%s1384_s24 + $0xa8] sm:$0xff]  ;;  %v227_v46 = vld [vmem:[%s1384_s24 + $0x1a0] sm:$0xff] }
  0x49   : > { %1280 = vmatmul.msk.bf16.gmra.mxu2 %vm386_vm2, %v338_v54  ;;  %1296 = vmatmul.msk.bf16.gmra.mxu3 %vm386_vm2, %v354_v55  ;;  %v359_v54 = vpack.c.bf16 %v288_v48, %v287_v47  ;;  %v228_v47 = vld [vmem:[%s1384_s24 + $0x1a8] sm:$0xff]  ;;  %v259_v48 = vld [vmem:[%s1384_s24 + $0x2a0] sm:$0xff] }
  0x58   : > { %1249 = vmatmul.msk.bf16.gmra.mxu0 %vm386_vm2, %v307_v0  ;;  %1265 = vmatmul.msk.bf16.gmra.mxu1 %vm386_vm2, %v323_v1 }
  0x59   : > { %1281 = vmatmul.msk.bf16.gmra.mxu2 %vm386_vm2, %v339_v2  ;;  %1297 = vmatmul.msk.bf16.gmra.mxu3 %vm386_vm2, %v355_v3 }
  0x68   : > { %1250 = vmatmul.msk.bf16.gmra.mxu0 %vm386_vm2, %v308_v12  ;;  %1266 = vmatmul.msk.bf16.gmra.mxu1 %vm386_vm2, %v324_v13  ;;  %v258_v12 = vld [vmem:[%s1384_s24 + $0x298] sm:$0xff]  ;;  %v289_v13 = vld [vmem:[%s1384_s24 + $0x390] sm:$0xff] }
  0x69   : > { %1282 = vmatmul.msk.bf16.gmra.mxu2 %vm386_vm2, %v340_v14  ;;  %1298 = vmatmul.msk.bf16.gmra.mxu3 %vm386_vm2, %v356_v15  ;;  %v290_v14 = vld [vmem:[%s1384_s24 + $0x398] sm:$0xff]  ;;  %v344_v23 = vpack.c.bf16 %v258_v12, %v257_v11 }
  0x78   : > { %1251 = vmatmul.msk.bf16.gmra.mxu0 %vm386_vm2, %v309_v24  ;;  %1267 = vmatmul.msk.bf16.gmra.mxu1 %vm386_vm2, %v325_v25  ;;  %v360_v24 = vpack.c.bf16 %v290_v14, %v289_v13 }
  0x79   : > { %1283 = vmatmul.msk.bf16.gmra.mxu2 %vm386_vm2, %v341_v26  ;;  %1299 = vmatmul.msk.bf16.gmra.mxu3 %vm386_vm2, %v357_v27 }
  0x88   : > { %1252 = vmatmul.msk.bf16.gmra.mxu0 %vm386_vm2, %v310_v36  ;;  %1268 = vmatmul.msk.bf16.gmra.mxu1 %vm386_vm2, %v326_v37 }
  0x89   : > { %1284 = vmatmul.msk.bf16.gmra.mxu2 %vm386_vm2, %v342_v38  ;;  %1300 = vmatmul.msk.bf16.gmra.mxu3 %vm386_vm2, %v358_v39 }
  0x95   : > { %v595_v51 = vpop.f32.mrf.mxu0  ;;  %v675_v52 = vpop.f32.mrf.mxu1 }
  0x96   : > { %v596_v55 = vadd.f32 %v1485_v40, %v595_v51  ;;  %v676_v56 = vadd.f32 %v1485_v40, %v675_v52  ;;  %v292_v51 = vld [vmem:[%s1384_s24 + $0x3a8] sm:$0xff] }
  0x98   : > { %v915_v57 = vmax.f32 %v596_v55, 0.0  ;;  %v947_v58 = vmax.f32 %v676_v56, 0.0  ;;  %1253 = vmatmul.msk.bf16.gmra.mxu0 %vm386_vm2, %v311_v49  ;;  %1269 = vmatmul.msk.bf16.gmra.mxu1 %vm386_vm2, %v327_v50  ;;  %v260_v49 = vld [vmem:[%s1384_s24 + $0x2a8] sm:$0xff]  ;;  %v291_v50 = vld [vmem:[%s1384_s24 + $0x3a0] sm:$0xff]  ;;  %v329_v55 = vpack.c.bf16 %v228_v47, %v227_v46 }
  0x99   : > { %1285 = vmatmul.msk.bf16.gmra.mxu2 %vm386_vm2, %v343_v53  ;;  %1301 = vmatmul.msk.bf16.gmra.mxu3 %vm386_vm2, %v359_v54  ;;  %v313_v54 = vpack.c.bf16 %v196_v45, %v195_v44 }
  0x9a   : > { %1044 = vst.msk [vmem:[%s1502_s29] sm:$0xff] %vm1043_vm3, %v915_v57 }
  0x9b   : > { %1076 = vst.msk [vmem:[%s1502_s29 + $0x100] sm:$0xff] %vm1043_vm3, %v947_v58 }
  0x9c   : > { %v755_v59 = vpop.f32.mrf.mxu2  ;;  %v835_v60 = vpop.f32.mrf.mxu3 }
  0x9d   : > { %v756_v61 = vadd.f32 %v1485_v40, %v755_v59  ;;  %v836_v62 = vadd.f32 %v1485_v40, %v835_v60  ;;  %v597_v63 = vpop.f32.mrf.mxu0  ;;  %v677_v0 = vpop.f32.mrf.mxu1  ;;  %v345_v60 = vpack.c.bf16 %v260_v49, %v259_v48 }
  0x9e   : > { %v598_v1 = vadd.f32 %v1485_v40, %v597_v63  ;;  %v678_v2 = vadd.f32 %v1485_v40, %v677_v0 }
  0x9f   : > { %v979_v3 = vmax.f32 %v756_v61, 0.0  ;;  %v1011_v4 = vmax.f32 %v836_v62, 0.0  ;;  %v361_v61 = vpack.c.bf16 %v292_v51, %v291_v50 }
  0xa0   : > { %v916_v5 = vmax.f32 %v598_v1, 0.0  ;;  %v948_v6 = vmax.f32 %v678_v2, 0.0 }
  0xa1   : > { %1108 = vst.msk [vmem:[%s1502_s29 + $0x200] sm:$0xff] %vm1043_vm3, %v979_v3 }
  0xa2   : > { %1140 = vst.msk [vmem:[%s1502_s29 + $0x300] sm:$0xff] %vm1043_vm3, %v1011_v4 }
  0xa3   : > { %1045 = vst.msk [vmem:[%s1502_s29 + $0x8] sm:$0xff] %vm1043_vm3, %v916_v5 }
  0xa4   : > { %1077 = vst.msk [vmem:[%s1502_s29 + $0x108] sm:$0xff] %vm1043_vm3, %v948_v6  ;;  %v757_v15 = vpop.f32.mrf.mxu2  ;;  %v837_v16 = vpop.f32.mrf.mxu3 }
  0xa5   : > { %v758_v19 = vadd.f32 %v1485_v40, %v757_v15  ;;  %v838_v20 = vadd.f32 %v1485_v40, %v837_v16  ;;  %v600_v21 = vpop.f32.mrf.mxu0  ;;  %v680_v22 = vpop.f32.mrf.mxu1  ;;  %v197_v16 = vld [vmem:[%s1384_s24 + $0xb0] sm:$0xff] }
  0xa6   : > { %v601_v25 = vadd.f32 %v1485_v40, %v600_v21  ;;  %v681_v26 = vadd.f32 %v1485_v40, %v680_v22  ;;  %v262_v21 = vld [vmem:[%s1384_s24 + $0x2b8] sm:$0xff]  ;;  %v293_v22 = vld [vmem:[%s1384_s24 + $0x3b0] sm:$0xff] }
  0xa7   : > { %v980_v27 = vmax.f32 %v758_v19, 0.0  ;;  %v1012_v28 = vmax.f32 %v838_v20, 0.0  ;;  %v230_v19 = vld [vmem:[%s1384_s24 + $0x1b8] sm:$0xff]  ;;  %v261_v20 = vld [vmem:[%s1384_s24 + $0x2b0] sm:$0xff] }
  0xa8   : > { %v917_v29 = vmax.f32 %v601_v25, 0.0  ;;  %v949_v30 = vmax.f32 %v681_v26, 0.0  ;;  %1254 = vmatmul.msk.bf16.gmra.mxu0 %vm386_vm2, %v312_v17  ;;  %1270 = vmatmul.msk.bf16.gmra.mxu1 %vm386_vm2, %v328_v18  ;;  %v198_v17 = vld [vmem:[%s1384_s24 + $0xb8] sm:$0xff]  ;;  %v229_v18 = vld [vmem:[%s1384_s24 + $0x1b0] sm:$0xff] }
  0xa9   : > { %1109 = vst.msk [vmem:[%s1502_s29 + $0x208] sm:$0xff] %vm1043_vm3, %v980_v27  ;;  %1286 = vmatmul.msk.bf16.gmra.mxu2 %vm386_vm2, %v344_v23  ;;  %1302 = vmatmul.msk.bf16.gmra.mxu3 %vm386_vm2, %v360_v24  ;;  %v294_v23 = vld [vmem:[%s1384_s24 + $0x3b8] sm:$0xff]  ;;  %v314_v26 = vpack.c.bf16 %v198_v17, %v197_v16  ;;  %v330_v27 = vpack.c.bf16 %v230_v19, %v229_v18 }
  0xaa   : > { %1141 = vst.msk [vmem:[%s1502_s29 + $0x308] sm:$0xff] %vm1043_vm3, %v1012_v28 }
  0xab   : > { %1046 = vst.msk [vmem:[%s1502_s29 + $0x10] sm:$0xff] %vm1043_vm3, %v917_v29 }
  0xac   : > { %1078 = vst.msk [vmem:[%s1502_s29 + $0x110] sm:$0xff] %vm1043_vm3, %v949_v30  ;;  %v760_v31 = vpop.f32.mrf.mxu2  ;;  %v840_v32 = vpop.f32.mrf.mxu3 }
  0xad   : > { %v761_v33 = vadd.f32 %v1485_v40, %v760_v31  ;;  %v841_v34 = vadd.f32 %v1485_v40, %v840_v32  ;;  %v602_v35 = vpop.f32.mrf.mxu0  ;;  %v682_v36 = vpop.f32.mrf.mxu1  ;;  %v346_v32 = vpack.c.bf16 %v262_v21, %v261_v20 }
  0xae   : > { %v603_v37 = vadd.f32 %v1485_v40, %v602_v35  ;;  %v683_v38 = vadd.f32 %v1485_v40, %v682_v36 }
  0xaf   : > { %v981_v39 = vmax.f32 %v761_v33, 0.0  ;;  %v1013_v41 = vmax.f32 %v841_v34, 0.0  ;;  %v362_v33 = vpack.c.bf16 %v294_v23, %v293_v22 }
  0xb0   : > { %v918_v42 = vmax.f32 %v603_v37, 0.0  ;;  %v950_v43 = vmax.f32 %v683_v38, 0.0 }
  0xb1   : > { %1110 = vst.msk [vmem:[%s1502_s29 + $0x210] sm:$0xff] %vm1043_vm3, %v981_v39 }
  0xb2   : > { %1142 = vst.msk [vmem:[%s1502_s29 + $0x310] sm:$0xff] %vm1043_vm3, %v1013_v41 }
  0xb3   : > { %1047 = vst.msk [vmem:[%s1502_s29 + $0x18] sm:$0xff] %vm1043_vm3, %v918_v42 }
  0xb4   : > { %1079 = vst.msk [vmem:[%s1502_s29 + $0x118] sm:$0xff] %vm1043_vm3, %v950_v43  ;;  %v762_v52 = vpop.f32.mrf.mxu2  ;;  %v842_v53 = vpop.f32.mrf.mxu3 }
  0xb5   : > { %v763_v56 = vadd.f32 %v1485_v40, %v762_v52  ;;  %v843_v57 = vadd.f32 %v1485_v40, %v842_v53  ;;  %v605_v58 = vpop.f32.mrf.mxu0  ;;  %v685_v59 = vpop.f32.mrf.mxu1  ;;  %v199_v53 = vld [vmem:[%s1384_s24 + $0xc0] sm:$0xff] }
  0xb6   : > { %v606_v62 = vadd.f32 %v1485_v40, %v605_v58  ;;  %v686_v63 = vadd.f32 %v1485_v40, %v685_v59  ;;  %v264_v58 = vld [vmem:[%s1384_s24 + $0x2c8] sm:$0xff]  ;;  %v295_v59 = vld [vmem:[%s1384_s24 + $0x3c0] sm:$0xff] }
  0xb7   : > { %v982_v0 = vmax.f32 %v763_v56, 0.0  ;;  %v1014_v1 = vmax.f32 %v843_v57, 0.0  ;;  %v232_v56 = vld [vmem:[%s1384_s24 + $0x1c8] sm:$0xff]  ;;  %v263_v57 = vld [vmem:[%s1384_s24 + $0x2c0] sm:$0xff] }
  0xb8   : > { %v919_v2 = vmax.f32 %v606_v62, 0.0  ;;  %v951_v3 = vmax.f32 %v686_v63, 0.0  ;;  %1255 = vmatmul.msk.bf16.gmra.mxu0 %vm386_vm2, %v313_v54  ;;  %1271 = vmatmul.msk.bf16.gmra.mxu1 %vm386_vm2, %v329_v55  ;;  %v200_v54 = vld [vmem:[%s1384_s24 + $0xc8] sm:$0xff]  ;;  %v231_v55 = vld [vmem:[%s1384_s24 + $0x1c0] sm:$0xff] }
  0xb9   : > { %1111 = vst.msk [vmem:[%s1502_s29 + $0x218] sm:$0xff] %vm1043_vm3, %v982_v0  ;;  %1287 = vmatmul.msk.bf16.gmra.mxu2 %vm386_vm2, %v345_v60  ;;  %1303 = vmatmul.msk.bf16.gmra.mxu3 %vm386_vm2, %v361_v61  ;;  %v296_v60 = vld [vmem:[%s1384_s24 + $0x3c8] sm:$0xff]  ;;  %v315_v63 = vpack.c.bf16 %v200_v54, %v199_v53  ;;  %v331_v0 = vpack.c.bf16 %v232_v56, %v231_v55 }
  0xba   : > { %1143 = vst.msk [vmem:[%s1502_s29 + $0x318] sm:$0xff] %vm1043_vm3, %v1014_v1 }
  0xbb   : > { %1048 = vst.msk [vmem:[%s1502_s29 + $0x20] sm:$0xff] %vm1043_vm3, %v919_v2 }
  0xbc   : > { %1080 = vst.msk [vmem:[%s1502_s29 + $0x120] sm:$0xff] %vm1043_vm3, %v951_v3  ;;  %v765_v4 = vpop.f32.mrf.mxu2  ;;  %v845_v5 = vpop.f32.mrf.mxu3 }
  0xbd   : > { %v766_v6 = vadd.f32 %v1485_v40, %v765_v4  ;;  %v846_v7 = vadd.f32 %v1485_v40, %v845_v5  ;;  %v607_v8 = vpop.f32.mrf.mxu0  ;;  %v687_v9 = vpop.f32.mrf.mxu1  ;;  %v347_v5 = vpack.c.bf16 %v264_v58, %v263_v57 }
  0xbe   : > { %v608_v10 = vadd.f32 %v1485_v40, %v607_v8  ;;  %v688_v11 = vadd.f32 %v1485_v40, %v687_v9 }
  0xbf   : > { %v983_v12 = vmax.f32 %v766_v6, 0.0  ;;  %v1015_v13 = vmax.f32 %v846_v7, 0.0  ;;  %v363_v6 = vpack.c.bf16 %v296_v60, %v295_v59 }
  0xc0   : > { %v920_v14 = vmax.f32 %v608_v10, 0.0  ;;  %v952_v15 = vmax.f32 %v688_v11, 0.0 }
  0xc1   : > { %1112 = vst.msk [vmem:[%s1502_s29 + $0x220] sm:$0xff] %vm1043_vm3, %v983_v12 }
  0xc2   : > { %1144 = vst.msk [vmem:[%s1502_s29 + $0x320] sm:$0xff] %vm1043_vm3, %v1015_v13 }
  0xc3   : > { %1049 = vst.msk [vmem:[%s1502_s29 + $0x28] sm:$0xff] %vm1043_vm3, %v920_v14 }
  0xc4   : > { %1081 = vst.msk [vmem:[%s1502_s29 + $0x128] sm:$0xff] %vm1043_vm3, %v952_v15  ;;  %v767_v24 = vpop.f32.mrf.mxu2  ;;  %v847_v25 = vpop.f32.mrf.mxu3 }
  0xc5   : > { %v768_v28 = vadd.f32 %v1485_v40, %v767_v24  ;;  %v848_v29 = vadd.f32 %v1485_v40, %v847_v25  ;;  %v610_v30 = vpop.f32.mrf.mxu0  ;;  %v690_v31 = vpop.f32.mrf.mxu1  ;;  %v201_v25 = vld [vmem:[%s1384_s24 + $0xd0] sm:$0xff] }
  0xc6   : > { %v611_v34 = vadd.f32 %v1485_v40, %v610_v30  ;;  %v691_v35 = vadd.f32 %v1485_v40, %v690_v31  ;;  %v266_v30 = vld [vmem:[%s1384_s24 + $0x2d8] sm:$0xff]  ;;  %v297_v31 = vld [vmem:[%s1384_s24 + $0x3d0] sm:$0xff] }
  0xc7   : > { %v984_v36 = vmax.f32 %v768_v28, 0.0  ;;  %v1016_v37 = vmax.f32 %v848_v29, 0.0  ;;  %v234_v28 = vld [vmem:[%s1384_s24 + $0x1d8] sm:$0xff]  ;;  %v265_v29 = vld [vmem:[%s1384_s24 + $0x2d0] sm:$0xff] }
  0xc8   : > { %v921_v38 = vmax.f32 %v611_v34, 0.0  ;;  %v953_v39 = vmax.f32 %v691_v35, 0.0  ;;  %1256 = vmatmul.msk.bf16.gmra.mxu0 %vm386_vm2, %v314_v26  ;;  %1272 = vmatmul.msk.bf16.gmra.mxu1 %vm386_vm2, %v330_v27  ;;  %v202_v26 = vld [vmem:[%s1384_s24 + $0xd8] sm:$0xff]  ;;  %v233_v27 = vld [vmem:[%s1384_s24 + $0x1d0] sm:$0xff] }
  0xc9   : > { %1113 = vst.msk [vmem:[%s1502_s29 + $0x228] sm:$0xff] %vm1043_vm3, %v984_v36  ;;  %1288 = vmatmul.msk.bf16.gmra.mxu2 %vm386_vm2, %v346_v32  ;;  %1304 = vmatmul.msk.bf16.gmra.mxu3 %vm386_vm2, %v362_v33  ;;  %v298_v32 = vld [vmem:[%s1384_s24 + $0x3d8] sm:$0xff]  ;;  %v316_v35 = vpack.c.bf16 %v202_v26, %v201_v25  ;;  %v332_v36 = vpack.c.bf16 %v234_v28, %v233_v27 }
  0xca   : > { %1145 = vst.msk [vmem:[%s1502_s29 + $0x328] sm:$0xff] %vm1043_vm3, %v1016_v37 }
  0xcb   : > { %1050 = vst.msk [vmem:[%s1502_s29 + $0x30] sm:$0xff] %vm1043_vm3, %v921_v38 }
  0xcc   : > { %1082 = vst.msk [vmem:[%s1502_s29 + $0x130] sm:$0xff] %vm1043_vm3, %v953_v39  ;;  %v770_v41 = vpop.f32.mrf.mxu2  ;;  %v850_v42 = vpop.f32.mrf.mxu3 }
  0xcd   : > { %v771_v43 = vadd.f32 %v1485_v40, %v770_v41  ;;  %v851_v44 = vadd.f32 %v1485_v40, %v850_v42  ;;  %v612_v45 = vpop.f32.mrf.mxu0  ;;  %v692_v46 = vpop.f32.mrf.mxu1  ;;  %v348_v42 = vpack.c.bf16 %v266_v30, %v265_v29 }
  0xce   : > { %v613_v47 = vadd.f32 %v1485_v40, %v612_v45  ;;  %v693_v48 = vadd.f32 %v1485_v40, %v692_v46 }
  0xcf   : > { %v985_v49 = vmax.f32 %v771_v43, 0.0  ;;  %v1017_v50 = vmax.f32 %v851_v44, 0.0  ;;  %v364_v43 = vpack.c.bf16 %v298_v32, %v297_v31 }
  0xd0   : > { %v922_v51 = vmax.f32 %v613_v47, 0.0  ;;  %v954_v52 = vmax.f32 %v693_v48, 0.0 }
  0xd1   : > { %1114 = vst.msk [vmem:[%s1502_s29 + $0x230] sm:$0xff] %vm1043_vm3, %v985_v49 }
  0xd2   : > { %1146 = vst.msk [vmem:[%s1502_s29 + $0x330] sm:$0xff] %vm1043_vm3, %v1017_v50 }
  0xd3   : > { %1051 = vst.msk [vmem:[%s1502_s29 + $0x38] sm:$0xff] %vm1043_vm3, %v922_v51 }
  0xd4   : > { %1083 = vst.msk [vmem:[%s1502_s29 + $0x138] sm:$0xff] %vm1043_vm3, %v954_v52  ;;  %v772_v61 = vpop.f32.mrf.mxu2  ;;  %v852_v62 = vpop.f32.mrf.mxu3 }
  0xd5   : > { %v773_v1 = vadd.f32 %v1485_v40, %v772_v61  ;;  %v853_v2 = vadd.f32 %v1485_v40, %v852_v62  ;;  %v615_v3 = vpop.f32.mrf.mxu0  ;;  %v695_v4 = vpop.f32.mrf.mxu1  ;;  %v203_v62 = vld [vmem:[%s1384_s24 + $0xe0] sm:$0xff] }
  0xd6   : > { %v616_v7 = vadd.f32 %v1485_v40, %v615_v3  ;;  %v696_v8 = vadd.f32 %v1485_v40, %v695_v4  ;;  %v268_v3 = vld [vmem:[%s1384_s24 + $0x2e8] sm:$0xff]  ;;  %v299_v4 = vld [vmem:[%s1384_s24 + $0x3e0] sm:$0xff] }
  0xd7   : > { %v986_v9 = vmax.f32 %v773_v1, 0.0  ;;  %v1018_v10 = vmax.f32 %v853_v2, 0.0  ;;  %v236_v1 = vld [vmem:[%s1384_s24 + $0x1e8] sm:$0xff]  ;;  %v267_v2 = vld [vmem:[%s1384_s24 + $0x2e0] sm:$0xff] }
  0xd8   : > { %v923_v11 = vmax.f32 %v616_v7, 0.0  ;;  %v955_v12 = vmax.f32 %v696_v8, 0.0  ;;  %1257 = vmatmul.msk.bf16.gmra.mxu0 %vm386_vm2, %v315_v63  ;;  %1273 = vmatmul.msk.bf16.gmra.mxu1 %vm386_vm2, %v331_v0  ;;  %v204_v63 = vld [vmem:[%s1384_s24 + $0xe8] sm:$0xff]  ;;  %v235_v0 = vld [vmem:[%s1384_s24 + $0x1e0] sm:$0xff] }
  0xd9   : > { %1115 = vst.msk [vmem:[%s1502_s29 + $0x238] sm:$0xff] %vm1043_vm3, %v986_v9  ;;  %1289 = vmatmul.msk.bf16.gmra.mxu2 %vm386_vm2, %v347_v5  ;;  %1305 = vmatmul.msk.bf16.gmra.mxu3 %vm386_vm2, %v363_v6  ;;  %v300_v5 = vld [vmem:[%s1384_s24 + $0x3e8] sm:$0xff]  ;;  %v317_v8 = vpack.c.bf16 %v204_v63, %v203_v62  ;;  %v333_v9 = vpack.c.bf16 %v236_v1, %v235_v0 }
  0xda   : > { %1147 = vst.msk [vmem:[%s1502_s29 + $0x338] sm:$0xff] %vm1043_vm3, %v1018_v10 }
  0xdb   : > { %1052 = vst.msk [vmem:[%s1502_s29 + $0x40] sm:$0xff] %vm1043_vm3, %v923_v11 }
  0xdc   : > { %1084 = vst.msk [vmem:[%s1502_s29 + $0x140] sm:$0xff] %vm1043_vm3, %v955_v12  ;;  %v775_v13 = vpop.f32.mrf.mxu2  ;;  %v855_v14 = vpop.f32.mrf.mxu3 }
  0xdd   : > { %v776_v15 = vadd.f32 %v1485_v40, %v775_v13  ;;  %v856_v16 = vadd.f32 %v1485_v40, %v855_v14  ;;  %v617_v17 = vpop.f32.mrf.mxu0  ;;  %v697_v18 = vpop.f32.mrf.mxu1  ;;  %v349_v14 = vpack.c.bf16 %v268_v3, %v267_v2 }
  0xde   : > { %v618_v19 = vadd.f32 %v1485_v40, %v617_v17  ;;  %v698_v20 = vadd.f32 %v1485_v40, %v697_v18 }
  0xdf   : > { %v987_v21 = vmax.f32 %v776_v15, 0.0  ;;  %v1019_v22 = vmax.f32 %v856_v16, 0.0  ;;  %v365_v15 = vpack.c.bf16 %v300_v5, %v299_v4 }
  0xe0   : > { %v924_v23 = vmax.f32 %v618_v19, 0.0  ;;  %v956_v24 = vmax.f32 %v698_v20, 0.0 }
  0xe1   : > { %1116 = vst.msk [vmem:[%s1502_s29 + $0x240] sm:$0xff] %vm1043_vm3, %v987_v21 }
  0xe2   : > { %1148 = vst.msk [vmem:[%s1502_s29 + $0x340] sm:$0xff] %vm1043_vm3, %v1019_v22 }
  0xe3   : > { %1053 = vst.msk [vmem:[%s1502_s29 + $0x48] sm:$0xff] %vm1043_vm3, %v924_v23 }
  0xe4   : > { %1085 = vst.msk [vmem:[%s1502_s29 + $0x148] sm:$0xff] %vm1043_vm3, %v956_v24  ;;  %v777_v33 = vpop.f32.mrf.mxu2  ;;  %v857_v34 = vpop.f32.mrf.mxu3 }
  0xe5   : > { %v778_v37 = vadd.f32 %v1485_v40, %v777_v33  ;;  %v858_v38 = vadd.f32 %v1485_v40, %v857_v34  ;;  %v620_v39 = vpop.f32.mrf.mxu0  ;;  %v700_v41 = vpop.f32.mrf.mxu1  ;;  %v205_v34 = vld [vmem:[%s1384_s24 + $0xf0] sm:$0xff] }
  0xe6   : > { %v621_v44 = vadd.f32 %v1485_v40, %v620_v39  ;;  %v701_v45 = vadd.f32 %v1485_v40, %v700_v41  ;;  %v270_v39 = vld [vmem:[%s1384_s24 + $0x2f8] sm:$0xff]  ;;  %v301_v41 = vld [vmem:[%s1384_s24 + $0x3f0] sm:$0xff] }
  0xe7   : > { %v988_v46 = vmax.f32 %v778_v37, 0.0  ;;  %v1020_v47 = vmax.f32 %v858_v38, 0.0  ;;  %v238_v37 = vld [vmem:[%s1384_s24 + $0x1f8] sm:$0xff]  ;;  %v269_v38 = vld [vmem:[%s1384_s24 + $0x2f0] sm:$0xff] }
  0xe8   : > { %v925_v48 = vmax.f32 %v621_v44, 0.0  ;;  %v957_v49 = vmax.f32 %v701_v45, 0.0  ;;  %1258 = vmatmul.msk.bf16.gmra.mxu0 %vm386_vm2, %v316_v35  ;;  %1274 = vmatmul.msk.bf16.gmra.mxu1 %vm386_vm2, %v332_v36  ;;  %v206_v35 = vld [vmem:[%s1384_s24 + $0xf8] sm:$0xff]  ;;  %v237_v36 = vld [vmem:[%s1384_s24 + $0x1f0] sm:$0xff] }
  0xe9   : > { %1117 = vst.msk [vmem:[%s1502_s29 + $0x248] sm:$0xff] %vm1043_vm3, %v988_v46  ;;  %1290 = vmatmul.msk.bf16.gmra.mxu2 %vm386_vm2, %v348_v42  ;;  %1306 = vmatmul.msk.bf16.gmra.mxu3 %vm386_vm2, %v364_v43  ;;  %v302_v42 = vld [vmem:[%s1384_s24 + $0x3f8] sm:$0xff]  ;;  %v318_v45 = vpack.c.bf16 %v206_v35, %v205_v34  ;;  %v334_v46 = vpack.c.bf16 %v238_v37, %v237_v36 }
  0xea   : > { %1149 = vst.msk [vmem:[%s1502_s29 + $0x348] sm:$0xff] %vm1043_vm3, %v1020_v47 }
  0xeb   : > { %1054 = vst.msk [vmem:[%s1502_s29 + $0x50] sm:$0xff] %vm1043_vm3, %v925_v48 }
  0xec   : > { %1086 = vst.msk [vmem:[%s1502_s29 + $0x150] sm:$0xff] %vm1043_vm3, %v957_v49  ;;  %v780_v50 = vpop.f32.mrf.mxu2  ;;  %v860_v51 = vpop.f32.mrf.mxu3 }
  0xed   : > { %v781_v52 = vadd.f32 %v1485_v40, %v780_v50  ;;  %v861_v53 = vadd.f32 %v1485_v40, %v860_v51  ;;  %v622_v54 = vpop.f32.mrf.mxu0  ;;  %v702_v55 = vpop.f32.mrf.mxu1  ;;  %v350_v51 = vpack.c.bf16 %v270_v39, %v269_v38 }
  0xee   : > { %v623_v56 = vadd.f32 %v1485_v40, %v622_v54  ;;  %v703_v57 = vadd.f32 %v1485_v40, %v702_v55 }
  0xef   : > { %v989_v58 = vmax.f32 %v781_v52, 0.0  ;;  %v1021_v59 = vmax.f32 %v861_v53, 0.0  ;;  %v366_v52 = vpack.c.bf16 %v302_v42, %v301_v41 }
  0xf0   : > { %v926_v60 = vmax.f32 %v623_v56, 0.0  ;;  %v958_v61 = vmax.f32 %v703_v57, 0.0 }
  0xf1   : > { %1118 = vst.msk [vmem:[%s1502_s29 + $0x250] sm:$0xff] %vm1043_vm3, %v989_v58 }
  0xf2   : > { %1150 = vst.msk [vmem:[%s1502_s29 + $0x350] sm:$0xff] %vm1043_vm3, %v1021_v59 }
  0xf3   : > { %1055 = vst.msk [vmem:[%s1502_s29 + $0x58] sm:$0xff] %vm1043_vm3, %v926_v60 }
  0xf4   : > { %1087 = vst.msk [vmem:[%s1502_s29 + $0x158] sm:$0xff] %vm1043_vm3, %v958_v61  ;;  %v782_v6 = vpop.f32.mrf.mxu2  ;;  %v862_v7 = vpop.f32.mrf.mxu3 }
  0xf5   : > { %v783_v10 = vadd.f32 %v1485_v40, %v782_v6  ;;  %v863_v11 = vadd.f32 %v1485_v40, %v862_v7  ;;  %v625_v12 = vpop.f32.mrf.mxu0  ;;  %v705_v13 = vpop.f32.mrf.mxu1 }
  0xf6   : > { %v626_v16 = vadd.f32 %v1485_v40, %v625_v12  ;;  %v706_v17 = vadd.f32 %v1485_v40, %v705_v13 }
  0xf7   : > { %v990_v18 = vmax.f32 %v783_v10, 0.0  ;;  %v1022_v19 = vmax.f32 %v863_v11, 0.0 }
  0xf8   : > { %v927_v20 = vmax.f32 %v626_v16, 0.0  ;;  %v959_v21 = vmax.f32 %v706_v17, 0.0  ;;  %1259 = vmatmul.msk.bf16.gmra.mxu0 %vm386_vm2, %v317_v8  ;;  %1275 = vmatmul.msk.bf16.gmra.mxu1 %vm386_vm2, %v333_v9 }
  0xf9   : > { %1119 = vst.msk [vmem:[%s1502_s29 + $0x258] sm:$0xff] %vm1043_vm3, %v990_v18  ;;  %1291 = vmatmul.msk.bf16.gmra.mxu2 %vm386_vm2, %v349_v14  ;;  %1307 = vmatmul.msk.bf16.gmra.mxu3 %vm386_vm2, %v365_v15 }
  0xfa   : > { %1151 = vst.msk [vmem:[%s1502_s29 + $0x358] sm:$0xff] %vm1043_vm3, %v1022_v19 }
  0xfb   : > { %1056 = vst.msk [vmem:[%s1502_s29 + $0x60] sm:$0xff] %vm1043_vm3, %v927_v20 }
  0xfc   : > { %1088 = vst.msk [vmem:[%s1502_s29 + $0x160] sm:$0xff] %vm1043_vm3, %v959_v21  ;;  %v785_v22 = vpop.f32.mrf.mxu2  ;;  %v865_v23 = vpop.f32.mrf.mxu3 }
  0xfd   : > { %v786_v24 = vadd.f32 %v1485_v40, %v785_v22  ;;  %v866_v25 = vadd.f32 %v1485_v40, %v865_v23  ;;  %v627_v26 = vpop.f32.mrf.mxu0  ;;  %v707_v27 = vpop.f32.mrf.mxu1 }
  0xfe   : > { %v628_v28 = vadd.f32 %v1485_v40, %v627_v26  ;;  %v708_v29 = vadd.f32 %v1485_v40, %v707_v27 }
  0xff   : > { %v991_v30 = vmax.f32 %v786_v24, 0.0  ;;  %v1023_v31 = vmax.f32 %v866_v25, 0.0 }
 0x100   : > { %v928_v32 = vmax.f32 %v628_v28, 0.0  ;;  %v960_v33 = vmax.f32 %v708_v29, 0.0 }
 0x101   : > { %1120 = vst.msk [vmem:[%s1502_s29 + $0x260] sm:$0xff] %vm1043_vm3, %v991_v30 }
 0x102   : > { %1152 = vst.msk [vmem:[%s1502_s29 + $0x360] sm:$0xff] %vm1043_vm3, %v1023_v31 }
 0x103   : > { %1057 = vst.msk [vmem:[%s1502_s29 + $0x68] sm:$0xff] %vm1043_vm3, %v928_v32 }
 0x104   : > { %1089 = vst.msk [vmem:[%s1502_s29 + $0x168] sm:$0xff] %vm1043_vm3, %v960_v33  ;;  %v787_v43 = vpop.f32.mrf.mxu2  ;;  %v867_v44 = vpop.f32.mrf.mxu3 }
 0x105   : > { %v788_v47 = vadd.f32 %v1485_v40, %v787_v43  ;;  %v868_v48 = vadd.f32 %v1485_v40, %v867_v44  ;;  %v630_v49 = vpop.f32.mrf.mxu0  ;;  %v710_v50 = vpop.f32.mrf.mxu1 }
 0x106   : > { %v631_v53 = vadd.f32 %v1485_v40, %v630_v49  ;;  %v711_v54 = vadd.f32 %v1485_v40, %v710_v50 }
 0x107   : > { %v992_v55 = vmax.f32 %v788_v47, 0.0  ;;  %v1024_v56 = vmax.f32 %v868_v48, 0.0 }
 0x108   : > { %v929_v57 = vmax.f32 %v631_v53, 0.0  ;;  %v961_v58 = vmax.f32 %v711_v54, 0.0  ;;  %1260 = vmatmul.msk.bf16.gmra.mxu0 %vm386_vm2, %v318_v45  ;;  %1276 = vmatmul.msk.bf16.gmra.mxu1 %vm386_vm2, %v334_v46 }
 0x109   : > { %1121 = vst.msk [vmem:[%s1502_s29 + $0x268] sm:$0xff] %vm1043_vm3, %v992_v55  ;;  %1292 = vmatmul.msk.bf16.gmra.mxu2 %vm386_vm2, %v350_v51  ;;  %1308 = vmatmul.msk.bf16.gmra.mxu3 %vm386_vm2, %v366_v52 }
 0x10a   : > { %1153 = vst.msk [vmem:[%s1502_s29 + $0x368] sm:$0xff] %vm1043_vm3, %v1024_v56 }
 0x10b   : > { %1058 = vst.msk [vmem:[%s1502_s29 + $0x70] sm:$0xff] %vm1043_vm3, %v929_v57 }
 0x10c   : > { %1090 = vst.msk [vmem:[%s1502_s29 + $0x170] sm:$0xff] %vm1043_vm3, %v961_v58  ;;  %v790_v59 = vpop.f32.mrf.mxu2  ;;  %v870_v60 = vpop.f32.mrf.mxu3 }
 0x10d   : > { %v791_v61 = vadd.f32 %v1485_v40, %v790_v59  ;;  %v871_v62 = vadd.f32 %v1485_v40, %v870_v60  ;;  %v632_v63 = vpop.f32.mrf.mxu0  ;;  %v712_v0 = vpop.f32.mrf.mxu1 }
 0x10e   : > { %v633_v1 = vadd.f32 %v1485_v40, %v632_v63  ;;  %v713_v2 = vadd.f32 %v1485_v40, %v712_v0 }
 0x10f   : > { %v993_v3 = vmax.f32 %v791_v61, 0.0  ;;  %v1025_v4 = vmax.f32 %v871_v62, 0.0 }
 0x110   : > { %v930_v5 = vmax.f32 %v633_v1, 0.0  ;;  %v962_v6 = vmax.f32 %v713_v2, 0.0 }
 0x111   : > { %1122 = vst.msk [vmem:[%s1502_s29 + $0x270] sm:$0xff] %vm1043_vm3, %v993_v3 }
 0x112   : > { %1154 = vst.msk [vmem:[%s1502_s29 + $0x370] sm:$0xff] %vm1043_vm3, %v1025_v4 }
 0x113   : > { %1059 = vst.msk [vmem:[%s1502_s29 + $0x78] sm:$0xff] %vm1043_vm3, %v930_v5 }
 0x114   : > { %1091 = vst.msk [vmem:[%s1502_s29 + $0x178] sm:$0xff] %vm1043_vm3, %v962_v6  ;;  %v792_v7 = vpop.f32.mrf.mxu2  ;;  %v872_v8 = vpop.f32.mrf.mxu3 }
 0x115   : > { %v793_v9 = vadd.f32 %v1485_v40, %v792_v7  ;;  %v873_v10 = vadd.f32 %v1485_v40, %v872_v8  ;;  %v635_v11 = vpop.f32.mrf.mxu0  ;;  %v715_v12 = vpop.f32.mrf.mxu1 }
 0x116   : > { %v636_v13 = vadd.f32 %v1485_v40, %v635_v11  ;;  %v716_v14 = vadd.f32 %v1485_v40, %v715_v12 }
 0x117   : > { %v994_v15 = vmax.f32 %v793_v9, 0.0  ;;  %v1026_v16 = vmax.f32 %v873_v10, 0.0 }
 0x118   : > { %v931_v17 = vmax.f32 %v636_v13, 0.0  ;;  %v963_v18 = vmax.f32 %v716_v14, 0.0 }
 0x119   : > { %1123 = vst.msk [vmem:[%s1502_s29 + $0x278] sm:$0xff] %vm1043_vm3, %v994_v15 }
 0x11a   : > { %1155 = vst.msk [vmem:[%s1502_s29 + $0x378] sm:$0xff] %vm1043_vm3, %v1026_v16 }
 0x11b   : > { %1060 = vst.msk [vmem:[%s1502_s29 + $0x80] sm:$0xff] %vm1043_vm3, %v931_v17 }
 0x11c   : > { %1092 = vst.msk [vmem:[%s1502_s29 + $0x180] sm:$0xff] %vm1043_vm3, %v963_v18  ;;  %v795_v19 = vpop.f32.mrf.mxu2  ;;  %v875_v20 = vpop.f32.mrf.mxu3 }
 0x11d   : > { %v796_v21 = vadd.f32 %v1485_v40, %v795_v19  ;;  %v876_v22 = vadd.f32 %v1485_v40, %v875_v20  ;;  %v637_v23 = vpop.f32.mrf.mxu0  ;;  %v717_v24 = vpop.f32.mrf.mxu1 }
 0x11e   : > { %v638_v25 = vadd.f32 %v1485_v40, %v637_v23  ;;  %v718_v26 = vadd.f32 %v1485_v40, %v717_v24 }
 0x11f   : > { %v995_v27 = vmax.f32 %v796_v21, 0.0  ;;  %v1027_v28 = vmax.f32 %v876_v22, 0.0 }
 0x120   : > { %v932_v29 = vmax.f32 %v638_v25, 0.0  ;;  %v964_v30 = vmax.f32 %v718_v26, 0.0 }
 0x121   : > { %1124 = vst.msk [vmem:[%s1502_s29 + $0x280] sm:$0xff] %vm1043_vm3, %v995_v27 }
 0x122   : > { %1156 = vst.msk [vmem:[%s1502_s29 + $0x380] sm:$0xff] %vm1043_vm3, %v1027_v28 }
 0x123   : > { %1061 = vst.msk [vmem:[%s1502_s29 + $0x88] sm:$0xff] %vm1043_vm3, %v932_v29 }
 0x124   : > { %1093 = vst.msk [vmem:[%s1502_s29 + $0x188] sm:$0xff] %vm1043_vm3, %v964_v30  ;;  %v797_v31 = vpop.f32.mrf.mxu2  ;;  %v877_v32 = vpop.f32.mrf.mxu3 }
 0x125   : > { %v798_v33 = vadd.f32 %v1485_v40, %v797_v31  ;;  %v878_v34 = vadd.f32 %v1485_v40, %v877_v32  ;;  %v640_v35 = vpop.f32.mrf.mxu0  ;;  %v720_v36 = vpop.f32.mrf.mxu1 }
 0x126   : > { %v641_v37 = vadd.f32 %v1485_v40, %v640_v35  ;;  %v721_v38 = vadd.f32 %v1485_v40, %v720_v36 }
 0x127   : > { %v996_v39 = vmax.f32 %v798_v33, 0.0  ;;  %v1028_v41 = vmax.f32 %v878_v34, 0.0 }
 0x128   : > { %v933_v42 = vmax.f32 %v641_v37, 0.0  ;;  %v965_v43 = vmax.f32 %v721_v38, 0.0 }
 0x129   : > { %1125 = vst.msk [vmem:[%s1502_s29 + $0x288] sm:$0xff] %vm1043_vm3, %v996_v39 }
 0x12a   : > { %1157 = vst.msk [vmem:[%s1502_s29 + $0x388] sm:$0xff] %vm1043_vm3, %v1028_v41 }
 0x12b   : > { %1062 = vst.msk [vmem:[%s1502_s29 + $0x90] sm:$0xff] %vm1043_vm3, %v933_v42 }
 0x12c   : > { %1094 = vst.msk [vmem:[%s1502_s29 + $0x190] sm:$0xff] %vm1043_vm3, %v965_v43  ;;  %v800_v44 = vpop.f32.mrf.mxu2  ;;  %v880_v45 = vpop.f32.mrf.mxu3 }
 0x12d   : > { %v801_v46 = vadd.f32 %v1485_v40, %v800_v44  ;;  %v881_v47 = vadd.f32 %v1485_v40, %v880_v45  ;;  %v642_v48 = vpop.f32.mrf.mxu0  ;;  %v722_v49 = vpop.f32.mrf.mxu1 }
 0x12e   : > { %v643_v50 = vadd.f32 %v1485_v40, %v642_v48  ;;  %v723_v51 = vadd.f32 %v1485_v40, %v722_v49 }
 0x12f   : > { %v997_v52 = vmax.f32 %v801_v46, 0.0  ;;  %v1029_v53 = vmax.f32 %v881_v47, 0.0  ;;  %v1877_v47 = vld [vmem:[%s1984_s2] ss:$0 sm:$0xff] }
 0x130   : > { %v934_v54 = vmax.f32 %v643_v50, 0.0  ;;  %v966_v55 = vmax.f32 %v723_v51, 0.0 }
 0x131   : > { %1126 = vst.msk [vmem:[%s1502_s29 + $0x290] sm:$0xff] %vm1043_vm3, %v997_v52 }
 0x132   : > { %1158 = vst.msk [vmem:[%s1502_s29 + $0x390] sm:$0xff] %vm1043_vm3, %v1029_v53 }
 0x133   : > { %1063 = vst.msk [vmem:[%s1502_s29 + $0x98] sm:$0xff] %vm1043_vm3, %v934_v54 }
 0x134   : > { %1095 = vst.msk [vmem:[%s1502_s29 + $0x198] sm:$0xff] %vm1043_vm3, %v966_v55  ;;  %v802_v56 = vpop.f32.mrf.mxu2  ;;  %v882_v57 = vpop.f32.mrf.mxu3 }
 0x135   : > { %v803_v58 = vadd.f32 %v1485_v40, %v802_v56  ;;  %v883_v59 = vadd.f32 %v1485_v40, %v882_v57  ;;  %v645_v60 = vpop.f32.mrf.mxu0  ;;  %v725_v61 = vpop.f32.mrf.mxu1 }
 0x136   : > { %v646_v62 = vadd.f32 %v1485_v40, %v645_v60  ;;  %v726_v63 = vadd.f32 %v1485_v40, %v725_v61 }
 0x137   : > { %v998_v0 = vmax.f32 %v803_v58, 0.0  ;;  %v1030_v1 = vmax.f32 %v883_v59, 0.0 }
 0x138   : > { %v935_v2 = vmax.f32 %v646_v62, 0.0  ;;  %v967_v3 = vmax.f32 %v726_v63, 0.0 }
 0x139   : > { %1127 = vst.msk [vmem:[%s1502_s29 + $0x298] sm:$0xff] %vm1043_vm3, %v998_v0 }
 0x13a   : > { %1159 = vst.msk [vmem:[%s1502_s29 + $0x398] sm:$0xff] %vm1043_vm3, %v1030_v1 }
 0x13b   : > { %1064 = vst.msk [vmem:[%s1502_s29 + $0xa0] sm:$0xff] %vm1043_vm3, %v935_v2 }
 0x13c   : > { %1096 = vst.msk [vmem:[%s1502_s29 + $0x1a0] sm:$0xff] %vm1043_vm3, %v967_v3  ;;  %v805_v4 = vpop.f32.mrf.mxu2  ;;  %v885_v5 = vpop.f32.mrf.mxu3 }
 0x13d   : > { %v806_v6 = vadd.f32 %v1485_v40, %v805_v4  ;;  %v886_v7 = vadd.f32 %v1485_v40, %v885_v5  ;;  %v647_v8 = vpop.f32.mrf.mxu0  ;;  %v727_v9 = vpop.f32.mrf.mxu1 }
 0x13e   : > { %v648_v10 = vadd.f32 %v1485_v40, %v647_v8  ;;  %v728_v11 = vadd.f32 %v1485_v40, %v727_v9 }
 0x13f   : > { %v999_v12 = vmax.f32 %v806_v6, 0.0  ;;  %v1031_v13 = vmax.f32 %v886_v7, 0.0 }
 0x140   : > { %v936_v14 = vmax.f32 %v648_v10, 0.0  ;;  %v968_v15 = vmax.f32 %v728_v11, 0.0 }
 0x141   : > { %1128 = vst.msk [vmem:[%s1502_s29 + $0x2a0] sm:$0xff] %vm1043_vm3, %v999_v12 }
 0x142   : > { %1160 = vst.msk [vmem:[%s1502_s29 + $0x3a0] sm:$0xff] %vm1043_vm3, %v1031_v13 }
 0x143   : > { %1065 = vst.msk [vmem:[%s1502_s29 + $0xa8] sm:$0xff] %vm1043_vm3, %v936_v14 }
 0x144   : > { %1097 = vst.msk [vmem:[%s1502_s29 + $0x1a8] sm:$0xff] %vm1043_vm3, %v968_v15  ;;  %v807_v16 = vpop.f32.mrf.mxu2  ;;  %v887_v17 = vpop.f32.mrf.mxu3 }
 0x145   : > { %v808_v18 = vadd.f32 %v1485_v40, %v807_v16  ;;  %v888_v19 = vadd.f32 %v1485_v40, %v887_v17  ;;  %v650_v20 = vpop.f32.mrf.mxu0  ;;  %v730_v21 = vpop.f32.mrf.mxu1 }
 0x146   : > { %v651_v22 = vadd.f32 %v1485_v40, %v650_v20  ;;  %v731_v23 = vadd.f32 %v1485_v40, %v730_v21 }
 0x147   : > { %v1000_v24 = vmax.f32 %v808_v18, 0.0  ;;  %v1032_v25 = vmax.f32 %v888_v19, 0.0 }
 0x148   : > { %v937_v26 = vmax.f32 %v651_v22, 0.0  ;;  %v969_v27 = vmax.f32 %v731_v23, 0.0 }
 0x149   : > { %1129 = vst.msk [vmem:[%s1502_s29 + $0x2a8] sm:$0xff] %vm1043_vm3, %v1000_v24 }
 0x14a   : > { %1161 = vst.msk [vmem:[%s1502_s29 + $0x3a8] sm:$0xff] %vm1043_vm3, %v1032_v25 }
 0x14b   : > { %1066 = vst.msk [vmem:[%s1502_s29 + $0xb0] sm:$0xff] %vm1043_vm3, %v937_v26 }
 0x14c   : > { %1098 = vst.msk [vmem:[%s1502_s29 + $0x1b0] sm:$0xff] %vm1043_vm3, %v969_v27  ;;  %v810_v28 = vpop.f32.mrf.mxu2  ;;  %v890_v29 = vpop.f32.mrf.mxu3 }
 0x14d   : > { %v811_v30 = vadd.f32 %v1485_v40, %v810_v28  ;;  %v891_v31 = vadd.f32 %v1485_v40, %v890_v29  ;;  %v652_v32 = vpop.f32.mrf.mxu0  ;;  %v732_v33 = vpop.f32.mrf.mxu1 }
 0x14e   : > { %v653_v34 = vadd.f32 %v1485_v40, %v652_v32  ;;  %v733_v35 = vadd.f32 %v1485_v40, %v732_v33 }
 0x14f   : > { %v1001_v36 = vmax.f32 %v811_v30, 0.0  ;;  %v1033_v37 = vmax.f32 %v891_v31, 0.0 }
 0x150   : > { %v938_v38 = vmax.f32 %v653_v34, 0.0  ;;  %v970_v39 = vmax.f32 %v733_v35, 0.0 }
 0x151   : > { %1130 = vst.msk [vmem:[%s1502_s29 + $0x2b0] sm:$0xff] %vm1043_vm3, %v1001_v36 }
 0x152   : > { %1162 = vst.msk [vmem:[%s1502_s29 + $0x3b0] sm:$0xff] %vm1043_vm3, %v1033_v37 }
 0x153   : > { %1067 = vst.msk [vmem:[%s1502_s29 + $0xb8] sm:$0xff] %vm1043_vm3, %v938_v38 }
 0x154   : > { %1099 = vst.msk [vmem:[%s1502_s29 + $0x1b8] sm:$0xff] %vm1043_vm3, %v970_v39  ;;  %v812_v41 = vpop.f32.mrf.mxu2  ;;  %v892_v42 = vpop.f32.mrf.mxu3 }
 0x155   : > { %v813_v43 = vadd.f32 %v1485_v40, %v812_v41  ;;  %v893_v44 = vadd.f32 %v1485_v40, %v892_v42  ;;  %v655_v45 = vpop.f32.mrf.mxu0  ;;  %v735_v46 = vpop.f32.mrf.mxu1 }
 0x156   : > { %v656_v48 = vadd.f32 %v1877_v47, %v655_v45  ;;  %v736_v49 = vadd.f32 %v1877_v47, %v735_v46 }
 0x157   : > { %v1002_v50 = vmax.f32 %v813_v43, 0.0  ;;  %v1034_v51 = vmax.f32 %v893_v44, 0.0 }
 0x158   : > { %v939_v52 = vmax.f32 %v656_v48, 0.0  ;;  %v971_v53 = vmax.f32 %v736_v49, 0.0 }
 0x159   : > { %1131 = vst.msk [vmem:[%s1502_s29 + $0x2b8] sm:$0xff] %vm1043_vm3, %v1002_v50 }
 0x15a   : > { %1163 = vst.msk [vmem:[%s1502_s29 + $0x3b8] sm:$0xff] %vm1043_vm3, %v1034_v51 }
 0x15b   : > { %1068 = vst.msk [vmem:[%s1502_s29 + $0xc0] sm:$0xff] %vm1043_vm3, %v939_v52 }
 0x15c   : > { %1100 = vst.msk [vmem:[%s1502_s29 + $0x1c0] sm:$0xff] %vm1043_vm3, %v971_v53  ;;  %v815_v40 = vpop.f32.mrf.mxu2  ;;  %v895_v54 = vpop.f32.mrf.mxu3 }
 0x15d   : > { %v816_v55 = vadd.f32 %v1877_v47, %v815_v40  ;;  %v896_v56 = vadd.f32 %v1877_v47, %v895_v54  ;;  %v657_v57 = vpop.f32.mrf.mxu0  ;;  %v737_v58 = vpop.f32.mrf.mxu1 }
 0x15e   : > { %v658_v59 = vadd.f32 %v1877_v47, %v657_v57  ;;  %v738_v60 = vadd.f32 %v1877_v47, %v737_v58 }
 0x15f   : > { %v1003_v61 = vmax.f32 %v816_v55, 0.0  ;;  %v1035_v62 = vmax.f32 %v896_v56, 0.0 }
 0x160   : > { %v940_v63 = vmax.f32 %v658_v59, 0.0  ;;  %v972_v0 = vmax.f32 %v738_v60, 0.0 }
 0x161   : > { %1132 = vst.msk [vmem:[%s1502_s29 + $0x2c0] sm:$0xff] %vm1043_vm3, %v1003_v61 }
 0x162   : > { %1164 = vst.msk [vmem:[%s1502_s29 + $0x3c0] sm:$0xff] %vm1043_vm3, %v1035_v62 }
 0x163   : > { %1069 = vst.msk [vmem:[%s1502_s29 + $0xc8] sm:$0xff] %vm1043_vm3, %v940_v63 }
 0x164   : > { %1101 = vst.msk [vmem:[%s1502_s29 + $0x1c8] sm:$0xff] %vm1043_vm3, %v972_v0  ;;  %v817_v1 = vpop.f32.mrf.mxu2  ;;  %v897_v2 = vpop.f32.mrf.mxu3 }
 0x165   : > { %v818_v3 = vadd.f32 %v1877_v47, %v817_v1  ;;  %v898_v4 = vadd.f32 %v1877_v47, %v897_v2  ;;  %v660_v5 = vpop.f32.mrf.mxu0  ;;  %v740_v6 = vpop.f32.mrf.mxu1 }
 0x166   : > { %v661_v7 = vadd.f32 %v1877_v47, %v660_v5  ;;  %v741_v8 = vadd.f32 %v1877_v47, %v740_v6 }
 0x167   : > { %v1004_v9 = vmax.f32 %v818_v3, 0.0  ;;  %v1036_v10 = vmax.f32 %v898_v4, 0.0 }
 0x168   : > { %v941_v11 = vmax.f32 %v661_v7, 0.0  ;;  %v973_v12 = vmax.f32 %v741_v8, 0.0 }
 0x169   : > { %1133 = vst.msk [vmem:[%s1502_s29 + $0x2c8] sm:$0xff] %vm1043_vm3, %v1004_v9 }
 0x16a   : > { %1165 = vst.msk [vmem:[%s1502_s29 + $0x3c8] sm:$0xff] %vm1043_vm3, %v1036_v10 }
 0x16b   : > { %1070 = vst.msk [vmem:[%s1502_s29 + $0xd0] sm:$0xff] %vm1043_vm3, %v941_v11 }
 0x16c   : > { %1102 = vst.msk [vmem:[%s1502_s29 + $0x1d0] sm:$0xff] %vm1043_vm3, %v973_v12  ;;  %v820_v13 = vpop.f32.mrf.mxu2  ;;  %v900_v14 = vpop.f32.mrf.mxu3 }
 0x16d   : > { %v821_v15 = vadd.f32 %v1877_v47, %v820_v13  ;;  %v901_v16 = vadd.f32 %v1877_v47, %v900_v14  ;;  %v662_v17 = vpop.f32.mrf.mxu0  ;;  %v742_v18 = vpop.f32.mrf.mxu1 }
 0x16e   : > { %v663_v19 = vadd.f32 %v1877_v47, %v662_v17  ;;  %v743_v20 = vadd.f32 %v1877_v47, %v742_v18 }
 0x16f   : > { %v1005_v21 = vmax.f32 %v821_v15, 0.0  ;;  %v1037_v22 = vmax.f32 %v901_v16, 0.0 }
 0x170   : > { %v942_v23 = vmax.f32 %v663_v19, 0.0  ;;  %v974_v24 = vmax.f32 %v743_v20, 0.0 }
 0x171   : > { %1134 = vst.msk [vmem:[%s1502_s29 + $0x2d0] sm:$0xff] %vm1043_vm3, %v1005_v21 }
 0x172   : > { %1166 = vst.msk [vmem:[%s1502_s29 + $0x3d0] sm:$0xff] %vm1043_vm3, %v1037_v22 }
 0x173   : > { %1071 = vst.msk [vmem:[%s1502_s29 + $0xd8] sm:$0xff] %vm1043_vm3, %v942_v23 }
 0x174   : > { %1103 = vst.msk [vmem:[%s1502_s29 + $0x1d8] sm:$0xff] %vm1043_vm3, %v974_v24  ;;  %v822_v25 = vpop.f32.mrf.mxu2  ;;  %v902_v26 = vpop.f32.mrf.mxu3 }
 0x175   : > { %v823_v27 = vadd.f32 %v1877_v47, %v822_v25  ;;  %v903_v28 = vadd.f32 %v1877_v47, %v902_v26  ;;  %v665_v29 = vpop.f32.mrf.mxu0  ;;  %v745_v30 = vpop.f32.mrf.mxu1 }
 0x176   : > { %v666_v31 = vadd.f32 %v1877_v47, %v665_v29  ;;  %v746_v32 = vadd.f32 %v1877_v47, %v745_v30 }
 0x177   : > { %v1006_v33 = vmax.f32 %v823_v27, 0.0  ;;  %v1038_v34 = vmax.f32 %v903_v28, 0.0 }
 0x178   : > { %v943_v35 = vmax.f32 %v666_v31, 0.0  ;;  %v975_v36 = vmax.f32 %v746_v32, 0.0 }
 0x179   : > { %1135 = vst.msk [vmem:[%s1502_s29 + $0x2d8] sm:$0xff] %vm1043_vm3, %v1006_v33 }
 0x17a   : > { %1167 = vst.msk [vmem:[%s1502_s29 + $0x3d8] sm:$0xff] %vm1043_vm3, %v1038_v34 }
 0x17b   : > { %1072 = vst.msk [vmem:[%s1502_s29 + $0xe0] sm:$0xff] %vm1043_vm3, %v943_v35 }
 0x17c   : > { %1104 = vst.msk [vmem:[%s1502_s29 + $0x1e0] sm:$0xff] %vm1043_vm3, %v975_v36  ;;  %v825_v37 = vpop.f32.mrf.mxu2  ;;  %v905_v38 = vpop.f32.mrf.mxu3 }
 0x17d   : > { %v826_v39 = vadd.f32 %v1877_v47, %v825_v37  ;;  %v906_v41 = vadd.f32 %v1877_v47, %v905_v38  ;;  %v667_v42 = vpop.f32.mrf.mxu0  ;;  %v747_v43 = vpop.f32.mrf.mxu1 }
 0x17e   : > { %v668_v44 = vadd.f32 %v1877_v47, %v667_v42  ;;  %v748_v45 = vadd.f32 %v1877_v47, %v747_v43 }
 0x17f   : > { %v1007_v46 = vmax.f32 %v826_v39, 0.0  ;;  %v1039_v48 = vmax.f32 %v906_v41, 0.0 }
 0x180   : > { %v944_v49 = vmax.f32 %v668_v44, 0.0  ;;  %v976_v50 = vmax.f32 %v748_v45, 0.0 }
 0x181   : > { %1136 = vst.msk [vmem:[%s1502_s29 + $0x2e0] sm:$0xff] %vm1043_vm3, %v1007_v46 }
 0x182   : > { %1168 = vst.msk [vmem:[%s1502_s29 + $0x3e0] sm:$0xff] %vm1043_vm3, %v1039_v48 }
 0x183   : > { %1073 = vst.msk [vmem:[%s1502_s29 + $0xe8] sm:$0xff] %vm1043_vm3, %v944_v49 }
 0x184   : > { %1105 = vst.msk [vmem:[%s1502_s29 + $0x1e8] sm:$0xff] %vm1043_vm3, %v976_v50  ;;  %v827_v51 = vpop.f32.mrf.mxu2  ;;  %v907_v52 = vpop.f32.mrf.mxu3 }
 0x185   : > { %v828_v53 = vadd.f32 %v1877_v47, %v827_v51  ;;  %v908_v40 = vadd.f32 %v1877_v47, %v907_v52  ;;  %v670_v54 = vpop.f32.mrf.mxu0  ;;  %v750_v55 = vpop.f32.mrf.mxu1 }
 0x186   : > { %v671_v56 = vadd.f32 %v1877_v47, %v670_v54  ;;  %v751_v57 = vadd.f32 %v1877_v47, %v750_v55 }
 0x187   : > { %v1008_v58 = vmax.f32 %v828_v53, 0.0  ;;  %v1040_v59 = vmax.f32 %v908_v40, 0.0 }
 0x188   : > { %v945_v60 = vmax.f32 %v671_v56, 0.0  ;;  %v977_v61 = vmax.f32 %v751_v57, 0.0 }
 0x189   : > { %1137 = vst.msk [vmem:[%s1502_s29 + $0x2e8] sm:$0xff] %vm1043_vm3, %v1008_v58 }
 0x18a   : > { %1169 = vst.msk [vmem:[%s1502_s29 + $0x3e8] sm:$0xff] %vm1043_vm3, %v1040_v59 }
 0x18b   : > { %1074 = vst.msk [vmem:[%s1502_s29 + $0xf0] sm:$0xff] %vm1043_vm3, %v945_v60 }
 0x18c   : > { %1106 = vst.msk [vmem:[%s1502_s29 + $0x1f0] sm:$0xff] %vm1043_vm3, %v977_v61  ;;  %v830_v62 = vpop.f32.mrf.mxu2  ;;  %v910_v63 = vpop.f32.mrf.mxu3 }
 0x18d   : > { %v831_v0 = vadd.f32 %v1877_v47, %v830_v62  ;;  %v911_v1 = vadd.f32 %v1877_v47, %v910_v63  ;;  %v672_v2 = vpop.f32.mrf.mxu0  ;;  %v752_v3 = vpop.f32.mrf.mxu1 }
 0x18e   : > { %v673_v4 = vadd.f32 %v1877_v47, %v672_v2  ;;  %v753_v5 = vadd.f32 %v1877_v47, %v752_v3 }
 0x18f   : > { %v1009_v6 = vmax.f32 %v831_v0, 0.0  ;;  %v1041_v7 = vmax.f32 %v911_v1, 0.0 }
 0x190   : > { %v946_v8 = vmax.f32 %v673_v4, 0.0  ;;  %v978_v9 = vmax.f32 %v753_v5, 0.0 }
 0x191   : > { %1138 = vst.msk [vmem:[%s1502_s29 + $0x2f0] sm:$0xff] %vm1043_vm3, %v1009_v6 }
 0x192   : > { %1170 = vst.msk [vmem:[%s1502_s29 + $0x3f0] sm:$0xff] %vm1043_vm3, %v1041_v7 }
 0x193   : > { %1075 = vst.msk [vmem:[%s1502_s29 + $0xf8] sm:$0xff] %vm1043_vm3, %v946_v8 }
 0x194   : > { %1107 = vst.msk [vmem:[%s1502_s29 + $0x1f8] sm:$0xff] %vm1043_vm3, %v978_v9  ;;  %v832_v10 = vpop.f32.mrf.mxu2  ;;  %v912_v11 = vpop.f32.mrf.mxu3 }
 0x195   : > { %v833_v12 = vadd.f32 %v1877_v47, %v832_v10  ;;  %v913_v13 = vadd.f32 %v1877_v47, %v912_v11 }
 0x197   : > { %v1010_v14 = vmax.f32 %v833_v12, 0.0  ;;  %v1042_v15 = vmax.f32 %v913_v13, 0.0 }
 0x199   : > { %1139 = vst.msk [vmem:[%s1502_s29 + $0x2f8] sm:$0xff] %vm1043_vm3, %v1010_v14 }
 0x19a   : > { %1171 = vst.msk [vmem:[%s1502_s29 + $0x3f8] sm:$0xff] %vm1043_vm3, %v1042_v15 }
 0x19b PF: > { %s13_s12 = sadd.s32 1, %s1336_s12  }
 0x19c   : > { %p10_p4 = scmp.ge.s32.totalorder %s13_s12, 4  }
 0x19e   :  { %12 = sbr.rel (!%p10_p4) target bundleno = 1 (0x1), region = 62 }

// kernel: fcos_forward.19
= control target key start
LH: loop header
LB: loop body
LE: loop exit
PB: predicated region body
PF: predicated region fallthrough
CT: control target
= control target key end

     0   :  { %s625_s12 = smov 0   ;;  %s817_s0 = inlined_call_operand.vmem [shape: f32[512,72], index: 0, kind: input, shape index: {}]   ;;  %s818_s1 = inlined_call_operand.vmem [shape: bf16[72,16], index: 1, kind: input, shape index: {}]   ;;  %s819_s2 = inlined_call_operand.vmem [shape: f32[1,16], index: 2, kind: input, shape index: {}]   ;;  %s820_s3 = inlined_call_operand.vmem [shape: f32[512,16], index: 3, kind: output, shape index: {}]  }
   0x1 LB: > { %s526_s13 = sadd.s32 4294967295, %s603_s12   ;;  %p530_p0 = scmp.ge.s32.totalorder %s603_s12, 1  ;;  %s603_s12 = sphi %s625_s12, %s13_s12  }
   0x2   : > { %p138_p1 = scmp.lt.s32.totalorder %s603_s12, 3 }
   0x4   : > { %p139_p2 = pnand %p530_p0, %p138_p1 }
   0x5   : > { %s531_s16 = sshll.u32 (!%p139_p2), %s526_s13, 5 }
   0x6   : > { %142 = sbr.rel (%p139_p2) target bundleno = 231 (0xe7), region = 32  ;;  %p163_p3 = scmp.lt.s32.totalorder (!%p139_p2), %s531_s16, 63 }
   0xb   : > { %v231_v0 = vld [vmem:[%s818_s1 + $0x20] sm:$0xf]  ;;  %vm312_vm0 = vcmask 1043456   ;;  %v572_v4 = vld [vmem:[%s818_s1 + $0x18] sm:$0xff]  ;;  %s822_s16 = smov (!%p163_p3, %s531_s16), 63  ;;  %v571_v5 = vld [vmem:[%s818_s1 + $0x10] sm:$0xff] }
   0xc   : > { %v253_v1 = vunpack.c.l.b16 %v231_v0  ;;  %s532_s21 = sshll.u32 %s822_s16, 3  ;;  %v570_v6 = vld [vmem:[%s818_s1 + $0x8] sm:$0xff]  ;;  %v569_v7 = vld [vmem:[%s818_s1] sm:$0xff]  ;;  %vm263_vm1 = vcmask 588800   ;;  %vm437_vm2 = vcmask 130048  }
   0xd   : > { %s653_s26 = scalar_lea.vmem %s817_s0, %s532_s21  ;;  %v709_v56 = vld [vmem:[%s819_s2] ss:$0 sm:$0xff]  ;;  %s718_s6 = scalar_lea.vmem %s820_s3, %s532_s21 }
   0xe   : > { %v258_v2 = vpack.c.b16 %v253_v1, %v253_v1  ;;  %v175_v8 = vld [vmem:[%s653_s26] sm:$0xff]  ;;  %v176_v9 = vld [vmem:[%s653_s26 + $0x8] sm:$0xff]  ;;  %v177_v20 = vld [vmem:[%s653_s26 + $0x10] sm:$0xff] }
   0xf   : > { %v183_v10 = vld [vmem:[%s653_s26 + $0x40] sm:$0xff]  ;;  %v184_v11 = vld [vmem:[%s653_s26 + $0x48] sm:$0xff]  ;;  %v207_v16 = vpack.c.bf16 %v176_v9, %v175_v8  ;;  %v178_v21 = vld [vmem:[%s653_s26 + $0x18] sm:$0xff] }
  0x10   : > { %v314_v3 = vsel %vm312_vm0, %v258_v2, 0  ;;  %v191_v12 = vld [vmem:[%s653_s26 + $0x80] sm:$0xff]  ;;  %v192_v13 = vld [vmem:[%s653_s26 + $0x88] sm:$0xff]  ;;  %v211_v17 = vpack.c.bf16 %v184_v11, %v183_v10  ;;  %v185_v22 = vld [vmem:[%s653_s26 + $0x50] sm:$0xff]  ;;  %v208_v28 = vpack.c.bf16 %v178_v21, %v177_v20 }
  0x11   : > { %319 = vmatpush.bf16.msra.mxu0 %v314_v3  ;;  %573 = vmatpush.bf16.msra.mxu1 %v314_v3  ;;  %v199_v14 = vld [vmem:[%s653_s26 + $0xc0] sm:$0xff]  ;;  %v200_v15 = vld [vmem:[%s653_s26 + $0xc8] sm:$0xff]  ;;  %v215_v18 = vpack.c.bf16 %v192_v13, %v191_v12  ;;  %v186_v23 = vld [vmem:[%s653_s26 + $0x58] sm:$0xff] }
  0x12   : > { %574 = vmatpush.bf16.msra.mxu2 %v314_v3  ;;  %575 = vmatpush.bf16.msra.mxu3 %v314_v3  ;;  %v219_v19 = vpack.c.bf16 %v200_v15, %v199_v14  ;;  %v193_v24 = vld [vmem:[%s653_s26 + $0x90] sm:$0xff]  ;;  %v194_v25 = vld [vmem:[%s653_s26 + $0x98] sm:$0xff]  ;;  %v212_v29 = vpack.c.bf16 %v186_v23, %v185_v22  ;;  %v179_v32 = vld [vmem:[%s653_s26 + $0x20] sm:$0xff] }
  0x13   : > { %v201_v26 = vld [vmem:[%s653_s26 + $0xd0] sm:$0xff]  ;;  %v202_v27 = vld [vmem:[%s653_s26 + $0xd8] sm:$0xff]  ;;  %v216_v30 = vpack.c.bf16 %v194_v25, %v193_v24  ;;  %v180_v33 = vld [vmem:[%s653_s26 + $0x28] sm:$0xff] }
  0x14   : > { %v220_v31 = vpack.c.bf16 %v202_v27, %v201_v26  ;;  %v187_v34 = vld [vmem:[%s653_s26 + $0x60] sm:$0xff]  ;;  %v188_v35 = vld [vmem:[%s653_s26 + $0x68] sm:$0xff]  ;;  %v209_v40 = vpack.c.bf16 %v180_v33, %v179_v32  ;;  %v181_v44 = vld [vmem:[%s653_s26 + $0x30] sm:$0xff] }
  0x15   : > { %320 = vmatpush.bf16.msra.mxu0 %v572_v4  ;;  %576 = vmatpush.bf16.msra.mxu1 %v572_v4  ;;  %v195_v36 = vld [vmem:[%s653_s26 + $0xa0] sm:$0xff]  ;;  %v196_v37 = vld [vmem:[%s653_s26 + $0xa8] sm:$0xff]  ;;  %v213_v41 = vpack.c.bf16 %v188_v35, %v187_v34  ;;  %v182_v45 = vld [vmem:[%s653_s26 + $0x38] sm:$0xff] }
  0x16   : > { %577 = vmatpush.bf16.msra.mxu2 %v572_v4  ;;  %578 = vmatpush.bf16.msra.mxu3 %v572_v4  ;;  %v203_v38 = vld [vmem:[%s653_s26 + $0xe0] sm:$0xff]  ;;  %v204_v39 = vld [vmem:[%s653_s26 + $0xe8] sm:$0xff]  ;;  %v217_v42 = vpack.c.bf16 %v196_v37, %v195_v36  ;;  %v189_v46 = vld [vmem:[%s653_s26 + $0x70] sm:$0xff]  ;;  %v210_v52 = vpack.c.bf16 %v182_v45, %v181_v44 }
  0x17   : > { %v221_v43 = vpack.c.bf16 %v204_v39, %v203_v38  ;;  %v190_v47 = vld [vmem:[%s653_s26 + $0x78] sm:$0xff]  ;;  %v197_v48 = vld [vmem:[%s653_s26 + $0xb0] sm:$0xff] }
  0x18   : > { %v198_v49 = vld [vmem:[%s653_s26 + $0xb8] sm:$0xff]  ;;  %v205_v50 = vld [vmem:[%s653_s26 + $0xf0] sm:$0xff]  ;;  %v214_v53 = vpack.c.bf16 %v190_v47, %v189_v46 }
  0x19   : > { %321 = vmatpush.bf16.msra.mxu0 %v571_v5  ;;  %579 = vmatpush.bf16.msra.mxu1 %v571_v5  ;;  %v206_v51 = vld [vmem:[%s653_s26 + $0xf8] sm:$0xff]  ;;  %v218_v54 = vpack.c.bf16 %v198_v49, %v197_v48 }
  0x1a   : > { %580 = vmatpush.bf16.msra.mxu2 %v571_v5  ;;  %581 = vmatpush.bf16.msra.mxu3 %v571_v5  ;;  %v222_v55 = vpack.c.bf16 %v206_v51, %v205_v50 }
  0x1d   : > { %322 = vmatpush.bf16.msra.mxu0 %v570_v6  ;;  %582 = vmatpush.bf16.msra.mxu1 %v570_v6 }
  0x1e   : > { %583 = vmatpush.bf16.msra.mxu2 %v570_v6  ;;  %584 = vmatpush.bf16.msra.mxu3 %v570_v6 }
  0x21   : > { %323 = vmatpush.bf16.msra.mxu0 %v569_v7  ;;  %585 = vmatpush.bf16.msra.mxu1 %v569_v7 }
  0x22   : > { %586 = vmatpush.bf16.msra.mxu2 %v569_v7  ;;  %587 = vmatpush.bf16.msra.mxu3 %v569_v7 }
  0x24   : > { %551 = vmatmul.msk.bf16.vlgmr.msra.gmra.mxu0 %vm263_vm1, %v207_v16  ;;  %555 = vmatmul.msk.bf16.vlgmr.msra.gmra.mxu1 %vm263_vm1, %v211_v17 }
  0x25   : > { %559 = vmatmul.msk.bf16.vlgmr.msra.gmra.mxu2 %vm263_vm1, %v215_v18  ;;  %563 = vmatmul.msk.bf16.vlgmr.msra.gmra.mxu3 %vm263_vm1, %v219_v19 }
  0x34   : > { %552 = vmatmul.msk.bf16.gmra.mxu0 %vm263_vm1, %v208_v28  ;;  %556 = vmatmul.msk.bf16.gmra.mxu1 %vm263_vm1, %v212_v29 }
  0x35   : > { %560 = vmatmul.msk.bf16.gmra.mxu2 %vm263_vm1, %v216_v30  ;;  %564 = vmatmul.msk.bf16.gmra.mxu3 %vm263_vm1, %v220_v31 }
  0x44   : > { %553 = vmatmul.msk.bf16.gmra.mxu0 %vm263_vm1, %v209_v40  ;;  %557 = vmatmul.msk.bf16.gmra.mxu1 %vm263_vm1, %v213_v41 }
  0x45   : > { %561 = vmatmul.msk.bf16.gmra.mxu2 %vm263_vm1, %v217_v42  ;;  %565 = vmatmul.msk.bf16.gmra.mxu3 %vm263_vm1, %v221_v43 }
  0x54   : > { %554 = vmatmul.msk.bf16.gmra.mxu0 %vm263_vm1, %v210_v52  ;;  %558 = vmatmul.msk.bf16.gmra.mxu1 %vm263_vm1, %v214_v53 }
  0x55   : > { %562 = vmatmul.msk.bf16.gmra.mxu2 %vm263_vm1, %v218_v54  ;;  %566 = vmatmul.msk.bf16.gmra.mxu3 %vm263_vm1, %v222_v55 }
  0xa1   : > { %v325_v57 = vpop.f32.mrf.mxu0  ;;  %v345_v58 = vpop.f32.mrf.mxu1 }
  0xa2   : > { %v326_v59 = vadd.f32 %v709_v56, %v325_v57  ;;  %v346_v60 = vadd.f32 %v709_v56, %v345_v58 }
  0xa4   : > { %v405_v61 = vmax.f32 %v326_v59, 0.0  ;;  %v413_v62 = vmax.f32 %v346_v60, 0.0 }
  0xa6   : > { %438 = vst.msk [vmem:[%s718_s6] sm:$0xff] %vm437_vm2, %v405_v61 }
  0xa7   : > { %446 = vst.msk [vmem:[%s718_s6 + $0x40] sm:$0xff] %vm437_vm2, %v413_v62 }
  0xa8   : > { %v365_v63 = vpop.f32.mrf.mxu2  ;;  %v385_v0 = vpop.f32.mrf.mxu3 }
  0xa9   : > { %v366_v1 = vadd.f32 %v709_v56, %v365_v63  ;;  %v386_v2 = vadd.f32 %v709_v56, %v385_v0  ;;  %v327_v3 = vpop.f32.mrf.mxu0  ;;  %v347_v4 = vpop.f32.mrf.mxu1 }
  0xaa   : > { %v328_v5 = vadd.f32 %v709_v56, %v327_v3  ;;  %v348_v6 = vadd.f32 %v709_v56, %v347_v4 }
  0xab   : > { %v421_v7 = vmax.f32 %v366_v1, 0.0  ;;  %v429_v8 = vmax.f32 %v386_v2, 0.0 }
  0xac   : > { %v406_v9 = vmax.f32 %v328_v5, 0.0  ;;  %v414_v10 = vmax.f32 %v348_v6, 0.0 }
  0xad   : > { %454 = vst.msk [vmem:[%s718_s6 + $0x80] sm:$0xff] %vm437_vm2, %v421_v7 }
  0xae   : > { %462 = vst.msk [vmem:[%s718_s6 + $0xc0] sm:$0xff] %vm437_vm2, %v429_v8 }
  0xaf   : > { %439 = vst.msk [vmem:[%s718_s6 + $0x8] sm:$0xff] %vm437_vm2, %v406_v9 }
  0xb0   : > { %447 = vst.msk [vmem:[%s718_s6 + $0x48] sm:$0xff] %vm437_vm2, %v414_v10  ;;  %v367_v11 = vpop.f32.mrf.mxu2  ;;  %v387_v12 = vpop.f32.mrf.mxu3 }
  0xb1   : > { %v368_v13 = vadd.f32 %v709_v56, %v367_v11  ;;  %v388_v14 = vadd.f32 %v709_v56, %v387_v12  ;;  %v330_v15 = vpop.f32.mrf.mxu0  ;;  %v350_v16 = vpop.f32.mrf.mxu1 }
  0xb2   : > { %v331_v17 = vadd.f32 %v709_v56, %v330_v15  ;;  %v351_v18 = vadd.f32 %v709_v56, %v350_v16 }
  0xb3   : > { %v422_v19 = vmax.f32 %v368_v13, 0.0  ;;  %v430_v20 = vmax.f32 %v388_v14, 0.0 }
  0xb4   : > { %v407_v21 = vmax.f32 %v331_v17, 0.0  ;;  %v415_v22 = vmax.f32 %v351_v18, 0.0 }
  0xb5   : > { %455 = vst.msk [vmem:[%s718_s6 + $0x88] sm:$0xff] %vm437_vm2, %v422_v19 }
  0xb6   : > { %463 = vst.msk [vmem:[%s718_s6 + $0xc8] sm:$0xff] %vm437_vm2, %v430_v20 }
  0xb7   : > { %440 = vst.msk [vmem:[%s718_s6 + $0x10] sm:$0xff] %vm437_vm2, %v407_v21 }
  0xb8   : > { %448 = vst.msk [vmem:[%s718_s6 + $0x50] sm:$0xff] %vm437_vm2, %v415_v22  ;;  %v370_v23 = vpop.f32.mrf.mxu2  ;;  %v390_v24 = vpop.f32.mrf.mxu3 }
  0xb9   : > { %v371_v25 = vadd.f32 %v709_v56, %v370_v23  ;;  %v391_v26 = vadd.f32 %v709_v56, %v390_v24  ;;  %v332_v27 = vpop.f32.mrf.mxu0  ;;  %v352_v28 = vpop.f32.mrf.mxu1 }
  0xba   : > { %v333_v29 = vadd.f32 %v709_v56, %v332_v27  ;;  %v353_v30 = vadd.f32 %v709_v56, %v352_v28 }
  0xbb   : > { %v423_v31 = vmax.f32 %v371_v25, 0.0  ;;  %v431_v32 = vmax.f32 %v391_v26, 0.0 }
  0xbc   : > { %v408_v33 = vmax.f32 %v333_v29, 0.0  ;;  %v416_v34 = vmax.f32 %v353_v30, 0.0 }
  0xbd   : > { %456 = vst.msk [vmem:[%s718_s6 + $0x90] sm:$0xff] %vm437_vm2, %v423_v31 }
  0xbe   : > { %464 = vst.msk [vmem:[%s718_s6 + $0xd0] sm:$0xff] %vm437_vm2, %v431_v32 }
  0xbf   : > { %441 = vst.msk [vmem:[%s718_s6 + $0x18] sm:$0xff] %vm437_vm2, %v408_v33 }
  0xc0   : > { %449 = vst.msk [vmem:[%s718_s6 + $0x58] sm:$0xff] %vm437_vm2, %v416_v34  ;;  %v372_v35 = vpop.f32.mrf.mxu2  ;;  %v392_v36 = vpop.f32.mrf.mxu3 }
  0xc1   : > { %v373_v37 = vadd.f32 %v709_v56, %v372_v35  ;;  %v393_v38 = vadd.f32 %v709_v56, %v392_v36  ;;  %v335_v39 = vpop.f32.mrf.mxu0  ;;  %v355_v40 = vpop.f32.mrf.mxu1 }
  0xc2   : > { %v336_v41 = vadd.f32 %v709_v56, %v335_v39  ;;  %v356_v42 = vadd.f32 %v709_v56, %v355_v40 }
  0xc3   : > { %v424_v43 = vmax.f32 %v373_v37, 0.0  ;;  %v432_v44 = vmax.f32 %v393_v38, 0.0 }
  0xc4   : > { %v409_v45 = vmax.f32 %v336_v41, 0.0  ;;  %v417_v46 = vmax.f32 %v356_v42, 0.0 }
  0xc5   : > { %457 = vst.msk [vmem:[%s718_s6 + $0x98] sm:$0xff] %vm437_vm2, %v424_v43 }
  0xc6   : > { %465 = vst.msk [vmem:[%s718_s6 + $0xd8] sm:$0xff] %vm437_vm2, %v432_v44 }
  0xc7   : > { %442 = vst.msk [vmem:[%s718_s6 + $0x20] sm:$0xff] %vm437_vm2, %v409_v45 }
  0xc8   : > { %450 = vst.msk [vmem:[%s718_s6 + $0x60] sm:$0xff] %vm437_vm2, %v417_v46  ;;  %v375_v47 = vpop.f32.mrf.mxu2  ;;  %v395_v48 = vpop.f32.mrf.mxu3 }
  0xc9   : > { %v376_v49 = vadd.f32 %v709_v56, %v375_v47  ;;  %v396_v50 = vadd.f32 %v709_v56, %v395_v48  ;;  %v337_v51 = vpop.f32.mrf.mxu0  ;;  %v357_v52 = vpop.f32.mrf.mxu1 }
  0xca   : > { %v338_v53 = vadd.f32 %v709_v56, %v337_v51  ;;  %v358_v54 = vadd.f32 %v709_v56, %v357_v52 }
  0xcb   : > { %v425_v55 = vmax.f32 %v376_v49, 0.0  ;;  %v433_v57 = vmax.f32 %v396_v50, 0.0 }
  0xcc   : > { %v410_v58 = vmax.f32 %v338_v53, 0.0  ;;  %v418_v59 = vmax.f32 %v358_v54, 0.0 }
  0xcd   : > { %458 = vst.msk [vmem:[%s718_s6 + $0xa0] sm:$0xff] %vm437_vm2, %v425_v55 }
  0xce   : > { %466 = vst.msk [vmem:[%s718_s6 + $0xe0] sm:$0xff] %vm437_vm2, %v433_v57 }
  0xcf   : > { %443 = vst.msk [vmem:[%s718_s6 + $0x28] sm:$0xff] %vm437_vm2, %v410_v58 }
  0xd0   : > { %451 = vst.msk [vmem:[%s718_s6 + $0x68] sm:$0xff] %vm437_vm2, %v418_v59  ;;  %v377_v60 = vpop.f32.mrf.mxu2  ;;  %v397_v61 = vpop.f32.mrf.mxu3 }
  0xd1   : > { %v378_v62 = vadd.f32 %v709_v56, %v377_v60  ;;  %v398_v63 = vadd.f32 %v709_v56, %v397_v61  ;;  %v340_v0 = vpop.f32.mrf.mxu0  ;;  %v360_v1 = vpop.f32.mrf.mxu1 }
  0xd2   : > { %v341_v2 = vadd.f32 %v709_v56, %v340_v0  ;;  %v361_v3 = vadd.f32 %v709_v56, %v360_v1 }
  0xd3   : > { %v426_v4 = vmax.f32 %v378_v62, 0.0  ;;  %v434_v5 = vmax.f32 %v398_v63, 0.0 }
  0xd4   : > { %v411_v6 = vmax.f32 %v341_v2, 0.0  ;;  %v419_v7 = vmax.f32 %v361_v3, 0.0 }
  0xd5   : > { %459 = vst.msk [vmem:[%s718_s6 + $0xa8] sm:$0xff] %vm437_vm2, %v426_v4 }
  0xd6   : > { %467 = vst.msk [vmem:[%s718_s6 + $0xe8] sm:$0xff] %vm437_vm2, %v434_v5 }
  0xd7   : > { %444 = vst.msk [vmem:[%s718_s6 + $0x30] sm:$0xff] %vm437_vm2, %v411_v6 }
  0xd8   : > { %452 = vst.msk [vmem:[%s718_s6 + $0x70] sm:$0xff] %vm437_vm2, %v419_v7  ;;  %v380_v8 = vpop.f32.mrf.mxu2  ;;  %v400_v9 = vpop.f32.mrf.mxu3 }
  0xd9   : > { %v381_v10 = vadd.f32 %v709_v56, %v380_v8  ;;  %v401_v11 = vadd.f32 %v709_v56, %v400_v9  ;;  %v342_v12 = vpop.f32.mrf.mxu0  ;;  %v362_v13 = vpop.f32.mrf.mxu1 }
  0xda   : > { %v343_v14 = vadd.f32 %v709_v56, %v342_v12  ;;  %v363_v15 = vadd.f32 %v709_v56, %v362_v13 }
  0xdb   : > { %v427_v16 = vmax.f32 %v381_v10, 0.0  ;;  %v435_v17 = vmax.f32 %v401_v11, 0.0 }
  0xdc   : > { %v412_v18 = vmax.f32 %v343_v14, 0.0  ;;  %v420_v19 = vmax.f32 %v363_v15, 0.0 }
  0xdd   : > { %460 = vst.msk [vmem:[%s718_s6 + $0xb0] sm:$0xff] %vm437_vm2, %v427_v16 }
  0xde   : > { %468 = vst.msk [vmem:[%s718_s6 + $0xf0] sm:$0xff] %vm437_vm2, %v435_v17 }
  0xdf   : > { %445 = vst.msk [vmem:[%s718_s6 + $0x38] sm:$0xff] %vm437_vm2, %v412_v18 }
  0xe0   : > { %453 = vst.msk [vmem:[%s718_s6 + $0x78] sm:$0xff] %vm437_vm2, %v420_v19  ;;  %v382_v20 = vpop.f32.mrf.mxu2  ;;  %v402_v21 = vpop.f32.mrf.mxu3 }
  0xe1   : > { %v383_v22 = vadd.f32 %v709_v56, %v382_v20  ;;  %v403_v23 = vadd.f32 %v709_v56, %v402_v21 }
  0xe3   : > { %v428_v24 = vmax.f32 %v383_v22, 0.0  ;;  %v436_v25 = vmax.f32 %v403_v23, 0.0 }
  0xe5   : > { %461 = vst.msk [vmem:[%s718_s6 + $0xb8] sm:$0xff] %vm437_vm2, %v428_v24 }
  0xe6   : > { %469 = vst.msk [vmem:[%s718_s6 + $0xf8] sm:$0xff] %vm437_vm2, %v436_v25 }
  0xe7 PF: > { %s13_s12 = sadd.s32 1, %s603_s12  }
  0xe8   : > { %p10_p4 = scmp.ge.s32.totalorder %s13_s12, 4  }
  0xea   :  { %12 = sbr.rel (!%p10_p4) target bundleno = 1 (0x1), region = 62 }

// kernel: fcos_forward.20
= control target key start
LH: loop header
LB: loop body
LE: loop exit
PB: predicated region body
PF: predicated region fallthrough
CT: control target
= control target key end

     0   :  { %vm139_vm0 = vcmask 130048   ;;  %s597_s1 = inlined_call_operand.vmem [shape: bf16[144,16], index: 1, kind: input, shape index: {}]   ;;  %s598_s0 = inlined_call_operand.vmem [shape: f32[128,144], index: 0, kind: input, shape index: {}]   ;;  %s599_s2 = inlined_call_operand.vmem [shape: f32[1,16], index: 2, kind: input, shape index: {}]   ;;  %s600_s3 = inlined_call_operand.vmem [shape: f32[128,16], index: 3, kind: output, shape index: {}]  }
   0x1   :  { %v349_v0 = vld [vmem:[%s597_s1 + $0x38] sm:$0xff]  ;;  %v350_v1 = vld [vmem:[%s597_s1 + $0x40] sm:$0xff]  ;;  %v16_v2 = vld [vmem:[%s598_s0 + $0x8] sm:$0xff] }
   0x2   :  { %v18_v3 = vld [vmem:[%s598_s0 + $0x18] sm:$0xff]  ;;  %164 = vmatpush.bf16.msra.mxu0 %v349_v0  ;;  %351 = vmatpush.bf16.msra.mxu2 %v349_v0  ;;  %v348_v5 = vld [vmem:[%s597_s1 + $0x30] sm:$0xff]  ;;  %v347_v6 = vld [vmem:[%s597_s1 + $0x28] sm:$0xff] }
   0x3   :  { %v48_v4 = vpack.c.bf16 %v18_v3, %v16_v2  ;;  %220 = vmatpush.bf16.msra.mxu1 %v350_v1  ;;  %359 = vmatpush.bf16.msra.mxu3 %v350_v1  ;;  %v36_v7 = vld [vmem:[%s598_s0 + $0xa8] sm:$0xff]  ;;  %v38_v8 = vld [vmem:[%s598_s0 + $0xb8] sm:$0xff]  ;;  %v346_v10 = vld [vmem:[%s597_s1 + $0x20] sm:$0xff] }
   0x4   :  { %v58_v9 = vpack.c.bf16 %v38_v8, %v36_v7  ;;  %v345_v11 = vld [vmem:[%s597_s1 + $0x18] sm:$0xff]  ;;  %v20_v12 = vld [vmem:[%s598_s0 + $0x28] sm:$0xff]  ;;  %v344_v15 = vld [vmem:[%s597_s1 + $0x10] sm:$0xff] }
   0x5   :  { %v22_v13 = vld [vmem:[%s598_s0 + $0x38] sm:$0xff]  ;;  %v343_v16 = vld [vmem:[%s597_s1 + $0x8] sm:$0xff]  ;;  %v342_v20 = vld [vmem:[%s597_s1] sm:$0xff] }
   0x6   :  { %334 = vmatmul.msk.bf16.vlgmr.msra.gmra.mxu1 %vm139_vm0, %v48_v4  ;;  %165 = vmatpush.bf16.msra.mxu0 %v348_v5  ;;  %v50_v14 = vpack.c.bf16 %v22_v13, %v20_v12  ;;  %v40_v17 = vld [vmem:[%s598_s0 + $0xc8] sm:$0xff]  ;;  %v42_v18 = vld [vmem:[%s598_s0 + $0xd8] sm:$0xff]  ;;  %v15_v21 = vld [vmem:[%s598_s0] sm:$0xff] }
   0x7   :  { %352 = vmatpush.bf16.msra.mxu2 %v348_v5  ;;  %339 = vmatmul.msk.bf16.vlgmr.msra.gmra.mxu3 %vm139_vm0, %v58_v9  ;;  %v60_v19 = vpack.c.bf16 %v42_v18, %v40_v17  ;;  %v17_v22 = vld [vmem:[%s598_s0 + $0x10] sm:$0xff]  ;;  %v31_v23 = vld [vmem:[%s598_s0 + $0x80] sm:$0xff]  ;;  %v24_v27 = vld [vmem:[%s598_s0 + $0x48] sm:$0xff] }
   0x8   :  { %v33_v24 = vld [vmem:[%s598_s0 + $0x90] sm:$0xff]  ;;  %v47_v25 = vpack.c.bf16 %v17_v22, %v15_v21  ;;  %v26_v28 = vld [vmem:[%s598_s0 + $0x58] sm:$0xff]  ;;  %v44_v30 = vld [vmem:[%s598_s0 + $0xe8] sm:$0xff] }
   0x9   :  { %v55_v26 = vpack.c.bf16 %v33_v24, %v31_v23  ;;  %v52_v29 = vpack.c.bf16 %v26_v28, %v24_v27  ;;  %v46_v31 = vld [vmem:[%s598_s0 + $0xf8] sm:$0xff]  ;;  %v19_v33 = vld [vmem:[%s598_s0 + $0x20] sm:$0xff]  ;;  %v21_v34 = vld [vmem:[%s598_s0 + $0x30] sm:$0xff] }
   0xa   :  { %166 = vmatpush.bf16.msra.mxu0 %v347_v6  ;;  %v62_v32 = vpack.c.bf16 %v46_v31, %v44_v30  ;;  %v35_v35 = vld [vmem:[%s598_s0 + $0xa0] sm:$0xff]  ;;  %v37_v36 = vld [vmem:[%s598_s0 + $0xb0] sm:$0xff]  ;;  %v49_v37 = vpack.c.bf16 %v21_v34, %v19_v33  ;;  %v28_v39 = vld [vmem:[%s598_s0 + $0x68] sm:$0xff] }
   0xb   :  { %353 = vmatpush.bf16.msra.mxu2 %v347_v6  ;;  %v57_v38 = vpack.c.bf16 %v37_v36, %v35_v35  ;;  %v30_v40 = vld [vmem:[%s598_s0 + $0x78] sm:$0xff]  ;;  %v23_v42 = vld [vmem:[%s598_s0 + $0x40] sm:$0xff]  ;;  %v25_v43 = vld [vmem:[%s598_s0 + $0x50] sm:$0xff] }
   0xc   :  { %v54_v41 = vpack.c.bf16 %v30_v40, %v28_v39  ;;  %v39_v44 = vld [vmem:[%s598_s0 + $0xc0] sm:$0xff]  ;;  %v41_v45 = vld [vmem:[%s598_s0 + $0xd0] sm:$0xff]  ;;  %v51_v46 = vpack.c.bf16 %v25_v43, %v23_v42  ;;  %v32_v48 = vld [vmem:[%s598_s0 + $0x88] sm:$0xff] }
   0xd   :  { %v59_v47 = vpack.c.bf16 %v41_v45, %v39_v44  ;;  %v34_v49 = vld [vmem:[%s598_s0 + $0x98] sm:$0xff]  ;;  %v27_v51 = vld [vmem:[%s598_s0 + $0x60] sm:$0xff]  ;;  %v29_v52 = vld [vmem:[%s598_s0 + $0x70] sm:$0xff] }
   0xe   :  { %167 = vmatpush.bf16.msra.mxu0 %v346_v10  ;;  %v56_v50 = vpack.c.bf16 %v34_v49, %v32_v48  ;;  %v43_v53 = vld [vmem:[%s598_s0 + $0xe0] sm:$0xff]  ;;  %v45_v54 = vld [vmem:[%s598_s0 + $0xf0] sm:$0xff]  ;;  %v53_v55 = vpack.c.bf16 %v29_v52, %v27_v51 }
   0xf   :  { %354 = vmatpush.bf16.msra.mxu2 %v346_v10  ;;  %v61_v56 = vpack.c.bf16 %v45_v54, %v43_v53  ;;  %v515_v61 = vld [vmem:[%s599_s2] ss:$0 sm:$0xff] }
  0x12   :  { %168 = vmatpush.bf16.msra.mxu0 %v345_v11 }
  0x13   :  { %355 = vmatpush.bf16.msra.mxu2 %v345_v11 }
  0x16   :  { %335 = vmatmul.msk.bf16.gmra.mxu1 %vm139_vm0, %v50_v14  ;;  %169 = vmatpush.bf16.msra.mxu0 %v344_v15 }
  0x17   :  { %356 = vmatpush.bf16.msra.mxu2 %v344_v15  ;;  %340 = vmatmul.msk.bf16.gmra.mxu3 %vm139_vm0, %v60_v19 }
  0x1a   :  { %170 = vmatpush.bf16.msra.mxu0 %v343_v16 }
  0x1b   :  { %357 = vmatpush.bf16.msra.mxu2 %v343_v16 }
  0x1e   :  { %171 = vmatpush.bf16.msra.mxu0 %v342_v20 }
  0x1f   :  { %358 = vmatpush.bf16.msra.mxu2 %v342_v20 }
  0x21   :  { %172 = vmatmul.bf16.vlgmr.msra.gmra.mxu0 %v47_v25 }
  0x22   :  { %192 = vmatmul.bf16.vlgmr.msra.gmra.mxu2 %v55_v26 }
  0x26   :  { %336 = vmatmul.msk.bf16.gmra.mxu1 %vm139_vm0, %v52_v29 }
  0x27   :  { %341 = vmatmul.msk.bf16.gmra.mxu3 %vm139_vm0, %v62_v32 }
  0x31   :  { %177 = vmatmul.bf16.gmra.mxu0 %v49_v37 }
  0x32   :  { %197 = vmatmul.bf16.gmra.mxu2 %v57_v38 }
  0x36   :  { %337 = vmatmul.msk.bf16.gmra.mxu1 %vm139_vm0, %v54_v41 }
  0x41   :  { %182 = vmatmul.bf16.gmra.mxu0 %v51_v46 }
  0x42   :  { %202 = vmatmul.bf16.gmra.mxu2 %v59_v47 }
  0x46   :  { %338 = vmatmul.msk.bf16.gmra.mxu1 %vm139_vm0, %v56_v50 }
  0x51   :  { %187 = vmatmul.bf16.gmra.mxu0 %v53_v55 }
  0x52   :  { %207 = vmatmul.bf16.gmra.mxu2 %v61_v56 }
  0x83   :  { %v222_v57 = vpop.f32.mrf.mxu1 }
  0x8a   :  { %v247_v10 = vpop.f32.mrf.mxu3 }
  0x8b   :  { %v224_v58 = vpop.f32.mrf.mxu1 }
  0x92   :  { %v249_v20 = vpop.f32.mrf.mxu3 }
  0x93   :  { %v227_v59 = vpop.f32.mrf.mxu1 }
  0x9a   :  { %v252_v32 = vpop.f32.mrf.mxu3 }
  0x9b   :  { %v229_v60 = vpop.f32.mrf.mxu1 }
  0x9e   :  { %v173_v62 = vpop.f32.mrf.mxu0 }
  0x9f   :  { %v174_v63 = vadd.f32 %v515_v61, %v173_v62 }
  0xa1   :  { %v223_v0 = vadd.f32 %v222_v57, %v174_v63 }
  0xa2   :  { %v254_v48 = vpop.f32.mrf.mxu3 }
  0xa3   :  { %v262_v1 = vmax.f32 %v223_v0, 0.0  ;;  %v232_v2 = vpop.f32.mrf.mxu1 }
  0xa5   :  { %278 = vst.msk [vmem:[%s600_s3] sm:$0xff] %vm139_vm0, %v262_v1  ;;  %v193_v3 = vpop.f32.mrf.mxu2 }
  0xa6   :  { %v175_v4 = vpop.f32.mrf.mxu0  ;;  %v194_v33 = vadd.f32 %v515_v61, %v193_v3 }
  0xa7   :  { %v176_v5 = vadd.f32 %v515_v61, %v175_v4 }
  0xa9   :  { %v225_v6 = vadd.f32 %v224_v58, %v176_v5 }
  0xab   :  { %v263_v7 = vmax.f32 %v225_v6, 0.0  ;;  %v234_v8 = vpop.f32.mrf.mxu1 }
  0xad   :  { %279 = vst.msk [vmem:[%s600_s3 + $0x8] sm:$0xff] %vm139_vm0, %v263_v7  ;;  %v195_v9 = vpop.f32.mrf.mxu2 }
  0xae   :  { %v178_v11 = vpop.f32.mrf.mxu0  ;;  %v196_v45 = vadd.f32 %v515_v61, %v195_v9 }
  0xaf   :  { %v179_v12 = vadd.f32 %v515_v61, %v178_v11 }
  0xb1   :  { %v228_v13 = vadd.f32 %v227_v59, %v179_v12 }
  0xb3   :  { %v264_v14 = vmax.f32 %v228_v13, 0.0  ;;  %v237_v15 = vpop.f32.mrf.mxu1 }
  0xb5   :  { %280 = vst.msk [vmem:[%s600_s3 + $0x10] sm:$0xff] %vm139_vm0, %v264_v14  ;;  %v198_v16 = vpop.f32.mrf.mxu2 }
  0xb6   :  { %v199_v17 = vadd.f32 %v515_v61, %v198_v16  ;;  %v180_v18 = vpop.f32.mrf.mxu0 }
  0xb7   :  { %v181_v19 = vadd.f32 %v515_v61, %v180_v18 }
  0xb8   :  { %v248_v21 = vadd.f32 %v247_v10, %v199_v17 }
  0xb9   :  { %v230_v22 = vadd.f32 %v229_v60, %v181_v19  ;;  %v257_v60 = vpop.f32.mrf.mxu3 }
  0xba   :  { %v272_v23 = vmax.f32 %v248_v21, 0.0 }
  0xbb   :  { %v265_v24 = vmax.f32 %v230_v22, 0.0  ;;  %v239_v25 = vpop.f32.mrf.mxu1 }
  0xbc   :  { %288 = vst.msk [vmem:[%s600_s3 + $0x50] sm:$0xff] %vm139_vm0, %v272_v23 }
  0xbd   :  { %281 = vst.msk [vmem:[%s600_s3 + $0x18] sm:$0xff] %vm139_vm0, %v265_v24  ;;  %v200_v26 = vpop.f32.mrf.mxu2 }
  0xbe   :  { %v201_v27 = vadd.f32 %v515_v61, %v200_v26  ;;  %v183_v28 = vpop.f32.mrf.mxu0 }
  0xbf   :  { %v184_v29 = vadd.f32 %v515_v61, %v183_v28 }
  0xc0   :  { %v250_v30 = vadd.f32 %v249_v20, %v201_v27 }
  0xc1   :  { %v233_v31 = vadd.f32 %v232_v2, %v184_v29 }
  0xc2   :  { %v273_v34 = vmax.f32 %v250_v30, 0.0 }
  0xc3   :  { %v266_v35 = vmax.f32 %v233_v31, 0.0  ;;  %v242_v36 = vpop.f32.mrf.mxu1 }
  0xc4   :  { %289 = vst.msk [vmem:[%s600_s3 + $0x58] sm:$0xff] %vm139_vm0, %v273_v34  ;;  %v243_v37 = vadd.f32 %v242_v36, %v194_v33 }
  0xc5   :  { %282 = vst.msk [vmem:[%s600_s3 + $0x20] sm:$0xff] %vm139_vm0, %v266_v35  ;;  %v203_v38 = vpop.f32.mrf.mxu2 }
  0xc6   :  { %v270_v39 = vmax.f32 %v243_v37, 0.0  ;;  %v204_v40 = vadd.f32 %v515_v61, %v203_v38  ;;  %v185_v41 = vpop.f32.mrf.mxu0 }
  0xc7   :  { %v186_v42 = vadd.f32 %v515_v61, %v185_v41 }
  0xc8   :  { %286 = vst.msk [vmem:[%s600_s3 + $0x40] sm:$0xff] %vm139_vm0, %v270_v39  ;;  %v253_v43 = vadd.f32 %v252_v32, %v204_v40 }
  0xc9   :  { %v235_v44 = vadd.f32 %v234_v8, %v186_v42  ;;  %v259_v8 = vpop.f32.mrf.mxu3 }
  0xca   :  { %v274_v46 = vmax.f32 %v253_v43, 0.0 }
  0xcb   :  { %v267_v47 = vmax.f32 %v235_v44, 0.0  ;;  %v244_v49 = vpop.f32.mrf.mxu1 }
  0xcc   :  { %290 = vst.msk [vmem:[%s600_s3 + $0x60] sm:$0xff] %vm139_vm0, %v274_v46  ;;  %v245_v50 = vadd.f32 %v244_v49, %v196_v45 }
  0xcd   :  { %283 = vst.msk [vmem:[%s600_s3 + $0x28] sm:$0xff] %vm139_vm0, %v267_v47  ;;  %v205_v51 = vpop.f32.mrf.mxu2 }
  0xce   :  { %v271_v52 = vmax.f32 %v245_v50, 0.0  ;;  %v206_v53 = vadd.f32 %v515_v61, %v205_v51  ;;  %v188_v54 = vpop.f32.mrf.mxu0 }
  0xcf   :  { %v189_v55 = vadd.f32 %v515_v61, %v188_v54 }
  0xd0   :  { %287 = vst.msk [vmem:[%s600_s3 + $0x48] sm:$0xff] %vm139_vm0, %v271_v52  ;;  %v255_v56 = vadd.f32 %v254_v48, %v206_v53 }
  0xd1   :  { %v238_v57 = vadd.f32 %v237_v15, %v189_v55 }
  0xd2   :  { %v275_v58 = vmax.f32 %v255_v56, 0.0 }
  0xd3   :  { %v268_v59 = vmax.f32 %v238_v57, 0.0 }
  0xd4   :  { %291 = vst.msk [vmem:[%s600_s3 + $0x68] sm:$0xff] %vm139_vm0, %v275_v58 }
  0xd5   :  { %284 = vst.msk [vmem:[%s600_s3 + $0x30] sm:$0xff] %vm139_vm0, %v268_v59  ;;  %v208_v62 = vpop.f32.mrf.mxu2 }
  0xd6   :  { %v209_v63 = vadd.f32 %v515_v61, %v208_v62  ;;  %v190_v0 = vpop.f32.mrf.mxu0 }
  0xd7   :  { %v191_v1 = vadd.f32 %v515_v61, %v190_v0 }
  0xd8   :  { %v258_v2 = vadd.f32 %v257_v60, %v209_v63 }
  0xd9   :  { %v240_v3 = vadd.f32 %v239_v25, %v191_v1 }
  0xda   :  { %v276_v4 = vmax.f32 %v258_v2, 0.0 }
  0xdb   :  { %v269_v5 = vmax.f32 %v240_v3, 0.0 }
  0xdc   :  { %292 = vst.msk [vmem:[%s600_s3 + $0x70] sm:$0xff] %vm139_vm0, %v276_v4 }
  0xdd   :  { %285 = vst.msk [vmem:[%s600_s3 + $0x38] sm:$0xff] %vm139_vm0, %v269_v5  ;;  %v210_v6 = vpop.f32.mrf.mxu2 }
  0xde   :  { %v211_v7 = vadd.f32 %v515_v61, %v210_v6 }
  0xe0   :  { %v260_v9 = vadd.f32 %v259_v8, %v211_v7 }
  0xe2   :  { %v277_v10 = vmax.f32 %v260_v9, 0.0 }
  0xe4   :  { %293 = vst.msk [vmem:[%s600_s3 + $0x78] sm:$0xff] %vm139_vm0, %v277_v10 }

// kernel: fcos_forward.21
= control target key start
LH: loop header
LB: loop body
LE: loop exit
PB: predicated region body
PF: predicated region fallthrough
CT: control target
= control target key end

     0   :  { %vm103_vm0 = vcmask 130048   ;;  %vm152_vm1 = vcmask 261120   ;;  %s309_s1 = inlined_call_operand.vmem [shape: bf16[144,32], index: 1, kind: input, shape index: {}]   ;;  %s310_s0 = inlined_call_operand.vmem [shape: f32[32,144], index: 0, kind: input, shape index: {}]   ;;  %s311_s2 = inlined_call_operand.vmem [shape: f32[1,32], index: 2, kind: input, shape index: {}]   ;;  %s312_s3 = inlined_call_operand.vmem [shape: f32[32,32], index: 3, kind: output, shape index: {}]  }
   0x1   :  { %v206_v0 = vld [vmem:[%s309_s1 + $0x38] sm:$0xff]  ;;  %v207_v1 = vld [vmem:[%s309_s1 + $0x40] sm:$0xff]  ;;  %v16_v2 = vld [vmem:[%s310_s0 + $0x8] sm:$0xff] }
   0x2   :  { %110 = vmatpush.bf16.msra.mxu0 %v206_v0  ;;  %208 = vmatpush.bf16.msra.mxu2 %v206_v0  ;;  %v205_v3 = vld [vmem:[%s309_s1 + $0x30] sm:$0xff]  ;;  %v18_v4 = vld [vmem:[%s310_s0 + $0x18] sm:$0xff]  ;;  %v204_v6 = vld [vmem:[%s309_s1 + $0x28] sm:$0xff] }
   0x3   :  { %136 = vmatpush.bf16.msra.mxu1 %v207_v1  ;;  %v24_v5 = vpack.c.bf16 %v18_v4, %v16_v2  ;;  %v203_v7 = vld [vmem:[%s309_s1 + $0x20] sm:$0xff]  ;;  %v202_v8 = vld [vmem:[%s309_s1 + $0x18] sm:$0xff]  ;;  %v20_v9 = vld [vmem:[%s310_s0 + $0x28] sm:$0xff] }
   0x4   :  { %v22_v10 = vld [vmem:[%s310_s0 + $0x38] sm:$0xff]  ;;  %v201_v11 = vld [vmem:[%s309_s1 + $0x10] sm:$0xff]  ;;  %v200_v13 = vld [vmem:[%s309_s1 + $0x8] sm:$0xff] }
   0x5   :  { %v26_v12 = vpack.c.bf16 %v22_v10, %v20_v9  ;;  %v199_v14 = vld [vmem:[%s309_s1] sm:$0xff]  ;;  %v17_v16 = vld [vmem:[%s310_s0 + $0x10] sm:$0xff] }
   0x6   :  { %111 = vmatpush.bf16.msra.mxu0 %v205_v3  ;;  %209 = vmatpush.bf16.msra.mxu2 %v205_v3  ;;  %v15_v15 = vld [vmem:[%s310_s0] sm:$0xff]  ;;  %v21_v18 = vld [vmem:[%s310_s0 + $0x30] sm:$0xff] }
   0x7   :  { %197 = vmatmul.msk.bf16.vlgmr.msra.gmra.mxu1 %vm103_vm0, %v24_v5  ;;  %v19_v17 = vld [vmem:[%s310_s0 + $0x20] sm:$0xff]  ;;  %v23_v19 = vpack.c.bf16 %v17_v16, %v15_v15 }
   0x8   :  { %v25_v20 = vpack.c.bf16 %v21_v18, %v19_v17  ;;  %v216_v23 = vld [vmem:[%s311_s2] ss:$0 sm:$0xff] }
   0xa   :  { %112 = vmatpush.bf16.msra.mxu0 %v204_v6  ;;  %210 = vmatpush.bf16.msra.mxu2 %v204_v6 }
   0xe   :  { %113 = vmatpush.bf16.msra.mxu0 %v203_v7  ;;  %211 = vmatpush.bf16.msra.mxu2 %v203_v7 }
  0x12   :  { %114 = vmatpush.bf16.msra.mxu0 %v202_v8  ;;  %212 = vmatpush.bf16.msra.mxu2 %v202_v8 }
  0x16   :  { %115 = vmatpush.bf16.msra.mxu0 %v201_v11  ;;  %213 = vmatpush.bf16.msra.mxu2 %v201_v11 }
  0x17   :  { %198 = vmatmul.msk.bf16.gmra.mxu1 %vm103_vm0, %v26_v12 }
  0x1a   :  { %116 = vmatpush.bf16.msra.mxu0 %v200_v13  ;;  %214 = vmatpush.bf16.msra.mxu2 %v200_v13 }
  0x1e   :  { %117 = vmatpush.bf16.msra.mxu0 %v199_v14  ;;  %215 = vmatpush.bf16.msra.mxu2 %v199_v14 }
  0x21   :  { %118 = vmatmul.bf16.vlgmr.msra.gmra.mxu0 %v23_v19  ;;  %123 = vmatmul.bf16.vlgmr.msra.gmra.mxu2 %v25_v20 }
  0x84   :  { %v138_v21 = vpop.f32.mrf.mxu1 }
  0x8c   :  { %v140_v22 = vpop.f32.mrf.mxu1 }
  0x94   :  { %v143_v28 = vpop.f32.mrf.mxu1 }
  0x9c   :  { %v145_v39 = vpop.f32.mrf.mxu1 }
  0x9e   :  { %v119_v24 = vpop.f32.mrf.mxu0 }
  0x9f   :  { %v120_v25 = vadd.f32 %v216_v23, %v119_v24 }
  0xa1   :  { %v139_v26 = vadd.f32 %v138_v21, %v120_v25 }
  0xa3   :  { %v148_v27 = vmax.f32 %v139_v26, 0.0 }
  0xa4   :  { %v124_v29 = vpop.f32.mrf.mxu2 }
  0xa5   :  { %153 = vst.msk [vmem:[%s312_s3] sm:$0xff] %vm152_vm1, %v148_v27  ;;  %v125_v30 = vadd.f32 %v216_v23, %v124_v29 }
  0xa6   :  { %v121_v31 = vpop.f32.mrf.mxu0 }
  0xa7   :  { %v144_v32 = vadd.f32 %v143_v28, %v125_v30  ;;  %v122_v33 = vadd.f32 %v216_v23, %v121_v31 }
  0xa9   :  { %v150_v34 = vmax.f32 %v144_v32, 0.0  ;;  %v141_v35 = vadd.f32 %v140_v22, %v122_v33 }
  0xab   :  { %155 = vst.msk [vmem:[%s312_s3 + $0x10] sm:$0xff] %vm152_vm1, %v150_v34  ;;  %v149_v36 = vmax.f32 %v141_v35, 0.0 }
  0xac   :  { %v126_v37 = vpop.f32.mrf.mxu2 }
  0xad   :  { %154 = vst.msk [vmem:[%s312_s3 + $0x8] sm:$0xff] %vm152_vm1, %v149_v36  ;;  %v127_v38 = vadd.f32 %v216_v23, %v126_v37 }
  0xaf   :  { %v146_v40 = vadd.f32 %v145_v39, %v127_v38 }
  0xb1   :  { %v151_v41 = vmax.f32 %v146_v40, 0.0 }
  0xb3   :  { %156 = vst.msk [vmem:[%s312_s3 + $0x18] sm:$0xff] %vm152_vm1, %v151_v41 }

// kernel: fcos_forward.25
= control target key start
LH: loop header
LB: loop body
LE: loop exit
PB: predicated region body
PF: predicated region fallthrough
CT: control target
= control target key end

     0   :  { %vm37_vm0 = vcmask 261120   ;;  %s106_s1 = inlined_call_operand.vmem [shape: bf16[32,32], index: 1, kind: input, shape index: {}]   ;;  %s107_s0 = inlined_call_operand.vmem [shape: f32[8,32], index: 0, kind: input, shape index: {}]   ;;  %s108_s2 = inlined_call_operand.vmem [shape: f32[1,32], index: 2, kind: input, shape index: {}]   ;;  %s109_s3 = inlined_call_operand.vmem [shape: f32[8,32], index: 3, kind: output, shape index: {}]  }
   0x1   :  { %v69_v0 = vld [vmem:[%s106_s1 + $0x8] sm:$0xff]  ;;  %v68_v1 = vld [vmem:[%s106_s1] sm:$0xff] }
   0x2   :  { %47 = vmatpush.bf16.msra.mxu0 %v69_v0  ;;  %v15_v2 = vld [vmem:[%s107_s0] sm:$0xff] }
   0x3   :  { %v16_v3 = vpack.c.bf16 %v15_v2, %v15_v2  ;;  %v70_v4 = vld [vmem:[%s108_s2] ss:$0 sm:$0xff] }
   0x6   :  { %48 = vmatpush.bf16.msra.mxu0 %v68_v1 }
   0x9   :  { %67 = vmatmul.msk.bf16.vlgmr.msra.gmra.mxu0 %vm37_vm0, %v16_v3 }
  0x86   :  { %v50_v5 = vpop.f32.mrf.mxu0 }
  0x87   :  { %v51_v6 = vadd.f32 %v70_v4, %v50_v5 }
  0x89   :  { %54 = vst.msk [vmem:[%s109_s3] sm:$0xff] %vm37_vm0, %v51_v6 }
  0x8e   :  { %v52_v7 = vpop.f32.mrf.mxu0 }

// kernel: fcos_forward.22
= control target key start
LH: loop header
LB: loop body
LE: loop exit
PB: predicated region body
PF: predicated region fallthrough
CT: control target
= control target key end

     0   :  { %vm169_vm0 = vcmask 261120   ;;  %s401_s1 = inlined_call_operand.vmem [shape: bf16[288,32], index: 1, kind: input, shape index: {}]   ;;  %s402_s0 = inlined_call_operand.vmem [shape: f32[8,288], index: 0, kind: input, shape index: {}]   ;;  %s403_s2 = inlined_call_operand.vmem [shape: f32[1,32], index: 2, kind: input, shape index: {}]   ;;  %s404_s3 = inlined_call_operand.vmem [shape: f32[8,32], index: 3, kind: output, shape index: {}]  }
   0x1   :  { %v298_v0 = vld [vmem:[%s401_s1 + $0x38] sm:$0xff]  ;;  %v297_v2 = vld [vmem:[%s401_s1 + $0x30] sm:$0xff]  ;;  %v308_v4 = vld [vmem:[%s401_s1 + $0x88] sm:$0xff] }
   0x2   :  { %v306_v1 = vld [vmem:[%s401_s1 + $0x78] sm:$0xff]  ;;  %173 = vmatpush.bf16.msra.mxu0 %v298_v0  ;;  %v305_v3 = vld [vmem:[%s401_s1 + $0x70] sm:$0xff]  ;;  %205 = vmatpush.bf16.msra.mxu2 %v308_v4  ;;  %v307_v5 = vld [vmem:[%s401_s1 + $0x80] sm:$0xff] }
   0x3   :  { %186 = vmatpush.bf16.msra.mxu1 %v306_v1  ;;  %v17_v6 = vld [vmem:[%s402_s0 + $0x10] sm:$0xff]  ;;  %v296_v7 = vld [vmem:[%s401_s1 + $0x28] sm:$0xff]  ;;  %v295_v10 = vld [vmem:[%s401_s1 + $0x20] sm:$0xff] }
   0x4   :  { %v304_v8 = vld [vmem:[%s401_s1 + $0x68] sm:$0xff]  ;;  %v20_v9 = vpack.c.bf16 %v17_v6, %v17_v6  ;;  %v303_v11 = vld [vmem:[%s401_s1 + $0x60] sm:$0xff]  ;;  %v294_v12 = vld [vmem:[%s401_s1 + $0x18] sm:$0xff] }
   0x5   :  { %v302_v13 = vld [vmem:[%s401_s1 + $0x58] sm:$0xff]  ;;  %v293_v14 = vld [vmem:[%s401_s1 + $0x10] sm:$0xff]  ;;  %v292_v16 = vld [vmem:[%s401_s1 + $0x8] sm:$0xff] }
   0x6   :  { %174 = vmatpush.bf16.msra.mxu0 %v297_v2  ;;  %206 = vmatpush.bf16.msra.mxu2 %v307_v5  ;;  %v301_v15 = vld [vmem:[%s401_s1 + $0x50] sm:$0xff]  ;;  %v300_v17 = vld [vmem:[%s401_s1 + $0x48] sm:$0xff]  ;;  %v291_v18 = vld [vmem:[%s401_s1] sm:$0xff] }
   0x7   :  { %187 = vmatpush.bf16.msra.mxu1 %v305_v3  ;;  %v299_v19 = vld [vmem:[%s401_s1 + $0x40] sm:$0xff]  ;;  %v16_v21 = vld [vmem:[%s402_s0 + $0x8] sm:$0xff] }
   0x8   :  { %v15_v20 = vld [vmem:[%s402_s0] sm:$0xff]  ;;  %v19_v23 = vpack.c.bf16 %v16_v21, %v16_v21 }
   0x9   :  { %290 = vmatmul.msk.bf16.vlgmr.msra.gmra.mxu2 %vm169_vm0, %v20_v9  ;;  %v18_v22 = vpack.c.bf16 %v15_v20, %v15_v20  ;;  %v309_v26 = vld [vmem:[%s403_s2] ss:$0 sm:$0xff] }
   0xa   :  { %175 = vmatpush.bf16.msra.mxu0 %v296_v7 }
   0xb   :  { %188 = vmatpush.bf16.msra.mxu1 %v304_v8 }
   0xe   :  { %176 = vmatpush.bf16.msra.mxu0 %v295_v10 }
   0xf   :  { %189 = vmatpush.bf16.msra.mxu1 %v303_v11 }
  0x12   :  { %177 = vmatpush.bf16.msra.mxu0 %v294_v12 }
  0x13   :  { %190 = vmatpush.bf16.msra.mxu1 %v302_v13 }
  0x16   :  { %178 = vmatpush.bf16.msra.mxu0 %v293_v14 }
  0x17   :  { %191 = vmatpush.bf16.msra.mxu1 %v301_v15 }
  0x1a   :  { %179 = vmatpush.bf16.msra.mxu0 %v292_v16 }
  0x1b   :  { %192 = vmatpush.bf16.msra.mxu1 %v300_v17 }
  0x1e   :  { %180 = vmatpush.bf16.msra.mxu0 %v291_v18 }
  0x1f   :  { %193 = vmatpush.bf16.msra.mxu1 %v299_v19 }
  0x21   :  { %181 = vmatmul.bf16.vlgmr.msra.gmra.mxu0 %v18_v22 }
  0x22   :  { %194 = vmatmul.bf16.vlgmr.msra.gmra.mxu1 %v19_v23 }
  0x8c   :  { %v208_v24 = vpop.f32.mrf.mxu2 }
  0x94   :  { %v210_v25 = vpop.f32.mrf.mxu2 }
  0x9e   :  { %v182_v27 = vpop.f32.mrf.mxu0 }
  0x9f   :  { %v195_v28 = vpop.f32.mrf.mxu1  ;;  %v183_v29 = vadd.f32 %v309_v26, %v182_v27 }
  0xa1   :  { %v196_v30 = vadd.f32 %v195_v28, %v183_v29 }
  0xa3   :  { %v209_v31 = vadd.f32 %v208_v24, %v196_v30 }
  0xa5   :  { %v212_v32 = vmax.f32 %v209_v31, 0.0 }
  0xa6   :  { %v184_v33 = vpop.f32.mrf.mxu0 }
  0xa7   :  { %v197_v34 = vpop.f32.mrf.mxu1  ;;  %213 = vst.msk [vmem:[%s404_s3] sm:$0xff] %vm169_vm0, %v212_v32 }

// kernel: fcos_forward.29
= control target key start
LH: loop header
LB: loop body
LE: loop exit
PB: predicated region body
PF: predicated region fallthrough
CT: control target
= control target key end

     0   :  { %vm175_vm0 = vcmask 261120   ;;  %vm218_vm1 = vcmask 254976   ;;  %s399_s1 = inlined_call_operand.vmem [shape: bf16[288,32], index: 1, kind: input, shape index: {}]   ;;  %s400_s0 = inlined_call_operand.vmem [shape: f32[2,288], index: 0, kind: input, shape index: {}]   ;;  %s401_s2 = inlined_call_operand.vmem [shape: f32[1,32], index: 2, kind: input, shape index: {}]   ;;  %s402_s3 = inlined_call_operand.vmem [shape: f32[2,32], index: 3, kind: output, shape index: {}]  }
   0x1   :  { %v304_v0 = vld [vmem:[%s399_s1 + $0x38] sm:$0xff]  ;;  %v303_v2 = vld [vmem:[%s399_s1 + $0x30] sm:$0xff]  ;;  %v314_v4 = vld [vmem:[%s399_s1 + $0x88] sm:$0xff] }
   0x2   :  { %v312_v1 = vld [vmem:[%s399_s1 + $0x78] sm:$0xff]  ;;  %179 = vmatpush.bf16.msra.mxu0 %v304_v0  ;;  %v311_v3 = vld [vmem:[%s399_s1 + $0x70] sm:$0xff]  ;;  %211 = vmatpush.bf16.msra.mxu2 %v314_v4  ;;  %v313_v5 = vld [vmem:[%s399_s1 + $0x80] sm:$0xff] }
   0x3   :  { %192 = vmatpush.bf16.msra.mxu1 %v312_v1  ;;  %v15_v6 = vld [vmem:[%s400_s0] sm:$0x3f]  ;;  %v302_v7 = vld [vmem:[%s399_s1 + $0x28] sm:$0xff]  ;;  %v300_v13 = vld [vmem:[%s399_s1 + $0x18] sm:$0xff] }
   0x4   :  { %17 = vst [vmem:[#allocation1] ss:$4 sm:$0xff] %v15_v6  ;;  %v310_v8 = vld [vmem:[%s399_s1 + $0x68] sm:$0xff]  ;;  %v301_v9 = vld [vmem:[%s399_s1 + $0x20] sm:$0xff]  ;;  %v308_v14 = vld [vmem:[%s399_s1 + $0x58] sm:$0xff] }
   0x5   :  { %v309_v10 = vld [vmem:[%s399_s1 + $0x60] sm:$0xff]  ;;  %v299_v15 = vld [vmem:[%s399_s1 + $0x10] sm:$0xff]  ;;  %v298_v17 = vld [vmem:[%s399_s1 + $0x8] sm:$0xff] }
   0x6   :  { %180 = vmatpush.bf16.msra.mxu0 %v303_v2  ;;  %212 = vmatpush.bf16.msra.mxu2 %v313_v5  ;;  %v307_v16 = vld [vmem:[%s399_s1 + $0x50] sm:$0xff]  ;;  %v306_v18 = vld [vmem:[%s399_s1 + $0x48] sm:$0xff]  ;;  %v297_v19 = vld [vmem:[%s399_s1] sm:$0xff] }
   0x7   :  { %193 = vmatpush.bf16.msra.mxu1 %v311_v3  ;;  %v305_v20 = vld [vmem:[%s399_s1 + $0x40] sm:$0xff] }
   0x8   :  { %v315_v27 = vld [vmem:[%s401_s2] ss:$0 sm:$0xff] }
   0xa   :  { %181 = vmatpush.bf16.msra.mxu0 %v302_v7 }
   0xb   :  { %194 = vmatpush.bf16.msra.mxu1 %v310_v8  ;;  %v20_v11 = vld.sshfl [vmem:[#allocation1 + $0x10] sm:$0xff pattern:$0x73625140]  ;;  %v18_v21 = vld.sshfl [vmem:[#allocation1] sm:$0xff pattern:$0x73625140] }
   0xc   :  { %v26_v12 = vpack.c.bf16 %v20_v11, %v20_v11  ;;  %v19_v22 = vld.sshfl [vmem:[#allocation1 + $0x8] sm:$0xff pattern:$0x73625140]  ;;  %v24_v23 = vpack.c.bf16 %v18_v21, %v18_v21 }
   0xd   :  { %v25_v24 = vpack.c.bf16 %v19_v22, %v19_v22 }
   0xe   :  { %182 = vmatpush.bf16.msra.mxu0 %v301_v9  ;;  %296 = vmatmul.msk.bf16.vlgmr.msra.gmra.mxu2 %vm175_vm0, %v26_v12 }
   0xf   :  { %195 = vmatpush.bf16.msra.mxu1 %v309_v10 }
  0x12   :  { %183 = vmatpush.bf16.msra.mxu0 %v300_v13 }
  0x13   :  { %196 = vmatpush.bf16.msra.mxu1 %v308_v14 }
  0x16   :  { %184 = vmatpush.bf16.msra.mxu0 %v299_v15 }
  0x17   :  { %197 = vmatpush.bf16.msra.mxu1 %v307_v16 }
  0x1a   :  { %185 = vmatpush.bf16.msra.mxu0 %v298_v17 }
  0x1b   :  { %198 = vmatpush.bf16.msra.mxu1 %v306_v18 }
  0x1e   :  { %186 = vmatpush.bf16.msra.mxu0 %v297_v19 }
  0x1f   :  { %199 = vmatpush.bf16.msra.mxu1 %v305_v20 }
  0x21   :  { %187 = vmatmul.bf16.vlgmr.msra.gmra.mxu0 %v24_v23 }
  0x22   :  { %200 = vmatmul.bf16.vlgmr.msra.gmra.mxu1 %v25_v24 }
  0x91   :  { %v214_v25 = vpop.f32.mrf.mxu2 }
  0x99   :  { %v216_v26 = vpop.f32.mrf.mxu2 }
  0x9e   :  { %v188_v28 = vpop.f32.mrf.mxu0 }
  0x9f   :  { %v201_v29 = vpop.f32.mrf.mxu1  ;;  %v189_v30 = vadd.f32 %v315_v27, %v188_v28 }
  0xa1   :  { %v202_v31 = vadd.f32 %v201_v29, %v189_v30 }
  0xa3   :  { %v215_v32 = vadd.f32 %v214_v25, %v202_v31 }
  0xa5   :  { %219 = vst.msk [vmem:[%s402_s3] sm:$0x3] %vm218_vm1, %v215_v32 }
  0xa6   :  { %v190_v33 = vpop.f32.mrf.mxu0 }
  0xa7   :  { %v203_v34 = vpop.f32.mrf.mxu1 }

// kernel: fcos_forward.28
= control target key start
LH: loop header
LB: loop body
LE: loop exit
PB: predicated region body
PF: predicated region fallthrough
CT: control target
= control target key end

     0   :  { %vm169_vm0 = vcmask 261120   ;;  %s400_s1 = inlined_call_operand.vmem [shape: bf16[288,32], index: 1, kind: input, shape index: {}]   ;;  %s401_s0 = inlined_call_operand.vmem [shape: f32[8,288], index: 0, kind: input, shape index: {}]   ;;  %s402_s2 = inlined_call_operand.vmem [shape: f32[1,32], index: 2, kind: input, shape index: {}]   ;;  %s403_s3 = inlined_call_operand.vmem [shape: f32[8,32], index: 3, kind: output, shape index: {}]  }
   0x1   :  { %v297_v0 = vld [vmem:[%s400_s1 + $0x38] sm:$0xff]  ;;  %v296_v2 = vld [vmem:[%s400_s1 + $0x30] sm:$0xff]  ;;  %v307_v4 = vld [vmem:[%s400_s1 + $0x88] sm:$0xff] }
   0x2   :  { %v305_v1 = vld [vmem:[%s400_s1 + $0x78] sm:$0xff]  ;;  %173 = vmatpush.bf16.msra.mxu0 %v297_v0  ;;  %v304_v3 = vld [vmem:[%s400_s1 + $0x70] sm:$0xff]  ;;  %205 = vmatpush.bf16.msra.mxu2 %v307_v4  ;;  %v306_v5 = vld [vmem:[%s400_s1 + $0x80] sm:$0xff] }
   0x3   :  { %186 = vmatpush.bf16.msra.mxu1 %v305_v1  ;;  %v17_v6 = vld [vmem:[%s401_s0 + $0x10] sm:$0xff]  ;;  %v295_v7 = vld [vmem:[%s400_s1 + $0x28] sm:$0xff]  ;;  %v294_v10 = vld [vmem:[%s400_s1 + $0x20] sm:$0xff] }
   0x4   :  { %v303_v8 = vld [vmem:[%s400_s1 + $0x68] sm:$0xff]  ;;  %v20_v9 = vpack.c.bf16 %v17_v6, %v17_v6  ;;  %v302_v11 = vld [vmem:[%s400_s1 + $0x60] sm:$0xff]  ;;  %v293_v12 = vld [vmem:[%s400_s1 + $0x18] sm:$0xff] }
   0x5   :  { %v301_v13 = vld [vmem:[%s400_s1 + $0x58] sm:$0xff]  ;;  %v292_v14 = vld [vmem:[%s400_s1 + $0x10] sm:$0xff]  ;;  %v291_v16 = vld [vmem:[%s400_s1 + $0x8] sm:$0xff] }
   0x6   :  { %174 = vmatpush.bf16.msra.mxu0 %v296_v2  ;;  %206 = vmatpush.bf16.msra.mxu2 %v306_v5  ;;  %v300_v15 = vld [vmem:[%s400_s1 + $0x50] sm:$0xff]  ;;  %v299_v17 = vld [vmem:[%s400_s1 + $0x48] sm:$0xff]  ;;  %v290_v18 = vld [vmem:[%s400_s1] sm:$0xff] }
   0x7   :  { %187 = vmatpush.bf16.msra.mxu1 %v304_v3  ;;  %v298_v19 = vld [vmem:[%s400_s1 + $0x40] sm:$0xff]  ;;  %v16_v21 = vld [vmem:[%s401_s0 + $0x8] sm:$0xff] }
   0x8   :  { %v15_v20 = vld [vmem:[%s401_s0] sm:$0xff]  ;;  %v19_v23 = vpack.c.bf16 %v16_v21, %v16_v21 }
   0x9   :  { %289 = vmatmul.msk.bf16.vlgmr.msra.gmra.mxu2 %vm169_vm0, %v20_v9  ;;  %v18_v22 = vpack.c.bf16 %v15_v20, %v15_v20  ;;  %v308_v26 = vld [vmem:[%s402_s2] ss:$0 sm:$0xff] }
   0xa   :  { %175 = vmatpush.bf16.msra.mxu0 %v295_v7 }
   0xb   :  { %188 = vmatpush.bf16.msra.mxu1 %v303_v8 }
   0xe   :  { %176 = vmatpush.bf16.msra.mxu0 %v294_v10 }
   0xf   :  { %189 = vmatpush.bf16.msra.mxu1 %v302_v11 }
  0x12   :  { %177 = vmatpush.bf16.msra.mxu0 %v293_v12 }
  0x13   :  { %190 = vmatpush.bf16.msra.mxu1 %v301_v13 }
  0x16   :  { %178 = vmatpush.bf16.msra.mxu0 %v292_v14 }
  0x17   :  { %191 = vmatpush.bf16.msra.mxu1 %v300_v15 }
  0x1a   :  { %179 = vmatpush.bf16.msra.mxu0 %v291_v16 }
  0x1b   :  { %192 = vmatpush.bf16.msra.mxu1 %v299_v17 }
  0x1e   :  { %180 = vmatpush.bf16.msra.mxu0 %v290_v18 }
  0x1f   :  { %193 = vmatpush.bf16.msra.mxu1 %v298_v19 }
  0x21   :  { %181 = vmatmul.bf16.vlgmr.msra.gmra.mxu0 %v18_v22 }
  0x22   :  { %194 = vmatmul.bf16.vlgmr.msra.gmra.mxu1 %v19_v23 }
  0x8c   :  { %v208_v24 = vpop.f32.mrf.mxu2 }
  0x94   :  { %v210_v25 = vpop.f32.mrf.mxu2 }
  0x9e   :  { %v182_v27 = vpop.f32.mrf.mxu0 }
  0x9f   :  { %v195_v28 = vpop.f32.mrf.mxu1  ;;  %v183_v29 = vadd.f32 %v308_v26, %v182_v27 }
  0xa1   :  { %v196_v30 = vadd.f32 %v195_v28, %v183_v29 }
  0xa3   :  { %v209_v31 = vadd.f32 %v208_v24, %v196_v30 }
  0xa5   :  { %212 = vst.msk [vmem:[%s403_s3] sm:$0xff] %vm169_vm0, %v209_v31 }
  0xa6   :  { %v184_v32 = vpop.f32.mrf.mxu0 }
  0xa7   :  { %v197_v33 = vpop.f32.mrf.mxu1 }

// kernel: fcos_forward.24
= control target key start
LH: loop header
LB: loop body
LE: loop exit
PB: predicated region body
PF: predicated region fallthrough
CT: control target
= control target key end

     0   :  { %vm41_vm0 = vcmask 261120   ;;  %s149_s1 = inlined_call_operand.vmem [shape: bf16[32,32], index: 1, kind: input, shape index: {}]   ;;  %s150_s0 = inlined_call_operand.vmem [shape: f32[32,32], index: 0, kind: input, shape index: {}]   ;;  %s151_s2 = inlined_call_operand.vmem [shape: f32[1,32], index: 2, kind: input, shape index: {}]   ;;  %s152_s3 = inlined_call_operand.vmem [shape: f32[32,32], index: 3, kind: output, shape index: {}]  }
   0x1   :  { %v86_v0 = vld [vmem:[%s149_s1 + $0x8] sm:$0xff]  ;;  %v85_v1 = vld [vmem:[%s149_s1] sm:$0xff]  ;;  %v17_v4 = vld [vmem:[%s150_s0 + $0x10] sm:$0xff] }
   0x2   :  { %v15_v2 = vld [vmem:[%s150_s0] sm:$0xff]  ;;  %v16_v3 = vld [vmem:[%s150_s0 + $0x8] sm:$0xff]  ;;  %54 = vmatpush.bf16.msra.mxu0 %v86_v0  ;;  %87 = vmatpush.bf16.msra.mxu1 %v86_v0  ;;  %v18_v5 = vld [vmem:[%s150_s0 + $0x18] sm:$0xff] }
   0x3   :  { %v19_v6 = vpack.c.bf16 %v16_v3, %v15_v2  ;;  %v20_v7 = vpack.c.bf16 %v18_v5, %v17_v4  ;;  %v89_v8 = vld [vmem:[%s151_s2] ss:$0 sm:$0xff] }
   0x6   :  { %55 = vmatpush.bf16.msra.mxu0 %v85_v1  ;;  %88 = vmatpush.bf16.msra.mxu1 %v85_v1 }
   0x9   :  { %83 = vmatmul.msk.bf16.vlgmr.msra.gmra.mxu0 %vm41_vm0, %v19_v6  ;;  %84 = vmatmul.msk.bf16.vlgmr.msra.gmra.mxu1 %vm41_vm0, %v20_v7 }
  0x86   :  { %v57_v9 = vpop.f32.mrf.mxu0  ;;  %v62_v10 = vpop.f32.mrf.mxu1 }
  0x87   :  { %v58_v11 = vadd.f32 %v89_v8, %v57_v9  ;;  %v63_v12 = vadd.f32 %v89_v8, %v62_v10 }
  0x89   :  { %67 = vst.msk [vmem:[%s152_s3] sm:$0xff] %vm41_vm0, %v58_v11 }
  0x8a   :  { %69 = vst.msk [vmem:[%s152_s3 + $0x10] sm:$0xff] %vm41_vm0, %v63_v12 }
  0x8e   :  { %v59_v13 = vpop.f32.mrf.mxu0  ;;  %v64_v14 = vpop.f32.mrf.mxu1 }
  0x8f   :  { %v60_v15 = vadd.f32 %v89_v8, %v59_v13  ;;  %v65_v16 = vadd.f32 %v89_v8, %v64_v14 }
  0x91   :  { %68 = vst.msk [vmem:[%s152_s3 + $0x8] sm:$0xff] %vm41_vm0, %v60_v15 }
  0x92   :  { %70 = vst.msk [vmem:[%s152_s3 + $0x18] sm:$0xff] %vm41_vm0, %v65_v16 }

// kernel: fcos_forward.27
= control target key start
LH: loop header
LB: loop body
LE: loop exit
PB: predicated region body
PF: predicated region fallthrough
CT: control target
= control target key end

     0   :  { %vm181_vm0 = vcmask 261120   ;;  %s485_s1 = inlined_call_operand.vmem [shape: bf16[288,32], index: 1, kind: input, shape index: {}]   ;;  %s486_s0 = inlined_call_operand.vmem [shape: f32[32,288], index: 0, kind: input, shape index: {}]   ;;  %s487_s2 = inlined_call_operand.vmem [shape: f32[1,32], index: 2, kind: input, shape index: {}]   ;;  %s488_s3 = inlined_call_operand.vmem [shape: f32[32,32], index: 3, kind: output, shape index: {}]  }
   0x1   :  { %v334_v0 = vld [vmem:[%s485_s1 + $0x38] sm:$0xff]  ;;  %v333_v2 = vld [vmem:[%s485_s1 + $0x30] sm:$0xff]  ;;  %v344_v3 = vld [vmem:[%s485_s1 + $0x88] sm:$0xff] }
   0x2   :  { %v342_v1 = vld [vmem:[%s485_s1 + $0x78] sm:$0xff]  ;;  %188 = vmatpush.bf16.msra.mxu0 %v334_v0  ;;  %345 = vmatpush.bf16.msra.mxu3 %v334_v0  ;;  %v341_v4 = vld [vmem:[%s485_s1 + $0x70] sm:$0xff]  ;;  %v343_v5 = vld [vmem:[%s485_s1 + $0x80] sm:$0xff] }
   0x3   :  { %207 = vmatpush.bf16.msra.mxu1 %v342_v1  ;;  %232 = vmatpush.bf16.msra.mxu2 %v344_v3  ;;  %v17_v6 = vld [vmem:[%s486_s0 + $0x10] sm:$0xff]  ;;  %v20_v7 = vld [vmem:[%s486_s0 + $0x28] sm:$0xff]  ;;  %v331_v11 = vld [vmem:[%s485_s1 + $0x20] sm:$0xff] }
   0x4   :  { %v332_v8 = vld [vmem:[%s485_s1 + $0x28] sm:$0xff]  ;;  %v29_v10 = vpack.c.bf16 %v20_v7, %v17_v6  ;;  %v339_v12 = vld [vmem:[%s485_s1 + $0x60] sm:$0xff]  ;;  %v330_v13 = vld [vmem:[%s485_s1 + $0x18] sm:$0xff] }
   0x5   :  { %v340_v9 = vld [vmem:[%s485_s1 + $0x68] sm:$0xff]  ;;  %v338_v14 = vld [vmem:[%s485_s1 + $0x58] sm:$0xff]  ;;  %v329_v15 = vld [vmem:[%s485_s1 + $0x10] sm:$0xff] }
   0x6   :  { %189 = vmatpush.bf16.msra.mxu0 %v333_v2  ;;  %346 = vmatpush.bf16.msra.mxu3 %v333_v2  ;;  %v337_v16 = vld [vmem:[%s485_s1 + $0x50] sm:$0xff]  ;;  %v23_v17 = vld [vmem:[%s486_s0 + $0x40] sm:$0xff]  ;;  %v26_v18 = vld [vmem:[%s486_s0 + $0x58] sm:$0xff] }
   0x7   :  { %208 = vmatpush.bf16.msra.mxu1 %v341_v4  ;;  %233 = vmatpush.bf16.msra.mxu2 %v343_v5  ;;  %v328_v19 = vld [vmem:[%s485_s1 + $0x8] sm:$0xff]  ;;  %v32_v21 = vpack.c.bf16 %v26_v18, %v23_v17  ;;  %v327_v22 = vld [vmem:[%s485_s1] sm:$0xff]  ;;  %v18_v24 = vld [vmem:[%s486_s0 + $0x18] sm:$0xff] }
   0x8   :  { %v336_v20 = vld [vmem:[%s485_s1 + $0x48] sm:$0xff]  ;;  %v15_v23 = vld [vmem:[%s486_s0] sm:$0xff]  ;;  %v21_v25 = vld [vmem:[%s486_s0 + $0x30] sm:$0xff] }
   0x9   :  { %v24_v26 = vld [vmem:[%s486_s0 + $0x48] sm:$0xff]  ;;  %v335_v27 = vld [vmem:[%s485_s1 + $0x40] sm:$0xff]  ;;  %v27_v30 = vpack.c.bf16 %v18_v24, %v15_v23  ;;  %v22_v33 = vld [vmem:[%s486_s0 + $0x38] sm:$0xff] }
   0xa   :  { %190 = vmatpush.bf16.msra.mxu0 %v332_v8  ;;  %347 = vmatpush.bf16.msra.mxu3 %v332_v8  ;;  %v16_v28 = vld [vmem:[%s486_s0 + $0x8] sm:$0xff]  ;;  %v19_v29 = vld [vmem:[%s486_s0 + $0x20] sm:$0xff]  ;;  %v30_v31 = vpack.c.bf16 %v24_v26, %v21_v25  ;;  %v25_v34 = vld [vmem:[%s486_s0 + $0x50] sm:$0xff] }
   0xb   :  { %209 = vmatpush.bf16.msra.mxu1 %v340_v9  ;;  %325 = vmatmul.msk.bf16.vlgmr.msra.gmra.mxu2 %vm181_vm0, %v29_v10  ;;  %v28_v32 = vpack.c.bf16 %v19_v29, %v16_v28  ;;  %v31_v35 = vpack.c.bf16 %v25_v34, %v22_v33  ;;  %v353_v37 = vld [vmem:[%s487_s2] ss:$0 sm:$0xff] }
   0xe   :  { %191 = vmatpush.bf16.msra.mxu0 %v331_v11  ;;  %348 = vmatpush.bf16.msra.mxu3 %v331_v11 }
   0xf   :  { %210 = vmatpush.bf16.msra.mxu1 %v339_v12 }
  0x12   :  { %192 = vmatpush.bf16.msra.mxu0 %v330_v13  ;;  %349 = vmatpush.bf16.msra.mxu3 %v330_v13 }
  0x13   :  { %211 = vmatpush.bf16.msra.mxu1 %v338_v14 }
  0x16   :  { %193 = vmatpush.bf16.msra.mxu0 %v329_v15  ;;  %350 = vmatpush.bf16.msra.mxu3 %v329_v15 }
  0x17   :  { %212 = vmatpush.bf16.msra.mxu1 %v337_v16 }
  0x1a   :  { %194 = vmatpush.bf16.msra.mxu0 %v328_v19  ;;  %351 = vmatpush.bf16.msra.mxu3 %v328_v19 }
  0x1b   :  { %213 = vmatpush.bf16.msra.mxu1 %v336_v20  ;;  %326 = vmatmul.msk.bf16.gmra.mxu2 %vm181_vm0, %v32_v21 }
  0x1e   :  { %195 = vmatpush.bf16.msra.mxu0 %v327_v22  ;;  %352 = vmatpush.bf16.msra.mxu3 %v327_v22 }
  0x1f   :  { %214 = vmatpush.bf16.msra.mxu1 %v335_v27 }
  0x21   :  { %196 = vmatmul.bf16.vlgmr.msra.gmra.mxu0 %v27_v30  ;;  %201 = vmatmul.bf16.vlgmr.msra.gmra.mxu3 %v30_v31 }
  0x22   :  { %215 = vmatmul.bf16.vlgmr.msra.gmra.mxu1 %v28_v32 }
  0x32   :  { %220 = vmatmul.bf16.gmra.mxu1 %v31_v35 }
  0x8e   :  { %v235_v36 = vpop.f32.mrf.mxu2 }
  0x96   :  { %v237_v43 = vpop.f32.mrf.mxu2 }
  0x9e   :  { %v197_v38 = vpop.f32.mrf.mxu0  ;;  %v240_v51 = vpop.f32.mrf.mxu2 }
  0x9f   :  { %v198_v39 = vadd.f32 %v353_v37, %v197_v38  ;;  %v216_v40 = vpop.f32.mrf.mxu1 }
  0xa1   :  { %v217_v41 = vadd.f32 %v216_v40, %v198_v39 }
  0xa3   :  { %v236_v42 = vadd.f32 %v235_v36, %v217_v41 }
  0xa4   :  { %v202_v47 = vpop.f32.mrf.mxu3 }
  0xa5   :  { %245 = vst.msk [vmem:[%s488_s3] sm:$0xff] %vm181_vm0, %v236_v42  ;;  %v203_v50 = vadd.f32 %v353_v37, %v202_v47 }
  0xa6   :  { %v199_v44 = vpop.f32.mrf.mxu0  ;;  %v242_v59 = vpop.f32.mrf.mxu2 }
  0xa7   :  { %v200_v45 = vadd.f32 %v353_v37, %v199_v44  ;;  %v218_v46 = vpop.f32.mrf.mxu1 }
  0xa9   :  { %v219_v48 = vadd.f32 %v218_v46, %v200_v45 }
  0xab   :  { %v238_v49 = vadd.f32 %v237_v43, %v219_v48 }
  0xac   :  { %v204_v55 = vpop.f32.mrf.mxu3 }
  0xad   :  { %246 = vst.msk [vmem:[%s488_s3 + $0x8] sm:$0xff] %vm181_vm0, %v238_v49  ;;  %v205_v56 = vadd.f32 %v353_v37, %v204_v55 }
  0xaf   :  { %v221_v52 = vpop.f32.mrf.mxu1 }
  0xb0   :  { %v222_v53 = vadd.f32 %v221_v52, %v203_v50 }
  0xb2   :  { %v241_v54 = vadd.f32 %v240_v51, %v222_v53 }
  0xb4   :  { %247 = vst.msk [vmem:[%s488_s3 + $0x10] sm:$0xff] %vm181_vm0, %v241_v54 }
  0xb7   :  { %v223_v57 = vpop.f32.mrf.mxu1 }
  0xb8   :  { %v224_v58 = vadd.f32 %v223_v57, %v205_v56 }
  0xba   :  { %v243_v60 = vadd.f32 %v242_v59, %v224_v58 }
  0xbc   :  { %248 = vst.msk [vmem:[%s488_s3 + $0x18] sm:$0xff] %vm181_vm0, %v243_v60 }

// kernel: fcos_forward.23
= control target key start
LH: loop header
LB: loop body
LE: loop exit
PB: predicated region body
PF: predicated region fallthrough
CT: control target
= control target key end

     0   :  { %vm51_vm0 = vcmask 130048   ;;  %vm125_vm1 = vcmask 261120   ;;  %s309_s1 = inlined_call_operand.vmem [shape: bf16[16,32], index: 1, kind: input, shape index: {}]   ;;  %s310_s0 = inlined_call_operand.vmem [shape: f32[128,16], index: 0, kind: input, shape index: {}]   ;;  %s311_s2 = inlined_call_operand.vmem [shape: f32[1,32], index: 2, kind: input, shape index: {}]   ;;  %s312_s3 = inlined_call_operand.vmem [shape: f32[128,32], index: 3, kind: output, shape index: {}]  }
   0x1   :  { %v158_v0 = vld [vmem:[%s309_s1] sm:$0xff]  ;;  %v16_v2 = vld [vmem:[%s310_s0 + $0x8] sm:$0xff]  ;;  %v17_v13 = vld [vmem:[%s310_s0 + $0x10] sm:$0xff] }
   0x2   :  { %v15_v1 = vld [vmem:[%s310_s0] sm:$0xff]  ;;  %v20_v5 = vld [vmem:[%s310_s0 + $0x28] sm:$0xff]  ;;  %83 = vmatpush.bf16.msra.mxu0 %v158_v0  ;;  %159 = vmatpush.bf16.msra.mxu1 %v158_v0  ;;  %v18_v14 = vld [vmem:[%s310_s0 + $0x18] sm:$0xff] }
   0x3   :  { %v31_v3 = vpack.c.bf16 %v16_v2, %v15_v1  ;;  %v19_v4 = vld [vmem:[%s310_s0 + $0x20] sm:$0xff]  ;;  %v24_v8 = vld [vmem:[%s310_s0 + $0x48] sm:$0xff]  ;;  %160 = vmatpush.bf16.msra.mxu2 %v158_v0  ;;  %161 = vmatpush.bf16.msra.mxu3 %v158_v0  ;;  %v21_v15 = vld [vmem:[%s310_s0 + $0x30] sm:$0xff]  ;;  %v32_v21 = vpack.c.bf16 %v18_v14, %v17_v13 }
   0x4   :  { %v23_v6 = vld [vmem:[%s310_s0 + $0x40] sm:$0xff]  ;;  %v33_v7 = vpack.c.bf16 %v20_v5, %v19_v4  ;;  %v28_v10 = vld [vmem:[%s310_s0 + $0x68] sm:$0xff]  ;;  %v22_v16 = vld [vmem:[%s310_s0 + $0x38] sm:$0xff] }
   0x5   :  { %v27_v9 = vld [vmem:[%s310_s0 + $0x60] sm:$0xff]  ;;  %v35_v11 = vpack.c.bf16 %v24_v8, %v23_v6  ;;  %150 = vmatmul.msk.bf16.vlgmr.msra.gmra.mxu0 %vm51_vm0, %v31_v3  ;;  %v25_v17 = vld [vmem:[%s310_s0 + $0x50] sm:$0xff]  ;;  %v26_v18 = vld [vmem:[%s310_s0 + $0x58] sm:$0xff]  ;;  %v34_v22 = vpack.c.bf16 %v22_v16, %v21_v15 }
   0x6   :  { %v37_v12 = vpack.c.bf16 %v28_v10, %v27_v9  ;;  %152 = vmatmul.msk.bf16.vlgmr.msra.gmra.mxu1 %vm51_vm0, %v33_v7  ;;  %v29_v19 = vld [vmem:[%s310_s0 + $0x70] sm:$0xff]  ;;  %v30_v20 = vld [vmem:[%s310_s0 + $0x78] sm:$0xff]  ;;  %v36_v23 = vpack.c.bf16 %v26_v18, %v25_v17  ;;  %v162_v25 = vld [vmem:[%s311_s2] ss:$0 sm:$0xff] }
   0x7   :  { %154 = vmatmul.msk.bf16.vlgmr.msra.gmra.mxu2 %vm51_vm0, %v35_v11  ;;  %v38_v24 = vpack.c.bf16 %v30_v20, %v29_v19 }
   0x8   :  { %156 = vmatmul.msk.bf16.vlgmr.msra.gmra.mxu3 %vm51_vm0, %v37_v12 }
  0x15   :  { %151 = vmatmul.msk.bf16.gmra.mxu0 %vm51_vm0, %v32_v21 }
  0x16   :  { %153 = vmatmul.msk.bf16.gmra.mxu1 %vm51_vm0, %v34_v22 }
  0x17   :  { %155 = vmatmul.msk.bf16.gmra.mxu2 %vm51_vm0, %v36_v23 }
  0x18   :  { %157 = vmatmul.msk.bf16.gmra.mxu3 %vm51_vm0, %v38_v24 }
  0x82   :  { %v85_v26 = vpop.f32.mrf.mxu0 }
  0x83   :  { %v95_v27 = vpop.f32.mrf.mxu1  ;;  %v86_v28 = vadd.f32 %v162_v25, %v85_v26 }
  0x84   :  { %v96_v29 = vadd.f32 %v162_v25, %v95_v27 }
  0x85   :  { %126 = vst.msk [vmem:[%s312_s3] sm:$0xff] %vm125_vm1, %v86_v28 }
  0x86   :  { %130 = vst.msk [vmem:[%s312_s3 + $0x20] sm:$0xff] %vm125_vm1, %v96_v29 }
  0x8a   :  { %v105_v30 = vpop.f32.mrf.mxu2  ;;  %v87_v34 = vpop.f32.mrf.mxu0 }
  0x8b   :  { %v115_v31 = vpop.f32.mrf.mxu3  ;;  %v106_v32 = vadd.f32 %v162_v25, %v105_v30  ;;  %v97_v35 = vpop.f32.mrf.mxu1  ;;  %v88_v36 = vadd.f32 %v162_v25, %v87_v34 }
  0x8c   :  { %v116_v33 = vadd.f32 %v162_v25, %v115_v31  ;;  %v98_v37 = vadd.f32 %v162_v25, %v97_v35 }
  0x8d   :  { %134 = vst.msk [vmem:[%s312_s3 + $0x40] sm:$0xff] %vm125_vm1, %v106_v32 }
  0x8e   :  { %138 = vst.msk [vmem:[%s312_s3 + $0x60] sm:$0xff] %vm125_vm1, %v116_v33 }
  0x8f   :  { %127 = vst.msk [vmem:[%s312_s3 + $0x8] sm:$0xff] %vm125_vm1, %v88_v36 }
  0x90   :  { %131 = vst.msk [vmem:[%s312_s3 + $0x28] sm:$0xff] %vm125_vm1, %v98_v37 }
  0x92   :  { %v107_v38 = vpop.f32.mrf.mxu2  ;;  %v90_v42 = vpop.f32.mrf.mxu0 }
  0x93   :  { %v117_v39 = vpop.f32.mrf.mxu3  ;;  %v108_v40 = vadd.f32 %v162_v25, %v107_v38  ;;  %v100_v43 = vpop.f32.mrf.mxu1  ;;  %v91_v44 = vadd.f32 %v162_v25, %v90_v42 }
  0x94   :  { %v118_v41 = vadd.f32 %v162_v25, %v117_v39  ;;  %v101_v45 = vadd.f32 %v162_v25, %v100_v43 }
  0x95   :  { %135 = vst.msk [vmem:[%s312_s3 + $0x48] sm:$0xff] %vm125_vm1, %v108_v40 }
  0x96   :  { %139 = vst.msk [vmem:[%s312_s3 + $0x68] sm:$0xff] %vm125_vm1, %v118_v41 }
  0x97   :  { %128 = vst.msk [vmem:[%s312_s3 + $0x10] sm:$0xff] %vm125_vm1, %v91_v44 }
  0x98   :  { %132 = vst.msk [vmem:[%s312_s3 + $0x30] sm:$0xff] %vm125_vm1, %v101_v45 }
  0x9a   :  { %v110_v46 = vpop.f32.mrf.mxu2  ;;  %v92_v50 = vpop.f32.mrf.mxu0 }
  0x9b   :  { %v120_v47 = vpop.f32.mrf.mxu3  ;;  %v111_v48 = vadd.f32 %v162_v25, %v110_v46  ;;  %v102_v51 = vpop.f32.mrf.mxu1  ;;  %v93_v52 = vadd.f32 %v162_v25, %v92_v50 }
  0x9c   :  { %v121_v49 = vadd.f32 %v162_v25, %v120_v47  ;;  %v103_v53 = vadd.f32 %v162_v25, %v102_v51 }
  0x9d   :  { %136 = vst.msk [vmem:[%s312_s3 + $0x50] sm:$0xff] %vm125_vm1, %v111_v48 }
  0x9e   :  { %140 = vst.msk [vmem:[%s312_s3 + $0x70] sm:$0xff] %vm125_vm1, %v121_v49 }
  0x9f   :  { %129 = vst.msk [vmem:[%s312_s3 + $0x18] sm:$0xff] %vm125_vm1, %v93_v52 }
  0xa0   :  { %133 = vst.msk [vmem:[%s312_s3 + $0x38] sm:$0xff] %vm125_vm1, %v103_v53 }
  0xa2   :  { %v112_v54 = vpop.f32.mrf.mxu2 }
  0xa3   :  { %v122_v55 = vpop.f32.mrf.mxu3  ;;  %v113_v56 = vadd.f32 %v162_v25, %v112_v54 }
  0xa4   :  { %v123_v57 = vadd.f32 %v162_v25, %v122_v55 }
  0xa5   :  { %137 = vst.msk [vmem:[%s312_s3 + $0x58] sm:$0xff] %vm125_vm1, %v113_v56 }
  0xa6   :  { %141 = vst.msk [vmem:[%s312_s3 + $0x78] sm:$0xff] %vm125_vm1, %v123_v57 }

// kernel: fcos_forward.26
= control target key start
LH: loop header
LB: loop body
LE: loop exit
PB: predicated region body
PF: predicated region fallthrough
CT: control target
= control target key end

     0   :  { %vm235_vm0 = vcmask 261120   ;;  %s853_s1 = inlined_call_operand.vmem [shape: bf16[288,32], index: 1, kind: input, shape index: {}]   ;;  %s854_s0 = inlined_call_operand.vmem [shape: f32[128,288], index: 0, kind: input, shape index: {}]   ;;  %s855_s2 = inlined_call_operand.vmem [shape: f32[1,32], index: 2, kind: input, shape index: {}]   ;;  %s856_s3 = inlined_call_operand.vmem [shape: f32[128,32], index: 3, kind: output, shape index: {}]  }
   0x1   :  { %v514_v0 = vld [vmem:[%s853_s1 + $0x38] sm:$0xff]  ;;  %v524_v1 = vld [vmem:[%s853_s1 + $0x88] sm:$0xff]  ;;  %v513_v3 = vld [vmem:[%s853_s1 + $0x30] sm:$0xff] }
   0x2   :  { %v522_v2 = vld [vmem:[%s853_s1 + $0x78] sm:$0xff]  ;;  %260 = vmatpush.bf16.msra.mxu0 %v514_v0  ;;  %525 = vmatpush.bf16.msra.mxu3 %v514_v0  ;;  %v523_v4 = vld [vmem:[%s853_s1 + $0x80] sm:$0xff]  ;;  %v521_v5 = vld [vmem:[%s853_s1 + $0x70] sm:$0xff] }
   0x3   :  { %364 = vmatpush.bf16.msra.mxu2 %v524_v1  ;;  %309 = vmatpush.bf16.msra.mxu1 %v522_v2  ;;  %v17_v6 = vld [vmem:[%s854_s0 + $0x10] sm:$0xff]  ;;  %v20_v7 = vld [vmem:[%s854_s0 + $0x28] sm:$0xff]  ;;  %v511_v11 = vld [vmem:[%s853_s1 + $0x20] sm:$0xff] }
   0x4   :  { %v65_v8 = vpack.c.bf16 %v20_v7, %v17_v6  ;;  %v512_v9 = vld [vmem:[%s853_s1 + $0x28] sm:$0xff]  ;;  %v519_v12 = vld [vmem:[%s853_s1 + $0x60] sm:$0xff]  ;;  %v510_v13 = vld [vmem:[%s853_s1 + $0x18] sm:$0xff] }
   0x5   :  { %v520_v10 = vld [vmem:[%s853_s1 + $0x68] sm:$0xff]  ;;  %v518_v14 = vld [vmem:[%s853_s1 + $0x58] sm:$0xff]  ;;  %v509_v15 = vld [vmem:[%s853_s1 + $0x10] sm:$0xff] }
   0x6   :  { %261 = vmatpush.bf16.msra.mxu0 %v513_v3  ;;  %526 = vmatpush.bf16.msra.mxu3 %v513_v3  ;;  %v517_v16 = vld [vmem:[%s853_s1 + $0x50] sm:$0xff]  ;;  %v23_v17 = vld [vmem:[%s854_s0 + $0x40] sm:$0xff]  ;;  %v26_v18 = vld [vmem:[%s854_s0 + $0x58] sm:$0xff] }
   0x7   :  { %365 = vmatpush.bf16.msra.mxu2 %v523_v4  ;;  %310 = vmatpush.bf16.msra.mxu1 %v521_v5  ;;  %v68_v19 = vpack.c.bf16 %v26_v18, %v23_v17  ;;  %v508_v20 = vld [vmem:[%s853_s1 + $0x8] sm:$0xff]  ;;  %v507_v22 = vld [vmem:[%s853_s1] sm:$0xff]  ;;  %v18_v25 = vld [vmem:[%s854_s0 + $0x18] sm:$0xff] }
   0x8   :  { %v516_v21 = vld [vmem:[%s853_s1 + $0x48] sm:$0xff]  ;;  %v515_v23 = vld [vmem:[%s853_s1 + $0x40] sm:$0xff]  ;;  %v54_v27 = vld [vmem:[%s854_s0 + $0x138] sm:$0xff] }
   0x9   :  { %v15_v24 = vld [vmem:[%s854_s0] sm:$0xff]  ;;  %v16_v28 = vld [vmem:[%s854_s0 + $0x8] sm:$0xff]  ;;  %v29_v33 = vld [vmem:[%s854_s0 + $0x70] sm:$0xff] }
   0xa   :  { %499 = vmatmul.msk.bf16.vlgmr.msra.gmra.mxu2 %vm235_vm0, %v65_v8  ;;  %262 = vmatpush.bf16.msra.mxu0 %v512_v9  ;;  %v51_v26 = vld [vmem:[%s854_s0 + $0x120] sm:$0xff]  ;;  %v63_v30 = vpack.c.bf16 %v18_v25, %v15_v24  ;;  %v32_v34 = vld [vmem:[%s854_s0 + $0x88] sm:$0xff]  ;;  %v21_v36 = vld [vmem:[%s854_s0 + $0x30] sm:$0xff] }
   0xb   :  { %527 = vmatpush.bf16.msra.mxu3 %v512_v9  ;;  %311 = vmatpush.bf16.msra.mxu1 %v520_v10  ;;  %v19_v29 = vld [vmem:[%s854_s0 + $0x20] sm:$0xff]  ;;  %v81_v31 = vpack.c.bf16 %v54_v27, %v51_v26  ;;  %v71_v35 = vpack.c.bf16 %v32_v34, %v29_v33  ;;  %v24_v37 = vld [vmem:[%s854_s0 + $0x48] sm:$0xff]  ;;  %v57_v38 = vld [vmem:[%s854_s0 + $0x150] sm:$0xff] }
   0xc   :  { %v64_v32 = vpack.c.bf16 %v19_v29, %v16_v28  ;;  %v60_v39 = vld [vmem:[%s854_s0 + $0x168] sm:$0xff]  ;;  %v22_v40 = vld [vmem:[%s854_s0 + $0x38] sm:$0xff]  ;;  %v25_v41 = vld [vmem:[%s854_s0 + $0x50] sm:$0xff]  ;;  %v66_v42 = vpack.c.bf16 %v24_v37, %v21_v36 }
   0xd   :  { %v84_v43 = vpack.c.bf16 %v60_v39, %v57_v38  ;;  %v67_v44 = vpack.c.bf16 %v25_v41, %v22_v40  ;;  %v35_v45 = vld [vmem:[%s854_s0 + $0xa0] sm:$0xff]  ;;  %v38_v46 = vld [vmem:[%s854_s0 + $0xb8] sm:$0xff]  ;;  %v52_v50 = vld [vmem:[%s854_s0 + $0x128] sm:$0xff] }
   0xe   :  { %263 = vmatpush.bf16.msra.mxu0 %v511_v11  ;;  %v74_v47 = vpack.c.bf16 %v38_v46, %v35_v45  ;;  %v27_v48 = vld [vmem:[%s854_s0 + $0x60] sm:$0xff]  ;;  %v30_v49 = vld [vmem:[%s854_s0 + $0x78] sm:$0xff]  ;;  %v28_v52 = vld [vmem:[%s854_s0 + $0x68] sm:$0xff] }
   0xf   :  { %528 = vmatpush.bf16.msra.mxu3 %v511_v11  ;;  %312 = vmatpush.bf16.msra.mxu1 %v519_v12  ;;  %v55_v51 = vld [vmem:[%s854_s0 + $0x140] sm:$0xff]  ;;  %v69_v54 = vpack.c.bf16 %v30_v49, %v27_v48  ;;  %v41_v57 = vld [vmem:[%s854_s0 + $0xd0] sm:$0xff]  ;;  %v44_v58 = vld [vmem:[%s854_s0 + $0xe8] sm:$0xff] }
  0x10   :  { %v31_v53 = vld [vmem:[%s854_s0 + $0x80] sm:$0xff]  ;;  %v82_v55 = vpack.c.bf16 %v55_v51, %v52_v50  ;;  %v77_v59 = vpack.c.bf16 %v44_v58, %v41_v57  ;;  %v33_v60 = vld [vmem:[%s854_s0 + $0x90] sm:$0xff]  ;;  %v36_v61 = vld [vmem:[%s854_s0 + $0xa8] sm:$0xff] }
  0x11   :  { %v70_v56 = vpack.c.bf16 %v31_v53, %v28_v52  ;;  %v58_v62 = vld [vmem:[%s854_s0 + $0x158] sm:$0xff]  ;;  %v61_v63 = vld [vmem:[%s854_s0 + $0x170] sm:$0xff]  ;;  %v39_v8 = vld [vmem:[%s854_s0 + $0xc0] sm:$0xff] }
  0x12   :  { %264 = vmatpush.bf16.msra.mxu0 %v510_v13  ;;  %v34_v0 = vld [vmem:[%s854_s0 + $0x98] sm:$0xff]  ;;  %v37_v1 = vld [vmem:[%s854_s0 + $0xb0] sm:$0xff]  ;;  %v85_v3 = vpack.c.bf16 %v61_v63, %v58_v62  ;;  %v43_v11 = vld [vmem:[%s854_s0 + $0xe0] sm:$0xff] }
  0x13   :  { %529 = vmatpush.bf16.msra.mxu3 %v510_v13  ;;  %313 = vmatpush.bf16.msra.mxu1 %v518_v14  ;;  %v73_v4 = vpack.c.bf16 %v37_v1, %v34_v0  ;;  %v50_v6 = vld [vmem:[%s854_s0 + $0x118] sm:$0xff]  ;;  %v45_v17 = vld [vmem:[%s854_s0 + $0xf0] sm:$0xff]  ;;  %v48_v18 = vld [vmem:[%s854_s0 + $0x108] sm:$0xff] }
  0x14   :  { %v42_v9 = vld [vmem:[%s854_s0 + $0xd8] sm:$0xff]  ;;  %v771_v28 = vld [vmem:[%s855_s2] ss:$0 sm:$0xff] }
  0x15   :  { %v62_v24 = vld [vmem:[%s854_s0 + $0x178] sm:$0xff] }
  0x16   :  { %265 = vmatpush.bf16.msra.mxu0 %v509_v15 }
  0x17   :  { %530 = vmatpush.bf16.msra.mxu3 %v509_v15  ;;  %314 = vmatpush.bf16.msra.mxu1 %v517_v16  ;;  %v56_v15 = vld [vmem:[%s854_s0 + $0x148] sm:$0xff] }
  0x1a   :  { %500 = vmatmul.msk.bf16.gmra.mxu2 %vm235_vm0, %v68_v19  ;;  %266 = vmatpush.bf16.msra.mxu0 %v508_v20  ;;  %v46_v19 = vld [vmem:[%s854_s0 + $0xf8] sm:$0xff] }
  0x1b   :  { %531 = vmatpush.bf16.msra.mxu3 %v508_v20  ;;  %315 = vmatpush.bf16.msra.mxu1 %v516_v21  ;;  %v49_v20 = vld [vmem:[%s854_s0 + $0x110] sm:$0xff] }
  0x1e   :  { %267 = vmatpush.bf16.msra.mxu0 %v507_v22 }
  0x1f   :  { %532 = vmatpush.bf16.msra.mxu3 %v507_v22  ;;  %316 = vmatpush.bf16.msra.mxu1 %v515_v23  ;;  %v79_v22 = vpack.c.bf16 %v49_v20, %v46_v19 }
  0x21   :  { %268 = vmatmul.bf16.vlgmr.msra.gmra.mxu0 %v63_v30 }
  0x22   :  { %298 = vmatmul.bf16.vlgmr.msra.gmra.mxu3 %v81_v31  ;;  %317 = vmatmul.bf16.vlgmr.msra.gmra.mxu1 %v64_v32 }
  0x23   :  { %533 = vmatpush.bf16.msrb.mxu3 %v522_v2  ;;  %v72_v2 = vpack.c.bf16 %v36_v61, %v33_v60 }
  0x27   :  { %534 = vmatpush.bf16.msrb.mxu3 %v521_v5  ;;  %v47_v5 = vld [vmem:[%s854_s0 + $0x100] sm:$0xff] }
  0x28   :  { %v80_v7 = vpack.c.bf16 %v50_v6, %v47_v5 }
  0x2a   :  { %501 = vmatmul.msk.bf16.gmra.mxu2 %vm235_vm0, %v71_v35 }
  0x2b   :  { %535 = vmatpush.bf16.msrb.mxu3 %v520_v10  ;;  %v40_v10 = vld [vmem:[%s854_s0 + $0xc8] sm:$0xff] }
  0x2c   :  { %v76_v13 = vpack.c.bf16 %v43_v11, %v40_v10 }
  0x2f   :  { %536 = vmatpush.bf16.msrb.mxu3 %v519_v12  ;;  %v75_v12 = vpack.c.bf16 %v42_v9, %v39_v8 }
  0x31   :  { %273 = vmatmul.bf16.gmra.mxu0 %v66_v42 }
  0x32   :  { %303 = vmatmul.bf16.gmra.mxu3 %v84_v43  ;;  %322 = vmatmul.bf16.gmra.mxu1 %v67_v44 }
  0x33   :  { %537 = vmatpush.bf16.msrb.mxu3 %v518_v14  ;;  %v53_v14 = vld [vmem:[%s854_s0 + $0x130] sm:$0xff] }
  0x37   :  { %538 = vmatpush.bf16.msrb.mxu3 %v517_v16  ;;  %v83_v16 = vpack.c.bf16 %v56_v15, %v53_v14 }
  0x3a   :  { %502 = vmatmul.msk.bf16.gmra.mxu2 %vm235_vm0, %v74_v47 }
  0x3b   :  { %539 = vmatpush.bf16.msrb.mxu3 %v516_v21  ;;  %v78_v21 = vpack.c.bf16 %v48_v18, %v45_v17 }
  0x3f   :  { %540 = vmatpush.bf16.msrb.mxu3 %v515_v23  ;;  %v59_v23 = vld [vmem:[%s854_s0 + $0x160] sm:$0xff] }
  0x40   :  { %v86_v25 = vpack.c.bf16 %v62_v24, %v59_v23 }
  0x41   :  { %278 = vmatmul.bf16.gmra.mxu0 %v69_v54 }
  0x42   :  { %347 = vmatmul.bf16.vlgmr.msrb.gmra.mxu3 %v82_v55  ;;  %327 = vmatmul.bf16.gmra.mxu1 %v70_v56 }
  0x4a   :  { %503 = vmatmul.msk.bf16.gmra.mxu2 %vm235_vm0, %v77_v59 }
  0x51   :  { %283 = vmatmul.bf16.gmra.mxu0 %v72_v2 }
  0x52   :  { %352 = vmatmul.bf16.gmra.mxu3 %v85_v3  ;;  %332 = vmatmul.bf16.gmra.mxu1 %v73_v4 }
  0x5a   :  { %504 = vmatmul.msk.bf16.gmra.mxu2 %vm235_vm0, %v80_v7 }
  0x61   :  { %288 = vmatmul.bf16.gmra.mxu0 %v75_v12 }
  0x62   :  { %337 = vmatmul.bf16.gmra.mxu1 %v76_v13 }
  0x6a   :  { %505 = vmatmul.msk.bf16.gmra.mxu2 %vm235_vm0, %v83_v16 }
  0x71   :  { %293 = vmatmul.bf16.gmra.mxu0 %v78_v21 }
  0x72   :  { %342 = vmatmul.bf16.gmra.mxu1 %v79_v22 }
  0x7a   :  { %506 = vmatmul.msk.bf16.gmra.mxu2 %vm235_vm0, %v86_v25 }
  0x8d   :  { %v367_v26 = vpop.f32.mrf.mxu2 }
  0x95   :  { %v369_v27 = vpop.f32.mrf.mxu2 }
  0x9d   :  { %v372_v29 = vpop.f32.mrf.mxu2 }
  0x9e   :  { %v269_v30 = vpop.f32.mrf.mxu0 }
  0x9f   :  { %v270_v31 = vadd.f32 %v771_v28, %v269_v30  ;;  %v318_v32 = vpop.f32.mrf.mxu1 }
  0xa1   :  { %v319_v33 = vadd.f32 %v318_v32, %v270_v31 }
  0xa3   :  { %v368_v34 = vadd.f32 %v367_v26, %v319_v33 }
  0xa5   :  { %407 = vst.msk [vmem:[%s856_s3] sm:$0xff] %vm235_vm0, %v368_v34  ;;  %v374_v35 = vpop.f32.mrf.mxu2  ;;  %v299_v52 = vpop.f32.mrf.mxu3 }
  0xa6   :  { %v271_v36 = vpop.f32.mrf.mxu0 }
  0xa7   :  { %v272_v37 = vadd.f32 %v771_v28, %v271_v36  ;;  %v320_v38 = vpop.f32.mrf.mxu1 }
  0xa9   :  { %v321_v39 = vadd.f32 %v320_v38, %v272_v37 }
  0xab   :  { %v370_v40 = vadd.f32 %v369_v27, %v321_v39 }
  0xad   :  { %408 = vst.msk [vmem:[%s856_s3 + $0x8] sm:$0xff] %vm235_vm0, %v370_v40  ;;  %v377_v41 = vpop.f32.mrf.mxu2  ;;  %v301_v60 = vpop.f32.mrf.mxu3 }
  0xae   :  { %v274_v42 = vpop.f32.mrf.mxu0  ;;  %v302_v39 = vadd.f32 %v771_v28, %v301_v60 }
  0xaf   :  { %v275_v43 = vadd.f32 %v771_v28, %v274_v42  ;;  %v323_v44 = vpop.f32.mrf.mxu1 }
  0xb1   :  { %v324_v45 = vadd.f32 %v323_v44, %v275_v43 }
  0xb3   :  { %v373_v46 = vadd.f32 %v372_v29, %v324_v45  ;;  %v300_v29 = vadd.f32 %v771_v28, %v299_v52 }
  0xb5   :  { %409 = vst.msk [vmem:[%s856_s3 + $0x10] sm:$0xff] %vm235_vm0, %v373_v46  ;;  %v379_v47 = vpop.f32.mrf.mxu2  ;;  %v304_v5 = vpop.f32.mrf.mxu3 }
  0xb6   :  { %v276_v48 = vpop.f32.mrf.mxu0 }
  0xb7   :  { %v277_v49 = vadd.f32 %v771_v28, %v276_v48  ;;  %v325_v50 = vpop.f32.mrf.mxu1 }
  0xb9   :  { %v326_v51 = vadd.f32 %v325_v50, %v277_v49  ;;  %v305_v49 = vadd.f32 %v771_v28, %v304_v5 }
  0xbb   :  { %v375_v53 = vadd.f32 %v374_v35, %v326_v51 }
  0xbd   :  { %410 = vst.msk [vmem:[%s856_s3 + $0x18] sm:$0xff] %vm235_vm0, %v375_v53  ;;  %v382_v54 = vpop.f32.mrf.mxu2  ;;  %v306_v14 = vpop.f32.mrf.mxu3 }
  0xbe   :  { %v279_v55 = vpop.f32.mrf.mxu0 }
  0xbf   :  { %v280_v56 = vadd.f32 %v771_v28, %v279_v55  ;;  %v328_v57 = vpop.f32.mrf.mxu1  ;;  %v307_v55 = vadd.f32 %v771_v28, %v306_v14 }
  0xc1   :  { %v329_v58 = vadd.f32 %v328_v57, %v280_v56 }
  0xc3   :  { %v378_v59 = vadd.f32 %v377_v41, %v329_v58 }
  0xc5   :  { %411 = vst.msk [vmem:[%s856_s3 + $0x20] sm:$0xff] %vm235_vm0, %v378_v59  ;;  %v384_v61 = vpop.f32.mrf.mxu2  ;;  %v348_v22 = vpop.f32.mrf.mxu3 }
  0xc6   :  { %v281_v62 = vpop.f32.mrf.mxu0  ;;  %v349_v32 = vadd.f32 %v348_v22, %v300_v29 }
  0xc7   :  { %v282_v63 = vadd.f32 %v771_v28, %v281_v62  ;;  %v330_v0 = vpop.f32.mrf.mxu1 }
  0xc9   :  { %v331_v1 = vadd.f32 %v330_v0, %v282_v63 }
  0xcb   :  { %v380_v2 = vadd.f32 %v379_v47, %v331_v1 }
  0xcd   :  { %412 = vst.msk [vmem:[%s856_s3 + $0x28] sm:$0xff] %vm235_vm0, %v380_v2  ;;  %v387_v3 = vpop.f32.mrf.mxu2  ;;  %v350_v33 = vpop.f32.mrf.mxu3 }
  0xce   :  { %v284_v4 = vpop.f32.mrf.mxu0  ;;  %v351_v42 = vadd.f32 %v350_v33, %v302_v39 }
  0xcf   :  { %v285_v6 = vadd.f32 %v771_v28, %v284_v4  ;;  %v333_v7 = vpop.f32.mrf.mxu1 }
  0xd1   :  { %v334_v8 = vadd.f32 %v333_v7, %v285_v6 }
  0xd3   :  { %v383_v9 = vadd.f32 %v382_v54, %v334_v8 }
  0xd5   :  { %413 = vst.msk [vmem:[%s856_s3 + $0x30] sm:$0xff] %vm235_vm0, %v383_v9  ;;  %v389_v10 = vpop.f32.mrf.mxu2  ;;  %v353_v46 = vpop.f32.mrf.mxu3 }
  0xd6   :  { %v286_v11 = vpop.f32.mrf.mxu0  ;;  %v354_v52 = vadd.f32 %v353_v46, %v305_v49 }
  0xd7   :  { %v287_v12 = vadd.f32 %v771_v28, %v286_v11  ;;  %v335_v13 = vpop.f32.mrf.mxu1 }
  0xd9   :  { %v336_v15 = vadd.f32 %v335_v13, %v287_v12 }
  0xdb   :  { %v385_v16 = vadd.f32 %v384_v61, %v336_v15 }
  0xdd   :  { %414 = vst.msk [vmem:[%s856_s3 + $0x38] sm:$0xff] %vm235_vm0, %v385_v16  ;;  %v392_v17 = vpop.f32.mrf.mxu2  ;;  %v355_v56 = vpop.f32.mrf.mxu3 }
  0xde   :  { %v289_v18 = vpop.f32.mrf.mxu0  ;;  %v356_v57 = vadd.f32 %v355_v56, %v307_v55 }
  0xdf   :  { %v290_v19 = vadd.f32 %v771_v28, %v289_v18  ;;  %v338_v20 = vpop.f32.mrf.mxu1 }
  0xe1   :  { %v339_v21 = vadd.f32 %v338_v20, %v290_v19 }
  0xe3   :  { %v388_v23 = vadd.f32 %v387_v3, %v339_v21 }
  0xe5   :  { %415 = vst.msk [vmem:[%s856_s3 + $0x40] sm:$0xff] %vm235_vm0, %v388_v23  ;;  %v394_v24 = vpop.f32.mrf.mxu2 }
  0xe6   :  { %v291_v25 = vpop.f32.mrf.mxu0 }
  0xe7   :  { %v292_v26 = vadd.f32 %v771_v28, %v291_v25  ;;  %v340_v27 = vpop.f32.mrf.mxu1 }
  0xe9   :  { %v341_v30 = vadd.f32 %v340_v27, %v292_v26 }
  0xeb   :  { %v390_v31 = vadd.f32 %v389_v10, %v341_v30 }
  0xed   :  { %416 = vst.msk [vmem:[%s856_s3 + $0x48] sm:$0xff] %vm235_vm0, %v390_v31  ;;  %v397_v34 = vpop.f32.mrf.mxu2 }
  0xee   :  { %v398_v35 = vadd.f32 %v397_v34, %v349_v32  ;;  %v294_v36 = vpop.f32.mrf.mxu0 }
  0xef   :  { %v295_v37 = vadd.f32 %v771_v28, %v294_v36  ;;  %v343_v38 = vpop.f32.mrf.mxu1 }
  0xf0   :  { %419 = vst.msk [vmem:[%s856_s3 + $0x60] sm:$0xff] %vm235_vm0, %v398_v35 }
  0xf1   :  { %v344_v40 = vadd.f32 %v343_v38, %v295_v37 }
  0xf3   :  { %v393_v41 = vadd.f32 %v392_v17, %v344_v40 }
  0xf5   :  { %417 = vst.msk [vmem:[%s856_s3 + $0x50] sm:$0xff] %vm235_vm0, %v393_v41  ;;  %v399_v43 = vpop.f32.mrf.mxu2 }
  0xf6   :  { %v400_v44 = vadd.f32 %v399_v43, %v351_v42  ;;  %v296_v45 = vpop.f32.mrf.mxu0 }
  0xf7   :  { %v297_v47 = vadd.f32 %v771_v28, %v296_v45  ;;  %v345_v48 = vpop.f32.mrf.mxu1 }
  0xf8   :  { %420 = vst.msk [vmem:[%s856_s3 + $0x68] sm:$0xff] %vm235_vm0, %v400_v44 }
  0xf9   :  { %v346_v50 = vadd.f32 %v345_v48, %v297_v47 }
  0xfb   :  { %v395_v51 = vadd.f32 %v394_v24, %v346_v50 }
  0xfd   :  { %418 = vst.msk [vmem:[%s856_s3 + $0x58] sm:$0xff] %vm235_vm0, %v395_v51  ;;  %v402_v53 = vpop.f32.mrf.mxu2 }
  0xfe   :  { %v403_v54 = vadd.f32 %v402_v53, %v354_v52 }
 0x100   :  { %421 = vst.msk [vmem:[%s856_s3 + $0x70] sm:$0xff] %vm235_vm0, %v403_v54 }
 0x105   :  { %v404_v58 = vpop.f32.mrf.mxu2 }
 0x106   :  { %v405_v59 = vadd.f32 %v404_v58, %v356_v57 }
 0x108   :  { %422 = vst.msk [vmem:[%s856_s3 + $0x78] sm:$0xff] %vm235_vm0, %v405_v59 }

// kernel: fcos_forward.33
= control target key start
LH: loop header
LB: loop body
LE: loop exit
PB: predicated region body
PF: predicated region fallthrough
CT: control target
= control target key end

     0   :  { %vm262_vm0 = vcmask 261120   ;;  %vm510_vm1 = vcmask 785408   ;;  %vm532_vm2 = vcmask 781312   ;;  %s1093_s1 = inlined_call_operand.vmem [shape: bf16[288,96], index: 1, kind: input, shape index: {}]   ;;  %s1094_s0 = inlined_call_operand.vmem [shape: f32[172,288], index: 0, kind: input, shape index: {}]   ;;  %s1095_s2 = inlined_call_operand.vmem [shape: f32[1,96], index: 2, kind: input, shape index: {}]   ;;  %s1096_s3 = inlined_call_operand.vmem [shape: f32[172,96], index: 3, kind: output, shape index: {}]  }
   0x1   :  { %v628_v0 = vld [vmem:[%s1093_s1 + $0x38] sm:$0xff]  ;;  %v684_v1 = vld [vmem:[%s1093_s1 + $0x88] sm:$0xff]  ;;  %v627_v3 = vld [vmem:[%s1093_s1 + $0x30] sm:$0xff] }
   0x2   :  { %v636_v2 = vld [vmem:[%s1093_s1 + $0x78] sm:$0xff]  ;;  %296 = vmatpush.bf16.msra.mxu0 %v628_v0  ;;  %639 = vmatpush.bf16.msra.mxu3 %v628_v0  ;;  %v695_v4 = vld [vmem:[%s1093_s1 + $0x80] sm:$0xff]  ;;  %v635_v5 = vld [vmem:[%s1093_s1 + $0x70] sm:$0xff] }
   0x3   :  { %430 = vmatpush.bf16.msra.mxu2 %v684_v1  ;;  %360 = vmatpush.bf16.msra.mxu1 %v636_v2  ;;  %v17_v6 = vld [vmem:[%s1094_s0 + $0x10] sm:$0xff]  ;;  %v20_v7 = vld [vmem:[%s1094_s0 + $0x28] sm:$0xff]  ;;  %v625_v11 = vld [vmem:[%s1093_s1 + $0x20] sm:$0xff] }
   0x4   :  { %v83_v8 = vpack.c.bf16 %v20_v7, %v17_v6  ;;  %v626_v9 = vld [vmem:[%s1093_s1 + $0x28] sm:$0xff]  ;;  %v633_v12 = vld [vmem:[%s1093_s1 + $0x60] sm:$0xff]  ;;  %v624_v13 = vld [vmem:[%s1093_s1 + $0x18] sm:$0xff] }
   0x5   :  { %v634_v10 = vld [vmem:[%s1093_s1 + $0x68] sm:$0xff]  ;;  %v632_v14 = vld [vmem:[%s1093_s1 + $0x58] sm:$0xff]  ;;  %v623_v15 = vld [vmem:[%s1093_s1 + $0x10] sm:$0xff] }
   0x6   :  { %297 = vmatpush.bf16.msra.mxu0 %v627_v3  ;;  %640 = vmatpush.bf16.msra.mxu3 %v627_v3  ;;  %v631_v16 = vld [vmem:[%s1093_s1 + $0x50] sm:$0xff]  ;;  %v23_v17 = vld [vmem:[%s1094_s0 + $0x40] sm:$0xff]  ;;  %v26_v18 = vld [vmem:[%s1094_s0 + $0x58] sm:$0xff] }
   0x7   :  { %431 = vmatpush.bf16.msra.mxu2 %v695_v4  ;;  %361 = vmatpush.bf16.msra.mxu1 %v635_v5  ;;  %v86_v19 = vpack.c.bf16 %v26_v18, %v23_v17  ;;  %v622_v20 = vld [vmem:[%s1093_s1 + $0x8] sm:$0xff]  ;;  %v621_v22 = vld [vmem:[%s1093_s1] sm:$0xff]  ;;  %v18_v25 = vld [vmem:[%s1094_s0 + $0x18] sm:$0xff] }
   0x8   :  { %v630_v21 = vld [vmem:[%s1093_s1 + $0x48] sm:$0xff]  ;;  %v629_v23 = vld [vmem:[%s1093_s1 + $0x40] sm:$0xff]  ;;  %v66_v27 = vld [vmem:[%s1094_s0 + $0x198] sm:$0xff] }
   0x9   :  { %v15_v24 = vld [vmem:[%s1094_s0] sm:$0xff]  ;;  %v16_v28 = vld [vmem:[%s1094_s0 + $0x8] sm:$0xff]  ;;  %v29_v33 = vld [vmem:[%s1094_s0 + $0x70] sm:$0xff] }
   0xa   :  { %610 = vmatmul.msk.bf16.vlgmr.msra.gmra.mxu2 %vm262_vm0, %v83_v8  ;;  %298 = vmatpush.bf16.msra.mxu0 %v626_v9  ;;  %v63_v26 = vld [vmem:[%s1094_s0 + $0x180] sm:$0xff]  ;;  %v81_v30 = vpack.c.bf16 %v18_v25, %v15_v24  ;;  %v32_v34 = vld [vmem:[%s1094_s0 + $0x88] sm:$0xff]  ;;  %v21_v36 = vld [vmem:[%s1094_s0 + $0x30] sm:$0xff] }
   0xb   :  { %641 = vmatpush.bf16.msra.mxu3 %v626_v9  ;;  %362 = vmatpush.bf16.msra.mxu1 %v634_v10  ;;  %v19_v29 = vld [vmem:[%s1094_s0 + $0x20] sm:$0xff]  ;;  %v105_v31 = vpack.c.bf16 %v66_v27, %v63_v26  ;;  %v89_v35 = vpack.c.bf16 %v32_v34, %v29_v33  ;;  %v24_v37 = vld [vmem:[%s1094_s0 + $0x48] sm:$0xff]  ;;  %v69_v38 = vld [vmem:[%s1094_s0 + $0x1b0] sm:$0xff] }
   0xc   :  { %v82_v32 = vpack.c.bf16 %v19_v29, %v16_v28  ;;  %v72_v39 = vld [vmem:[%s1094_s0 + $0x1c8] sm:$0xff]  ;;  %v22_v40 = vld [vmem:[%s1094_s0 + $0x38] sm:$0xff]  ;;  %v25_v41 = vld [vmem:[%s1094_s0 + $0x50] sm:$0xff]  ;;  %v84_v42 = vpack.c.bf16 %v24_v37, %v21_v36 }
   0xd   :  { %v108_v43 = vpack.c.bf16 %v72_v39, %v69_v38  ;;  %v85_v44 = vpack.c.bf16 %v25_v41, %v22_v40  ;;  %v35_v45 = vld [vmem:[%s1094_s0 + $0xa0] sm:$0xff]  ;;  %v38_v46 = vld [vmem:[%s1094_s0 + $0xb8] sm:$0xff]  ;;  %v28_v52 = vld [vmem:[%s1094_s0 + $0x68] sm:$0xff] }
   0xe   :  { %299 = vmatpush.bf16.msra.mxu0 %v625_v11  ;;  %v92_v47 = vpack.c.bf16 %v38_v46, %v35_v45  ;;  %v27_v48 = vld [vmem:[%s1094_s0 + $0x60] sm:$0xff]  ;;  %v30_v49 = vld [vmem:[%s1094_s0 + $0x78] sm:$0xff]  ;;  %v41_v57 = vld [vmem:[%s1094_s0 + $0xd0] sm:$0xff] }
   0xf   :  { %642 = vmatpush.bf16.msra.mxu3 %v625_v11  ;;  %363 = vmatpush.bf16.msra.mxu1 %v633_v12  ;;  %v75_v50 = vld [vmem:[%s1094_s0 + $0x1e0] sm:$0xff]  ;;  %v78_v51 = vld [vmem:[%s1094_s0 + $0x1f8] sm:$0xf]  ;;  %v87_v54 = vpack.c.bf16 %v30_v49, %v27_v48  ;;  %v44_v58 = vld [vmem:[%s1094_s0 + $0xe8] sm:$0xff] }
  0x10   :  { %v31_v53 = vld [vmem:[%s1094_s0 + $0x80] sm:$0xff]  ;;  %v111_v55 = vpack.c.bf16 %v78_v51, %v75_v50  ;;  %v95_v59 = vpack.c.bf16 %v44_v58, %v41_v57  ;;  %v33_v60 = vld [vmem:[%s1094_s0 + $0x90] sm:$0xff]  ;;  %v36_v61 = vld [vmem:[%s1094_s0 + $0xa8] sm:$0xff] }
  0x11   :  { %v88_v56 = vpack.c.bf16 %v31_v53, %v28_v52  ;;  %v64_v62 = vld [vmem:[%s1094_s0 + $0x188] sm:$0xff]  ;;  %v67_v63 = vld [vmem:[%s1094_s0 + $0x1a0] sm:$0xff]  ;;  %v34_v0 = vld [vmem:[%s1094_s0 + $0x98] sm:$0xff] }
  0x12   :  { %300 = vmatpush.bf16.msra.mxu0 %v624_v13  ;;  %v106_v3 = vpack.c.bf16 %v67_v63, %v64_v62  ;;  %v50_v6 = vld [vmem:[%s1094_s0 + $0x118] sm:$0xff]  ;;  %v39_v8 = vld [vmem:[%s1094_s0 + $0xc0] sm:$0xff]  ;;  %v73_v11 = vld [vmem:[%s1094_s0 + $0x1d0] sm:$0xff] }
  0x13   :  { %643 = vmatpush.bf16.msra.mxu3 %v624_v13  ;;  %364 = vmatpush.bf16.msra.mxu1 %v632_v14  ;;  %v42_v9 = vld [vmem:[%s1094_s0 + $0xd8] sm:$0xff]  ;;  %v43_v13 = vld [vmem:[%s1094_s0 + $0xe0] sm:$0xff]  ;;  %v53_v17 = vld [vmem:[%s1094_s0 + $0x130] sm:$0xff] }
  0x14   :  { %v56_v18 = vld [vmem:[%s1094_s0 + $0x148] sm:$0xff]  ;;  %v46_v24 = vld [vmem:[%s1094_s0 + $0xf8] sm:$0xff]  ;;  %v49_v25 = vld [vmem:[%s1094_s0 + $0x110] sm:$0xff] }
  0x15   :  { %v97_v28 = vpack.c.bf16 %v49_v25, %v46_v24  ;;  %v59_v29 = vld [vmem:[%s1094_s0 + $0x160] sm:$0xff]  ;;  %v54_v33 = vld [vmem:[%s1094_s0 + $0x138] sm:$0xff]  ;;  %v77_v34 = vld [vmem:[%s1094_s0 + $0x1f0] sm:$0xff] }
  0x16   :  { %301 = vmatpush.bf16.msra.mxu0 %v623_v15  ;;  %v52_v36 = vld [vmem:[%s1094_s0 + $0x128] sm:$0xff]  ;;  %v55_v37 = vld [vmem:[%s1094_s0 + $0x140] sm:$0xff]  ;;  %v65_v41 = vld [vmem:[%s1094_s0 + $0x190] sm:$0xff] }
  0x17   :  { %644 = vmatpush.bf16.msra.mxu3 %v623_v15  ;;  %365 = vmatpush.bf16.msra.mxu1 %v631_v16  ;;  %v100_v40 = vpack.c.bf16 %v55_v37, %v52_v36  ;;  %v60_v45 = vld [vmem:[%s1094_s0 + $0x168] sm:$0xff]  ;;  %v58_v46 = vld [vmem:[%s1094_s0 + $0x158] sm:$0xff]  ;;  %v71_v51 = vld [vmem:[%s1094_s0 + $0x1c0] sm:$0xff] }
  0x18   :  { %v74_v52 = vld [vmem:[%s1094_s0 + $0x1d8] sm:$0xff] }
  0x1a   :  { %611 = vmatmul.msk.bf16.gmra.mxu2 %vm262_vm0, %v86_v19  ;;  %302 = vmatpush.bf16.msra.mxu0 %v622_v20  ;;  %v101_v19 = vpack.c.bf16 %v56_v18, %v53_v17 }
  0x1b   :  { %645 = vmatpush.bf16.msra.mxu3 %v622_v20  ;;  %366 = vmatpush.bf16.msra.mxu1 %v630_v21  ;;  %v45_v20 = vld [vmem:[%s1094_s0 + $0xf0] sm:$0xff] }
  0x1e   :  { %303 = vmatpush.bf16.msra.mxu0 %v621_v22 }
  0x1f   :  { %646 = vmatpush.bf16.msra.mxu3 %v621_v22  ;;  %367 = vmatpush.bf16.msra.mxu1 %v629_v23  ;;  %v76_v22 = vld [vmem:[%s1094_s0 + $0x1e8] sm:$0xff] }
  0x21   :  { %304 = vmatmul.bf16.vlgmr.msra.gmra.mxu0 %v81_v30  ;;  %v62_v30 = vld [vmem:[%s1094_s0 + $0x178] sm:$0xff] }
  0x22   :  { %344 = vmatmul.bf16.vlgmr.msra.gmra.mxu3 %v105_v31  ;;  %368 = vmatmul.bf16.vlgmr.msra.gmra.mxu1 %v82_v32  ;;  %v104_v31 = vpack.c.bf16 %v62_v30, %v59_v29  ;;  %v51_v32 = vld [vmem:[%s1094_s0 + $0x120] sm:$0xff] }
  0x23   :  { %647 = vmatpush.bf16.msrb.mxu3 %v636_v2  ;;  %v90_v2 = vpack.c.bf16 %v36_v61, %v33_v60  ;;  %v99_v38 = vpack.c.bf16 %v54_v33, %v51_v32 }
  0x27   :  { %648 = vmatpush.bf16.msrb.mxu3 %v635_v5  ;;  %v47_v5 = vld [vmem:[%s1094_s0 + $0x100] sm:$0xff] }
  0x28   :  { %v98_v7 = vpack.c.bf16 %v50_v6, %v47_v5 }
  0x2a   :  { %612 = vmatmul.msk.bf16.gmra.mxu2 %vm262_vm0, %v89_v35  ;;  %v80_v35 = vld [vmem:[%s1094_s0 + $0x208] sm:$0xf] }
  0x2b   :  { %649 = vmatpush.bf16.msrb.mxu3 %v634_v10  ;;  %v70_v10 = vld [vmem:[%s1094_s0 + $0x1b8] sm:$0xff]  ;;  %v113_v39 = vpack.c.bf16 %v80_v35, %v77_v34 }
  0x2c   :  { %v109_v15 = vpack.c.bf16 %v73_v11, %v70_v10 }
  0x2f   :  { %650 = vmatpush.bf16.msrb.mxu3 %v633_v12  ;;  %v40_v12 = vld [vmem:[%s1094_s0 + $0xc8] sm:$0xff] }
  0x31   :  { %309 = vmatmul.bf16.gmra.mxu0 %v84_v42  ;;  %v68_v42 = vld [vmem:[%s1094_s0 + $0x1a8] sm:$0xff] }
  0x32   :  { %349 = vmatmul.bf16.gmra.mxu3 %v108_v43  ;;  %373 = vmatmul.bf16.gmra.mxu1 %v85_v44  ;;  %v107_v43 = vpack.c.bf16 %v68_v42, %v65_v41  ;;  %v57_v44 = vld [vmem:[%s1094_s0 + $0x150] sm:$0xff] }
  0x33   :  { %651 = vmatpush.bf16.msrb.mxu3 %v632_v14  ;;  %v93_v14 = vpack.c.bf16 %v42_v9, %v39_v8  ;;  %v102_v49 = vpack.c.bf16 %v60_v45, %v57_v44 }
  0x37   :  { %652 = vmatpush.bf16.msrb.mxu3 %v631_v16  ;;  %v94_v16 = vpack.c.bf16 %v43_v13, %v40_v12 }
  0x3a   :  { %613 = vmatmul.msk.bf16.gmra.mxu2 %vm262_vm0, %v92_v47  ;;  %v61_v47 = vld [vmem:[%s1094_s0 + $0x170] sm:$0xff] }
  0x3b   :  { %653 = vmatpush.bf16.msrb.mxu3 %v630_v21  ;;  %v48_v21 = vld [vmem:[%s1094_s0 + $0x108] sm:$0xff]  ;;  %v103_v50 = vpack.c.bf16 %v61_v47, %v58_v46 }
  0x3c   :  { %v96_v26 = vpack.c.bf16 %v48_v21, %v45_v20 }
  0x3f   :  { %654 = vmatpush.bf16.msrb.mxu3 %v629_v23  ;;  %v79_v23 = vld [vmem:[%s1094_s0 + $0x200] sm:$0xf] }
  0x40   :  { %v112_v27 = vpack.c.bf16 %v79_v23, %v76_v22 }
  0x41   :  { %314 = vmatmul.bf16.gmra.mxu0 %v87_v54  ;;  %v110_v54 = vpack.c.bf16 %v74_v52, %v71_v51 }
  0x42   :  { %354 = vmatmul.bf16.gmra.mxu3 %v111_v55  ;;  %378 = vmatmul.bf16.gmra.mxu1 %v88_v56  ;;  %v952_v55 = vld [vmem:[%s1095_s2] ss:$0 sm:$0xff] }
  0x43   :  { %655 = vmatpush.bf16.msra.mxu3 %v684_v1  ;;  %v37_v1 = vld [vmem:[%s1094_s0 + $0xb0] sm:$0xff] }
  0x47   :  { %656 = vmatpush.bf16.msra.mxu3 %v695_v4  ;;  %v91_v4 = vpack.c.bf16 %v37_v1, %v34_v0 }
  0x4a   :  { %614 = vmatmul.msk.bf16.gmra.mxu2 %vm262_vm0, %v95_v59 }
  0x51   :  { %319 = vmatmul.bf16.gmra.mxu0 %v90_v2 }
  0x52   :  { %408 = vmatmul.bf16.vlgmr.msrb.gmra.mxu3 %v106_v3  ;;  %383 = vmatmul.bf16.gmra.mxu1 %v91_v4 }
  0x5a   :  { %615 = vmatmul.msk.bf16.gmra.mxu2 %vm262_vm0, %v98_v7 }
  0x61   :  { %324 = vmatmul.bf16.gmra.mxu0 %v93_v14 }
  0x62   :  { %413 = vmatmul.bf16.gmra.mxu3 %v109_v15  ;;  %388 = vmatmul.bf16.gmra.mxu1 %v94_v16 }
  0x6a   :  { %616 = vmatmul.msk.bf16.gmra.mxu2 %vm262_vm0, %v101_v19 }
  0x71   :  { %329 = vmatmul.bf16.gmra.mxu0 %v96_v26 }
  0x72   :  { %418 = vmatmul.bf16.gmra.mxu3 %v112_v27  ;;  %393 = vmatmul.bf16.gmra.mxu1 %v97_v28 }
  0x7a   :  { %617 = vmatmul.msk.bf16.gmra.mxu2 %vm262_vm0, %v104_v31 }
  0x81   :  { %334 = vmatmul.bf16.gmra.mxu0 %v99_v38 }
  0x82   :  { %620 = vmatmul.msk.bf16.vlgmr.msra.gmra.mxu3 %vm262_vm0, %v113_v39  ;;  %398 = vmatmul.bf16.gmra.mxu1 %v100_v40 }
  0x8a   :  { %618 = vmatmul.msk.bf16.gmra.mxu2 %vm262_vm0, %v107_v43 }
  0x8d   :  { %v433_v48 = vpop.f32.mrf.mxu2 }
  0x91   :  { %339 = vmatmul.bf16.gmra.mxu0 %v102_v49 }
  0x92   :  { %403 = vmatmul.bf16.gmra.mxu1 %v103_v50 }
  0x95   :  { %v435_v53 = vpop.f32.mrf.mxu2 }
  0x9a   :  { %619 = vmatmul.msk.bf16.gmra.mxu2 %vm262_vm0, %v110_v54 }
  0x9d   :  { %v438_v56 = vpop.f32.mrf.mxu2 }
  0x9e   :  { %v305_v57 = vpop.f32.mrf.mxu0 }
  0x9f   :  { %v306_v58 = vadd.f32 %v952_v55, %v305_v57  ;;  %v369_v59 = vpop.f32.mrf.mxu1 }
  0xa1   :  { %v370_v60 = vadd.f32 %v369_v59, %v306_v58 }
  0xa3   :  { %v434_v61 = vadd.f32 %v433_v48, %v370_v60 }
  0xa5   :  { %v488_v62 = vmax.f32 %v434_v61, 0.0  ;;  %v955_v63 = vpop.f32.mrf.mxu3  ;;  %v440_v0 = vpop.f32.mrf.mxu2 }
  0xa6   :  { %v307_v1 = vpop.f32.mrf.mxu0 }
  0xa7   :  { %511 = vst.msk [vmem:[%s1096_s3] sm:$0xff] %vm510_vm1, %v488_v62  ;;  %v308_v2 = vadd.f32 %v952_v55, %v307_v1  ;;  %v371_v3 = vpop.f32.mrf.mxu1 }
  0xa9   :  { %v372_v4 = vadd.f32 %v371_v3, %v308_v2 }
  0xab   :  { %v436_v5 = vadd.f32 %v435_v53, %v372_v4 }
  0xad   :  { %v489_v6 = vmax.f32 %v436_v5, 0.0  ;;  %v962_v7 = vpop.f32.mrf.mxu3  ;;  %v443_v8 = vpop.f32.mrf.mxu2 }
  0xae   :  { %v310_v9 = vpop.f32.mrf.mxu0 }
  0xaf   :  { %512 = vst.msk [vmem:[%s1096_s3 + $0x8] sm:$0xff] %vm510_vm1, %v489_v6  ;;  %v311_v10 = vadd.f32 %v952_v55, %v310_v9  ;;  %v374_v11 = vpop.f32.mrf.mxu1 }
  0xb1   :  { %v375_v12 = vadd.f32 %v374_v11, %v311_v10 }
  0xb3   :  { %v439_v13 = vadd.f32 %v438_v56, %v375_v12 }
  0xb5   :  { %v490_v14 = vmax.f32 %v439_v13, 0.0  ;;  %v969_v15 = vpop.f32.mrf.mxu3  ;;  %v445_v16 = vpop.f32.mrf.mxu2 }
  0xb6   :  { %v312_v17 = vpop.f32.mrf.mxu0 }
  0xb7   :  { %513 = vst.msk [vmem:[%s1096_s3 + $0x10] sm:$0xff] %vm510_vm1, %v490_v14  ;;  %v313_v18 = vadd.f32 %v952_v55, %v312_v17  ;;  %v376_v19 = vpop.f32.mrf.mxu1 }
  0xb9   :  { %v377_v20 = vadd.f32 %v376_v19, %v313_v18 }
  0xbb   :  { %v441_v21 = vadd.f32 %v440_v0, %v377_v20 }
  0xbd   :  { %v491_v22 = vmax.f32 %v441_v21, 0.0  ;;  %v976_v23 = vpop.f32.mrf.mxu3  ;;  %v448_v24 = vpop.f32.mrf.mxu2 }
  0xbe   :  { %v315_v25 = vpop.f32.mrf.mxu0 }
  0xbf   :  { %514 = vst.msk [vmem:[%s1096_s3 + $0x18] sm:$0xff] %vm510_vm1, %v491_v22  ;;  %v316_v26 = vadd.f32 %v952_v55, %v315_v25  ;;  %v379_v27 = vpop.f32.mrf.mxu1 }
  0xc1   :  { %v380_v28 = vadd.f32 %v379_v27, %v316_v26 }
  0xc3   :  { %v444_v29 = vadd.f32 %v443_v8, %v380_v28 }
  0xc5   :  { %v492_v30 = vmax.f32 %v444_v29, 0.0  ;;  %v983_v31 = vpop.f32.mrf.mxu3  ;;  %v450_v32 = vpop.f32.mrf.mxu2 }
  0xc6   :  { %v317_v33 = vpop.f32.mrf.mxu0 }
  0xc7   :  { %515 = vst.msk [vmem:[%s1096_s3 + $0x20] sm:$0xff] %vm510_vm1, %v492_v30  ;;  %v318_v34 = vadd.f32 %v952_v55, %v317_v33  ;;  %v381_v35 = vpop.f32.mrf.mxu1 }
  0xc9   :  { %v382_v36 = vadd.f32 %v381_v35, %v318_v34  ;;  %v356_v35 = vadd.f32 %v952_v55, %v983_v31  ;;  %v346_v31 = vadd.f32 %v952_v55, %v955_v63 }
  0xcb   :  { %v446_v37 = vadd.f32 %v445_v16, %v382_v36 }
  0xcd   :  { %v493_v38 = vmax.f32 %v446_v37, 0.0  ;;  %v990_v39 = vpop.f32.mrf.mxu3  ;;  %v453_v40 = vpop.f32.mrf.mxu2 }
  0xce   :  { %v320_v41 = vpop.f32.mrf.mxu0 }
  0xcf   :  { %516 = vst.msk [vmem:[%s1096_s3 + $0x28] sm:$0xff] %vm510_vm1, %v493_v38  ;;  %v321_v42 = vadd.f32 %v952_v55, %v320_v41  ;;  %v384_v43 = vpop.f32.mrf.mxu1 }
  0xd1   :  { %v385_v44 = vadd.f32 %v384_v43, %v321_v42 }
  0xd3   :  { %v449_v45 = vadd.f32 %v448_v24, %v385_v44 }
  0xd5   :  { %v494_v46 = vmax.f32 %v449_v45, 0.0  ;;  %v997_v47 = vpop.f32.mrf.mxu3  ;;  %v455_v48 = vpop.f32.mrf.mxu2 }
  0xd6   :  { %v322_v49 = vpop.f32.mrf.mxu0 }
  0xd7   :  { %517 = vst.msk [vmem:[%s1096_s3 + $0x30] sm:$0xff] %vm510_vm1, %v494_v46  ;;  %v323_v50 = vadd.f32 %v952_v55, %v322_v49  ;;  %v386_v51 = vpop.f32.mrf.mxu1  ;;  %v358_v49 = vadd.f32 %v952_v55, %v990_v39 }
  0xd9   :  { %v387_v52 = vadd.f32 %v386_v51, %v323_v50  ;;  %v410_v51 = vadd.f32 %v997_v47, %v346_v31  ;;  %v348_v47 = vadd.f32 %v952_v55, %v962_v7 }
  0xdb   :  { %v451_v53 = vadd.f32 %v450_v32, %v387_v52 }
  0xdd   :  { %v495_v54 = vmax.f32 %v451_v53, 0.0  ;;  %v1004_v56 = vpop.f32.mrf.mxu3  ;;  %v458_v57 = vpop.f32.mrf.mxu2 }
  0xde   :  { %v325_v58 = vpop.f32.mrf.mxu0 }
  0xdf   :  { %518 = vst.msk [vmem:[%s1096_s3 + $0x38] sm:$0xff] %vm510_vm1, %v495_v54  ;;  %v326_v59 = vadd.f32 %v952_v55, %v325_v58  ;;  %v389_v60 = vpop.f32.mrf.mxu1 }
  0xe1   :  { %v390_v61 = vadd.f32 %v389_v60, %v326_v59 }
  0xe3   :  { %v454_v62 = vadd.f32 %v453_v40, %v390_v61 }
  0xe5   :  { %v496_v0 = vmax.f32 %v454_v62, 0.0  ;;  %v1011_v1 = vpop.f32.mrf.mxu3  ;;  %v460_v2 = vpop.f32.mrf.mxu2 }
  0xe6   :  { %v327_v3 = vpop.f32.mrf.mxu0 }
  0xe7   :  { %519 = vst.msk [vmem:[%s1096_s3 + $0x40] sm:$0xff] %vm510_vm1, %v496_v0  ;;  %v328_v4 = vadd.f32 %v952_v55, %v327_v3  ;;  %v391_v5 = vpop.f32.mrf.mxu1  ;;  %v412_v3 = vadd.f32 %v1004_v56, %v348_v47 }
  0xe9   :  { %v392_v6 = vadd.f32 %v391_v5, %v328_v4 }
  0xeb   :  { %v456_v8 = vadd.f32 %v455_v48, %v392_v6 }
  0xed   :  { %v497_v9 = vmax.f32 %v456_v8, 0.0  ;;  %v1018_v10 = vpop.f32.mrf.mxu3  ;;  %v463_v11 = vpop.f32.mrf.mxu2 }
  0xee   :  { %v330_v12 = vpop.f32.mrf.mxu0 }
  0xef   :  { %520 = vst.msk [vmem:[%s1096_s3 + $0x48] sm:$0xff] %vm510_vm1, %v497_v9  ;;  %v331_v13 = vadd.f32 %v952_v55, %v330_v12  ;;  %v394_v14 = vpop.f32.mrf.mxu1 }
  0xf1   :  { %v395_v16 = vadd.f32 %v394_v14, %v331_v13  ;;  %v351_v13 = vadd.f32 %v952_v55, %v969_v15  ;;  %v353_v15 = vadd.f32 %v952_v55, %v976_v23 }
  0xf3   :  { %v459_v17 = vadd.f32 %v458_v57, %v395_v16  ;;  %v415_v14 = vadd.f32 %v1011_v1, %v351_v13 }
  0xf5   :  { %v498_v18 = vmax.f32 %v459_v17, 0.0  ;;  %v419_v19 = vpop.f32.mrf.mxu3  ;;  %v465_v20 = vpop.f32.mrf.mxu2 }
  0xf6   :  { %v332_v21 = vpop.f32.mrf.mxu0  ;;  %v420_v37 = vadd.f32 %v419_v19, %v356_v35 }
  0xf7   :  { %521 = vst.msk [vmem:[%s1096_s3 + $0x50] sm:$0xff] %vm510_vm1, %v498_v18  ;;  %v333_v22 = vadd.f32 %v952_v55, %v332_v21  ;;  %v396_v24 = vpop.f32.mrf.mxu1 }
  0xf9   :  { %v397_v25 = vadd.f32 %v396_v24, %v333_v22 }
  0xfb   :  { %v461_v26 = vadd.f32 %v460_v2, %v397_v25 }
  0xfd   :  { %v499_v27 = vmax.f32 %v461_v26, 0.0  ;;  %v421_v28 = vpop.f32.mrf.mxu3  ;;  %v468_v29 = vpop.f32.mrf.mxu2 }
  0xfe   :  { %v335_v30 = vpop.f32.mrf.mxu0  ;;  %v422_v52 = vadd.f32 %v421_v28, %v358_v49 }
  0xff   :  { %522 = vst.msk [vmem:[%s1096_s3 + $0x58] sm:$0xff] %vm510_vm1, %v499_v27  ;;  %v336_v32 = vadd.f32 %v952_v55, %v335_v30  ;;  %v399_v33 = vpop.f32.mrf.mxu1 }
 0x101   :  { %v400_v34 = vadd.f32 %v399_v33, %v336_v32 }
 0x103   :  { %v464_v36 = vadd.f32 %v463_v11, %v400_v34 }
 0x105   :  { %v500_v38 = vmax.f32 %v464_v36, 0.0  ;;  %v470_v40 = vpop.f32.mrf.mxu2  ;;  %v483_v41 = vpop.f32.mrf.mxu3 }
 0x106   :  { %v484_v42 = vadd.f32 %v483_v41, %v420_v37  ;;  %v337_v43 = vpop.f32.mrf.mxu0 }
 0x107   :  { %523 = vst.msk [vmem:[%s1096_s3 + $0x60] sm:$0xff] %vm510_vm1, %v500_v38  ;;  %v338_v44 = vadd.f32 %v952_v55, %v337_v43  ;;  %v401_v45 = vpop.f32.mrf.mxu1 }
 0x108   :  { %v508_v46 = vmax.f32 %v484_v42, 0.0 }
 0x109   :  { %v402_v48 = vadd.f32 %v401_v45, %v338_v44 }
 0x10a   :  { %531 = vst.msk [vmem:[%s1096_s3 + $0xa0] sm:$0xff] %vm510_vm1, %v508_v46 }
 0x10b   :  { %v466_v50 = vadd.f32 %v465_v20, %v402_v48  ;;  %v417_v20 = vadd.f32 %v1018_v10, %v353_v15 }
 0x10d   :  { %v501_v53 = vmax.f32 %v466_v50, 0.0  ;;  %v473_v54 = vpop.f32.mrf.mxu2  ;;  %v485_v57 = vpop.f32.mrf.mxu3 }
 0x10e   :  { %v474_v58 = vadd.f32 %v473_v54, %v410_v51  ;;  %v486_v59 = vadd.f32 %v485_v57, %v422_v52  ;;  %v340_v60 = vpop.f32.mrf.mxu0 }
 0x10f   :  { %524 = vst.msk [vmem:[%s1096_s3 + $0x68] sm:$0xff] %vm510_vm1, %v501_v53  ;;  %v341_v63 = vadd.f32 %v952_v55, %v340_v60  ;;  %v404_v39 = vpop.f32.mrf.mxu1 }
 0x110   :  { %v504_v61 = vmax.f32 %v474_v58, 0.0  ;;  %v509_v62 = vmax.f32 %v486_v59, 0.0 }
 0x111   :  { %v405_v0 = vadd.f32 %v404_v39, %v341_v63 }
 0x112   :  { %527 = vst.msk [vmem:[%s1096_s3 + $0x80] sm:$0xff] %vm510_vm1, %v504_v61 }
 0x113   :  { %533 = vst.msk [vmem:[%s1096_s3 + $0xa8] sm:$0xf] %vm532_vm2, %v509_v62  ;;  %v469_v2 = vadd.f32 %v468_v29, %v405_v0 }
 0x115   :  { %v502_v4 = vmax.f32 %v469_v2, 0.0  ;;  %v475_v5 = vpop.f32.mrf.mxu2 }
 0x116   :  { %v476_v6 = vadd.f32 %v475_v5, %v412_v3  ;;  %v342_v8 = vpop.f32.mrf.mxu0 }
 0x117   :  { %525 = vst.msk [vmem:[%s1096_s3 + $0x70] sm:$0xff] %vm510_vm1, %v502_v4  ;;  %v343_v7 = vadd.f32 %v952_v55, %v342_v8  ;;  %v406_v9 = vpop.f32.mrf.mxu1 }
 0x118   :  { %v505_v11 = vmax.f32 %v476_v6, 0.0 }
 0x119   :  { %v407_v12 = vadd.f32 %v406_v9, %v343_v7 }
 0x11a   :  { %528 = vst.msk [vmem:[%s1096_s3 + $0x88] sm:$0xff] %vm510_vm1, %v505_v11 }
 0x11b   :  { %v471_v56 = vadd.f32 %v470_v40, %v407_v12 }
 0x11d   :  { %v503_v16 = vmax.f32 %v471_v56, 0.0  ;;  %v478_v17 = vpop.f32.mrf.mxu2 }
 0x11e   :  { %v479_v18 = vadd.f32 %v478_v17, %v415_v14 }
 0x11f   :  { %526 = vst.msk [vmem:[%s1096_s3 + $0x78] sm:$0xff] %vm510_vm1, %v503_v16 }
 0x120   :  { %v506_v19 = vmax.f32 %v479_v18, 0.0 }
 0x122   :  { %529 = vst.msk [vmem:[%s1096_s3 + $0x90] sm:$0xff] %vm510_vm1, %v506_v19 }
 0x125   :  { %v480_v1 = vpop.f32.mrf.mxu2 }
 0x126   :  { %v481_v21 = vadd.f32 %v480_v1, %v417_v20 }
 0x128   :  { %v507_v22 = vmax.f32 %v481_v21, 0.0 }
 0x12a   :  { %530 = vst.msk [vmem:[%s1096_s3 + $0x98] sm:$0xff] %vm510_vm1, %v507_v22 }

// kernel: fcos_forward.34
= control target key start
LH: loop header
LB: loop body
LE: loop exit
PB: predicated region body
PF: predicated region fallthrough
CT: control target
= control target key end

     0   :  { %vm682_vm0 = vcmask 785408   ;;  %vm1207_vm1 = vcmask 781312   ;;  %s2457_s1 = inlined_call_operand.vmem [shape: bf16[864,96], index: 1, kind: input, shape index: {}]   ;;  %s2458_s2 = inlined_call_operand.vmem [shape: f32[1,96], index: 2, kind: input, shape index: {}]   ;;  %s2459_s0 = inlined_call_operand.vmem [shape: f32[172,864], index: 0, kind: input, shape index: {}]   ;;  %s2460_s3 = inlined_call_operand.vmem [shape: f32[172,96], index: 3, kind: output, shape index: {}]  }
   0x1   :  { %v1447_v0 = vld [vmem:[%s2457_s1 + $0x38] sm:$0xff]  ;;  %v1446_v3 = vld [vmem:[%s2457_s1 + $0x30] sm:$0xff]  ;;  %v1445_v6 = vld [vmem:[%s2457_s1 + $0x28] sm:$0xff] }
   0x2   :  { %v1545_v1 = vld [vmem:[%s2457_s1 + $0xb8] sm:$0xff]  ;;  %716 = vmatpush.bf16.msra.mxu0 %v1447_v0  ;;  %1494 = vmatpush.bf16.msra.mxu3 %v1447_v0  ;;  %v1560_v4 = vld [vmem:[%s2457_s1 + $0xb0] sm:$0xff]  ;;  %v1575_v7 = vld [vmem:[%s2457_s1 + $0xa8] sm:$0xff] }
   0x3   :  { %v1550_v2 = vld [vmem:[%s2457_s1 + $0x78] sm:$0xff]  ;;  %1510 = vmatpush.bf16.msra.mxu2 %v1545_v1  ;;  %v1565_v5 = vld [vmem:[%s2457_s1 + $0x70] sm:$0xff]  ;;  %v1580_v8 = vld [vmem:[%s2457_s1 + $0x68] sm:$0xff] }
   0x4   :  { %1502 = vmatpush.bf16.msra.mxu1 %v1550_v2  ;;  %v1444_v9 = vld [vmem:[%s2457_s1 + $0x20] sm:$0xff]  ;;  %v1443_v12 = vld [vmem:[%s2457_s1 + $0x18] sm:$0xff]  ;;  %v1442_v15 = vld [vmem:[%s2457_s1 + $0x10] sm:$0xff] }
   0x5   :  { %v1590_v10 = vld [vmem:[%s2457_s1 + $0xa0] sm:$0xff]  ;;  %v1605_v13 = vld [vmem:[%s2457_s1 + $0x98] sm:$0xff]  ;;  %v1620_v16 = vld [vmem:[%s2457_s1 + $0x90] sm:$0xff] }
   0x6   :  { %717 = vmatpush.bf16.msra.mxu0 %v1446_v3  ;;  %1495 = vmatpush.bf16.msra.mxu3 %v1446_v3  ;;  %v1595_v11 = vld [vmem:[%s2457_s1 + $0x60] sm:$0xff]  ;;  %v1610_v14 = vld [vmem:[%s2457_s1 + $0x58] sm:$0xff]  ;;  %v1625_v17 = vld [vmem:[%s2457_s1 + $0x50] sm:$0xff] }
   0x7   :  { %1511 = vmatpush.bf16.msra.mxu2 %v1560_v4  ;;  %v1441_v18 = vld [vmem:[%s2457_s1 + $0x8] sm:$0xff]  ;;  %v1440_v21 = vld [vmem:[%s2457_s1] sm:$0xff]  ;;  %v22_v25 = vld [vmem:[%s2459_s0 + $0x38] sm:$0xff] }
   0x8   :  { %1503 = vmatpush.bf16.msra.mxu1 %v1565_v5  ;;  %v1635_v19 = vld [vmem:[%s2457_s1 + $0x88] sm:$0xff]  ;;  %v1648_v22 = vld [vmem:[%s2457_s1 + $0x80] sm:$0xff]  ;;  %v50_v27 = vld [vmem:[%s2459_s0 + $0x118] sm:$0xff] }
   0x9   :  { %v1640_v20 = vld [vmem:[%s2457_s1 + $0x48] sm:$0xff]  ;;  %v1653_v23 = vld [vmem:[%s2457_s1 + $0x40] sm:$0xff]  ;;  %v45_v28 = vld [vmem:[%s2459_s0 + $0xf0] sm:$0xff] }
   0xa   :  { %718 = vmatpush.bf16.msra.mxu0 %v1445_v6  ;;  %1496 = vmatpush.bf16.msra.mxu3 %v1445_v6  ;;  %v15_v24 = vld [vmem:[%s2459_s0] sm:$0xff]  ;;  %v52_v29 = vld [vmem:[%s2459_s0 + $0x128] sm:$0xff]  ;;  %v1471_v32 = vld [vmem:[%s2457_s1 + $0xf8] sm:$0xff] }
   0xb   :  { %1512 = vmatpush.bf16.msra.mxu2 %v1575_v7  ;;  %v43_v26 = vld [vmem:[%s2459_s0 + $0xe0] sm:$0xff]  ;;  %v44_v30 = vld [vmem:[%s2459_s0 + $0xe8] sm:$0xff]  ;;  %v169_v33 = vpack.c.bf16 %v22_v25, %v15_v24  ;;  %v185_v35 = vpack.c.bf16 %v52_v29, %v45_v28  ;;  %v1487_v38 = vld [vmem:[%s2457_s1 + $0x178] sm:$0xff] }
   0xc   :  { %1504 = vmatpush.bf16.msra.mxu1 %v1580_v8  ;;  %v51_v31 = vld [vmem:[%s2459_s0 + $0x120] sm:$0xff]  ;;  %v183_v34 = vpack.c.bf16 %v50_v27, %v43_v26  ;;  %v1493_v37 = vld [vmem:[%s2457_s1 + $0x1a8] sm:$0xff]  ;;  %v1470_v39 = vld [vmem:[%s2457_s1 + $0xf0] sm:$0xff] }
   0xd   :  { %v184_v36 = vpack.c.bf16 %v51_v31, %v44_v30  ;;  %v1486_v40 = vld [vmem:[%s2457_s1 + $0x170] sm:$0xff]  ;;  %v1492_v41 = vld [vmem:[%s2457_s1 + $0x1a0] sm:$0xff]  ;;  %v1469_v42 = vld [vmem:[%s2457_s1 + $0xe8] sm:$0xff] }
   0xe   :  { %719 = vmatpush.bf16.msra.mxu0 %v1444_v9  ;;  %1497 = vmatpush.bf16.msra.mxu3 %v1444_v9  ;;  %v29_v43 = vld [vmem:[%s2459_s0 + $0x70] sm:$0xff]  ;;  %v36_v44 = vld [vmem:[%s2459_s0 + $0xa8] sm:$0xff]  ;;  %v59_v47 = vld [vmem:[%s2459_s0 + $0x160] sm:$0xff] }
   0xf   :  { %1513 = vmatpush.bf16.msra.mxu2 %v1590_v10  ;;  %v57_v45 = vld [vmem:[%s2459_s0 + $0x150] sm:$0xff]  ;;  %v64_v46 = vld [vmem:[%s2459_s0 + $0x188] sm:$0xff]  ;;  %v66_v48 = vld [vmem:[%s2459_s0 + $0x198] sm:$0xff]  ;;  %v176_v52 = vpack.c.bf16 %v36_v44, %v29_v43 }
  0x10   :  { %1505 = vmatpush.bf16.msra.mxu1 %v1595_v11  ;;  %v58_v49 = vld [vmem:[%s2459_s0 + $0x158] sm:$0xff]  ;;  %v65_v50 = vld [vmem:[%s2459_s0 + $0x190] sm:$0xff]  ;;  %v1485_v51 = vld [vmem:[%s2457_s1 + $0x168] sm:$0xff]  ;;  %v190_v53 = vpack.c.bf16 %v64_v46, %v57_v45  ;;  %v192_v54 = vpack.c.bf16 %v66_v48, %v59_v47 }
  0x11   :  { %v191_v55 = vpack.c.bf16 %v65_v50, %v58_v49  ;;  %v1468_v56 = vld [vmem:[%s2457_s1 + $0xe0] sm:$0xff]  ;;  %v1491_v57 = vld [vmem:[%s2457_s1 + $0x198] sm:$0xff]  ;;  %v16_v60 = vld [vmem:[%s2459_s0 + $0x8] sm:$0xff] }
  0x12   :  { %720 = vmatpush.bf16.msra.mxu0 %v1443_v12  ;;  %1498 = vmatpush.bf16.msra.mxu3 %v1443_v12  ;;  %v71_v58 = vld [vmem:[%s2459_s0 + $0x1c0] sm:$0xff]  ;;  %v78_v59 = vld [vmem:[%s2459_s0 + $0x1f8] sm:$0xff]  ;;  %v73_v62 = vld [vmem:[%s2459_s0 + $0x1d0] sm:$0xff] }
  0x13   :  { %1514 = vmatpush.bf16.msra.mxu2 %v1605_v13  ;;  %v23_v61 = vld [vmem:[%s2459_s0 + $0x40] sm:$0xff]  ;;  %v80_v63 = vld [vmem:[%s2459_s0 + $0x208] sm:$0xff]  ;;  %v197_v3 = vpack.c.bf16 %v78_v59, %v71_v58  ;;  %v1490_v12 = vld [vmem:[%s2457_s1 + $0x190] sm:$0xff] }
  0x14   :  { %1506 = vmatpush.bf16.msra.mxu1 %v1610_v14  ;;  %v72_v0 = vld [vmem:[%s2459_s0 + $0x1c8] sm:$0xff]  ;;  %v199_v6 = vpack.c.bf16 %v80_v63, %v73_v62  ;;  %v1484_v9 = vld [vmem:[%s2457_s1 + $0x160] sm:$0xff]  ;;  %v1466_v26 = vld [vmem:[%s2457_s1 + $0xd0] sm:$0xff] }
  0x15   :  { %v106_v27 = vld [vmem:[%s2459_s0 + $0x2d8] sm:$0xff]  ;;  %v17_v28 = vld [vmem:[%s2459_s0 + $0x10] sm:$0xff]  ;;  %v108_v29 = vld [vmem:[%s2459_s0 + $0x2e8] sm:$0xff] }
  0x16   :  { %721 = vmatpush.bf16.msra.mxu0 %v1442_v15  ;;  %1499 = vmatpush.bf16.msra.mxu3 %v1442_v15  ;;  %v30_v15 = vld [vmem:[%s2459_s0 + $0x78] sm:$0xff]  ;;  %v100_v30 = vld [vmem:[%s2459_s0 + $0x2a8] sm:$0xff]  ;;  %v107_v31 = vld [vmem:[%s2459_s0 + $0x2e0] sm:$0xff] }
  0x17   :  { %1515 = vmatpush.bf16.msra.mxu2 %v1620_v16  ;;  %v122_v43 = vld [vmem:[%s2459_s0 + $0x358] sm:$0xff]  ;;  %v121_v45 = vld [vmem:[%s2459_s0 + $0x350] sm:$0xff]  ;;  %v128_v58 = vld [vmem:[%s2459_s0 + $0x388] sm:$0xff] }
  0x18   :  { %1507 = vmatpush.bf16.msra.mxu1 %v1625_v17  ;;  %v114_v44 = vld [vmem:[%s2459_s0 + $0x318] sm:$0xff]  ;;  %v135_v59 = vld [vmem:[%s2459_s0 + $0x3c0] sm:$0xff] }
  0x19   :  { %v219_v49 = vpack.c.bf16 %v121_v45, %v114_v44  ;;  %v1479_v50 = vld [vmem:[%s2457_s1 + $0x138] sm:$0xff]  ;;  %v226_v63 = vpack.c.bf16 %v135_v59, %v128_v58  ;;  %v28_v44 = vld [vmem:[%s2459_s0 + $0x68] sm:$0xff] }
  0x1a   :  { %722 = vmatpush.bf16.msra.mxu0 %v1441_v18  ;;  %1500 = vmatpush.bf16.msra.mxu3 %v1441_v18  ;;  %v86_v18 = vld [vmem:[%s2459_s0 + $0x238] sm:$0xff]  ;;  %v20_v45 = vld [vmem:[%s2459_s0 + $0x28] sm:$0xff] }
  0x1b   :  { %1516 = vmatpush.bf16.msra.mxu2 %v1635_v19 }
  0x1c   :  { %1508 = vmatpush.bf16.msra.mxu1 %v1640_v20 }
  0x1e   :  { %723 = vmatpush.bf16.msra.mxu0 %v1440_v21  ;;  %1501 = vmatpush.bf16.msra.mxu3 %v1440_v21 }
  0x1f   :  { %1517 = vmatpush.bf16.msra.mxu2 %v1648_v22 }
  0x20   :  { %1509 = vmatpush.bf16.msra.mxu1 %v1653_v23 }
  0x21   :  { %724 = vmatmul.bf16.vlgmr.msra.gmra.mxu0 %v169_v33  ;;  %734 = vmatmul.bf16.vlgmr.msra.gmra.mxu3 %v183_v34 }
  0x22   :  { %908 = vmatpush.bf16.msrb.mxu3 %v1471_v32  ;;  %780 = vmatpush.bf16.msrb.mxu0 %v1550_v2  ;;  %v79_v2 = vld [vmem:[%s2459_s0 + $0x200] sm:$0xff] }
  0x23   :  { %862 = vmatmul.bf16.vlgmr.msra.gmra.mxu2 %v185_v35  ;;  %798 = vmatmul.bf16.vlgmr.msra.gmra.mxu1 %v184_v36  ;;  %v212_v35 = vpack.c.bf16 %v107_v31, %v100_v30  ;;  %v1489_v36 = vld [vmem:[%s2457_s1 + $0x188] sm:$0xff]  ;;  %v33_v31 = vld [vmem:[%s2459_s0 + $0x90] sm:$0xff] }
  0x24   :  { %1102 = vmatpush.bf16.msrb.mxu2 %v1493_v37  ;;  %1036 = vmatpush.bf16.msrb.mxu1 %v1487_v38  ;;  %v1465_v37 = vld [vmem:[%s2457_s1 + $0xc8] sm:$0xff]  ;;  %v113_v38 = vld [vmem:[%s2459_s0 + $0x310] sm:$0xff] }
  0x26   :  { %781 = vmatpush.bf16.msrb.mxu0 %v1565_v5  ;;  %909 = vmatpush.bf16.msrb.mxu3 %v1470_v39  ;;  %v170_v5 = vpack.c.bf16 %v23_v61, %v16_v60  ;;  %v120_v39 = vld [vmem:[%s2459_s0 + $0x348] sm:$0xff]  ;;  %v1476_v61 = vld [vmem:[%s2457_s1 + $0x120] sm:$0xff] }
  0x27   :  { %v218_v46 = vpack.c.bf16 %v120_v39, %v113_v38 }
  0x28   :  { %1037 = vmatpush.bf16.msrb.mxu1 %v1486_v40  ;;  %1103 = vmatpush.bf16.msrb.mxu2 %v1492_v41  ;;  %v31_v40 = vld [vmem:[%s2459_s0 + $0x80] sm:$0xff]  ;;  %v38_v41 = vld [vmem:[%s2459_s0 + $0xb8] sm:$0xff] }
  0x29   :  { %v178_v47 = vpack.c.bf16 %v38_v41, %v31_v40  ;;  %v18_v41 = vld [vmem:[%s2459_s0 + $0x18] sm:$0xff] }
  0x2a   :  { %782 = vmatpush.bf16.msrb.mxu0 %v1580_v8  ;;  %910 = vmatpush.bf16.msrb.mxu3 %v1469_v42  ;;  %v198_v8 = vpack.c.bf16 %v79_v2, %v72_v0  ;;  %v115_v42 = vld [vmem:[%s2459_s0 + $0x320] sm:$0xff] }
  0x2b   :  { %v220_v48 = vpack.c.bf16 %v122_v43, %v115_v42  ;;  %v1464_v0 = vld [vmem:[%s2457_s1 + $0xc0] sm:$0xff]  ;;  %v25_v42 = vld [vmem:[%s2459_s0 + $0x50] sm:$0xff] }
  0x2c   :  { %1038 = vmatpush.bf16.msrb.mxu1 %v1485_v51  ;;  %1104 = vmatpush.bf16.msrb.mxu2 %v1491_v57  ;;  %v1481_v51 = vld [vmem:[%s2457_s1 + $0x148] sm:$0xff]  ;;  %v1488_v2 = vld [vmem:[%s2457_s1 + $0x180] sm:$0xff]  ;;  %v21_v43 = vld [vmem:[%s2459_s0 + $0x30] sm:$0xff] }
  0x2d   :  { %v136_v57 = vld [vmem:[%s2459_s0 + $0x3c8] sm:$0xff] }
  0x2e   :  { %783 = vmatpush.bf16.msrb.mxu0 %v1595_v11  ;;  %911 = vmatpush.bf16.msrb.mxu3 %v1468_v56  ;;  %v1467_v11 = vld [vmem:[%s2457_s1 + $0xd8] sm:$0xff]  ;;  %v129_v56 = vld [vmem:[%s2459_s0 + $0x390] sm:$0xff] }
  0x2f   :  { %v227_v62 = vpack.c.bf16 %v136_v57, %v129_v56  ;;  %v47_v56 = vld [vmem:[%s2459_s0 + $0x100] sm:$0xff]  ;;  %v54_v57 = vld [vmem:[%s2459_s0 + $0x138] sm:$0xff] }
  0x30   :  { %1039 = vmatpush.bf16.msrb.mxu1 %v1484_v9  ;;  %1105 = vmatpush.bf16.msrb.mxu2 %v1490_v12  ;;  %v141_v9 = vld [vmem:[%s2459_s0 + $0x3f0] sm:$0xff]  ;;  %v143_v12 = vld [vmem:[%s2459_s0 + $0x400] sm:$0xff]  ;;  %v187_v59 = vpack.c.bf16 %v54_v57, %v47_v56 }
  0x31   :  { %729 = vmatmul.bf16.gmra.mxu0 %v176_v52  ;;  %739 = vmatmul.bf16.gmra.mxu3 %v190_v53  ;;  %v1478_v52 = vld [vmem:[%s2457_s1 + $0x130] sm:$0xff]  ;;  %v1477_v53 = vld [vmem:[%s2457_s1 + $0x128] sm:$0xff] }
  0x32   :  { %784 = vmatpush.bf16.msrb.mxu0 %v1610_v14  ;;  %912 = vmatpush.bf16.msrb.mxu3 %v1467_v11  ;;  %v92_v14 = vld [vmem:[%s2459_s0 + $0x268] sm:$0xff] }
  0x33   :  { %867 = vmatmul.bf16.gmra.mxu2 %v192_v54  ;;  %803 = vmatmul.bf16.gmra.mxu1 %v191_v55  ;;  %v127_v54 = vld [vmem:[%s2459_s0 + $0x380] sm:$0xff]  ;;  %v134_v55 = vld [vmem:[%s2459_s0 + $0x3b8] sm:$0xff]  ;;  %v148_v11 = vld [vmem:[%s2459_s0 + $0x428] sm:$0xff] }
  0x34   :  { %1106 = vmatpush.bf16.msrb.mxu2 %v1489_v36  ;;  %v225_v60 = vpack.c.bf16 %v134_v55, %v127_v54 }
  0x36   :  { %785 = vmatpush.bf16.msrb.mxu0 %v1625_v17  ;;  %v94_v17 = vld [vmem:[%s2459_s0 + $0x278] sm:$0xff]  ;;  %913 = vmatpush.bf16.msrb.mxu3 %v1466_v26  ;;  %v164_v26 = vld [vmem:[%s2459_s0 + $0x4a8] sm:$0xf] }
  0x38   :  { %1107 = vmatpush.bf16.msrb.mxu2 %v1488_v2 }
  0x3a   :  { %786 = vmatpush.bf16.msrb.mxu0 %v1640_v20  ;;  %v93_v20 = vld [vmem:[%s2459_s0 + $0x270] sm:$0xff]  ;;  %914 = vmatpush.bf16.msrb.mxu3 %v1465_v37 }
  0x3b   :  { %v205_v25 = vpack.c.bf16 %v93_v20, %v86_v18  ;;  %v19_v20 = vld [vmem:[%s2459_s0 + $0x20] sm:$0xff] }
  0x3e   :  { %787 = vmatpush.bf16.msrb.mxu0 %v1653_v23  ;;  %915 = vmatpush.bf16.msrb.mxu3 %v1464_v0 }
  0x41   :  { %744 = vmatmul.bf16.gmra.mxu3 %v197_v3  ;;  %788 = vmatmul.bf16.vlgmr.msrb.gmra.mxu0 %v170_v5  ;;  %v1475_v3 = vld [vmem:[%s2457_s1 + $0x118] sm:$0xff]  ;;  %v1474_v5 = vld [vmem:[%s2457_s1 + $0x110] sm:$0xff] }
  0x42   :  { %844 = vmatpush.bf16.msra.mxu0 %v1545_v1  ;;  %v85_v1 = vld [vmem:[%s2459_s0 + $0x230] sm:$0xff] }
  0x43   :  { %872 = vmatmul.bf16.gmra.mxu2 %v199_v6  ;;  %808 = vmatmul.bf16.gmra.mxu1 %v198_v8  ;;  %v204_v21 = vpack.c.bf16 %v92_v14, %v85_v1  ;;  %v1480_v6 = vld [vmem:[%s2457_s1 + $0x140] sm:$0xff]  ;;  %v1473_v8 = vld [vmem:[%s2457_s1 + $0x108] sm:$0xff]  ;;  %v150_v1 = vld [vmem:[%s2459_s0 + $0x438] sm:$0xff] }
  0x44   :  { %v142_v14 = vld [vmem:[%s2459_s0 + $0x3f8] sm:$0xff] }
  0x46   :  { %845 = vmatpush.bf16.msra.mxu0 %v1560_v4  ;;  %v37_v4 = vld [vmem:[%s2459_s0 + $0xb0] sm:$0xff] }
  0x47   :  { %v177_v23 = vpack.c.bf16 %v37_v4, %v30_v15  ;;  %v149_v15 = vld [vmem:[%s2459_s0 + $0x430] sm:$0xff]  ;;  %v232_v4 = vpack.c.bf16 %v148_v11, %v141_v9  ;;  %v42_v9 = vld [vmem:[%s2459_s0 + $0xd8] sm:$0xff] }
  0x48   :  { %v233_v18 = vpack.c.bf16 %v149_v15, %v142_v14  ;;  %v34_v11 = vld [vmem:[%s2459_s0 + $0x98] sm:$0xff] }
  0x4a   :  { %846 = vmatpush.bf16.msra.mxu0 %v1575_v7  ;;  %v87_v7 = vld [vmem:[%s2459_s0 + $0x240] sm:$0xff] }
  0x4b   :  { %v206_v24 = vpack.c.bf16 %v94_v17, %v87_v7  ;;  %v1472_v7 = vld [vmem:[%s2457_s1 + $0x100] sm:$0xff]  ;;  %v234_v17 = vpack.c.bf16 %v150_v1, %v143_v12  ;;  %v41_v12 = vld [vmem:[%s2459_s0 + $0xd0] sm:$0xff] }
  0x4e   :  { %847 = vmatpush.bf16.msra.mxu0 %v1590_v10  ;;  %v1483_v10 = vld [vmem:[%s2457_s1 + $0x158] sm:$0xff] }
  0x4f   :  { %1040 = vmatpush.bf16.msrb.mxu1 %v1483_v10  ;;  %v157_v10 = vld [vmem:[%s2459_s0 + $0x470] sm:$0xff] }
  0x51   :  { %749 = vmatmul.bf16.gmra.mxu3 %v204_v21  ;;  %793 = vmatmul.bf16.gmra.mxu0 %v177_v23  ;;  %v26_v21 = vld [vmem:[%s2459_s0 + $0x58] sm:$0xff] }
  0x52   :  { %848 = vmatpush.bf16.msra.mxu0 %v1605_v13  ;;  %v99_v13 = vld [vmem:[%s2459_s0 + $0x2a0] sm:$0xff]  ;;  %v173_v23 = vpack.c.bf16 %v26_v21, %v19_v20  ;;  %v61_v21 = vld [vmem:[%s2459_s0 + $0x170] sm:$0xff] }
  0x53   :  { %877 = vmatmul.bf16.gmra.mxu2 %v206_v24  ;;  %813 = vmatmul.bf16.gmra.mxu1 %v205_v25  ;;  %v211_v32 = vpack.c.bf16 %v106_v27, %v99_v13  ;;  %v155_v24 = vld [vmem:[%s2459_s0 + $0x460] sm:$0xff]  ;;  %v162_v25 = vld [vmem:[%s2459_s0 + $0x498] sm:$0xf]  ;;  %v156_v13 = vld [vmem:[%s2459_s0 + $0x468] sm:$0xff] }
  0x54   :  { %v163_v27 = vld [vmem:[%s2459_s0 + $0x4a0] sm:$0xf] }
  0x56   :  { %849 = vmatpush.bf16.msra.mxu0 %v1620_v16  ;;  %v24_v16 = vld [vmem:[%s2459_s0 + $0x48] sm:$0xff] }
  0x57   :  { %v171_v33 = vpack.c.bf16 %v24_v16, %v17_v28  ;;  %v239_v28 = vpack.c.bf16 %v162_v25, %v155_v24 }
  0x5a   :  { %850 = vmatpush.bf16.msra.mxu0 %v1635_v19  ;;  %v101_v19 = vld [vmem:[%s2459_s0 + $0x2b0] sm:$0xff] }
  0x5b   :  { %v213_v34 = vpack.c.bf16 %v108_v29, %v101_v19  ;;  %v241_v19 = vpack.c.bf16 %v164_v26, %v157_v10  ;;  %v240_v29 = vpack.c.bf16 %v163_v27, %v156_v13 }
  0x5e   :  { %851 = vmatpush.bf16.msra.mxu0 %v1648_v22  ;;  %v1482_v22 = vld [vmem:[%s2457_s1 + $0x150] sm:$0xff] }
  0x5f   :  { %1041 = vmatpush.bf16.msrb.mxu1 %v1482_v22 }
  0x61   :  { %754 = vmatmul.bf16.gmra.mxu3 %v211_v32  ;;  %852 = vmatmul.bf16.vlgmr.msra.gmra.mxu0 %v171_v33  ;;  %v40_v32 = vld [vmem:[%s2459_s0 + $0xc8] sm:$0xff]  ;;  %v1980_v33 = vld [vmem:[%s2458_s2] ss:$0 sm:$0xff] }
  0x62   :  { %972 = vmatpush.bf16.msrb.mxu0 %v1479_v50  ;;  %v172_v50 = vpack.c.bf16 %v25_v42, %v18_v41 }
  0x63   :  { %882 = vmatmul.bf16.gmra.mxu2 %v213_v34  ;;  %818 = vmatmul.bf16.gmra.mxu1 %v212_v35  ;;  %v180_v34 = vpack.c.bf16 %v40_v32, %v33_v31  ;;  %v53_v31 = vld [vmem:[%s2459_s0 + $0x130] sm:$0xff] }
  0x64   :  { %1042 = vmatpush.bf16.msrb.mxu1 %v1481_v51  ;;  %v49_v32 = vld [vmem:[%s2459_s0 + $0x110] sm:$0xff] }
  0x66   :  { %973 = vmatpush.bf16.msrb.mxu0 %v1478_v52  ;;  %v175_v52 = vpack.c.bf16 %v28_v44, %v21_v43 }
  0x68   :  { %1043 = vmatpush.bf16.msrb.mxu1 %v1480_v6  ;;  %v39_v6 = vld [vmem:[%s2459_s0 + $0xc0] sm:$0xff] }
  0x6a   :  { %974 = vmatpush.bf16.msrb.mxu0 %v1477_v53 }
  0x6e   :  { %975 = vmatpush.bf16.msrb.mxu0 %v1476_v61 }
  0x71   :  { %759 = vmatmul.bf16.gmra.mxu3 %v218_v46  ;;  %857 = vmatmul.bf16.gmra.mxu0 %v178_v47  ;;  %v27_v46 = vld [vmem:[%s2459_s0 + $0x60] sm:$0xff] }
  0x72   :  { %976 = vmatpush.bf16.msrb.mxu0 %v1475_v3  ;;  %v174_v53 = vpack.c.bf16 %v27_v46, %v20_v45 }
  0x73   :  { %887 = vmatmul.bf16.gmra.mxu2 %v220_v48  ;;  %823 = vmatmul.bf16.gmra.mxu1 %v219_v49 }
  0x76   :  { %977 = vmatpush.bf16.msrb.mxu0 %v1474_v5  ;;  %v32_v5 = vld [vmem:[%s2459_s0 + $0x88] sm:$0xff] }
  0x7a   :  { %978 = vmatpush.bf16.msrb.mxu0 %v1473_v8  ;;  %v35_v8 = vld [vmem:[%s2459_s0 + $0xa0] sm:$0xff] }
  0x7e   :  { %979 = vmatpush.bf16.msrb.mxu0 %v1472_v7  ;;  %v182_v7 = vpack.c.bf16 %v42_v9, %v35_v8 }
  0x81   :  { %764 = vmatmul.bf16.gmra.mxu3 %v225_v60  ;;  %980 = vmatmul.bf16.vlgmr.msrb.gmra.mxu0 %v173_v23  ;;  %v68_v23 = vld [vmem:[%s2459_s0 + $0x1a8] sm:$0xff] }
  0x82   :  { %v194_v25 = vpack.c.bf16 %v68_v23, %v61_v21 }
  0x83   :  { %892 = vmatmul.bf16.gmra.mxu2 %v227_v62  ;;  %828 = vmatmul.bf16.gmra.mxu1 %v226_v63 }
  0x91   :  { %769 = vmatmul.bf16.gmra.mxu3 %v232_v4  ;;  %985 = vmatmul.bf16.gmra.mxu0 %v180_v34  ;;  %v179_v4 = vpack.c.bf16 %v39_v6, %v32_v5  ;;  %v56_v34 = vld [vmem:[%s2459_s0 + $0x148] sm:$0xff]  ;;  %v69_v5 = vld [vmem:[%s2459_s0 + $0x1b0] sm:$0xff] }
  0x92   :  { %v189_v43 = vpack.c.bf16 %v56_v34, %v49_v32  ;;  %v84_v32 = vld [vmem:[%s2459_s0 + $0x228] sm:$0xff] }
  0x93   :  { %897 = vmatmul.bf16.gmra.mxu2 %v234_v17  ;;  %833 = vmatmul.bf16.gmra.mxu1 %v233_v18  ;;  %v181_v17 = vpack.c.bf16 %v41_v12, %v34_v11  ;;  %v76_v34 = vld [vmem:[%s2459_s0 + $0x1e8] sm:$0xff] }
  0x9e   :  { %v1969_v16 = vpop.f32.mrf.mxu0 }
  0xa0   :  { %v799_v30 = vpop.f32.mrf.mxu1 }
  0xa1   :  { %774 = vmatmul.bf16.gmra.mxu3 %v239_v28  ;;  %990 = vmatmul.bf16.gmra.mxu0 %v187_v59 }
  0xa3   :  { %902 = vmatmul.bf16.gmra.mxu2 %v241_v19  ;;  %838 = vmatmul.bf16.gmra.mxu1 %v240_v29 }
  0xa4   :  { %v735_v35 = vpop.f32.mrf.mxu3 }
  0xa5   :  { %v736_v22 = vadd.f32 %v1980_v33, %v735_v35  ;;  %v48_v35 = vld [vmem:[%s2459_s0 + $0x108] sm:$0xff] }
  0xa6   :  { %v863_v36 = vpop.f32.mrf.mxu2  ;;  %v1983_v37 = vpop.f32.mrf.mxu0 }
  0xa7   :  { %v800_v38 = vadd.f32 %v799_v30, %v736_v22  ;;  %v46_v30 = vld [vmem:[%s2459_s0 + $0xf8] sm:$0xff]  ;;  %v55_v22 = vld [vmem:[%s2459_s0 + $0x140] sm:$0xff] }
  0xa8   :  { %v801_v39 = vpop.f32.mrf.mxu1  ;;  %v186_v42 = vpack.c.bf16 %v53_v31, %v46_v30  ;;  %v188_v44 = vpack.c.bf16 %v55_v22, %v48_v35  ;;  %v81_v30 = vld [vmem:[%s2459_s0 + $0x210] sm:$0xff]  ;;  %v83_v35 = vld [vmem:[%s2459_s0 + $0x220] sm:$0xff] }
  0xa9   :  { %v1985_v40 = vadd.f32 %v863_v36, %v800_v38  ;;  %v77_v31 = vld [vmem:[%s2459_s0 + $0x1f0] sm:$0xff] }
  0xac   :  { %v737_v47 = vpop.f32.mrf.mxu3 }
  0xad   :  { %v738_v48 = vadd.f32 %v1980_v33, %v737_v47  ;;  %v75_v47 = vld [vmem:[%s2459_s0 + $0x1e0] sm:$0xff] }
  0xae   :  { %v865_v49 = vpop.f32.mrf.mxu2  ;;  %v2006_v51 = vpop.f32.mrf.mxu0 }
  0xaf   :  { %v802_v54 = vadd.f32 %v801_v39, %v738_v48  ;;  %v82_v48 = vld [vmem:[%s2459_s0 + $0x218] sm:$0xff] }
  0xb0   :  { %v804_v55 = vpop.f32.mrf.mxu1 }
  0xb1   :  { %v2014_v58 = vadd.f32 %v865_v49, %v802_v54  ;;  %916 = vmatmul.bf16.vlgmr.msrb.gmra.mxu3 %v172_v50  ;;  %995 = vmatmul.bf16.gmra.mxu0 %v194_v25  ;;  %v201_v50 = vpack.c.bf16 %v82_v48, %v75_v47  ;;  %v110_v47 = vld [vmem:[%s2459_s0 + $0x2f8] sm:$0xff] }
  0xb3   :  { %1429 = vmatmul.msk.bf16.vlgmr.msrb.gmra.mxu2 %vm682_vm0, %v175_v52  ;;  %1044 = vmatmul.bf16.vlgmr.msrb.gmra.mxu1 %v174_v53 }
  0xb4   :  { %v740_v60 = vpop.f32.mrf.mxu3 }
  0xb5   :  { %v741_v61 = vadd.f32 %v1980_v33, %v740_v60  ;;  %v60_v60 = vld [vmem:[%s2459_s0 + $0x168] sm:$0xff] }
  0xb6   :  { %v868_v62 = vpop.f32.mrf.mxu2  ;;  %v2018_v2 = vpop.f32.mrf.mxu0 }
  0xb7   :  { %v805_v63 = vadd.f32 %v804_v55, %v741_v61  ;;  %v67_v61 = vld [vmem:[%s2459_s0 + $0x1a0] sm:$0xff] }
  0xb8   :  { %v806_v0 = vpop.f32.mrf.mxu1  ;;  %v193_v11 = vpack.c.bf16 %v67_v61, %v60_v60 }
  0xb9   :  { %v2020_v3 = vadd.f32 %v868_v62, %v805_v63  ;;  %v63_v62 = vld [vmem:[%s2459_s0 + $0x180] sm:$0xff]  ;;  %v70_v63 = vld [vmem:[%s2459_s0 + $0x1b8] sm:$0xff] }
  0xba   :  { %v196_v12 = vpack.c.bf16 %v70_v63, %v63_v62  ;;  %v88_v62 = vld [vmem:[%s2459_s0 + $0x248] sm:$0xff]  ;;  %v95_v63 = vld [vmem:[%s2459_s0 + $0x280] sm:$0xff] }
  0xbc   :  { %v742_v1 = vpop.f32.mrf.mxu3 }
  0xbd   :  { %v743_v14 = vadd.f32 %v1980_v33, %v742_v1 }
  0xbe   :  { %v870_v15 = vpop.f32.mrf.mxu2  ;;  %v2049_v10 = vpop.f32.mrf.mxu0 }
  0xbf   :  { %v807_v18 = vadd.f32 %v806_v0, %v743_v14  ;;  %v62_v0 = vld [vmem:[%s2459_s0 + $0x178] sm:$0xff] }
  0xc0   :  { %v809_v20 = vpop.f32.mrf.mxu1  ;;  %v195_v1 = vpack.c.bf16 %v69_v5, %v62_v0  ;;  %v91_v0 = vld [vmem:[%s2459_s0 + $0x260] sm:$0xff]  ;;  %v98_v5 = vld [vmem:[%s2459_s0 + $0x298] sm:$0xff] }
  0xc1   :  { %v2047_v24 = vadd.f32 %v870_v15, %v807_v18  ;;  %921 = vmatmul.bf16.gmra.mxu3 %v179_v4  ;;  %1000 = vmatmul.bf16.gmra.mxu0 %v201_v50  ;;  %v89_v4 = vld [vmem:[%s2459_s0 + $0x250] sm:$0xff] }
  0xc3   :  { %1430 = vmatmul.msk.bf16.gmra.mxu2 %vm682_vm0, %v182_v7  ;;  %1049 = vmatmul.bf16.gmra.mxu1 %v181_v17  ;;  %v96_v17 = vld [vmem:[%s2459_s0 + $0x288] sm:$0xff] }
  0xc4   :  { %v745_v26 = vpop.f32.mrf.mxu3 }
  0xc5   :  { %v746_v13 = vadd.f32 %v1980_v33, %v745_v26 }
  0xc6   :  { %v873_v27 = vpop.f32.mrf.mxu2  ;;  %v2073_v36 = vpop.f32.mrf.mxu0 }
  0xc7   :  { %v810_v28 = vadd.f32 %v809_v20, %v746_v13  ;;  %v208_v20 = vpack.c.bf16 %v96_v17, %v89_v4 }
  0xc8   :  { %v811_v19 = vpop.f32.mrf.mxu1 }
  0xc9   :  { %v2053_v29 = vadd.f32 %v873_v27, %v810_v28 }
  0xcc   :  { %v747_v38 = vpop.f32.mrf.mxu3 }
  0xcd   :  { %v748_v39 = vadd.f32 %v1980_v33, %v747_v38 }
  0xce   :  { %v875_v41 = vpop.f32.mrf.mxu2  ;;  %v2086_v55 = vpop.f32.mrf.mxu0 }
  0xcf   :  { %v812_v45 = vadd.f32 %v811_v19, %v748_v39  ;;  %v74_v19 = vld [vmem:[%s2459_s0 + $0x1d8] sm:$0xff] }
  0xd0   :  { %v814_v46 = vpop.f32.mrf.mxu1 }
  0xd1   :  { %v2082_v49 = vadd.f32 %v875_v41, %v812_v45  ;;  %926 = vmatmul.bf16.gmra.mxu3 %v186_v42  ;;  %1005 = vmatmul.bf16.gmra.mxu0 %v208_v20  ;;  %v200_v41 = vpack.c.bf16 %v81_v30, %v74_v19  ;;  %v203_v42 = vpack.c.bf16 %v84_v32, %v77_v31 }
  0xd3   :  { %1431 = vmatmul.msk.bf16.gmra.mxu2 %vm682_vm0, %v189_v43  ;;  %1054 = vmatmul.bf16.gmra.mxu1 %v188_v44  ;;  %v202_v43 = vpack.c.bf16 %v83_v35, %v76_v34 }
  0xd4   :  { %v750_v52 = vpop.f32.mrf.mxu3 }
  0xd5   :  { %v751_v53 = vadd.f32 %v1980_v33, %v750_v52 }
  0xd6   :  { %v878_v54 = vpop.f32.mrf.mxu2  ;;  %v2112_v7 = vpop.f32.mrf.mxu0 }
  0xd7   :  { %v815_v56 = vadd.f32 %v814_v46, %v751_v53  ;;  %v103_v46 = vld [vmem:[%s2459_s0 + $0x2c0] sm:$0xff] }
  0xd8   :  { %v816_v57 = vpop.f32.mrf.mxu1  ;;  %v215_v50 = vpack.c.bf16 %v110_v47, %v103_v46 }
  0xd9   :  { %v2088_v59 = vadd.f32 %v878_v54, %v815_v56 }
  0xdc   :  { %v752_v6 = vpop.f32.mrf.mxu3 }
  0xdd   :  { %v753_v8 = vadd.f32 %v1980_v33, %v752_v6  ;;  %v90_v6 = vld [vmem:[%s2459_s0 + $0x258] sm:$0xff] }
  0xde   :  { %v880_v9 = vpop.f32.mrf.mxu2  ;;  %v2123_v28 = vpop.f32.mrf.mxu0 }
  0xdf   :  { %v817_v14 = vadd.f32 %v816_v57, %v753_v8  ;;  %v97_v8 = vld [vmem:[%s2459_s0 + $0x290] sm:$0xff] }
  0xe0   :  { %v819_v15 = vpop.f32.mrf.mxu1  ;;  %v209_v4 = vpack.c.bf16 %v97_v8, %v90_v6 }
  0xe1   :  { %v2117_v18 = vadd.f32 %v880_v9, %v817_v14  ;;  %931 = vmatmul.bf16.gmra.mxu3 %v193_v11  ;;  %1010 = vmatmul.bf16.gmra.mxu0 %v215_v50 }
  0xe3   :  { %1432 = vmatmul.msk.bf16.gmra.mxu2 %vm682_vm0, %v196_v12  ;;  %1059 = vmatmul.bf16.gmra.mxu1 %v195_v1  ;;  %v207_v1 = vpack.c.bf16 %v95_v63, %v88_v62  ;;  %v138_v62 = vld [vmem:[%s2459_s0 + $0x3d8] sm:$0xff] }
  0xe4   :  { %v755_v21 = vpop.f32.mrf.mxu3 }
  0xe5   :  { %v756_v23 = vadd.f32 %v1980_v33, %v755_v21  ;;  %v117_v21 = vld [vmem:[%s2459_s0 + $0x330] sm:$0xff] }
  0xe6   :  { %v883_v25 = vpop.f32.mrf.mxu2  ;;  %v2153_v52 = vpop.f32.mrf.mxu0 }
  0xe7   :  { %v820_v26 = vadd.f32 %v819_v15, %v756_v23  ;;  %v210_v15 = vpack.c.bf16 %v98_v5, %v91_v0  ;;  %v124_v23 = vld [vmem:[%s2459_s0 + $0x368] sm:$0xff] }
  0xe8   :  { %v821_v13 = vpop.f32.mrf.mxu1 }
  0xe9   :  { %v2121_v27 = vadd.f32 %v883_v25, %v820_v26  ;;  %v222_v26 = vpack.c.bf16 %v124_v23, %v117_v21  ;;  %v118_v21 = vld [vmem:[%s2459_s0 + $0x338] sm:$0xff]  ;;  %v125_v23 = vld [vmem:[%s2459_s0 + $0x370] sm:$0xff] }
  0xec   :  { %v757_v22 = vpop.f32.mrf.mxu3 }
  0xed   :  { %v758_v38 = vadd.f32 %v1980_v33, %v757_v22  ;;  %v102_v22 = vld [vmem:[%s2459_s0 + $0x2b8] sm:$0xff] }
  0xee   :  { %v885_v39 = vpop.f32.mrf.mxu2  ;;  %v2177_v14 = vpop.f32.mrf.mxu0 }
  0xef   :  { %v822_v44 = vadd.f32 %v821_v13, %v758_v38  ;;  %v109_v38 = vld [vmem:[%s2459_s0 + $0x2f0] sm:$0xff] }
  0xf0   :  { %v824_v45 = vpop.f32.mrf.mxu1  ;;  %v214_v47 = vpack.c.bf16 %v109_v38, %v102_v22 }
  0xf1   :  { %v2150_v48 = vadd.f32 %v885_v39, %v822_v44  ;;  %936 = vmatmul.bf16.gmra.mxu3 %v200_v41  ;;  %1015 = vmatmul.bf16.gmra.mxu0 %v222_v26  ;;  %v105_v39 = vld [vmem:[%s2459_s0 + $0x2d0] sm:$0xff]  ;;  %v112_v41 = vld [vmem:[%s2459_s0 + $0x308] sm:$0xff] }
  0xf2   :  { %v217_v50 = vpack.c.bf16 %v112_v41, %v105_v39  ;;  %v145_v39 = vld [vmem:[%s2459_s0 + $0x410] sm:$0xff] }
  0xf3   :  { %1433 = vmatmul.msk.bf16.gmra.mxu2 %vm682_vm0, %v203_v42  ;;  %1064 = vmatmul.bf16.gmra.mxu1 %v202_v43  ;;  %v104_v42 = vld [vmem:[%s2459_s0 + $0x2c8] sm:$0xff]  ;;  %v111_v43 = vld [vmem:[%s2459_s0 + $0x300] sm:$0xff] }
  0xf4   :  { %v760_v53 = vpop.f32.mrf.mxu3 }
  0xf5   :  { %v761_v54 = vadd.f32 %v1980_v33, %v760_v53  ;;  %v216_v53 = vpack.c.bf16 %v111_v43, %v104_v42  ;;  %v152_v42 = vld [vmem:[%s2459_s0 + $0x448] sm:$0xff] }
  0xf6   :  { %v888_v56 = vpop.f32.mrf.mxu2  ;;  %v2189_v34 = vpop.f32.mrf.mxu0 }
  0xf7   :  { %v825_v57 = vadd.f32 %v824_v45, %v761_v54 }
  0xf8   :  { %v826_v60 = vpop.f32.mrf.mxu1 }
  0xf9   :  { %v2156_v61 = vadd.f32 %v888_v56, %v825_v57  ;;  %v131_v57 = vld [vmem:[%s2459_s0 + $0x3a0] sm:$0xff] }
  0xfa   :  { %v229_v0 = vpack.c.bf16 %v138_v62, %v131_v57  ;;  %v137_v57 = vld [vmem:[%s2459_s0 + $0x3d0] sm:$0xff] }
  0xfb   :  { %v133_v62 = vld [vmem:[%s2459_s0 + $0x3b0] sm:$0xff] }
  0xfc   :  { %v762_v9 = vpop.f32.mrf.mxu3 }
  0xfd   :  { %v763_v11 = vadd.f32 %v1980_v33, %v762_v9 }
  0xfe   :  { %v890_v12 = vpop.f32.mrf.mxu2 }
  0xff   :  { %v827_v17 = vadd.f32 %v826_v60, %v763_v11  ;;  %v2215_v60 = vpop.f32.mrf.mxu0 }
 0x100   :  { %v829_v20 = vpop.f32.mrf.mxu1 }
 0x101   :  { %v2185_v25 = vadd.f32 %v890_v12, %v827_v17  ;;  %941 = vmatmul.bf16.gmra.mxu3 %v207_v1  ;;  %1020 = vmatmul.bf16.gmra.mxu0 %v229_v0  ;;  %v119_v17 = vld [vmem:[%s2459_s0 + $0x340] sm:$0xff] }
 0x103   :  { %1434 = vmatmul.msk.bf16.gmra.mxu2 %vm682_vm0, %v210_v15  ;;  %1069 = vmatmul.bf16.gmra.mxu1 %v209_v4  ;;  %v116_v15 = vld [vmem:[%s2459_s0 + $0x328] sm:$0xff]  ;;  %v123_v4 = vld [vmem:[%s2459_s0 + $0x360] sm:$0xff] }
 0x104   :  { %v765_v13 = vpop.f32.mrf.mxu3 }
 0x105   :  { %v766_v19 = vadd.f32 %v1980_v33, %v765_v13 }
 0x106   :  { %v893_v30 = vpop.f32.mrf.mxu2 }
 0x107   :  { %v830_v31 = vadd.f32 %v829_v20, %v766_v19  ;;  %v2224_v12 = vpop.f32.mrf.mxu0  ;;  %v126_v20 = vld [vmem:[%s2459_s0 + $0x378] sm:$0xff] }
 0x108   :  { %v831_v32 = vpop.f32.mrf.mxu1 }
 0x109   :  { %v2191_v35 = vadd.f32 %v893_v30, %v830_v31  ;;  %v221_v30 = vpack.c.bf16 %v123_v4, %v116_v15  ;;  %v224_v31 = vpack.c.bf16 %v126_v20, %v119_v17 }
 0x10c   :  { %v767_v44 = vpop.f32.mrf.mxu3 }
 0x10d   :  { %v768_v45 = vadd.f32 %v1980_v33, %v767_v44  ;;  %v236_v44 = vpack.c.bf16 %v152_v42, %v145_v39  ;;  %v728_v39 = vadd.f32 %v1980_v33, %v1983_v37  ;;  %v147_v37 = vld [vmem:[%s2459_s0 + $0x420] sm:$0xff] }
 0x10e   :  { %v895_v46 = vpop.f32.mrf.mxu2 }
 0x10f   :  { %v832_v54 = vadd.f32 %v831_v32, %v768_v45  ;;  %v223_v32 = vpack.c.bf16 %v125_v23, %v118_v21  ;;  %v2250_v41 = vpop.f32.mrf.mxu0 }
 0x110   :  { %v834_v56 = vpop.f32.mrf.mxu1 }
 0x111   :  { %v2220_v63 = vadd.f32 %v895_v46, %v832_v54  ;;  %946 = vmatmul.bf16.gmra.mxu3 %v214_v47  ;;  %1025 = vmatmul.bf16.gmra.mxu0 %v236_v44 }
 0x113   :  { %1435 = vmatmul.msk.bf16.gmra.mxu2 %vm682_vm0, %v217_v50  ;;  %1074 = vmatmul.bf16.gmra.mxu1 %v216_v53 }
 0x114   :  { %v770_v5 = vpop.f32.mrf.mxu3 }
 0x115   :  { %v771_v6 = vadd.f32 %v1980_v33, %v770_v5  ;;  %v140_v5 = vld [vmem:[%s2459_s0 + $0x3e8] sm:$0xff] }
 0x116   :  { %v898_v8 = vpop.f32.mrf.mxu2  ;;  %v231_v20 = vpack.c.bf16 %v140_v5, %v133_v62  ;;  %v731_v5 = vadd.f32 %v1980_v33, %v2006_v51 }
 0x117   :  { %v835_v9 = vadd.f32 %v834_v56, %v771_v6  ;;  %v130_v56 = vld [vmem:[%s2459_s0 + $0x398] sm:$0xff]  ;;  %v2270_v0 = vpop.f32.mrf.mxu0  ;;  %v132_v6 = vld [vmem:[%s2459_s0 + $0x3a8] sm:$0xff] }
 0x118   :  { %v836_v11 = vpop.f32.mrf.mxu1  ;;  %v228_v17 = vpack.c.bf16 %v137_v57, %v130_v56  ;;  %v153_v57 = vld [vmem:[%s2459_s0 + $0x450] sm:$0xff] }
 0x119   :  { %v2226_v1 = vadd.f32 %v898_v8, %v835_v9  ;;  %v139_v8 = vld [vmem:[%s2459_s0 + $0x3e0] sm:$0xff] }
 0x11a   :  { %v230_v21 = vpack.c.bf16 %v139_v8, %v132_v6 }
 0x11c   :  { %v772_v26 = vpop.f32.mrf.mxu3 }
 0x11d   :  { %v773_v13 = vadd.f32 %v1980_v33, %v772_v26 }
 0x11e   :  { %v900_v19 = vpop.f32.mrf.mxu2 }
 0x11f   :  { %v837_v22 = vadd.f32 %v836_v11, %v773_v13  ;;  %v726_v11 = vadd.f32 %v1980_v33, %v1969_v16  ;;  %v159_v13 = vld [vmem:[%s2459_s0 + $0x480] sm:$0xff] }
 0x120   :  { %v839_v38 = vpop.f32.mrf.mxu1 }
 0x121   :  { %v2255_v43 = vadd.f32 %v900_v19, %v837_v22  ;;  %951 = vmatmul.bf16.gmra.mxu3 %v221_v30  ;;  %v166_v19 = vld [vmem:[%s2459_s0 + $0x4b8] sm:$0xf]  ;;  %v790_v30 = vadd.f32 %v2049_v10, %v726_v11 }
 0x122   :  { %v243_v16 = vpack.c.bf16 %v166_v19, %v159_v13  ;;  %v733_v19 = vadd.f32 %v1980_v33, %v2018_v2  ;;  %v161_v2 = vld [vmem:[%s2459_s0 + $0x490] sm:$0xff] }
 0x123   :  { %1436 = vmatmul.msk.bf16.gmra.mxu2 %vm682_vm0, %v224_v31  ;;  %1079 = vmatmul.bf16.gmra.mxu1 %v223_v32  ;;  %v854_v32 = vadd.f32 %v2123_v28, %v790_v30  ;;  %v151_v28 = vld [vmem:[%s2459_s0 + $0x440] sm:$0xff] }
 0x124   :  { %v775_v45 = vpop.f32.mrf.mxu3  ;;  %1030 = vmatmul.bf16.gmra.mxu0 %v243_v16 }
 0x125   :  { %v776_v46 = vadd.f32 %v1980_v33, %v775_v45 }
 0x126   :  { %v903_v47 = vpop.f32.mrf.mxu2 }
 0x127   :  { %v840_v50 = vadd.f32 %v839_v38, %v776_v46  ;;  %v2295_v38 = vpop.f32.mrf.mxu0  ;;  %v792_v46 = vadd.f32 %v2073_v36, %v728_v39  ;;  %v154_v36 = vld [vmem:[%s2459_s0 + $0x458] sm:$0xff]  ;;  %v797_v39 = vadd.f32 %v2112_v7, %v733_v19  ;;  %v168_v7 = vld [vmem:[%s2459_s0 + $0x4c8] sm:$0xf] }
 0x128   :  { %v841_v53 = vpop.f32.mrf.mxu1  ;;  %v238_v11 = vpack.c.bf16 %v154_v36, %v147_v37 }
 0x129   :  { %v2259_v54 = vadd.f32 %v903_v47, %v840_v50  ;;  %v144_v50 = vld [vmem:[%s2459_s0 + $0x408] sm:$0xff] }
 0x12c   :  { %v777_v9 = vpop.f32.mrf.mxu3 }
 0x12d   :  { %v778_v15 = vadd.f32 %v1980_v33, %v777_v9  ;;  %v235_v9 = vpack.c.bf16 %v151_v28, %v144_v50  ;;  %v165_v33 = vld [vmem:[%s2459_s0 + $0x4b0] sm:$0xf] }
 0x12e   :  { %v905_v4 = vpop.f32.mrf.mxu2 }
 0x12f   :  { %v842_v23 = vadd.f32 %v841_v53, %v778_v15  ;;  %v856_v53 = vadd.f32 %v2153_v52, %v792_v46 }
 0x130   :  { %v1045_v26 = vpop.f32.mrf.mxu1 }
 0x131   :  { %v2291_v31 = vadd.f32 %v905_v4, %v842_v23  ;;  %956 = vmatmul.bf16.gmra.mxu3 %v228_v17  ;;  %v993_v4 = vpop.f32.mrf.mxu0 }
 0x133   :  { %1437 = vmatmul.msk.bf16.gmra.mxu2 %vm682_vm0, %v231_v20  ;;  %1084 = vmatmul.bf16.gmra.mxu1 %v230_v21  ;;  %v795_v21 = vadd.f32 %v2086_v55, %v731_v5 }
 0x134   :  { %v917_v22 = vpop.f32.mrf.mxu3 }
 0x135   :  { %v918_v42 = vadd.f32 %v917_v22, %v854_v32  ;;  %v859_v51 = vadd.f32 %v2177_v14, %v795_v21 }
 0x136   :  { %v1109_v44 = vpop.f32.mrf.mxu2 }
 0x137   :  { %v982_v10 = vadd.f32 %v2215_v60, %v918_v42  ;;  %v146_v60 = vld [vmem:[%s2459_s0 + $0x418] sm:$0xff] }
 0x138   :  { %v1047_v45 = vpop.f32.mrf.mxu1  ;;  %v237_v15 = vpack.c.bf16 %v153_v57, %v146_v60  ;;  %v158_v42 = vld [vmem:[%s2459_s0 + $0x478] sm:$0xff] }
 0x139   :  { %v1046_v47 = vadd.f32 %v1045_v26, %v982_v10  ;;  %v996_v22 = vpop.f32.mrf.mxu0  ;;  %v160_v10 = vld [vmem:[%s2459_s0 + $0x488] sm:$0xff]  ;;  %v242_v37 = vpack.c.bf16 %v165_v33, %v158_v42 }
 0x13b   :  { %v1110_v56 = vadd.f32 %v1109_v44, %v1046_v47  ;;  %v861_v44 = vadd.f32 %v2189_v34, %v797_v39 }
 0x13c   :  { %v919_v62 = vpop.f32.mrf.mxu3 }
 0x13d   :  { %v1164_v6 = vmax.f32 %v1110_v56, 0.0  ;;  %v920_v8 = vadd.f32 %v919_v62, %v856_v53  ;;  %v245_v53 = vpack.c.bf16 %v168_v7, %v161_v2 }
 0x13e   :  { %v1111_v52 = vpop.f32.mrf.mxu2 }
 0x13f   :  { %1186 = vst.msk [vmem:[%s2460_s3] sm:$0xff] %vm682_vm0, %v1164_v6  ;;  %v984_v17 = vadd.f32 %v2224_v12, %v920_v8 }
 0x140   :  { %v1050_v20 = vpop.f32.mrf.mxu1 }
 0x141   :  { %v1048_v23 = vadd.f32 %v1047_v45, %v984_v17  ;;  %961 = vmatmul.bf16.gmra.mxu3 %v235_v9  ;;  %v167_v45 = vld [vmem:[%s2459_s0 + $0x4c0] sm:$0xf]  ;;  %v998_v57 = vpop.f32.mrf.mxu0 }
 0x142   :  { %v244_v34 = vpack.c.bf16 %v167_v45, %v160_v10 }
 0x143   :  { %1438 = vmatmul.msk.bf16.gmra.mxu2 %vm682_vm0, %v238_v11  ;;  %1089 = vmatmul.bf16.gmra.mxu1 %v237_v15  ;;  %v1112_v26 = vadd.f32 %v1111_v52, %v1048_v23 }
 0x144   :  { %v922_v13 = vpop.f32.mrf.mxu3 }
 0x145   :  { %v1165_v30 = vmax.f32 %v1112_v26, 0.0  ;;  %v923_v16 = vadd.f32 %v922_v13, %v859_v51 }
 0x146   :  { %v1114_v32 = vpop.f32.mrf.mxu2 }
 0x147   :  { %1187 = vst.msk [vmem:[%s2460_s3 + $0x8] sm:$0xff] %vm682_vm0, %v1165_v30  ;;  %v987_v55 = vadd.f32 %v2250_v41, %v923_v16 }
 0x148   :  { %v1052_v12 = vpop.f32.mrf.mxu1 }
 0x149   :  { %v1051_v14 = vadd.f32 %v1050_v20, %v987_v55  ;;  %v1001_v20 = vpop.f32.mrf.mxu0 }
 0x14b   :  { %v1115_v41 = vadd.f32 %v1114_v32, %v1051_v14 }
 0x14c   :  { %v924_v46 = vpop.f32.mrf.mxu3 }
 0x14d   :  { %v1166_v47 = vmax.f32 %v1115_v41, 0.0  ;;  %v925_v50 = vadd.f32 %v924_v46, %v861_v44 }
 0x14e   :  { %v1116_v28 = vpop.f32.mrf.mxu2 }
 0x14f   :  { %1188 = vst.msk [vmem:[%s2460_s3 + $0x10] sm:$0xff] %vm682_vm0, %v1166_v47  ;;  %v989_v56 = vadd.f32 %v2270_v0, %v925_v50 }
 0x150   :  { %v1055_v36 = vpop.f32.mrf.mxu1 }
 0x151   :  { %v1053_v60 = vadd.f32 %v1052_v12, %v989_v56  ;;  %966 = vmatmul.bf16.gmra.mxu3 %v242_v37  ;;  %v1003_v55 = vpop.f32.mrf.mxu0 }
 0x153   :  { %1439 = vmatmul.msk.bf16.gmra.mxu2 %vm682_vm0, %v245_v53  ;;  %1094 = vmatmul.bf16.gmra.mxu1 %v244_v34  ;;  %v1117_v62 = vadd.f32 %v1116_v28, %v1053_v60 }
 0x154   :  { %v927_v5 = vpop.f32.mrf.mxu3 }
 0x155   :  { %v1167_v6 = vmax.f32 %v1117_v62, 0.0  ;;  %v928_v8 = vadd.f32 %v927_v5, %v1985_v40 }
 0x156   :  { %v1119_v52 = vpop.f32.mrf.mxu2 }
 0x157   :  { %1189 = vst.msk [vmem:[%s2460_s3 + $0x18] sm:$0xff] %vm682_vm0, %v1167_v6  ;;  %v992_v0 = vadd.f32 %v2295_v38, %v928_v8 }
 0x158   :  { %v1057_v9 = vpop.f32.mrf.mxu1 }
 0x159   :  { %v1056_v11 = vadd.f32 %v1055_v36, %v992_v0  ;;  %v1006_v41 = vpop.f32.mrf.mxu0 }
 0x15b   :  { %v1120_v15 = vadd.f32 %v1119_v52, %v1056_v11 }
 0x15c   :  { %v929_v17 = vpop.f32.mrf.mxu3 }
 0x15d   :  { %v1168_v21 = vmax.f32 %v1120_v15, 0.0  ;;  %v930_v23 = vadd.f32 %v929_v17, %v2014_v58 }
 0x15e   :  { %v1121_v51 = vpop.f32.mrf.mxu2 }
 0x15f   :  { %1190 = vst.msk [vmem:[%s2460_s3 + $0x20] sm:$0xff] %vm682_vm0, %v1168_v21  ;;  %v994_v40 = vadd.f32 %v993_v4, %v930_v23 }
 0x160   :  { %v1060_v26 = vpop.f32.mrf.mxu1 }
 0x161   :  { %v1058_v13 = vadd.f32 %v1057_v9, %v994_v40  ;;  %v1008_v37 = vpop.f32.mrf.mxu0 }
 0x163   :  { %v1122_v19 = vadd.f32 %v1121_v51, %v1058_v13 }
 0x164   :  { %v932_v30 = vpop.f32.mrf.mxu3 }
 0x165   :  { %v1169_v38 = vmax.f32 %v1122_v19, 0.0  ;;  %v933_v16 = vadd.f32 %v932_v30, %v2020_v3 }
 0x166   :  { %v1124_v32 = vpop.f32.mrf.mxu2 }
 0x167   :  { %1191 = vst.msk [vmem:[%s2460_s3 + $0x28] sm:$0xff] %vm682_vm0, %v1169_v38  ;;  %v997_v58 = vadd.f32 %v996_v22, %v933_v16 }
 0x168   :  { %v1062_v12 = vpop.f32.mrf.mxu1 }
 0x169   :  { %v1061_v39 = vadd.f32 %v1060_v26, %v997_v58  ;;  %v1011_v8 = vpop.f32.mrf.mxu0 }
 0x16b   :  { %v1125_v14 = vadd.f32 %v1124_v32, %v1061_v39 }
 0x16c   :  { %v934_v42 = vpop.f32.mrf.mxu3 }
 0x16d   :  { %v1170_v4 = vmax.f32 %v1125_v14, 0.0  ;;  %v935_v33 = vadd.f32 %v934_v42, %v2047_v24 }
 0x16e   :  { %v1126_v2 = vpop.f32.mrf.mxu2 }
 0x16f   :  { %1192 = vst.msk [vmem:[%s2460_s3 + $0x30] sm:$0xff] %vm682_vm0, %v1170_v4  ;;  %v999_v3 = vadd.f32 %v998_v57, %v935_v33 }
 0x170   :  { %v1065_v44 = vpop.f32.mrf.mxu1 }
 0x171   :  { %v1063_v7 = vadd.f32 %v1062_v12, %v999_v3  ;;  %v1013_v40 = vpop.f32.mrf.mxu0 }
 0x173   :  { %v1127_v10 = vadd.f32 %v1126_v2, %v1063_v7 }
 0x174   :  { %v937_v45 = vpop.f32.mrf.mxu3 }
 0x175   :  { %v1171_v22 = vmax.f32 %v1127_v10, 0.0  ;;  %v938_v46 = vadd.f32 %v937_v45, %v2053_v29 }
 0x176   :  { %v1129_v47 = vpop.f32.mrf.mxu2 }
 0x177   :  { %1193 = vst.msk [vmem:[%s2460_s3 + $0x38] sm:$0xff] %vm682_vm0, %v1171_v22  ;;  %v1002_v24 = vadd.f32 %v1001_v20, %v938_v46 }
 0x178   :  { %v1067_v50 = vpop.f32.mrf.mxu1 }
 0x179   :  { %v1066_v28 = vadd.f32 %v1065_v44, %v1002_v24  ;;  %v1016_v58 = vpop.f32.mrf.mxu0 }
 0x17b   :  { %v1130_v53 = vadd.f32 %v1129_v47, %v1066_v28 }
 0x17c   :  { %v939_v34 = vpop.f32.mrf.mxu3 }
 0x17d   :  { %v1172_v56 = vmax.f32 %v1130_v53, 0.0  ;;  %v940_v36 = vadd.f32 %v939_v34, %v2082_v49 }
 0x17e   :  { %v1131_v60 = vpop.f32.mrf.mxu2 }
 0x17f   :  { %1194 = vst.msk [vmem:[%s2460_s3 + $0x40] sm:$0xff] %vm682_vm0, %v1172_v56  ;;  %v1004_v29 = vadd.f32 %v1003_v55, %v940_v36 }
 0x180   :  { %v1070_v57 = vpop.f32.mrf.mxu1 }
 0x181   :  { %v1068_v62 = vadd.f32 %v1067_v50, %v1004_v29  ;;  %v1018_v44 = vpop.f32.mrf.mxu0 }
 0x183   :  { %v1132_v5 = vadd.f32 %v1131_v60, %v1068_v62 }
 0x184   :  { %v942_v6 = vpop.f32.mrf.mxu3 }
 0x185   :  { %v1173_v52 = vmax.f32 %v1132_v5, 0.0  ;;  %v943_v0 = vadd.f32 %v942_v6, %v2088_v59 }
 0x186   :  { %v1134_v9 = vpop.f32.mrf.mxu2 }
 0x187   :  { %1195 = vst.msk [vmem:[%s2460_s3 + $0x48] sm:$0xff] %vm682_vm0, %v1173_v52  ;;  %v1007_v49 = vadd.f32 %v1006_v41, %v943_v0 }
 0x188   :  { %v1072_v11 = vpop.f32.mrf.mxu1 }
 0x189   :  { %v1071_v15 = vadd.f32 %v1070_v57, %v1007_v49  ;;  %v1021_v28 = vpop.f32.mrf.mxu0 }
 0x18b   :  { %v1135_v17 = vadd.f32 %v1134_v9, %v1071_v15 }
 0x18c   :  { %v944_v20 = vpop.f32.mrf.mxu3 }
 0x18d   :  { %v1174_v21 = vmax.f32 %v1135_v17, 0.0  ;;  %v945_v23 = vadd.f32 %v944_v20, %v2117_v18 }
 0x18e   :  { %v1136_v51 = vpop.f32.mrf.mxu2 }
 0x18f   :  { %1196 = vst.msk [vmem:[%s2460_s3 + $0x50] sm:$0xff] %vm682_vm0, %v1174_v21  ;;  %v1009_v59 = vadd.f32 %v1008_v37, %v945_v23 }
 0x190   :  { %v1075_v26 = vpop.f32.mrf.mxu1 }
 0x191   :  { %v1073_v13 = vadd.f32 %v1072_v11, %v1009_v59  ;;  %v1023_v6 = vpop.f32.mrf.mxu0 }
 0x193   :  { %v1137_v19 = vadd.f32 %v1136_v51, %v1073_v13 }
 0x194   :  { %v947_v30 = vpop.f32.mrf.mxu3 }
 0x195   :  { %v1175_v38 = vmax.f32 %v1137_v19, 0.0  ;;  %v948_v16 = vadd.f32 %v947_v30, %v2121_v27 }
 0x196   :  { %v1139_v32 = vpop.f32.mrf.mxu2 }
 0x197   :  { %1197 = vst.msk [vmem:[%s2460_s3 + $0x58] sm:$0xff] %vm682_vm0, %v1175_v38  ;;  %v1012_v18 = vadd.f32 %v1011_v8, %v948_v16 }
 0x198   :  { %v1077_v55 = vpop.f32.mrf.mxu1 }
 0x199   :  { %v1076_v12 = vadd.f32 %v1075_v26, %v1012_v18  ;;  %v1026_v17 = vpop.f32.mrf.mxu0 }
 0x19b   :  { %v1140_v39 = vadd.f32 %v1139_v32, %v1076_v12 }
 0x19c   :  { %v949_v14 = vpop.f32.mrf.mxu3 }
 0x19d   :  { %v1176_v42 = vmax.f32 %v1140_v39, 0.0  ;;  %v950_v4 = vadd.f32 %v949_v14, %v2150_v48 }
 0x19e   :  { %v1141_v33 = vpop.f32.mrf.mxu2 }
 0x19f   :  { %1198 = vst.msk [vmem:[%s2460_s3 + $0x60] sm:$0xff] %vm682_vm0, %v1176_v42  ;;  %v1014_v27 = vadd.f32 %v1013_v40, %v950_v4 }
 0x1a0   :  { %v1080_v2 = vpop.f32.mrf.mxu1 }
 0x1a1   :  { %v1078_v3 = vadd.f32 %v1077_v55, %v1014_v27  ;;  %v1028_v19 = vpop.f32.mrf.mxu0 }
 0x1a3   :  { %v1142_v41 = vadd.f32 %v1141_v33, %v1078_v3 }
 0x1a4   :  { %v952_v7 = vpop.f32.mrf.mxu3 }
 0x1a5   :  { %v1177_v10 = vmax.f32 %v1142_v41, 0.0  ;;  %v953_v45 = vadd.f32 %v952_v7, %v2156_v61 }
 0x1a6   :  { %v1144_v22 = vpop.f32.mrf.mxu2 }
 0x1a7   :  { %1199 = vst.msk [vmem:[%s2460_s3 + $0x68] sm:$0xff] %vm682_vm0, %v1177_v10  ;;  %v1017_v48 = vadd.f32 %v1016_v58, %v953_v45 }
 0x1a8   :  { %v1082_v46 = vpop.f32.mrf.mxu1 }
 0x1a9   :  { %v1081_v47 = vadd.f32 %v1080_v2, %v1017_v48  ;;  %v1031_v39 = vpop.f32.mrf.mxu0 }
 0x1ab   :  { %v1145_v24 = vadd.f32 %v1144_v22, %v1081_v47 }
 0x1ac   :  { %v954_v50 = vpop.f32.mrf.mxu3 }
 0x1ad   :  { %v1178_v37 = vmax.f32 %v1145_v24, 0.0  ;;  %v955_v53 = vadd.f32 %v954_v50, %v2185_v25 }
 0x1ae   :  { %v1146_v34 = vpop.f32.mrf.mxu2 }
 0x1af   :  { %1200 = vst.msk [vmem:[%s2460_s3 + $0x70] sm:$0xff] %vm682_vm0, %v1178_v37  ;;  %v1019_v61 = vadd.f32 %v1018_v44, %v955_v53 }
 0x1b0   :  { %v1085_v56 = vpop.f32.mrf.mxu1 }
 0x1b1   :  { %v1083_v36 = vadd.f32 %v1082_v46, %v1019_v61  ;;  %v1033_v10 = vpop.f32.mrf.mxu0 }
 0x1b3   :  { %v1147_v60 = vadd.f32 %v1146_v34, %v1083_v36 }
 0x1b4   :  { %v957_v29 = vpop.f32.mrf.mxu3 }
 0x1b5   :  { %v1179_v57 = vmax.f32 %v1147_v60, 0.0  ;;  %v958_v62 = vadd.f32 %v957_v29, %v2191_v35 }
 0x1b6   :  { %v1149_v5 = vpop.f32.mrf.mxu2 }
 0x1b7   :  { %1201 = vst.msk [vmem:[%s2460_s3 + $0x78] sm:$0xff] %vm682_vm0, %v1179_v57  ;;  %v1022_v25 = vadd.f32 %v1021_v28, %v958_v62 }
 0x1b8   :  { %v1087_v8 = vpop.f32.mrf.mxu1 }
 0x1b9   :  { %v1086_v52 = vadd.f32 %v1085_v56, %v1022_v25 }
 0x1bb   :  { %v1150_v0 = vadd.f32 %v1149_v5, %v1086_v52 }
 0x1bc   :  { %v959_v9 = vpop.f32.mrf.mxu3 }
 0x1bd   :  { %v1180_v49 = vmax.f32 %v1150_v0, 0.0  ;;  %v960_v11 = vadd.f32 %v959_v9, %v2220_v63 }
 0x1be   :  { %v1151_v15 = vpop.f32.mrf.mxu2 }
 0x1bf   :  { %1202 = vst.msk [vmem:[%s2460_s3 + $0x80] sm:$0xff] %vm682_vm0, %v1180_v49  ;;  %v1024_v35 = vadd.f32 %v1023_v6, %v960_v11 }
 0x1c0   :  { %v1090_v21 = vpop.f32.mrf.mxu1 }
 0x1c1   :  { %v1088_v20 = vadd.f32 %v1087_v8, %v1024_v35 }
 0x1c3   :  { %v1152_v23 = vadd.f32 %v1151_v15, %v1088_v20 }
 0x1c4   :  { %v962_v51 = vpop.f32.mrf.mxu3 }
 0x1c5   :  { %v1181_v40 = vmax.f32 %v1152_v23, 0.0  ;;  %v963_v59 = vadd.f32 %v962_v51, %v2226_v1 }
 0x1c6   :  { %v1154_v26 = vpop.f32.mrf.mxu2 }
 0x1c7   :  { %1203 = vst.msk [vmem:[%s2460_s3 + $0x88] sm:$0xff] %vm682_vm0, %v1181_v40  ;;  %v1027_v63 = vadd.f32 %v1026_v17, %v963_v59 }
 0x1c8   :  { %v1092_v38 = vpop.f32.mrf.mxu1 }
 0x1c9   :  { %v1091_v13 = vadd.f32 %v1090_v21, %v1027_v63 }
 0x1cb   :  { %v1155_v30 = vadd.f32 %v1154_v26, %v1091_v13 }
 0x1cc   :  { %v964_v16 = vpop.f32.mrf.mxu3 }
 0x1cd   :  { %v1182_v32 = vmax.f32 %v1155_v30, 0.0  ;;  %v965_v18 = vadd.f32 %v964_v16, %v2255_v43 }
 0x1ce   :  { %v1156_v55 = vpop.f32.mrf.mxu2 }
 0x1cf   :  { %1204 = vst.msk [vmem:[%s2460_s3 + $0x90] sm:$0xff] %vm682_vm0, %v1182_v32  ;;  %v1029_v1 = vadd.f32 %v1028_v19, %v965_v18 }
 0x1d0   :  { %v1095_v33 = vpop.f32.mrf.mxu1 }
 0x1d1   :  { %v1093_v58 = vadd.f32 %v1092_v38, %v1029_v1 }
 0x1d3   :  { %v1157_v12 = vadd.f32 %v1156_v55, %v1093_v58 }
 0x1d4   :  { %v967_v14 = vpop.f32.mrf.mxu3 }
 0x1d5   :  { %v1183_v42 = vmax.f32 %v1157_v12, 0.0  ;;  %v968_v4 = vadd.f32 %v967_v14, %v2259_v54 }
 0x1d6   :  { %v1159_v27 = vpop.f32.mrf.mxu2 }
 0x1d7   :  { %1205 = vst.msk [vmem:[%s2460_s3 + $0x98] sm:$0xff] %vm682_vm0, %v1183_v42  ;;  %v1032_v43 = vadd.f32 %v1031_v39, %v968_v4 }
 0x1d8   :  { %v1097_v45 = vpop.f32.mrf.mxu1 }
 0x1d9   :  { %v1096_v2 = vadd.f32 %v1095_v33, %v1032_v43 }
 0x1db   :  { %v1160_v3 = vadd.f32 %v1159_v27, %v1096_v2 }
 0x1dc   :  { %v969_v44 = vpop.f32.mrf.mxu3 }
 0x1dd   :  { %v1184_v41 = vmax.f32 %v1160_v3, 0.0  ;;  %v970_v7 = vadd.f32 %v969_v44, %v2291_v31 }
 0x1de   :  { %v1161_v48 = vpop.f32.mrf.mxu2 }
 0x1df   :  { %1206 = vst.msk [vmem:[%s2460_s3 + $0xa0] sm:$0xff] %vm682_vm0, %v1184_v41  ;;  %v1034_v54 = vadd.f32 %v1033_v10, %v970_v7 }
 0x1e1   :  { %v1098_v22 = vadd.f32 %v1097_v45, %v1034_v54 }
 0x1e3   :  { %v1162_v46 = vadd.f32 %v1161_v48, %v1098_v22 }
 0x1e5   :  { %v1185_v47 = vmax.f32 %v1162_v46, 0.0 }
 0x1e7   :  { %1208 = vst.msk [vmem:[%s2460_s3 + $0xa8] sm:$0xf] %vm1207_vm1, %v1185_v47 }

// kernel: fcos_forward.35
= control target key start
LH: loop header
LB: loop body
LE: loop exit
PB: predicated region body
PF: predicated region fallthrough
CT: control target
= control target key end

     0   :  { %vm682_vm0 = vcmask 785408   ;;  %vm1164_vm1 = vcmask 80896   ;;  %vm1186_vm2 = vcmask 76800   ;;  %s2436_s1 = inlined_call_operand.vmem [shape: bf16[864,10], index: 1, kind: input, shape index: {}]   ;;  %s2437_s2 = inlined_call_operand.vmem [shape: f32[1,10], index: 2, kind: input, shape index: {}]   ;;  %s2438_s0 = inlined_call_operand.vmem [shape: f32[172,864], index: 0, kind: input, shape index: {}]   ;;  %s2439_s3 = inlined_call_operand.vmem [shape: f32[172,10], index: 3, kind: output, shape index: {}]  }
   0x1   :  { %v1426_v0 = vld [vmem:[%s2436_s1 + $0x38] sm:$0xff]  ;;  %v1425_v3 = vld [vmem:[%s2436_s1 + $0x30] sm:$0xff]  ;;  %v1424_v6 = vld [vmem:[%s2436_s1 + $0x28] sm:$0xff] }
   0x2   :  { %v1524_v1 = vld [vmem:[%s2436_s1 + $0xb8] sm:$0xff]  ;;  %716 = vmatpush.bf16.msra.mxu0 %v1426_v0  ;;  %1473 = vmatpush.bf16.msra.mxu3 %v1426_v0  ;;  %v1539_v4 = vld [vmem:[%s2436_s1 + $0xb0] sm:$0xff]  ;;  %v1554_v7 = vld [vmem:[%s2436_s1 + $0xa8] sm:$0xff] }
   0x3   :  { %v1529_v2 = vld [vmem:[%s2436_s1 + $0x78] sm:$0xff]  ;;  %1489 = vmatpush.bf16.msra.mxu2 %v1524_v1  ;;  %v1544_v5 = vld [vmem:[%s2436_s1 + $0x70] sm:$0xff]  ;;  %v1559_v8 = vld [vmem:[%s2436_s1 + $0x68] sm:$0xff] }
   0x4   :  { %1481 = vmatpush.bf16.msra.mxu1 %v1529_v2  ;;  %v1423_v9 = vld [vmem:[%s2436_s1 + $0x20] sm:$0xff]  ;;  %v1422_v12 = vld [vmem:[%s2436_s1 + $0x18] sm:$0xff]  ;;  %v1421_v15 = vld [vmem:[%s2436_s1 + $0x10] sm:$0xff] }
   0x5   :  { %v1569_v10 = vld [vmem:[%s2436_s1 + $0xa0] sm:$0xff]  ;;  %v1584_v13 = vld [vmem:[%s2436_s1 + $0x98] sm:$0xff]  ;;  %v1599_v16 = vld [vmem:[%s2436_s1 + $0x90] sm:$0xff] }
   0x6   :  { %717 = vmatpush.bf16.msra.mxu0 %v1425_v3  ;;  %1474 = vmatpush.bf16.msra.mxu3 %v1425_v3  ;;  %v1574_v11 = vld [vmem:[%s2436_s1 + $0x60] sm:$0xff]  ;;  %v1589_v14 = vld [vmem:[%s2436_s1 + $0x58] sm:$0xff]  ;;  %v1604_v17 = vld [vmem:[%s2436_s1 + $0x50] sm:$0xff] }
   0x7   :  { %1490 = vmatpush.bf16.msra.mxu2 %v1539_v4  ;;  %v1420_v18 = vld [vmem:[%s2436_s1 + $0x8] sm:$0xff]  ;;  %v1419_v21 = vld [vmem:[%s2436_s1] sm:$0xff]  ;;  %v22_v25 = vld [vmem:[%s2438_s0 + $0x38] sm:$0xff] }
   0x8   :  { %1482 = vmatpush.bf16.msra.mxu1 %v1544_v5  ;;  %v1614_v19 = vld [vmem:[%s2436_s1 + $0x88] sm:$0xff]  ;;  %v1627_v22 = vld [vmem:[%s2436_s1 + $0x80] sm:$0xff]  ;;  %v50_v27 = vld [vmem:[%s2438_s0 + $0x118] sm:$0xff] }
   0x9   :  { %v1619_v20 = vld [vmem:[%s2436_s1 + $0x48] sm:$0xff]  ;;  %v1632_v23 = vld [vmem:[%s2436_s1 + $0x40] sm:$0xff]  ;;  %v45_v28 = vld [vmem:[%s2438_s0 + $0xf0] sm:$0xff] }
   0xa   :  { %718 = vmatpush.bf16.msra.mxu0 %v1424_v6  ;;  %1475 = vmatpush.bf16.msra.mxu3 %v1424_v6  ;;  %v15_v24 = vld [vmem:[%s2438_s0] sm:$0xff]  ;;  %v52_v29 = vld [vmem:[%s2438_s0 + $0x128] sm:$0xff]  ;;  %v1450_v32 = vld [vmem:[%s2436_s1 + $0xf8] sm:$0xff] }
   0xb   :  { %1491 = vmatpush.bf16.msra.mxu2 %v1554_v7  ;;  %v43_v26 = vld [vmem:[%s2438_s0 + $0xe0] sm:$0xff]  ;;  %v44_v30 = vld [vmem:[%s2438_s0 + $0xe8] sm:$0xff]  ;;  %v169_v33 = vpack.c.bf16 %v22_v25, %v15_v24  ;;  %v185_v35 = vpack.c.bf16 %v52_v29, %v45_v28  ;;  %v1466_v38 = vld [vmem:[%s2436_s1 + $0x178] sm:$0xff] }
   0xc   :  { %1483 = vmatpush.bf16.msra.mxu1 %v1559_v8  ;;  %v51_v31 = vld [vmem:[%s2438_s0 + $0x120] sm:$0xff]  ;;  %v183_v34 = vpack.c.bf16 %v50_v27, %v43_v26  ;;  %v1472_v37 = vld [vmem:[%s2436_s1 + $0x1a8] sm:$0xff]  ;;  %v1449_v39 = vld [vmem:[%s2436_s1 + $0xf0] sm:$0xff] }
   0xd   :  { %v184_v36 = vpack.c.bf16 %v51_v31, %v44_v30  ;;  %v1465_v40 = vld [vmem:[%s2436_s1 + $0x170] sm:$0xff]  ;;  %v1471_v41 = vld [vmem:[%s2436_s1 + $0x1a0] sm:$0xff]  ;;  %v1448_v42 = vld [vmem:[%s2436_s1 + $0xe8] sm:$0xff] }
   0xe   :  { %719 = vmatpush.bf16.msra.mxu0 %v1423_v9  ;;  %1476 = vmatpush.bf16.msra.mxu3 %v1423_v9  ;;  %v29_v43 = vld [vmem:[%s2438_s0 + $0x70] sm:$0xff]  ;;  %v36_v44 = vld [vmem:[%s2438_s0 + $0xa8] sm:$0xff]  ;;  %v59_v47 = vld [vmem:[%s2438_s0 + $0x160] sm:$0xff] }
   0xf   :  { %1492 = vmatpush.bf16.msra.mxu2 %v1569_v10  ;;  %v57_v45 = vld [vmem:[%s2438_s0 + $0x150] sm:$0xff]  ;;  %v64_v46 = vld [vmem:[%s2438_s0 + $0x188] sm:$0xff]  ;;  %v66_v48 = vld [vmem:[%s2438_s0 + $0x198] sm:$0xff]  ;;  %v176_v52 = vpack.c.bf16 %v36_v44, %v29_v43 }
  0x10   :  { %1484 = vmatpush.bf16.msra.mxu1 %v1574_v11  ;;  %v58_v49 = vld [vmem:[%s2438_s0 + $0x158] sm:$0xff]  ;;  %v65_v50 = vld [vmem:[%s2438_s0 + $0x190] sm:$0xff]  ;;  %v1464_v51 = vld [vmem:[%s2436_s1 + $0x168] sm:$0xff]  ;;  %v190_v53 = vpack.c.bf16 %v64_v46, %v57_v45  ;;  %v192_v54 = vpack.c.bf16 %v66_v48, %v59_v47 }
  0x11   :  { %v191_v55 = vpack.c.bf16 %v65_v50, %v58_v49  ;;  %v1447_v56 = vld [vmem:[%s2436_s1 + $0xe0] sm:$0xff]  ;;  %v1470_v57 = vld [vmem:[%s2436_s1 + $0x198] sm:$0xff]  ;;  %v16_v60 = vld [vmem:[%s2438_s0 + $0x8] sm:$0xff] }
  0x12   :  { %720 = vmatpush.bf16.msra.mxu0 %v1422_v12  ;;  %1477 = vmatpush.bf16.msra.mxu3 %v1422_v12  ;;  %v71_v58 = vld [vmem:[%s2438_s0 + $0x1c0] sm:$0xff]  ;;  %v78_v59 = vld [vmem:[%s2438_s0 + $0x1f8] sm:$0xff]  ;;  %v73_v62 = vld [vmem:[%s2438_s0 + $0x1d0] sm:$0xff] }
  0x13   :  { %1493 = vmatpush.bf16.msra.mxu2 %v1584_v13  ;;  %v23_v61 = vld [vmem:[%s2438_s0 + $0x40] sm:$0xff]  ;;  %v80_v63 = vld [vmem:[%s2438_s0 + $0x208] sm:$0xff]  ;;  %v197_v3 = vpack.c.bf16 %v78_v59, %v71_v58  ;;  %v1469_v12 = vld [vmem:[%s2436_s1 + $0x190] sm:$0xff] }
  0x14   :  { %1485 = vmatpush.bf16.msra.mxu1 %v1589_v14  ;;  %v72_v0 = vld [vmem:[%s2438_s0 + $0x1c8] sm:$0xff]  ;;  %v199_v6 = vpack.c.bf16 %v80_v63, %v73_v62  ;;  %v1463_v9 = vld [vmem:[%s2436_s1 + $0x160] sm:$0xff]  ;;  %v1445_v26 = vld [vmem:[%s2436_s1 + $0xd0] sm:$0xff] }
  0x15   :  { %v106_v27 = vld [vmem:[%s2438_s0 + $0x2d8] sm:$0xff]  ;;  %v17_v28 = vld [vmem:[%s2438_s0 + $0x10] sm:$0xff]  ;;  %v108_v29 = vld [vmem:[%s2438_s0 + $0x2e8] sm:$0xff] }
  0x16   :  { %721 = vmatpush.bf16.msra.mxu0 %v1421_v15  ;;  %1478 = vmatpush.bf16.msra.mxu3 %v1421_v15  ;;  %v30_v15 = vld [vmem:[%s2438_s0 + $0x78] sm:$0xff]  ;;  %v100_v30 = vld [vmem:[%s2438_s0 + $0x2a8] sm:$0xff]  ;;  %v107_v31 = vld [vmem:[%s2438_s0 + $0x2e0] sm:$0xff] }
  0x17   :  { %1494 = vmatpush.bf16.msra.mxu2 %v1599_v16  ;;  %v122_v43 = vld [vmem:[%s2438_s0 + $0x358] sm:$0xff]  ;;  %v121_v45 = vld [vmem:[%s2438_s0 + $0x350] sm:$0xff]  ;;  %v128_v58 = vld [vmem:[%s2438_s0 + $0x388] sm:$0xff] }
  0x18   :  { %1486 = vmatpush.bf16.msra.mxu1 %v1604_v17  ;;  %v114_v44 = vld [vmem:[%s2438_s0 + $0x318] sm:$0xff]  ;;  %v135_v59 = vld [vmem:[%s2438_s0 + $0x3c0] sm:$0xff] }
  0x19   :  { %v219_v49 = vpack.c.bf16 %v121_v45, %v114_v44  ;;  %v1458_v50 = vld [vmem:[%s2436_s1 + $0x138] sm:$0xff]  ;;  %v226_v63 = vpack.c.bf16 %v135_v59, %v128_v58  ;;  %v28_v44 = vld [vmem:[%s2438_s0 + $0x68] sm:$0xff] }
  0x1a   :  { %722 = vmatpush.bf16.msra.mxu0 %v1420_v18  ;;  %1479 = vmatpush.bf16.msra.mxu3 %v1420_v18  ;;  %v86_v18 = vld [vmem:[%s2438_s0 + $0x238] sm:$0xff]  ;;  %v20_v45 = vld [vmem:[%s2438_s0 + $0x28] sm:$0xff] }
  0x1b   :  { %1495 = vmatpush.bf16.msra.mxu2 %v1614_v19 }
  0x1c   :  { %1487 = vmatpush.bf16.msra.mxu1 %v1619_v20 }
  0x1e   :  { %723 = vmatpush.bf16.msra.mxu0 %v1419_v21  ;;  %1480 = vmatpush.bf16.msra.mxu3 %v1419_v21 }
  0x1f   :  { %1496 = vmatpush.bf16.msra.mxu2 %v1627_v22 }
  0x20   :  { %1488 = vmatpush.bf16.msra.mxu1 %v1632_v23 }
  0x21   :  { %724 = vmatmul.bf16.vlgmr.msra.gmra.mxu0 %v169_v33  ;;  %734 = vmatmul.bf16.vlgmr.msra.gmra.mxu3 %v183_v34 }
  0x22   :  { %908 = vmatpush.bf16.msrb.mxu3 %v1450_v32  ;;  %780 = vmatpush.bf16.msrb.mxu0 %v1529_v2  ;;  %v79_v2 = vld [vmem:[%s2438_s0 + $0x200] sm:$0xff] }
  0x23   :  { %862 = vmatmul.bf16.vlgmr.msra.gmra.mxu2 %v185_v35  ;;  %798 = vmatmul.bf16.vlgmr.msra.gmra.mxu1 %v184_v36  ;;  %v212_v35 = vpack.c.bf16 %v107_v31, %v100_v30  ;;  %v1468_v36 = vld [vmem:[%s2436_s1 + $0x188] sm:$0xff]  ;;  %v33_v31 = vld [vmem:[%s2438_s0 + $0x90] sm:$0xff] }
  0x24   :  { %1102 = vmatpush.bf16.msrb.mxu2 %v1472_v37  ;;  %1036 = vmatpush.bf16.msrb.mxu1 %v1466_v38  ;;  %v1444_v37 = vld [vmem:[%s2436_s1 + $0xc8] sm:$0xff]  ;;  %v113_v38 = vld [vmem:[%s2438_s0 + $0x310] sm:$0xff] }
  0x26   :  { %781 = vmatpush.bf16.msrb.mxu0 %v1544_v5  ;;  %909 = vmatpush.bf16.msrb.mxu3 %v1449_v39  ;;  %v170_v5 = vpack.c.bf16 %v23_v61, %v16_v60  ;;  %v120_v39 = vld [vmem:[%s2438_s0 + $0x348] sm:$0xff]  ;;  %v1455_v61 = vld [vmem:[%s2436_s1 + $0x120] sm:$0xff] }
  0x27   :  { %v218_v46 = vpack.c.bf16 %v120_v39, %v113_v38 }
  0x28   :  { %1037 = vmatpush.bf16.msrb.mxu1 %v1465_v40  ;;  %1103 = vmatpush.bf16.msrb.mxu2 %v1471_v41  ;;  %v31_v40 = vld [vmem:[%s2438_s0 + $0x80] sm:$0xff]  ;;  %v38_v41 = vld [vmem:[%s2438_s0 + $0xb8] sm:$0xff] }
  0x29   :  { %v178_v47 = vpack.c.bf16 %v38_v41, %v31_v40  ;;  %v18_v41 = vld [vmem:[%s2438_s0 + $0x18] sm:$0xff] }
  0x2a   :  { %782 = vmatpush.bf16.msrb.mxu0 %v1559_v8  ;;  %910 = vmatpush.bf16.msrb.mxu3 %v1448_v42  ;;  %v198_v8 = vpack.c.bf16 %v79_v2, %v72_v0  ;;  %v115_v42 = vld [vmem:[%s2438_s0 + $0x320] sm:$0xff] }
  0x2b   :  { %v220_v48 = vpack.c.bf16 %v122_v43, %v115_v42  ;;  %v1443_v0 = vld [vmem:[%s2436_s1 + $0xc0] sm:$0xff]  ;;  %v25_v42 = vld [vmem:[%s2438_s0 + $0x50] sm:$0xff] }
  0x2c   :  { %1038 = vmatpush.bf16.msrb.mxu1 %v1464_v51  ;;  %1104 = vmatpush.bf16.msrb.mxu2 %v1470_v57  ;;  %v1460_v51 = vld [vmem:[%s2436_s1 + $0x148] sm:$0xff]  ;;  %v1467_v2 = vld [vmem:[%s2436_s1 + $0x180] sm:$0xff]  ;;  %v21_v43 = vld [vmem:[%s2438_s0 + $0x30] sm:$0xff] }
  0x2d   :  { %v136_v57 = vld [vmem:[%s2438_s0 + $0x3c8] sm:$0xff] }
  0x2e   :  { %783 = vmatpush.bf16.msrb.mxu0 %v1574_v11  ;;  %911 = vmatpush.bf16.msrb.mxu3 %v1447_v56  ;;  %v1446_v11 = vld [vmem:[%s2436_s1 + $0xd8] sm:$0xff]  ;;  %v129_v56 = vld [vmem:[%s2438_s0 + $0x390] sm:$0xff] }
  0x2f   :  { %v227_v62 = vpack.c.bf16 %v136_v57, %v129_v56  ;;  %v47_v56 = vld [vmem:[%s2438_s0 + $0x100] sm:$0xff]  ;;  %v54_v57 = vld [vmem:[%s2438_s0 + $0x138] sm:$0xff] }
  0x30   :  { %1039 = vmatpush.bf16.msrb.mxu1 %v1463_v9  ;;  %1105 = vmatpush.bf16.msrb.mxu2 %v1469_v12  ;;  %v141_v9 = vld [vmem:[%s2438_s0 + $0x3f0] sm:$0xff]  ;;  %v143_v12 = vld [vmem:[%s2438_s0 + $0x400] sm:$0xff]  ;;  %v187_v59 = vpack.c.bf16 %v54_v57, %v47_v56 }
  0x31   :  { %729 = vmatmul.bf16.gmra.mxu0 %v176_v52  ;;  %739 = vmatmul.bf16.gmra.mxu3 %v190_v53  ;;  %v1457_v52 = vld [vmem:[%s2436_s1 + $0x130] sm:$0xff]  ;;  %v1456_v53 = vld [vmem:[%s2436_s1 + $0x128] sm:$0xff] }
  0x32   :  { %784 = vmatpush.bf16.msrb.mxu0 %v1589_v14  ;;  %912 = vmatpush.bf16.msrb.mxu3 %v1446_v11  ;;  %v92_v14 = vld [vmem:[%s2438_s0 + $0x268] sm:$0xff] }
  0x33   :  { %867 = vmatmul.bf16.gmra.mxu2 %v192_v54  ;;  %803 = vmatmul.bf16.gmra.mxu1 %v191_v55  ;;  %v127_v54 = vld [vmem:[%s2438_s0 + $0x380] sm:$0xff]  ;;  %v134_v55 = vld [vmem:[%s2438_s0 + $0x3b8] sm:$0xff]  ;;  %v148_v11 = vld [vmem:[%s2438_s0 + $0x428] sm:$0xff] }
  0x34   :  { %1106 = vmatpush.bf16.msrb.mxu2 %v1468_v36  ;;  %v225_v60 = vpack.c.bf16 %v134_v55, %v127_v54 }
  0x36   :  { %785 = vmatpush.bf16.msrb.mxu0 %v1604_v17  ;;  %v94_v17 = vld [vmem:[%s2438_s0 + $0x278] sm:$0xff]  ;;  %913 = vmatpush.bf16.msrb.mxu3 %v1445_v26  ;;  %v164_v26 = vld [vmem:[%s2438_s0 + $0x4a8] sm:$0xf] }
  0x38   :  { %1107 = vmatpush.bf16.msrb.mxu2 %v1467_v2 }
  0x3a   :  { %786 = vmatpush.bf16.msrb.mxu0 %v1619_v20  ;;  %v93_v20 = vld [vmem:[%s2438_s0 + $0x270] sm:$0xff]  ;;  %914 = vmatpush.bf16.msrb.mxu3 %v1444_v37 }
  0x3b   :  { %v205_v25 = vpack.c.bf16 %v93_v20, %v86_v18  ;;  %v19_v20 = vld [vmem:[%s2438_s0 + $0x20] sm:$0xff] }
  0x3e   :  { %787 = vmatpush.bf16.msrb.mxu0 %v1632_v23  ;;  %915 = vmatpush.bf16.msrb.mxu3 %v1443_v0 }
  0x41   :  { %744 = vmatmul.bf16.gmra.mxu3 %v197_v3  ;;  %788 = vmatmul.bf16.vlgmr.msrb.gmra.mxu0 %v170_v5  ;;  %v1454_v3 = vld [vmem:[%s2436_s1 + $0x118] sm:$0xff]  ;;  %v1453_v5 = vld [vmem:[%s2436_s1 + $0x110] sm:$0xff] }
  0x42   :  { %844 = vmatpush.bf16.msra.mxu0 %v1524_v1  ;;  %v85_v1 = vld [vmem:[%s2438_s0 + $0x230] sm:$0xff] }
  0x43   :  { %872 = vmatmul.bf16.gmra.mxu2 %v199_v6  ;;  %808 = vmatmul.bf16.gmra.mxu1 %v198_v8  ;;  %v204_v21 = vpack.c.bf16 %v92_v14, %v85_v1  ;;  %v1459_v6 = vld [vmem:[%s2436_s1 + $0x140] sm:$0xff]  ;;  %v1452_v8 = vld [vmem:[%s2436_s1 + $0x108] sm:$0xff]  ;;  %v150_v1 = vld [vmem:[%s2438_s0 + $0x438] sm:$0xff] }
  0x44   :  { %v142_v14 = vld [vmem:[%s2438_s0 + $0x3f8] sm:$0xff] }
  0x46   :  { %845 = vmatpush.bf16.msra.mxu0 %v1539_v4  ;;  %v37_v4 = vld [vmem:[%s2438_s0 + $0xb0] sm:$0xff] }
  0x47   :  { %v177_v23 = vpack.c.bf16 %v37_v4, %v30_v15  ;;  %v149_v15 = vld [vmem:[%s2438_s0 + $0x430] sm:$0xff]  ;;  %v232_v4 = vpack.c.bf16 %v148_v11, %v141_v9  ;;  %v42_v9 = vld [vmem:[%s2438_s0 + $0xd8] sm:$0xff] }
  0x48   :  { %v233_v18 = vpack.c.bf16 %v149_v15, %v142_v14  ;;  %v34_v11 = vld [vmem:[%s2438_s0 + $0x98] sm:$0xff] }
  0x4a   :  { %846 = vmatpush.bf16.msra.mxu0 %v1554_v7  ;;  %v87_v7 = vld [vmem:[%s2438_s0 + $0x240] sm:$0xff] }
  0x4b   :  { %v206_v24 = vpack.c.bf16 %v94_v17, %v87_v7  ;;  %v1451_v7 = vld [vmem:[%s2436_s1 + $0x100] sm:$0xff]  ;;  %v234_v17 = vpack.c.bf16 %v150_v1, %v143_v12  ;;  %v41_v12 = vld [vmem:[%s2438_s0 + $0xd0] sm:$0xff] }
  0x4e   :  { %847 = vmatpush.bf16.msra.mxu0 %v1569_v10  ;;  %v1462_v10 = vld [vmem:[%s2436_s1 + $0x158] sm:$0xff] }
  0x4f   :  { %1040 = vmatpush.bf16.msrb.mxu1 %v1462_v10  ;;  %v157_v10 = vld [vmem:[%s2438_s0 + $0x470] sm:$0xff] }
  0x51   :  { %749 = vmatmul.bf16.gmra.mxu3 %v204_v21  ;;  %793 = vmatmul.bf16.gmra.mxu0 %v177_v23  ;;  %v26_v21 = vld [vmem:[%s2438_s0 + $0x58] sm:$0xff] }
  0x52   :  { %848 = vmatpush.bf16.msra.mxu0 %v1584_v13  ;;  %v99_v13 = vld [vmem:[%s2438_s0 + $0x2a0] sm:$0xff]  ;;  %v173_v23 = vpack.c.bf16 %v26_v21, %v19_v20  ;;  %v61_v21 = vld [vmem:[%s2438_s0 + $0x170] sm:$0xff] }
  0x53   :  { %877 = vmatmul.bf16.gmra.mxu2 %v206_v24  ;;  %813 = vmatmul.bf16.gmra.mxu1 %v205_v25  ;;  %v211_v32 = vpack.c.bf16 %v106_v27, %v99_v13  ;;  %v155_v24 = vld [vmem:[%s2438_s0 + $0x460] sm:$0xff]  ;;  %v162_v25 = vld [vmem:[%s2438_s0 + $0x498] sm:$0xf]  ;;  %v156_v13 = vld [vmem:[%s2438_s0 + $0x468] sm:$0xff] }
  0x54   :  { %v163_v27 = vld [vmem:[%s2438_s0 + $0x4a0] sm:$0xf] }
  0x56   :  { %849 = vmatpush.bf16.msra.mxu0 %v1599_v16  ;;  %v24_v16 = vld [vmem:[%s2438_s0 + $0x48] sm:$0xff] }
  0x57   :  { %v171_v33 = vpack.c.bf16 %v24_v16, %v17_v28  ;;  %v239_v28 = vpack.c.bf16 %v162_v25, %v155_v24 }
  0x5a   :  { %850 = vmatpush.bf16.msra.mxu0 %v1614_v19  ;;  %v101_v19 = vld [vmem:[%s2438_s0 + $0x2b0] sm:$0xff] }
  0x5b   :  { %v213_v34 = vpack.c.bf16 %v108_v29, %v101_v19  ;;  %v241_v19 = vpack.c.bf16 %v164_v26, %v157_v10  ;;  %v240_v29 = vpack.c.bf16 %v163_v27, %v156_v13 }
  0x5e   :  { %851 = vmatpush.bf16.msra.mxu0 %v1627_v22  ;;  %v1461_v22 = vld [vmem:[%s2436_s1 + $0x150] sm:$0xff] }
  0x5f   :  { %1041 = vmatpush.bf16.msrb.mxu1 %v1461_v22 }
  0x61   :  { %754 = vmatmul.bf16.gmra.mxu3 %v211_v32  ;;  %852 = vmatmul.bf16.vlgmr.msra.gmra.mxu0 %v171_v33  ;;  %v40_v32 = vld [vmem:[%s2438_s0 + $0xc8] sm:$0xff]  ;;  %v1959_v33 = vld [vmem:[%s2437_s2] ss:$0 sm:$0xff] }
  0x62   :  { %972 = vmatpush.bf16.msrb.mxu0 %v1458_v50  ;;  %v172_v50 = vpack.c.bf16 %v25_v42, %v18_v41 }
  0x63   :  { %882 = vmatmul.bf16.gmra.mxu2 %v213_v34  ;;  %818 = vmatmul.bf16.gmra.mxu1 %v212_v35  ;;  %v180_v34 = vpack.c.bf16 %v40_v32, %v33_v31  ;;  %v53_v31 = vld [vmem:[%s2438_s0 + $0x130] sm:$0xff] }
  0x64   :  { %1042 = vmatpush.bf16.msrb.mxu1 %v1460_v51  ;;  %v49_v32 = vld [vmem:[%s2438_s0 + $0x110] sm:$0xff] }
  0x66   :  { %973 = vmatpush.bf16.msrb.mxu0 %v1457_v52  ;;  %v175_v52 = vpack.c.bf16 %v28_v44, %v21_v43 }
  0x68   :  { %1043 = vmatpush.bf16.msrb.mxu1 %v1459_v6  ;;  %v39_v6 = vld [vmem:[%s2438_s0 + $0xc0] sm:$0xff] }
  0x6a   :  { %974 = vmatpush.bf16.msrb.mxu0 %v1456_v53 }
  0x6e   :  { %975 = vmatpush.bf16.msrb.mxu0 %v1455_v61 }
  0x71   :  { %759 = vmatmul.bf16.gmra.mxu3 %v218_v46  ;;  %857 = vmatmul.bf16.gmra.mxu0 %v178_v47  ;;  %v27_v46 = vld [vmem:[%s2438_s0 + $0x60] sm:$0xff] }
  0x72   :  { %976 = vmatpush.bf16.msrb.mxu0 %v1454_v3  ;;  %v174_v53 = vpack.c.bf16 %v27_v46, %v20_v45 }
  0x73   :  { %887 = vmatmul.bf16.gmra.mxu2 %v220_v48  ;;  %823 = vmatmul.bf16.gmra.mxu1 %v219_v49 }
  0x76   :  { %977 = vmatpush.bf16.msrb.mxu0 %v1453_v5  ;;  %v32_v5 = vld [vmem:[%s2438_s0 + $0x88] sm:$0xff] }
  0x7a   :  { %978 = vmatpush.bf16.msrb.mxu0 %v1452_v8  ;;  %v35_v8 = vld [vmem:[%s2438_s0 + $0xa0] sm:$0xff] }
  0x7e   :  { %979 = vmatpush.bf16.msrb.mxu0 %v1451_v7  ;;  %v182_v7 = vpack.c.bf16 %v42_v9, %v35_v8 }
  0x81   :  { %764 = vmatmul.bf16.gmra.mxu3 %v225_v60  ;;  %980 = vmatmul.bf16.vlgmr.msrb.gmra.mxu0 %v173_v23  ;;  %v68_v23 = vld [vmem:[%s2438_s0 + $0x1a8] sm:$0xff] }
  0x82   :  { %v194_v25 = vpack.c.bf16 %v68_v23, %v61_v21 }
  0x83   :  { %892 = vmatmul.bf16.gmra.mxu2 %v227_v62  ;;  %828 = vmatmul.bf16.gmra.mxu1 %v226_v63 }
  0x91   :  { %769 = vmatmul.bf16.gmra.mxu3 %v232_v4  ;;  %985 = vmatmul.bf16.gmra.mxu0 %v180_v34  ;;  %v179_v4 = vpack.c.bf16 %v39_v6, %v32_v5  ;;  %v56_v34 = vld [vmem:[%s2438_s0 + $0x148] sm:$0xff]  ;;  %v69_v5 = vld [vmem:[%s2438_s0 + $0x1b0] sm:$0xff] }
  0x92   :  { %v189_v43 = vpack.c.bf16 %v56_v34, %v49_v32  ;;  %v84_v32 = vld [vmem:[%s2438_s0 + $0x228] sm:$0xff] }
  0x93   :  { %897 = vmatmul.bf16.gmra.mxu2 %v234_v17  ;;  %833 = vmatmul.bf16.gmra.mxu1 %v233_v18  ;;  %v181_v17 = vpack.c.bf16 %v41_v12, %v34_v11  ;;  %v76_v34 = vld [vmem:[%s2438_s0 + $0x1e8] sm:$0xff] }
  0x9e   :  { %v1948_v16 = vpop.f32.mrf.mxu0 }
  0xa0   :  { %v799_v30 = vpop.f32.mrf.mxu1 }
  0xa1   :  { %774 = vmatmul.bf16.gmra.mxu3 %v239_v28  ;;  %990 = vmatmul.bf16.gmra.mxu0 %v187_v59 }
  0xa3   :  { %902 = vmatmul.bf16.gmra.mxu2 %v241_v19  ;;  %838 = vmatmul.bf16.gmra.mxu1 %v240_v29 }
  0xa4   :  { %v735_v35 = vpop.f32.mrf.mxu3 }
  0xa5   :  { %v736_v22 = vadd.f32 %v1959_v33, %v735_v35  ;;  %v48_v35 = vld [vmem:[%s2438_s0 + $0x108] sm:$0xff] }
  0xa6   :  { %v863_v36 = vpop.f32.mrf.mxu2  ;;  %v1962_v37 = vpop.f32.mrf.mxu0 }
  0xa7   :  { %v800_v38 = vadd.f32 %v799_v30, %v736_v22  ;;  %v46_v30 = vld [vmem:[%s2438_s0 + $0xf8] sm:$0xff]  ;;  %v55_v22 = vld [vmem:[%s2438_s0 + $0x140] sm:$0xff] }
  0xa8   :  { %v801_v39 = vpop.f32.mrf.mxu1  ;;  %v186_v42 = vpack.c.bf16 %v53_v31, %v46_v30  ;;  %v188_v44 = vpack.c.bf16 %v55_v22, %v48_v35  ;;  %v81_v30 = vld [vmem:[%s2438_s0 + $0x210] sm:$0xff]  ;;  %v83_v35 = vld [vmem:[%s2438_s0 + $0x220] sm:$0xff] }
  0xa9   :  { %v1964_v40 = vadd.f32 %v863_v36, %v800_v38  ;;  %v77_v31 = vld [vmem:[%s2438_s0 + $0x1f0] sm:$0xff] }
  0xac   :  { %v737_v47 = vpop.f32.mrf.mxu3 }
  0xad   :  { %v738_v48 = vadd.f32 %v1959_v33, %v737_v47  ;;  %v75_v47 = vld [vmem:[%s2438_s0 + $0x1e0] sm:$0xff] }
  0xae   :  { %v865_v49 = vpop.f32.mrf.mxu2  ;;  %v1985_v51 = vpop.f32.mrf.mxu0 }
  0xaf   :  { %v802_v54 = vadd.f32 %v801_v39, %v738_v48  ;;  %v82_v48 = vld [vmem:[%s2438_s0 + $0x218] sm:$0xff] }
  0xb0   :  { %v804_v55 = vpop.f32.mrf.mxu1 }
  0xb1   :  { %v1993_v58 = vadd.f32 %v865_v49, %v802_v54  ;;  %916 = vmatmul.bf16.vlgmr.msrb.gmra.mxu3 %v172_v50  ;;  %995 = vmatmul.bf16.gmra.mxu0 %v194_v25  ;;  %v201_v50 = vpack.c.bf16 %v82_v48, %v75_v47  ;;  %v110_v47 = vld [vmem:[%s2438_s0 + $0x2f8] sm:$0xff] }
  0xb3   :  { %1408 = vmatmul.msk.bf16.vlgmr.msrb.gmra.mxu2 %vm682_vm0, %v175_v52  ;;  %1044 = vmatmul.bf16.vlgmr.msrb.gmra.mxu1 %v174_v53 }
  0xb4   :  { %v740_v60 = vpop.f32.mrf.mxu3 }
  0xb5   :  { %v741_v61 = vadd.f32 %v1959_v33, %v740_v60  ;;  %v60_v60 = vld [vmem:[%s2438_s0 + $0x168] sm:$0xff] }
  0xb6   :  { %v868_v62 = vpop.f32.mrf.mxu2  ;;  %v1997_v2 = vpop.f32.mrf.mxu0 }
  0xb7   :  { %v805_v63 = vadd.f32 %v804_v55, %v741_v61  ;;  %v67_v61 = vld [vmem:[%s2438_s0 + $0x1a0] sm:$0xff] }
  0xb8   :  { %v806_v0 = vpop.f32.mrf.mxu1  ;;  %v193_v11 = vpack.c.bf16 %v67_v61, %v60_v60 }
  0xb9   :  { %v1999_v3 = vadd.f32 %v868_v62, %v805_v63  ;;  %v63_v62 = vld [vmem:[%s2438_s0 + $0x180] sm:$0xff]  ;;  %v70_v63 = vld [vmem:[%s2438_s0 + $0x1b8] sm:$0xff] }
  0xba   :  { %v196_v12 = vpack.c.bf16 %v70_v63, %v63_v62  ;;  %v88_v62 = vld [vmem:[%s2438_s0 + $0x248] sm:$0xff]  ;;  %v95_v63 = vld [vmem:[%s2438_s0 + $0x280] sm:$0xff] }
  0xbc   :  { %v742_v1 = vpop.f32.mrf.mxu3 }
  0xbd   :  { %v743_v14 = vadd.f32 %v1959_v33, %v742_v1 }
  0xbe   :  { %v870_v15 = vpop.f32.mrf.mxu2  ;;  %v2028_v10 = vpop.f32.mrf.mxu0 }
  0xbf   :  { %v807_v18 = vadd.f32 %v806_v0, %v743_v14  ;;  %v62_v0 = vld [vmem:[%s2438_s0 + $0x178] sm:$0xff] }
  0xc0   :  { %v809_v20 = vpop.f32.mrf.mxu1  ;;  %v195_v1 = vpack.c.bf16 %v69_v5, %v62_v0  ;;  %v91_v0 = vld [vmem:[%s2438_s0 + $0x260] sm:$0xff]  ;;  %v98_v5 = vld [vmem:[%s2438_s0 + $0x298] sm:$0xff] }
  0xc1   :  { %v2026_v24 = vadd.f32 %v870_v15, %v807_v18  ;;  %921 = vmatmul.bf16.gmra.mxu3 %v179_v4  ;;  %1000 = vmatmul.bf16.gmra.mxu0 %v201_v50  ;;  %v89_v4 = vld [vmem:[%s2438_s0 + $0x250] sm:$0xff] }
  0xc3   :  { %1409 = vmatmul.msk.bf16.gmra.mxu2 %vm682_vm0, %v182_v7  ;;  %1049 = vmatmul.bf16.gmra.mxu1 %v181_v17  ;;  %v96_v17 = vld [vmem:[%s2438_s0 + $0x288] sm:$0xff] }
  0xc4   :  { %v745_v26 = vpop.f32.mrf.mxu3 }
  0xc5   :  { %v746_v13 = vadd.f32 %v1959_v33, %v745_v26 }
  0xc6   :  { %v873_v27 = vpop.f32.mrf.mxu2  ;;  %v2052_v36 = vpop.f32.mrf.mxu0 }
  0xc7   :  { %v810_v28 = vadd.f32 %v809_v20, %v746_v13  ;;  %v208_v20 = vpack.c.bf16 %v96_v17, %v89_v4 }
  0xc8   :  { %v811_v19 = vpop.f32.mrf.mxu1 }
  0xc9   :  { %v2032_v29 = vadd.f32 %v873_v27, %v810_v28 }
  0xcc   :  { %v747_v38 = vpop.f32.mrf.mxu3 }
  0xcd   :  { %v748_v39 = vadd.f32 %v1959_v33, %v747_v38 }
  0xce   :  { %v875_v41 = vpop.f32.mrf.mxu2  ;;  %v2065_v55 = vpop.f32.mrf.mxu0 }
  0xcf   :  { %v812_v45 = vadd.f32 %v811_v19, %v748_v39  ;;  %v74_v19 = vld [vmem:[%s2438_s0 + $0x1d8] sm:$0xff] }
  0xd0   :  { %v814_v46 = vpop.f32.mrf.mxu1 }
  0xd1   :  { %v2061_v49 = vadd.f32 %v875_v41, %v812_v45  ;;  %926 = vmatmul.bf16.gmra.mxu3 %v186_v42  ;;  %1005 = vmatmul.bf16.gmra.mxu0 %v208_v20  ;;  %v200_v41 = vpack.c.bf16 %v81_v30, %v74_v19  ;;  %v203_v42 = vpack.c.bf16 %v84_v32, %v77_v31 }
  0xd3   :  { %1410 = vmatmul.msk.bf16.gmra.mxu2 %vm682_vm0, %v189_v43  ;;  %1054 = vmatmul.bf16.gmra.mxu1 %v188_v44  ;;  %v202_v43 = vpack.c.bf16 %v83_v35, %v76_v34 }
  0xd4   :  { %v750_v52 = vpop.f32.mrf.mxu3 }
  0xd5   :  { %v751_v53 = vadd.f32 %v1959_v33, %v750_v52 }
  0xd6   :  { %v878_v54 = vpop.f32.mrf.mxu2  ;;  %v2091_v7 = vpop.f32.mrf.mxu0 }
  0xd7   :  { %v815_v56 = vadd.f32 %v814_v46, %v751_v53  ;;  %v103_v46 = vld [vmem:[%s2438_s0 + $0x2c0] sm:$0xff] }
  0xd8   :  { %v816_v57 = vpop.f32.mrf.mxu1  ;;  %v215_v50 = vpack.c.bf16 %v110_v47, %v103_v46 }
  0xd9   :  { %v2067_v59 = vadd.f32 %v878_v54, %v815_v56 }
  0xdc   :  { %v752_v6 = vpop.f32.mrf.mxu3 }
  0xdd   :  { %v753_v8 = vadd.f32 %v1959_v33, %v752_v6  ;;  %v90_v6 = vld [vmem:[%s2438_s0 + $0x258] sm:$0xff] }
  0xde   :  { %v880_v9 = vpop.f32.mrf.mxu2  ;;  %v2102_v28 = vpop.f32.mrf.mxu0 }
  0xdf   :  { %v817_v14 = vadd.f32 %v816_v57, %v753_v8  ;;  %v97_v8 = vld [vmem:[%s2438_s0 + $0x290] sm:$0xff] }
  0xe0   :  { %v819_v15 = vpop.f32.mrf.mxu1  ;;  %v209_v4 = vpack.c.bf16 %v97_v8, %v90_v6 }
  0xe1   :  { %v2096_v18 = vadd.f32 %v880_v9, %v817_v14  ;;  %931 = vmatmul.bf16.gmra.mxu3 %v193_v11  ;;  %1010 = vmatmul.bf16.gmra.mxu0 %v215_v50 }
  0xe3   :  { %1411 = vmatmul.msk.bf16.gmra.mxu2 %vm682_vm0, %v196_v12  ;;  %1059 = vmatmul.bf16.gmra.mxu1 %v195_v1  ;;  %v207_v1 = vpack.c.bf16 %v95_v63, %v88_v62  ;;  %v138_v62 = vld [vmem:[%s2438_s0 + $0x3d8] sm:$0xff] }
  0xe4   :  { %v755_v21 = vpop.f32.mrf.mxu3 }
  0xe5   :  { %v756_v23 = vadd.f32 %v1959_v33, %v755_v21  ;;  %v117_v21 = vld [vmem:[%s2438_s0 + $0x330] sm:$0xff] }
  0xe6   :  { %v883_v25 = vpop.f32.mrf.mxu2  ;;  %v2132_v52 = vpop.f32.mrf.mxu0 }
  0xe7   :  { %v820_v26 = vadd.f32 %v819_v15, %v756_v23  ;;  %v210_v15 = vpack.c.bf16 %v98_v5, %v91_v0  ;;  %v124_v23 = vld [vmem:[%s2438_s0 + $0x368] sm:$0xff] }
  0xe8   :  { %v821_v13 = vpop.f32.mrf.mxu1 }
  0xe9   :  { %v2100_v27 = vadd.f32 %v883_v25, %v820_v26  ;;  %v222_v26 = vpack.c.bf16 %v124_v23, %v117_v21  ;;  %v118_v21 = vld [vmem:[%s2438_s0 + $0x338] sm:$0xff]  ;;  %v125_v23 = vld [vmem:[%s2438_s0 + $0x370] sm:$0xff] }
  0xec   :  { %v757_v22 = vpop.f32.mrf.mxu3 }
  0xed   :  { %v758_v38 = vadd.f32 %v1959_v33, %v757_v22  ;;  %v102_v22 = vld [vmem:[%s2438_s0 + $0x2b8] sm:$0xff] }
  0xee   :  { %v885_v39 = vpop.f32.mrf.mxu2  ;;  %v2156_v14 = vpop.f32.mrf.mxu0 }
  0xef   :  { %v822_v44 = vadd.f32 %v821_v13, %v758_v38  ;;  %v109_v38 = vld [vmem:[%s2438_s0 + $0x2f0] sm:$0xff] }
  0xf0   :  { %v824_v45 = vpop.f32.mrf.mxu1  ;;  %v214_v47 = vpack.c.bf16 %v109_v38, %v102_v22 }
  0xf1   :  { %v2129_v48 = vadd.f32 %v885_v39, %v822_v44  ;;  %936 = vmatmul.bf16.gmra.mxu3 %v200_v41  ;;  %1015 = vmatmul.bf16.gmra.mxu0 %v222_v26  ;;  %v105_v39 = vld [vmem:[%s2438_s0 + $0x2d0] sm:$0xff]  ;;  %v112_v41 = vld [vmem:[%s2438_s0 + $0x308] sm:$0xff] }
  0xf2   :  { %v217_v50 = vpack.c.bf16 %v112_v41, %v105_v39  ;;  %v145_v39 = vld [vmem:[%s2438_s0 + $0x410] sm:$0xff] }
  0xf3   :  { %1412 = vmatmul.msk.bf16.gmra.mxu2 %vm682_vm0, %v203_v42  ;;  %1064 = vmatmul.bf16.gmra.mxu1 %v202_v43  ;;  %v104_v42 = vld [vmem:[%s2438_s0 + $0x2c8] sm:$0xff]  ;;  %v111_v43 = vld [vmem:[%s2438_s0 + $0x300] sm:$0xff] }
  0xf4   :  { %v760_v53 = vpop.f32.mrf.mxu3 }
  0xf5   :  { %v761_v54 = vadd.f32 %v1959_v33, %v760_v53  ;;  %v216_v53 = vpack.c.bf16 %v111_v43, %v104_v42  ;;  %v152_v42 = vld [vmem:[%s2438_s0 + $0x448] sm:$0xff] }
  0xf6   :  { %v888_v56 = vpop.f32.mrf.mxu2  ;;  %v2168_v34 = vpop.f32.mrf.mxu0 }
  0xf7   :  { %v825_v57 = vadd.f32 %v824_v45, %v761_v54 }
  0xf8   :  { %v826_v60 = vpop.f32.mrf.mxu1 }
  0xf9   :  { %v2135_v61 = vadd.f32 %v888_v56, %v825_v57  ;;  %v131_v57 = vld [vmem:[%s2438_s0 + $0x3a0] sm:$0xff] }
  0xfa   :  { %v229_v0 = vpack.c.bf16 %v138_v62, %v131_v57  ;;  %v137_v57 = vld [vmem:[%s2438_s0 + $0x3d0] sm:$0xff] }
  0xfb   :  { %v133_v62 = vld [vmem:[%s2438_s0 + $0x3b0] sm:$0xff] }
  0xfc   :  { %v762_v9 = vpop.f32.mrf.mxu3 }
  0xfd   :  { %v763_v11 = vadd.f32 %v1959_v33, %v762_v9 }
  0xfe   :  { %v890_v12 = vpop.f32.mrf.mxu2 }
  0xff   :  { %v827_v17 = vadd.f32 %v826_v60, %v763_v11  ;;  %v2194_v60 = vpop.f32.mrf.mxu0 }
 0x100   :  { %v829_v20 = vpop.f32.mrf.mxu1 }
 0x101   :  { %v2164_v25 = vadd.f32 %v890_v12, %v827_v17  ;;  %941 = vmatmul.bf16.gmra.mxu3 %v207_v1  ;;  %1020 = vmatmul.bf16.gmra.mxu0 %v229_v0  ;;  %v119_v17 = vld [vmem:[%s2438_s0 + $0x340] sm:$0xff] }
 0x103   :  { %1413 = vmatmul.msk.bf16.gmra.mxu2 %vm682_vm0, %v210_v15  ;;  %1069 = vmatmul.bf16.gmra.mxu1 %v209_v4  ;;  %v116_v15 = vld [vmem:[%s2438_s0 + $0x328] sm:$0xff]  ;;  %v123_v4 = vld [vmem:[%s2438_s0 + $0x360] sm:$0xff] }
 0x104   :  { %v765_v13 = vpop.f32.mrf.mxu3 }
 0x105   :  { %v766_v19 = vadd.f32 %v1959_v33, %v765_v13 }
 0x106   :  { %v893_v30 = vpop.f32.mrf.mxu2 }
 0x107   :  { %v830_v31 = vadd.f32 %v829_v20, %v766_v19  ;;  %v2203_v12 = vpop.f32.mrf.mxu0  ;;  %v126_v20 = vld [vmem:[%s2438_s0 + $0x378] sm:$0xff] }
 0x108   :  { %v831_v32 = vpop.f32.mrf.mxu1 }
 0x109   :  { %v2170_v35 = vadd.f32 %v893_v30, %v830_v31  ;;  %v221_v30 = vpack.c.bf16 %v123_v4, %v116_v15  ;;  %v224_v31 = vpack.c.bf16 %v126_v20, %v119_v17 }
 0x10c   :  { %v767_v44 = vpop.f32.mrf.mxu3 }
 0x10d   :  { %v768_v45 = vadd.f32 %v1959_v33, %v767_v44  ;;  %v236_v44 = vpack.c.bf16 %v152_v42, %v145_v39  ;;  %v728_v39 = vadd.f32 %v1959_v33, %v1962_v37  ;;  %v147_v37 = vld [vmem:[%s2438_s0 + $0x420] sm:$0xff] }
 0x10e   :  { %v895_v46 = vpop.f32.mrf.mxu2 }
 0x10f   :  { %v832_v54 = vadd.f32 %v831_v32, %v768_v45  ;;  %v223_v32 = vpack.c.bf16 %v125_v23, %v118_v21  ;;  %v2229_v41 = vpop.f32.mrf.mxu0 }
 0x110   :  { %v834_v56 = vpop.f32.mrf.mxu1 }
 0x111   :  { %v2199_v63 = vadd.f32 %v895_v46, %v832_v54  ;;  %946 = vmatmul.bf16.gmra.mxu3 %v214_v47  ;;  %1025 = vmatmul.bf16.gmra.mxu0 %v236_v44 }
 0x113   :  { %1414 = vmatmul.msk.bf16.gmra.mxu2 %vm682_vm0, %v217_v50  ;;  %1074 = vmatmul.bf16.gmra.mxu1 %v216_v53 }
 0x114   :  { %v770_v5 = vpop.f32.mrf.mxu3 }
 0x115   :  { %v771_v6 = vadd.f32 %v1959_v33, %v770_v5  ;;  %v140_v5 = vld [vmem:[%s2438_s0 + $0x3e8] sm:$0xff] }
 0x116   :  { %v898_v8 = vpop.f32.mrf.mxu2  ;;  %v231_v20 = vpack.c.bf16 %v140_v5, %v133_v62  ;;  %v731_v5 = vadd.f32 %v1959_v33, %v1985_v51 }
 0x117   :  { %v835_v9 = vadd.f32 %v834_v56, %v771_v6  ;;  %v130_v56 = vld [vmem:[%s2438_s0 + $0x398] sm:$0xff]  ;;  %v2249_v0 = vpop.f32.mrf.mxu0  ;;  %v132_v6 = vld [vmem:[%s2438_s0 + $0x3a8] sm:$0xff] }
 0x118   :  { %v836_v11 = vpop.f32.mrf.mxu1  ;;  %v228_v17 = vpack.c.bf16 %v137_v57, %v130_v56  ;;  %v146_v56 = vld [vmem:[%s2438_s0 + $0x418] sm:$0xff]  ;;  %v153_v57 = vld [vmem:[%s2438_s0 + $0x450] sm:$0xff] }
 0x119   :  { %v2205_v1 = vadd.f32 %v898_v8, %v835_v9  ;;  %v139_v8 = vld [vmem:[%s2438_s0 + $0x3e0] sm:$0xff] }
 0x11a   :  { %v230_v21 = vpack.c.bf16 %v139_v8, %v132_v6 }
 0x11c   :  { %v772_v26 = vpop.f32.mrf.mxu3 }
 0x11d   :  { %v773_v13 = vadd.f32 %v1959_v33, %v772_v26 }
 0x11e   :  { %v900_v19 = vpop.f32.mrf.mxu2 }
 0x11f   :  { %v837_v22 = vadd.f32 %v836_v11, %v773_v13  ;;  %v726_v11 = vadd.f32 %v1959_v33, %v1948_v16  ;;  %v159_v13 = vld [vmem:[%s2438_s0 + $0x480] sm:$0xff] }
 0x120   :  { %v839_v38 = vpop.f32.mrf.mxu1 }
 0x121   :  { %v2234_v43 = vadd.f32 %v900_v19, %v837_v22  ;;  %951 = vmatmul.bf16.gmra.mxu3 %v221_v30  ;;  %v166_v19 = vld [vmem:[%s2438_s0 + $0x4b8] sm:$0xf]  ;;  %v790_v30 = vadd.f32 %v2028_v10, %v726_v11  ;;  %v237_v11 = vpack.c.bf16 %v153_v57, %v146_v56 }
 0x122   :  { %v243_v16 = vpack.c.bf16 %v166_v19, %v159_v13  ;;  %v733_v13 = vadd.f32 %v1959_v33, %v1997_v2  ;;  %v161_v2 = vld [vmem:[%s2438_s0 + $0x490] sm:$0xff] }
 0x123   :  { %1415 = vmatmul.msk.bf16.gmra.mxu2 %vm682_vm0, %v224_v31  ;;  %1079 = vmatmul.bf16.gmra.mxu1 %v223_v32  ;;  %v854_v32 = vadd.f32 %v2102_v28, %v790_v30  ;;  %v144_v28 = vld [vmem:[%s2438_s0 + $0x408] sm:$0xff] }
 0x124   :  { %v775_v45 = vpop.f32.mrf.mxu3  ;;  %1030 = vmatmul.bf16.gmra.mxu0 %v243_v16 }
 0x125   :  { %v776_v46 = vadd.f32 %v1959_v33, %v775_v45 }
 0x126   :  { %v903_v47 = vpop.f32.mrf.mxu2 }
 0x127   :  { %v840_v50 = vadd.f32 %v839_v38, %v776_v46  ;;  %v2274_v38 = vpop.f32.mrf.mxu0  ;;  %v792_v46 = vadd.f32 %v2052_v36, %v728_v39  ;;  %v154_v36 = vld [vmem:[%s2438_s0 + $0x458] sm:$0xff] }
 0x128   :  { %v841_v53 = vpop.f32.mrf.mxu1 }
 0x129   :  { %v2238_v54 = vadd.f32 %v903_v47, %v840_v50  ;;  %v151_v50 = vld [vmem:[%s2438_s0 + $0x440] sm:$0xff] }
 0x12a   :  { %v235_v8 = vpack.c.bf16 %v151_v50, %v144_v28 }
 0x12c   :  { %v777_v9 = vpop.f32.mrf.mxu3 }
 0x12d   :  { %v778_v15 = vadd.f32 %v1959_v33, %v777_v9  ;;  %v238_v9 = vpack.c.bf16 %v154_v36, %v147_v37  ;;  %v165_v33 = vld [vmem:[%s2438_s0 + $0x4b0] sm:$0xf] }
 0x12e   :  { %v905_v4 = vpop.f32.mrf.mxu2 }
 0x12f   :  { %v842_v23 = vadd.f32 %v841_v53, %v778_v15  ;;  %v856_v53 = vadd.f32 %v2132_v52, %v792_v46  ;;  %v993_v15 = vpop.f32.mrf.mxu0 }
 0x130   :  { %v1045_v26 = vpop.f32.mrf.mxu1 }
 0x131   :  { %v2270_v31 = vadd.f32 %v905_v4, %v842_v23  ;;  %956 = vmatmul.bf16.gmra.mxu3 %v228_v17 }
 0x133   :  { %1416 = vmatmul.msk.bf16.gmra.mxu2 %vm682_vm0, %v231_v20  ;;  %1084 = vmatmul.bf16.gmra.mxu1 %v230_v21  ;;  %v795_v20 = vadd.f32 %v2065_v55, %v731_v5 }
 0x134   :  { %v917_v22 = vpop.f32.mrf.mxu3 }
 0x135   :  { %v918_v42 = vadd.f32 %v917_v22, %v854_v32  ;;  %v859_v51 = vadd.f32 %v2156_v14, %v795_v20  ;;  %v797_v32 = vadd.f32 %v2091_v7, %v733_v13  ;;  %v158_v14 = vld [vmem:[%s2438_s0 + $0x478] sm:$0xff]  ;;  %v168_v7 = vld [vmem:[%s2438_s0 + $0x4c8] sm:$0xf] }
 0x136   :  { %v1109_v44 = vpop.f32.mrf.mxu2  ;;  %v242_v46 = vpack.c.bf16 %v165_v33, %v158_v14 }
 0x137   :  { %v982_v10 = vadd.f32 %v2194_v60, %v918_v42  ;;  %v996_v16 = vpop.f32.mrf.mxu0  ;;  %v861_v39 = vadd.f32 %v2168_v34, %v797_v32  ;;  %v160_v42 = vld [vmem:[%s2438_s0 + $0x488] sm:$0xff] }
 0x138   :  { %v1047_v45 = vpop.f32.mrf.mxu1 }
 0x139   :  { %v1046_v47 = vadd.f32 %v1045_v26, %v982_v10 }
 0x13b   :  { %v1110_v60 = vadd.f32 %v1109_v44, %v1046_v47  ;;  %v167_v44 = vld [vmem:[%s2438_s0 + $0x4c0] sm:$0xf]  ;;  %v245_v47 = vpack.c.bf16 %v168_v7, %v161_v2 }
 0x13c   :  { %v919_v62 = vpop.f32.mrf.mxu3  ;;  %v244_v28 = vpack.c.bf16 %v167_v44, %v160_v42 }
 0x13d   :  { %1165 = vst.msk [vmem:[%s2439_s3] sm:$0xff] %vm1164_vm1, %v1110_v60  ;;  %v920_v52 = vadd.f32 %v919_v62, %v856_v53 }
 0x13e   :  { %v1111_v6 = vpop.f32.mrf.mxu2 }
 0x13f   :  { %v984_v4 = vadd.f32 %v2203_v12, %v920_v52  ;;  %v998_v60 = vpop.f32.mrf.mxu0 }
 0x140   :  { %v1050_v17 = vpop.f32.mrf.mxu1 }
 0x141   :  { %v1048_v21 = vadd.f32 %v1047_v45, %v984_v4  ;;  %961 = vmatmul.bf16.gmra.mxu3 %v235_v8 }
 0x143   :  { %1417 = vmatmul.msk.bf16.gmra.mxu2 %vm682_vm0, %v238_v9  ;;  %1089 = vmatmul.bf16.gmra.mxu1 %v237_v11  ;;  %v1112_v23 = vadd.f32 %v1111_v6, %v1048_v21 }
 0x144   :  { %v922_v26 = vpop.f32.mrf.mxu3 }
 0x145   :  { %1166 = vst.msk [vmem:[%s2439_s3 + $0x8] sm:$0xff] %vm1164_vm1, %v1112_v23  ;;  %v923_v12 = vadd.f32 %v922_v26, %v859_v51 }
 0x146   :  { %v1114_v19 = vpop.f32.mrf.mxu2 }
 0x147   :  { %v987_v55 = vadd.f32 %v2229_v41, %v923_v12  ;;  %v1001_v9 = vpop.f32.mrf.mxu0 }
 0x148   :  { %v1052_v30 = vpop.f32.mrf.mxu1 }
 0x149   :  { %v1051_v22 = vadd.f32 %v1050_v17, %v987_v55 }
 0x14b   :  { %v1115_v41 = vadd.f32 %v1114_v19, %v1051_v22 }
 0x14c   :  { %v924_v10 = vpop.f32.mrf.mxu3 }
 0x14d   :  { %1167 = vst.msk [vmem:[%s2439_s3 + $0x10] sm:$0xff] %vm1164_vm1, %v1115_v41  ;;  %v925_v34 = vadd.f32 %v924_v10, %v861_v39 }
 0x14e   :  { %v1116_v45 = vpop.f32.mrf.mxu2 }
 0x14f   :  { %v989_v50 = vadd.f32 %v2249_v0, %v925_v34  ;;  %v1003_v26 = vpop.f32.mrf.mxu0 }
 0x150   :  { %v1055_v37 = vpop.f32.mrf.mxu1 }
 0x151   :  { %v1053_v53 = vadd.f32 %v1052_v30, %v989_v50  ;;  %966 = vmatmul.bf16.gmra.mxu3 %v242_v46 }
 0x153   :  { %1418 = vmatmul.msk.bf16.gmra.mxu2 %vm682_vm0, %v245_v47  ;;  %1094 = vmatmul.bf16.gmra.mxu1 %v244_v28  ;;  %v1117_v36 = vadd.f32 %v1116_v45, %v1053_v53 }
 0x154   :  { %v927_v56 = vpop.f32.mrf.mxu3 }
 0x155   :  { %1168 = vst.msk [vmem:[%s2439_s3 + $0x18] sm:$0xff] %vm1164_vm1, %v1117_v36  ;;  %v928_v57 = vadd.f32 %v927_v56, %v1964_v40 }
 0x156   :  { %v1119_v62 = vpop.f32.mrf.mxu2 }
 0x157   :  { %v992_v5 = vadd.f32 %v2274_v38, %v928_v57  ;;  %v1006_v14 = vpop.f32.mrf.mxu0 }
 0x158   :  { %v1057_v0 = vpop.f32.mrf.mxu1 }
 0x159   :  { %v1056_v52 = vadd.f32 %v1055_v37, %v992_v5 }
 0x15b   :  { %v1120_v6 = vadd.f32 %v1119_v62, %v1056_v52 }
 0x15c   :  { %v929_v8 = vpop.f32.mrf.mxu3 }
 0x15d   :  { %1169 = vst.msk [vmem:[%s2439_s3 + $0x20] sm:$0xff] %vm1164_vm1, %v1120_v6  ;;  %v930_v11 = vadd.f32 %v929_v8, %v1993_v58 }
 0x15e   :  { %v1121_v4 = vpop.f32.mrf.mxu2 }
 0x15f   :  { %v994_v17 = vadd.f32 %v993_v15, %v930_v11  ;;  %v1008_v44 = vpop.f32.mrf.mxu0 }
 0x160   :  { %v1060_v20 = vpop.f32.mrf.mxu1 }
 0x161   :  { %v1058_v21 = vadd.f32 %v1057_v0, %v994_v17 }
 0x163   :  { %v1122_v40 = vadd.f32 %v1121_v4, %v1058_v21 }
 0x164   :  { %v932_v51 = vpop.f32.mrf.mxu3 }
 0x165   :  { %1170 = vst.msk [vmem:[%s2439_s3 + $0x28] sm:$0xff] %vm1164_vm1, %v1122_v40  ;;  %v933_v38 = vadd.f32 %v932_v51, %v1999_v3 }
 0x166   :  { %v1124_v23 = vpop.f32.mrf.mxu2 }
 0x167   :  { %v997_v13 = vadd.f32 %v996_v16, %v933_v38  ;;  %v1011_v37 = vpop.f32.mrf.mxu0 }
 0x168   :  { %v1062_v12 = vpop.f32.mrf.mxu1 }
 0x169   :  { %v1061_v19 = vadd.f32 %v1060_v20, %v997_v13 }
 0x16b   :  { %v1125_v55 = vadd.f32 %v1124_v23, %v1061_v19 }
 0x16c   :  { %v934_v58 = vpop.f32.mrf.mxu3 }
 0x16d   :  { %1171 = vst.msk [vmem:[%s2439_s3 + $0x30] sm:$0xff] %vm1164_vm1, %v1125_v55  ;;  %v935_v15 = vadd.f32 %v934_v58, %v2026_v24 }
 0x16e   :  { %v1126_v30 = vpop.f32.mrf.mxu2 }
 0x16f   :  { %v999_v32 = vadd.f32 %v998_v60, %v935_v15  ;;  %v1013_v52 = vpop.f32.mrf.mxu0 }
 0x170   :  { %v1065_v22 = vpop.f32.mrf.mxu1 }
 0x171   :  { %v1063_v33 = vadd.f32 %v1062_v12, %v999_v32 }
 0x173   :  { %v1127_v3 = vadd.f32 %v1126_v30, %v1063_v33 }
 0x174   :  { %v937_v2 = vpop.f32.mrf.mxu3 }
 0x175   :  { %1172 = vst.msk [vmem:[%s2439_s3 + $0x38] sm:$0xff] %vm1164_vm1, %v1127_v3  ;;  %v938_v16 = vadd.f32 %v937_v2, %v2032_v29 }
 0x176   :  { %v1129_v39 = vpop.f32.mrf.mxu2 }
 0x177   :  { %v1002_v41 = vadd.f32 %v1001_v9, %v938_v16  ;;  %v1016_v40 = vpop.f32.mrf.mxu0 }
 0x178   :  { %v1067_v7 = vpop.f32.mrf.mxu1 }
 0x179   :  { %v1066_v42 = vadd.f32 %v1065_v22, %v1002_v41 }
 0x17b   :  { %v1130_v24 = vadd.f32 %v1129_v39, %v1066_v42 }
 0x17c   :  { %v939_v10 = vpop.f32.mrf.mxu3 }
 0x17d   :  { %1173 = vst.msk [vmem:[%s2439_s3 + $0x40] sm:$0xff] %vm1164_vm1, %v1130_v24  ;;  %v940_v34 = vadd.f32 %v939_v10, %v2061_v49 }
 0x17e   :  { %v1131_v45 = vpop.f32.mrf.mxu2 }
 0x17f   :  { %v1004_v46 = vadd.f32 %v1003_v26, %v940_v34  ;;  %v1018_v55 = vpop.f32.mrf.mxu0 }
 0x180   :  { %v1070_v47 = vpop.f32.mrf.mxu1 }
 0x181   :  { %v1068_v28 = vadd.f32 %v1067_v7, %v1004_v46 }
 0x183   :  { %v1132_v50 = vadd.f32 %v1131_v45, %v1068_v28 }
 0x184   :  { %v942_v29 = vpop.f32.mrf.mxu3 }
 0x185   :  { %1174 = vst.msk [vmem:[%s2439_s3 + $0x48] sm:$0xff] %vm1164_vm1, %v1132_v50  ;;  %v943_v53 = vadd.f32 %v942_v29, %v2067_v59 }
 0x186   :  { %v1134_v60 = vpop.f32.mrf.mxu2 }
 0x187   :  { %v1007_v36 = vadd.f32 %v1006_v14, %v943_v53  ;;  %v1021_v3 = vpop.f32.mrf.mxu0 }
 0x188   :  { %v1072_v56 = vpop.f32.mrf.mxu1 }
 0x189   :  { %v1071_v57 = vadd.f32 %v1070_v47, %v1007_v36 }
 0x18b   :  { %v1135_v62 = vadd.f32 %v1134_v60, %v1071_v57 }
 0x18c   :  { %v944_v49 = vpop.f32.mrf.mxu3 }
 0x18d   :  { %1175 = vst.msk [vmem:[%s2439_s3 + $0x50] sm:$0xff] %vm1164_vm1, %v1135_v62  ;;  %v945_v5 = vadd.f32 %v944_v49, %v2096_v18 }
 0x18e   :  { %v1136_v0 = vpop.f32.mrf.mxu2 }
 0x18f   :  { %v1009_v6 = vadd.f32 %v1008_v44, %v945_v5  ;;  %v1023_v10 = vpop.f32.mrf.mxu0 }
 0x190   :  { %v1075_v8 = vpop.f32.mrf.mxu1 }
 0x191   :  { %v1073_v9 = vadd.f32 %v1072_v56, %v1009_v6 }
 0x193   :  { %v1137_v11 = vadd.f32 %v1136_v0, %v1073_v9 }
 0x194   :  { %v947_v59 = vpop.f32.mrf.mxu3 }
 0x195   :  { %1176 = vst.msk [vmem:[%s2439_s3 + $0x58] sm:$0xff] %vm1164_vm1, %v1137_v11  ;;  %v948_v4 = vadd.f32 %v947_v59, %v2100_v27 }
 0x196   :  { %v1139_v17 = vpop.f32.mrf.mxu2 }
 0x197   :  { %v1012_v20 = vadd.f32 %v1011_v37, %v948_v4  ;;  %v1026_v37 = vpop.f32.mrf.mxu0 }
 0x198   :  { %v1077_v21 = vpop.f32.mrf.mxu1 }
 0x199   :  { %v1076_v51 = vadd.f32 %v1075_v8, %v1012_v20 }
 0x19b   :  { %v1140_v18 = vadd.f32 %v1139_v17, %v1076_v51 }
 0x19c   :  { %v949_v38 = vpop.f32.mrf.mxu3 }
 0x19d   :  { %1177 = vst.msk [vmem:[%s2439_s3 + $0x60] sm:$0xff] %vm1164_vm1, %v1140_v18  ;;  %v950_v23 = vadd.f32 %v949_v38, %v2129_v48 }
 0x19e   :  { %v1141_v26 = vpop.f32.mrf.mxu2 }
 0x19f   :  { %v1014_v13 = vadd.f32 %v1013_v52, %v950_v23  ;;  %v1028_v5 = vpop.f32.mrf.mxu0 }
 0x1a0   :  { %v1080_v12 = vpop.f32.mrf.mxu1 }
 0x1a1   :  { %v1078_v19 = vadd.f32 %v1077_v21, %v1014_v13 }
 0x1a3   :  { %v1142_v27 = vadd.f32 %v1141_v26, %v1078_v19 }
 0x1a4   :  { %v952_v58 = vpop.f32.mrf.mxu3 }
 0x1a5   :  { %1178 = vst.msk [vmem:[%s2439_s3 + $0x68] sm:$0xff] %vm1164_vm1, %v1142_v27  ;;  %v953_v15 = vadd.f32 %v952_v58, %v2135_v61 }
 0x1a6   :  { %v1144_v30 = vpop.f32.mrf.mxu2 }
 0x1a7   :  { %v1017_v32 = vadd.f32 %v1016_v40, %v953_v15  ;;  %v1031_v4 = vpop.f32.mrf.mxu0 }
 0x1a8   :  { %v1082_v22 = vpop.f32.mrf.mxu1 }
 0x1a9   :  { %v1081_v14 = vadd.f32 %v1080_v12, %v1017_v32 }
 0x1ab   :  { %v1145_v33 = vadd.f32 %v1144_v30, %v1081_v14 }
 0x1ac   :  { %v954_v48 = vpop.f32.mrf.mxu3 }
 0x1ad   :  { %1179 = vst.msk [vmem:[%s2439_s3 + $0x70] sm:$0xff] %vm1164_vm1, %v1145_v33  ;;  %v955_v2 = vadd.f32 %v954_v48, %v2164_v25 }
 0x1ae   :  { %v1146_v16 = vpop.f32.mrf.mxu2 }
 0x1af   :  { %v1019_v39 = vadd.f32 %v1018_v55, %v955_v2  ;;  %v1033_v23 = vpop.f32.mrf.mxu0 }
 0x1b0   :  { %v1085_v41 = vpop.f32.mrf.mxu1 }
 0x1b1   :  { %v1083_v7 = vadd.f32 %v1082_v22, %v1019_v39 }
 0x1b3   :  { %v1147_v42 = vadd.f32 %v1146_v16, %v1083_v7 }
 0x1b4   :  { %v957_v61 = vpop.f32.mrf.mxu3 }
 0x1b5   :  { %1180 = vst.msk [vmem:[%s2439_s3 + $0x78] sm:$0xff] %vm1164_vm1, %v1147_v42  ;;  %v958_v44 = vadd.f32 %v957_v61, %v2170_v35 }
 0x1b6   :  { %v1149_v24 = vpop.f32.mrf.mxu2 }
 0x1b7   :  { %v1022_v34 = vadd.f32 %v1021_v3, %v958_v44 }
 0x1b8   :  { %v1087_v45 = vpop.f32.mrf.mxu1 }
 0x1b9   :  { %v1086_v46 = vadd.f32 %v1085_v41, %v1022_v34 }
 0x1bb   :  { %v1150_v47 = vadd.f32 %v1149_v24, %v1086_v46 }
 0x1bc   :  { %v959_v25 = vpop.f32.mrf.mxu3 }
 0x1bd   :  { %1181 = vst.msk [vmem:[%s2439_s3 + $0x80] sm:$0xff] %vm1164_vm1, %v1150_v47  ;;  %v960_v28 = vadd.f32 %v959_v25, %v2199_v63 }
 0x1be   :  { %v1151_v50 = vpop.f32.mrf.mxu2 }
 0x1bf   :  { %v1024_v29 = vadd.f32 %v1023_v10, %v960_v28 }
 0x1c0   :  { %v1090_v60 = vpop.f32.mrf.mxu1 }
 0x1c1   :  { %v1088_v53 = vadd.f32 %v1087_v45, %v1024_v29 }
 0x1c3   :  { %v1152_v35 = vadd.f32 %v1151_v50, %v1088_v53 }
 0x1c4   :  { %v962_v36 = vpop.f32.mrf.mxu3 }
 0x1c5   :  { %1182 = vst.msk [vmem:[%s2439_s3 + $0x88] sm:$0xff] %vm1164_vm1, %v1152_v35  ;;  %v963_v56 = vadd.f32 %v962_v36, %v2205_v1 }
 0x1c6   :  { %v1154_v57 = vpop.f32.mrf.mxu2 }
 0x1c7   :  { %v1027_v62 = vadd.f32 %v1026_v37, %v963_v56 }
 0x1c8   :  { %v1092_v63 = vpop.f32.mrf.mxu1 }
 0x1c9   :  { %v1091_v49 = vadd.f32 %v1090_v60, %v1027_v62 }
 0x1cb   :  { %v1155_v0 = vadd.f32 %v1154_v57, %v1091_v49 }
 0x1cc   :  { %v964_v52 = vpop.f32.mrf.mxu3 }
 0x1cd   :  { %1183 = vst.msk [vmem:[%s2439_s3 + $0x90] sm:$0xff] %vm1164_vm1, %v1155_v0  ;;  %v965_v6 = vadd.f32 %v964_v52, %v2234_v43 }
 0x1ce   :  { %v1156_v8 = vpop.f32.mrf.mxu2 }
 0x1cf   :  { %v1029_v9 = vadd.f32 %v1028_v5, %v965_v6 }
 0x1d0   :  { %v1095_v20 = vpop.f32.mrf.mxu1 }
 0x1d1   :  { %v1093_v11 = vadd.f32 %v1092_v63, %v1029_v9 }
 0x1d3   :  { %v1157_v59 = vadd.f32 %v1156_v8, %v1093_v11 }
 0x1d4   :  { %v967_v1 = vpop.f32.mrf.mxu3 }
 0x1d5   :  { %1184 = vst.msk [vmem:[%s2439_s3 + $0x98] sm:$0xff] %vm1164_vm1, %v1157_v59  ;;  %v968_v17 = vadd.f32 %v967_v1, %v2238_v54 }
 0x1d6   :  { %v1159_v40 = vpop.f32.mrf.mxu2 }
 0x1d7   :  { %v1032_v21 = vadd.f32 %v1031_v4, %v968_v17 }
 0x1d8   :  { %v1097_v13 = vpop.f32.mrf.mxu1 }
 0x1d9   :  { %v1096_v51 = vadd.f32 %v1095_v20, %v1032_v21 }
 0x1db   :  { %v1160_v18 = vadd.f32 %v1159_v40, %v1096_v51 }
 0x1dc   :  { %v969_v38 = vpop.f32.mrf.mxu3 }
 0x1dd   :  { %1185 = vst.msk [vmem:[%s2439_s3 + $0xa0] sm:$0xff] %vm1164_vm1, %v1160_v18  ;;  %v970_v43 = vadd.f32 %v969_v38, %v2270_v31 }
 0x1de   :  { %v1161_v19 = vpop.f32.mrf.mxu2 }
 0x1df   :  { %v1034_v26 = vadd.f32 %v1033_v23, %v970_v43 }
 0x1e1   :  { %v1098_v12 = vadd.f32 %v1097_v13, %v1034_v26 }
 0x1e3   :  { %v1162_v54 = vadd.f32 %v1161_v19, %v1098_v12 }
 0x1e5   :  { %1187 = vst.msk [vmem:[%s2439_s3 + $0xa8] sm:$0xf] %vm1186_vm2, %v1162_v54 }

</bundles_post_ra>
